<compile_context>
chip_gen: v7x
topology: tpu7x:2x2x1
jax: 0.10.0
libtpu: 0.0.40
codegen_flags: <defaults>
</compile_context>

<pallas_src>
import functools

import jax
import jax.numpy as jnp
from jax.experimental import pallas as pl
from jax.experimental.pallas import tpu as pltpu


# ----------------------------------------------------------------------------
# Pallas kernels
# ----------------------------------------------------------------------------
def _dense_kernel(x_ref, w_ref, b_ref, o_ref, acc_ref, *, act):
    """o = act(x @ w + b); tiled over (M, K); f32 accumulator in VMEM."""
    @pl.when(pl.program_id(1) == 0)
    def _():
        acc_ref[...] = jnp.zeros_like(acc_ref)

    acc_ref[...] += jnp.dot(x_ref[...], w_ref[...],
                            preferred_element_type=jnp.float32)

    @pl.when(pl.program_id(1) == pl.num_programs(1) - 1)
    def _():
        y = acc_ref[...] + b_ref[...]
        if act == "relu":
            y = jnp.maximum(y, 0.0)
        elif act == "gelu":
            y = jax.nn.gelu(y, approximate=True)
        o_ref[...] = y.astype(o_ref.dtype)


def _dense_ln_kernel(x_ref, w_ref, b_ref, r_ref, g_ref, bt_ref, o_ref,
                     acc_ref, *, eps):
    """o = LayerNorm(x @ w + b + residual); LN fused as matmul epilogue."""
    @pl.when(pl.program_id(1) == 0)
    def _():
        acc_ref[...] = jnp.zeros_like(acc_ref)

    acc_ref[...] += jnp.dot(x_ref[...], w_ref[...],
                            preferred_element_type=jnp.float32)

    @pl.when(pl.program_id(1) == pl.num_programs(1) - 1)
    def _():
        y = acc_ref[...] + b_ref[...] + r_ref[...].astype(jnp.float32)
        mean = jnp.mean(y, axis=-1, keepdims=True)
        yc = y - mean
        var = jnp.mean(yc * yc, axis=-1, keepdims=True)
        inv = jax.lax.rsqrt(var + eps)
        o_ref[...] = (yc * inv * g_ref[...] + bt_ref[...]).astype(o_ref.dtype)


def _ln_kernel(x_ref, g_ref, b_ref, o_ref, *, eps):
    """o = LayerNorm(x) over the last dim (embedding LN); tiled over M."""
    x = x_ref[...].astype(jnp.float32)
    mean = jnp.mean(x, axis=-1, keepdims=True)
    xc = x - mean
    var = jnp.mean(xc * xc, axis=-1, keepdims=True)
    inv = jax.lax.rsqrt(var + eps)
    o_ref[...] = (xc * inv * g_ref[...] + b_ref[...]).astype(o_ref.dtype)


def _attn_kernel(qkv_ref, m_ref, o_ref, *, heads, scale):
    """All heads of one batch element: softmax(q k^T * scale + mask) v.

    qkv_ref: [1, S, 3D] (bf16, heads packed as contiguous Dh column slices)
    m_ref  : [1, 1, S]  (f32 additive mask, 0 / -1e9)
    o_ref  : [1, S, D]  (bf16)
    """
    S = qkv_ref.shape[1]
    D = qkv_ref.shape[2] // 3
    dh = D // heads
    qkv = qkv_ref[0]                      # [S, 3D] bf16
    mask = m_ref[0]                       # [1, S]  f32

    for h in range(heads):                # static unroll; stays in one launch
        q_h = qkv[:, h * dh:(h + 1) * dh]
        k_h = qkv[:, D + h * dh:D + (h + 1) * dh]
        v_h = qkv[:, 2 * D + h * dh:2 * D + (h + 1) * dh]
        # q @ k^T via dot_general contracting the head dim (no explicit .T)
        s = jax.lax.dot_general(q_h, k_h, (((1,), (1,)), ((), ())),
                                preferred_element_type=jnp.float32)
        s = s * scale + mask              # [S,S] + [1,S] broadcast over keys
        s = s - jnp.max(s, axis=-1, keepdims=True)
        p = jnp.exp(s)
        p = p * pl.reciprocal(jnp.sum(p, axis=-1, keepdims=True), approx=True)
        ctx = jnp.dot(p.astype(qkv.dtype), v_h,
                      preferred_element_type=jnp.float32)
        o_ref[0, :, h * dh:(h + 1) * dh] = ctx.astype(o_ref.dtype)


def _cls_head_kernel(x_ref, w1_ref, b1_ref, w2_ref, b2_ref, o_ref):
    """Fused classifier head: Linear(D,H) -> ReLU -> Linear(H,2)."""
    h = jnp.dot(x_ref[...].astype(jnp.float32), w1_ref[...],
                preferred_element_type=jnp.float32)
    h = jnp.maximum(h + b1_ref[...], 0.0)
    y = jnp.dot(h, w2_ref[...], preferred_element_type=jnp.float32)
    o_ref[...] = y + b2_ref[...]


# ----------------------------------------------------------------------------
# Pallas-call wrappers
# ----------------------------------------------------------------------------
def _pick(tile, dim):
    return tile if dim % tile == 0 else dim


def dense_act(x, w, b, act="none", tm=128, tk=256):
    """act(x @ w + b); x:[M,K] bf16, w:[K,N] bf16, b:[N] f32 -> [M,N] bf16."""
    M, K = x.shape
    _, N = w.shape
    tm, tk = _pick(tm, M), _pick(tk, K)
    return pl.pallas_call(
        functools.partial(_dense_kernel, act=act),
        out_shape=jax.ShapeDtypeStruct((M, N), jnp.bfloat16),
        grid=(M // tm, K // tk),
        in_specs=[
            pl.BlockSpec((tm, tk), lambda i, k: (i, k)),
            pl.BlockSpec((tk, N), lambda i, k: (k, 0)),
            pl.BlockSpec((1, N), lambda i, k: (0, 0)),
        ],
        out_specs=pl.BlockSpec((tm, N), lambda i, k: (i, 0)),
        scratch_shapes=[pltpu.VMEM((tm, N), jnp.float32)],
        compiler_params=pltpu.CompilerParams(
            dimension_semantics=("parallel", "arbitrary")),
    )(x, w, b.reshape(1, N))


def dense_residual_ln(x, w, b, residual, gamma, beta, eps, tm=128, tk=256):
    """LayerNorm(x @ w + b + residual); fused matmul + residual + LN."""
    M, K = x.shape
    _, N = w.shape
    tm, tk = _pick(tm, M), _pick(tk, K)
    return pl.pallas_call(
        functools.partial(_dense_ln_kernel, eps=eps),
        out_shape=jax.ShapeDtypeStruct((M, N), jnp.bfloat16),
        grid=(M // tm, K // tk),
        in_specs=[
            pl.BlockSpec((tm, tk), lambda i, k: (i, k)),
            pl.BlockSpec((tk, N), lambda i, k: (k, 0)),
            pl.BlockSpec((1, N), lambda i, k: (0, 0)),
            pl.BlockSpec((tm, N), lambda i, k: (i, 0)),
            pl.BlockSpec((1, N), lambda i, k: (0, 0)),
            pl.BlockSpec((1, N), lambda i, k: (0, 0)),
        ],
        out_specs=pl.BlockSpec((tm, N), lambda i, k: (i, 0)),
        scratch_shapes=[pltpu.VMEM((tm, N), jnp.float32)],
        compiler_params=pltpu.CompilerParams(
            dimension_semantics=("parallel", "arbitrary")),
    )(x, w, b.reshape(1, N), residual, gamma.reshape(1, N), beta.reshape(1, N))


def layernorm(x, gamma, beta, eps, tm=128):
    """LayerNorm over last dim (embedding LN); x:[M,D] f32 -> [M,D] bf16."""
    M, D = x.shape
    tm = _pick(tm, M)
    return pl.pallas_call(
        functools.partial(_ln_kernel, eps=eps),
        out_shape=jax.ShapeDtypeStruct((M, D), jnp.bfloat16),
        grid=(M // tm,),
        in_specs=[
            pl.BlockSpec((tm, D), lambda i: (i, 0)),
            pl.BlockSpec((1, D), lambda i: (0, 0)),
            pl.BlockSpec((1, D), lambda i: (0, 0)),
        ],
        out_specs=pl.BlockSpec((tm, D), lambda i: (i, 0)),
        compiler_params=pltpu.CompilerParams(
            dimension_semantics=("parallel",)),
    )(x, gamma.reshape(1, D), beta.reshape(1, D))


def multihead_attention(qkv, add_mask, heads, scale):
    """qkv: [B, S, 3D] bf16 (fused Q|K|V); add_mask: [B,1,S] f32 -> [B,S,D]."""
    B, S, D3 = qkv.shape
    D = D3 // 3
    return pl.pallas_call(
        functools.partial(_attn_kernel, heads=heads, scale=scale),
        out_shape=jax.ShapeDtypeStruct((B, S, D), jnp.bfloat16),
        grid=(B,),
        in_specs=[
            pl.BlockSpec((1, S, D3), lambda b: (b, 0, 0)),
            pl.BlockSpec((1, 1, S), lambda b: (b, 0, 0)),
        ],
        out_specs=pl.BlockSpec((1, S, D), lambda b: (b, 0, 0)),
        compiler_params=pltpu.CompilerParams(
            dimension_semantics=("parallel",)),
    )(qkv, add_mask)


def classifier_head(x, w1, b1, w2, b2):
    """Fused Linear(D,H) -> ReLU -> Linear(H,L); x:[B,D] -> [B,L] f32."""
    B, D = x.shape
    H1 = w1.shape[1]
    L = w2.shape[1]
    return pl.pallas_call(
        _cls_head_kernel,
        out_shape=jax.ShapeDtypeStruct((B, L), jnp.float32),
        grid=(1,),
        in_specs=[
            pl.BlockSpec((B, D), lambda i: (0, 0)),
            pl.BlockSpec((D, H1), lambda i: (0, 0)),
            pl.BlockSpec((1, H1), lambda i: (0, 0)),
            pl.BlockSpec((H1, L), lambda i: (0, 0)),
            pl.BlockSpec((1, L), lambda i: (0, 0)),
        ],
        out_specs=pl.BlockSpec((B, L), lambda i: (0, 0)),
    )(x, w1, b1.reshape(1, H1), w2, b2.reshape(1, L))


# ----------------------------------------------------------------------------
# Model definition (synthetic small BERT + classifier head)
# ----------------------------------------------------------------------------
CFG = dict(vocab=100, max_pos=128, type_vocab=2, D=128, Hn=4, Dh=32,
           inter=512, layers=2, eps=1e-12, cls_hidden=50, n_labels=2)


def init_params(key):
    p = {}
    std = 0.02

    def nrm(shape, dtype=jnp.float32):
        nonlocal key
        key, sub = jax.random.split(key)
        return (std * jax.random.normal(sub, shape)).astype(dtype)

    D, I = CFG["D"], CFG["inter"]
    p["word_emb"] = nrm((CFG["vocab"], D))
    p["pos_emb"] = nrm((CFG["max_pos"], D))
    p["type_emb"] = nrm((CFG["type_vocab"], D))
    p["emb_ln_g"] = jnp.ones((D,), jnp.float32)
    p["emb_ln_b"] = jnp.zeros((D,), jnp.float32)

    p["layers"] = []
    for _ in range(CFG["layers"]):
        lyr = dict(
            # fused QKV projection: [D, 3D] bf16 weights for the MXU
            wqkv=nrm((D, 3 * D), jnp.bfloat16),
            bqkv=jnp.zeros((3 * D,), jnp.float32),
            wo=nrm((D, D), jnp.bfloat16), bo=jnp.zeros((D,), jnp.float32),
            ln1_g=jnp.ones((D,), jnp.float32), ln1_b=jnp.zeros((D,), jnp.float32),
            w_ff1=nrm((D, I), jnp.bfloat16), b_ff1=jnp.zeros((I,), jnp.float32),
            w_ff2=nrm((I, D), jnp.bfloat16), b_ff2=jnp.zeros((D,), jnp.float32),
            ln2_g=jnp.ones((D,), jnp.float32), ln2_b=jnp.zeros((D,), jnp.float32),
        )
        p["layers"].append(lyr)

    # classifier: Linear(D, 50) -> ReLU -> Linear(50, 2)  (tiny; keep f32)
    p["cls_w1"] = nrm((D, CFG["cls_hidden"]))
    p["cls_b1"] = jnp.zeros((CFG["cls_hidden"],), jnp.float32)
    p["cls_w2"] = nrm((CFG["cls_hidden"], CFG["n_labels"]))
    p["cls_b2"] = jnp.zeros((CFG["n_labels"],), jnp.float32)
    return p


def bert_classifier_forward(params, input_ids, attention_mask):
    """input_ids: [B, S] int32; attention_mask: [B, S] {0,1} -> logits [B, 2]."""
    B, S = input_ids.shape
    D, Hn, Dh = CFG["D"], CFG["Hn"], CFG["Dh"]
    eps = CFG["eps"]
    M = B * S

    # --- embeddings (gather is glue; LN is a Pallas kernel) ---
    word = jnp.take(params["word_emb"], input_ids, axis=0)            # [B,S,D]
    pos = params["pos_emb"][:S][None, :, :]                           # [1,S,D]
    typ = params["type_emb"][0][None, None, :]                        # [1,1,D]
    emb = (word + pos + typ).reshape(M, D)                            # f32
    h = layernorm(emb, params["emb_ln_g"], params["emb_ln_b"], eps)   # [M,D] bf16

    # additive attention mask: 0 where attended, -1e9 where masked
    add_mask = ((1.0 - attention_mask.astype(jnp.float32)) * -1e9)[:, None, :]
    scale = 1.0 / float(Dh) ** 0.5

    for lyr in params["layers"]:
        x = h                                                          # [M, D]
        # fused QKV projection (one Pallas matmul, N = 3D)
        qkv = dense_act(x, lyr["wqkv"], lyr["bqkv"])                   # [M, 3D]
        # all heads per batch element; no head-split transposes in HBM
        ctx = multihead_attention(qkv.reshape(B, S, 3 * D), add_mask,
                                  Hn, scale)                           # [B,S,D]
        # output projection + residual + LayerNorm fused
        h1 = dense_residual_ln(ctx.reshape(M, D), lyr["wo"], lyr["bo"],
                               x, lyr["ln1_g"], lyr["ln1_b"], eps)
        # feed-forward: GELU fused into ff1; residual+LN fused into ff2
        ff = dense_act(h1, lyr["w_ff1"], lyr["b_ff1"], act="gelu")     # [M, I]
        h = dense_residual_ln(ff, lyr["w_ff2"], lyr["b_ff2"],
                              h1, lyr["ln2_g"], lyr["ln2_b"], eps)

    cls_tok = h.reshape(B, S, D)[:, 0, :]                              # [B, D]

    # classifier head: Linear -> ReLU -> Linear in ONE Pallas kernel
    logits = classifier_head(cls_tok, params["cls_w1"], params["cls_b1"],
                             params["cls_w2"], params["cls_b2"])
    return logits                                                      # [B, 2]


if __name__ == "__main__":
    key = jax.random.PRNGKey(0)
    pkey, ikey = jax.random.split(key)
    params = init_params(pkey)

    B, S = 4, 128
    input_ids = jax.random.randint(ikey, (B, S), 0, CFG["vocab"], dtype=jnp.int32)
    lengths = jnp.array([S, S - 28, S // 2, 5], dtype=jnp.int32)
    attention_mask = (jnp.arange(S)[None, :] < lengths[:, None]).astype(jnp.int32)

    logits = jax.jit(bert_classifier_forward)(params, input_ids, attention_mask)
    logits = jax.block_until_ready(logits)
    assert logits.shape == (B, CFG["n_labels"])
    assert bool(jnp.all(jnp.isfinite(logits)))
    print("KERNEL_OK")
</pallas_src>

<mosaic_0001>
module attributes {stable_mosaic.version = 11 : i64} {
  func.func @_ln_kernel(%arg0: i32, %arg1: memref<128x128xf32, #tpu.memory_space<vmem>>, %arg2: memref<1x128xf32, #tpu.memory_space<vmem>>, %arg3: memref<1x128xf32, #tpu.memory_space<vmem>>, %arg4: memref<128x128xbf16, #tpu.memory_space<vmem>>) attributes {dimension_semantics = [#tpu.dimension_semantics<parallel>], iteration_bounds = array<i64: 4>, scalar_prefetch = 0 : i64, scratch_operands = 0 : i64, tpu.core_type = #tpu.core_type<tc>, window_params = [{transform_indices = @transform_0, window_bounds = array<i64: 128, 128>}, {pipeline_mode = #tpu.pipeline_mode<synchronous>, transform_indices = @transform_1, window_bounds = array<i64: 1, 128>}, {pipeline_mode = #tpu.pipeline_mode<synchronous>, transform_indices = @transform_2, window_bounds = array<i64: 1, 128>}, {transform_indices = @transform_3, window_bounds = array<i64: 128, 128>}]} {
    %c0 = arith.constant 0 : index
    %c0_0 = arith.constant 0 : index
    %0 = vector.load %arg1[%c0, %c0_0] : memref<128x128xf32, #tpu.memory_space<vmem>>, vector<128x128xf32>
    %cst = arith.constant dense<0.000000e+00> : vector<128xf32>
    %1 = vector.multi_reduction <add>, %0, %cst [1] : vector<128x128xf32> to vector<128xf32>
    %2 = vector.shape_cast %1 : vector<128xf32> to vector<128x1xf32>
    %cst_1 = arith.constant 1.280000e+02 : f32
    %3 = vector.broadcast %cst_1 : f32 to vector<128x1xf32>
    %4 = arith.divf %2, %3 : vector<128x1xf32>
    %5 = vector.broadcast %4 : vector<128x1xf32> to vector<128x128xf32>
    %6 = arith.subf %0, %5 : vector<128x128xf32>
    %7 = arith.mulf %6, %6 : vector<128x128xf32>
    %cst_2 = arith.constant dense<0.000000e+00> : vector<128xf32>
    %8 = vector.multi_reduction <add>, %7, %cst_2 [1] : vector<128x128xf32> to vector<128xf32>
    %9 = vector.shape_cast %8 : vector<128xf32> to vector<128x1xf32>
    %cst_3 = arith.constant 1.280000e+02 : f32
    %10 = vector.broadcast %cst_3 : f32 to vector<128x1xf32>
    %11 = arith.divf %9, %10 : vector<128x1xf32>
    %cst_4 = arith.constant 9.99999996E-13 : f32
    %12 = vector.broadcast %cst_4 : f32 to vector<128x1xf32>
    %13 = arith.addf %11, %12 : vector<128x1xf32>
    %14 = math.rsqrt %13 : vector<128x1xf32>
    %15 = vector.broadcast %14 : vector<128x1xf32> to vector<128x128xf32>
    %16 = arith.mulf %6, %15 : vector<128x128xf32>
    %c0_5 = arith.constant 0 : index
    %c0_6 = arith.constant 0 : index
    %17 = vector.load %arg2[%c0_5, %c0_6] : memref<1x128xf32, #tpu.memory_space<vmem>>, vector<1x128xf32>
    %18 = vector.broadcast %17 : vector<1x128xf32> to vector<128x128xf32>
    %19 = arith.mulf %16, %18 : vector<128x128xf32>
    %c0_7 = arith.constant 0 : index
    %c0_8 = arith.constant 0 : index
    %20 = vector.load %arg3[%c0_7, %c0_8] : memref<1x128xf32, #tpu.memory_space<vmem>>, vector<1x128xf32>
    %21 = vector.broadcast %20 : vector<1x128xf32> to vector<128x128xf32>
    %22 = arith.addf %19, %21 : vector<128x128xf32>
    %23 = arith.truncf %22 : vector<128x128xf32> to vector<128x128xbf16>
    %c0_9 = arith.constant 0 : index
    %c0_10 = arith.constant 0 : index
    %24 = vector.load %arg4[%c0_9, %c0_10] : memref<128x128xbf16, #tpu.memory_space<vmem>>, vector<128x128xbf16>
    tpu.vector_store %arg4[%c0_9, %c0_10], %23 {strides = array<i32>} : memref<128x128xbf16, #tpu.memory_space<vmem>>, vector<128x128xbf16>,
    return
  }
  func.func @transform_0(%arg0: i32) -> (i32, i32) {
    %c0_i32 = arith.constant 0 : i32
    %c0_i32_0 = arith.constant 0 : i32
    return %arg0, %c0_i32 : i32, i32
  }
  func.func @transform_1(%arg0: i32) -> (i32, i32) {
    %c0_i32 = arith.constant 0 : i32
    %c0_i32_0 = arith.constant 0 : i32
    %c0_i32_1 = arith.constant 0 : i32
    return %c0_i32, %c0_i32_0 : i32, i32
  }
  func.func @transform_2(%arg0: i32) -> (i32, i32) {
    %c0_i32 = arith.constant 0 : i32
    %c0_i32_0 = arith.constant 0 : i32
    %c0_i32_1 = arith.constant 0 : i32
    return %c0_i32, %c0_i32_0 : i32, i32
  }
  func.func @transform_3(%arg0: i32) -> (i32, i32) {
    %c0_i32 = arith.constant 0 : i32
    %c0_i32_0 = arith.constant 0 : i32
    return %arg0, %c0_i32 : i32, i32
  }
}

module attributes {stable_mosaic.version = 11 : i64} {
  func.func @_dense_kernel(%arg0: i32, %arg1: i32, %arg2: memref<128x128xbf16, #tpu.memory_space<vmem>>, %arg3: memref<128x384xbf16, #tpu.memory_space<vmem>>, %arg4: memref<1x384xf32, #tpu.memory_space<vmem>>, %arg5: memref<128x384xbf16, #tpu.memory_space<vmem>>, %arg6: memref<128x384xf32, #tpu.memory_space<vmem>>) attributes {dimension_semantics = [#tpu.dimension_semantics<parallel>, #tpu.dimension_semantics<arbitrary>], iteration_bounds = array<i64: 4, 1>, scalar_prefetch = 0 : i64, scratch_operands = 1 : i64, tpu.core_type = #tpu.core_type<tc>, window_params = [{transform_indices = @transform_0, window_bounds = array<i64: 128, 128>}, {transform_indices = @transform_1, window_bounds = array<i64: 128, 384>}, {pipeline_mode = #tpu.pipeline_mode<synchronous>, transform_indices = @transform_2, window_bounds = array<i64: 1, 384>}, {transform_indices = @transform_3, window_bounds = array<i64: 128, 384>}]} {
    %c0_i32 = arith.constant 0 : i32
    %0 = arith.cmpi eq, %arg1, %c0_i32 : i32
    %1 = arith.extui %0 : i1 to i32
    %c0_i32_0 = arith.constant 0 : i32
    %2 = arith.cmpi ne, %1, %c0_i32_0 : i32
    scf.if %2 {
      %cst_10 = arith.constant 0.000000e+00 : f32
      %12 = vector.broadcast %cst_10 : f32 to vector<128x384xf32>
      %c0_11 = arith.constant 0 : index
      %c0_12 = arith.constant 0 : index
      %13 = vector.load %arg6[%c0_11, %c0_12] : memref<128x384xf32, #tpu.memory_space<vmem>>, vector<128x384xf32>
      tpu.vector_store %arg6[%c0_11, %c0_12], %12 {strides = array<i32>} : memref<128x384xf32, #tpu.memory_space<vmem>>, vector<128x384xf32>,
    } else {
    }
    %c0 = arith.constant 0 : index
    %c0_1 = arith.constant 0 : index
    %3 = vector.load %arg6[%c0, %c0_1] : memref<128x384xf32, #tpu.memory_space<vmem>>, vector<128x384xf32>
    %c0_2 = arith.constant 0 : index
    %c0_3 = arith.constant 0 : index
    %4 = vector.load %arg2[%c0_2, %c0_3] : memref<128x128xbf16, #tpu.memory_space<vmem>>, vector<128x128xbf16>
    %c0_4 = arith.constant 0 : index
    %c0_5 = arith.constant 0 : index
    %5 = vector.load %arg3[%c0_4, %c0_5] : memref<128x384xbf16, #tpu.memory_space<vmem>>, vector<128x384xbf16>
    %cst = arith.constant dense<0.000000e+00> : vector<128x384xf32>
    %6 = tpu.matmul %4, %5, %cst {dimension_numbers = #tpu.dot_dimension_numbers<[1], [0], [0], [1], [0, 0, 1, 1], [], []>} : vector<128x128xbf16>, vector<128x384xbf16>, vector<128x384xf32> -> vector<128x384xf32>
    %7 = arith.addf %3, %6 : vector<128x384xf32>
    %c0_6 = arith.constant 0 : index
    %c0_7 = arith.constant 0 : index
    %8 = vector.load %arg6[%c0_6, %c0_7] : memref<128x384xf32, #tpu.memory_space<vmem>>, vector<128x384xf32>
    tpu.vector_store %arg6[%c0_6, %c0_7], %7 {strides = array<i32>} : memref<128x384xf32, #tpu.memory_space<vmem>>, vector<128x384xf32>,
    %c0_i32_8 = arith.constant 0 : i32
    %9 = arith.cmpi eq, %arg1, %c0_i32_8 : i32
    %10 = arith.extui %9 : i1 to i32
    %c0_i32_9 = arith.constant 0 : i32
    %11 = arith.cmpi ne, %10, %c0_i32_9 : i32
    scf.if %11 {
      %c0_10 = arith.constant 0 : index
      %c0_11 = arith.constant 0 : index
      %12 = vector.load %arg6[%c0_10, %c0_11] : memref<128x384xf32, #tpu.memory_space<vmem>>, vector<128x384xf32>
      %c0_12 = arith.constant 0 : index
      %c0_13 = arith.constant 0 : index
      %13 = vector.load %arg4[%c0_12, %c0_13] : memref<1x384xf32, #tpu.memory_space<vmem>>, vector<1x384xf32>
      %14 = vector.broadcast %13 : vector<1x384xf32> to vector<128x384xf32>
      %15 = arith.addf %12, %14 : vector<128x384xf32>
      %16 = arith.truncf %15 : vector<128x384xf32> to vector<128x384xbf16>
      %c0_14 = arith.constant 0 : index
      %c0_15 = arith.constant 0 : index
      %17 = vector.load %arg5[%c0_14, %c0_15] : memref<128x384xbf16, #tpu.memory_space<vmem>>, vector<128x384xbf16>
      tpu.vector_store %arg5[%c0_14, %c0_15], %16 {strides = array<i32>} : memref<128x384xbf16, #tpu.memory_space<vmem>>, vector<128x384xbf16>,
    } else {
    }
    return
  }
  func.func @transform_0(%arg0: i32, %arg1: i32) -> (i32, i32) {
    %c0_i32 = arith.constant 0 : i32
    return %arg0, %arg1 : i32, i32
  }
  func.func @transform_1(%arg0: i32, %arg1: i32) -> (i32, i32) {
    %c0_i32 = arith.constant 0 : i32
    %c0_i32_0 = arith.constant 0 : i32
    return %arg1, %c0_i32 : i32, i32
  }
  func.func @transform_2(%arg0: i32, %arg1: i32) -> (i32, i32) {
    %c0_i32 = arith.constant 0 : i32
    %c0_i32_0 = arith.constant 0 : i32
    %c0_i32_1 = arith.constant 0 : i32
    return %c0_i32, %c0_i32_0 : i32, i32
  }
  func.func @transform_3(%arg0: i32, %arg1: i32) -> (i32, i32) {
    %c0_i32 = arith.constant 0 : i32
    %c0_i32_0 = arith.constant 0 : i32
    return %arg0, %c0_i32 : i32, i32
  }
}

module attributes {stable_mosaic.version = 11 : i64} {
  func.func @_attn_kernel(%arg0: i32, %arg1: memref<1x128x384xbf16, #tpu.memory_space<vmem>>, %arg2: memref<1x1x128xf32, #tpu.memory_space<vmem>>, %arg3: memref<1x128x128xbf16, #tpu.memory_space<vmem>>) attributes {dimension_semantics = [#tpu.dimension_semantics<parallel>], iteration_bounds = array<i64: 4>, scalar_prefetch = 0 : i64, scratch_operands = 0 : i64, tpu.core_type = #tpu.core_type<tc>, window_params = [{transform_indices = @transform_0, window_bounds = array<i64: 1, 128, 384>}, {transform_indices = @transform_1, window_bounds = array<i64: 1, 1, 128>}, {transform_indices = @transform_2, window_bounds = array<i64: 1, 128, 128>}]} {
    %c0 = arith.constant 0 : index
    %c0_0 = arith.constant 0 : index
    %c0_1 = arith.constant 0 : index
    %0 = vector.load %arg1[%c0, %c0_0, %c0_1] : memref<1x128x384xbf16, #tpu.memory_space<vmem>>, vector<1x128x384xbf16>
    %1 = vector.shape_cast %0 : vector<1x128x384xbf16> to vector<128x384xbf16>
    %c0_2 = arith.constant 0 : index
    %c0_3 = arith.constant 0 : index
    %c0_4 = arith.constant 0 : index
    %2 = vector.load %arg2[%c0_2, %c0_3, %c0_4] : memref<1x1x128xf32, #tpu.memory_space<vmem>>, vector<1x1x128xf32>
    %3 = vector.shape_cast %2 : vector<1x1x128xf32> to vector<1x128xf32>
    %4 = vector.extract_strided_slice %1 {offsets = [0, 0], sizes = [128, 32], strides = [1, 1]} : vector<128x384xbf16> to vector<128x32xbf16>
    %5 = vector.extract_strided_slice %1 {offsets = [0, 128], sizes = [128, 32], strides = [1, 1]} : vector<128x384xbf16> to vector<128x32xbf16>
    %6 = vector.extract_strided_slice %1 {offsets = [0, 256], sizes = [128, 32], strides = [1, 1]} : vector<128x384xbf16> to vector<128x32xbf16>
    %cst = arith.constant dense<0.000000e+00> : vector<128x128xf32>
    %7 = tpu.matmul %4, %5, %cst {dimension_numbers = #tpu.dot_dimension_numbers<[1], [1], [0], [0], [0, 0, 1, 0], [], []>} : vector<128x32xbf16>, vector<128x32xbf16>, vector<128x128xf32> -> vector<128x128xf32>
    %cst_5 = arith.constant 0.176776692 : f32
    %8 = vector.broadcast %cst_5 : f32 to vector<128x128xf32>
    %9 = arith.mulf %7, %8 : vector<128x128xf32>
    %10 = vector.broadcast %3 : vector<1x128xf32> to vector<128x128xf32>
    %11 = arith.addf %9, %10 : vector<128x128xf32>
    %cst_6 = arith.constant dense<0xFF800000> : vector<128xf32>
    %12 = vector.multi_reduction <maximumf>, %11, %cst_6 [1] : vector<128x128xf32> to vector<128xf32>
    %13 = vector.shape_cast %12 : vector<128xf32> to vector<128x1xf32>
    %14 = vector.broadcast %13 : vector<128x1xf32> to vector<128x128xf32>
    %15 = arith.subf %11, %14 : vector<128x128xf32>
    %16 = math.exp %15 : vector<128x128xf32>
    %cst_7 = arith.constant dense<0.000000e+00> : vector<128xf32>
    %17 = vector.multi_reduction <add>, %16, %cst_7 [1] : vector<128x128xf32> to vector<128xf32>
    %18 = vector.shape_cast %17 : vector<128xf32> to vector<128x1xf32>
    %19 = tpu.reciprocal %18 {approx = true} : vector<128x1xf32> -> vector<128x1xf32>
    %20 = vector.broadcast %19 : vector<128x1xf32> to vector<128x128xf32>
    %21 = arith.mulf %16, %20 : vector<128x128xf32>
    %22 = arith.truncf %21 : vector<128x128xf32> to vector<128x128xbf16>
    %cst_8 = arith.constant dense<0.000000e+00> : vector<128x32xf32>
    %23 = tpu.matmul %22, %6, %cst_8 {dimension_numbers = #tpu.dot_dimension_numbers<[1], [0], [0], [1], [0, 0, 1, 1], [], []>} : vector<128x128xbf16>, vector<128x32xbf16>, vector<128x32xf32> -> vector<128x32xf32>
    %24 = arith.truncf %23 : vector<128x32xf32> to vector<128x32xbf16>
    %c0_9 = arith.constant 0 : index
    %c0_10 = arith.constant 0 : index
    %c0_11 = arith.constant 0 : index
    %25 = vector.load %arg3[%c0_9, %c0_10, %c0_11] : memref<1x128x128xbf16, #tpu.memory_space<vmem>>, vector<1x128x32xbf16>
    %26 = vector.shape_cast %25 : vector<1x128x32xbf16> to vector<128x32xbf16>
    %27 = vector.shape_cast %24 : vector<128x32xbf16> to vector<1x128x32xbf16>
    tpu.vector_store %arg3[%c0_9, %c0_10, %c0_11], %27 {strides = array<i32>} : memref<1x128x128xbf16, #tpu.memory_space<vmem>>, vector<1x128x32xbf16>,
    %28 = vector.extract_strided_slice %1 {offsets = [0, 32], sizes = [128, 32], strides = [1, 1]} : vector<128x384xbf16> to vector<128x32xbf16>
    %29 = vector.extract_strided_slice %1 {offsets = [0, 160], sizes = [128, 32], strides = [1, 1]} : vector<128x384xbf16> to vector<128x32xbf16>
    %30 = vector.extract_strided_slice %1 {offsets = [0, 288], sizes = [128, 32], strides = [1, 1]} : vector<128x384xbf16> to vector<128x32xbf16>
    %cst_12 = arith.constant dense<0.000000e+00> : vector<128x128xf32>
    %31 = tpu.matmul %28, %29, %cst_12 {dimension_numbers = #tpu.dot_dimension_numbers<[1], [1], [0], [0], [0, 0, 1, 0], [], []>} : vector<128x32xbf16>, vector<128x32xbf16>, vector<128x128xf32> -> vector<128x128xf32>
    %cst_13 = arith.constant 0.176776692 : f32
    %32 = vector.broadcast %cst_13 : f32 to vector<128x128xf32>
    %33 = arith.mulf %31, %32 : vector<128x128xf32>
    %34 = vector.broadcast %3 : vector<1x128xf32> to vector<128x128xf32>
    %35 = arith.addf %33, %34 : vector<128x128xf32>
    %cst_14 = arith.constant dense<0xFF800000> : vector<128xf32>
    %36 = vector.multi_reduction <maximumf>, %35, %cst_14 [1] : vector<128x128xf32> to vector<128xf32>
    %37 = vector.shape_cast %36 : vector<128xf32> to vector<128x1xf32>
    %38 = vector.broadcast %37 : vector<128x1xf32> to vector<128x128xf32>
    %39 = arith.subf %35, %38 : vector<128x128xf32>
    %40 = math.exp %39 : vector<128x128xf32>
    %cst_15 = arith.constant dense<0.000000e+00> : vector<128xf32>
    %41 = vector.multi_reduction <add>, %40, %cst_15 [1] : vector<128x128xf32> to vector<128xf32>
    %42 = vector.shape_cast %41 : vector<128xf32> to vector<128x1xf32>
    %43 = tpu.reciprocal %42 {approx = true} : vector<128x1xf32> -> vector<128x1xf32>
    %44 = vector.broadcast %43 : vector<128x1xf32> to vector<128x128xf32>
    %45 = arith.mulf %40, %44 : vector<128x128xf32>
    %46 = arith.truncf %45 : vector<128x128xf32> to vector<128x128xbf16>
    %cst_16 = arith.constant dense<0.000000e+00> : vector<128x32xf32>
    %47 = tpu.matmul %46, %30, %cst_16 {dimension_numbers = #tpu.dot_dimension_numbers<[1], [0], [0], [1], [0, 0, 1, 1], [], []>} : vector<128x128xbf16>, vector<128x32xbf16>, vector<128x32xf32> -> vector<128x32xf32>
    %48 = arith.truncf %47 : vector<128x32xf32> to vector<128x32xbf16>
    %c0_17 = arith.constant 0 : index
    %c0_18 = arith.constant 0 : index
    %c32 = arith.constant 32 : index
    %49 = vector.load %arg3[%c0_17, %c0_18, %c32] : memref<1x128x128xbf16, #tpu.memory_space<vmem>>, vector<1x128x32xbf16>
    %50 = vector.shape_cast %49 : vector<1x128x32xbf16> to vector<128x32xbf16>
    %51 = vector.shape_cast %48 : vector<128x32xbf16> to vector<1x128x32xbf16>
    tpu.vector_store %arg3[%c0_17, %c0_18, %c32], %51 {strides = array<i32>} : memref<1x128x128xbf16, #tpu.memory_space<vmem>>, vector<1x128x32xbf16>,
    %52 = vector.extract_strided_slice %1 {offsets = [0, 64], sizes = [128, 32], strides = [1, 1]} : vector<128x384xbf16> to vector<128x32xbf16>
    %53 = vector.extract_strided_slice %1 {offsets = [0, 192], sizes = [128, 32], strides = [1, 1]} : vector<128x384xbf16> to vector<128x32xbf16>
    %54 = vector.extract_strided_slice %1 {offsets = [0, 320], sizes = [128, 32], strides = [1, 1]} : vector<128x384xbf16> to vector<128x32xbf16>
    %cst_19 = arith.constant dense<0.000000e+00> : vector<128x128xf32>
    %55 = tpu.matmul %52, %53, %cst_19 {dimension_numbers = #tpu.dot_dimension_numbers<[1], [1], [0], [0], [0, 0, 1, 0], [], []>} : vector<128x32xbf16>, vector<128x32xbf16>, vector<128x128xf32> -> vector<128x128xf32>
    %cst_20 = arith.constant 0.176776692 : f32
    %56 = vector.broadcast %cst_20 : f32 to vector<128x128xf32>
    %57 = arith.mulf %55, %56 : vector<128x128xf32>
    %58 = vector.broadcast %3 : vector<1x128xf32> to vector<128x128xf32>
    %59 = arith.addf %57, %58 : vector<128x128xf32>
    %cst_21 = arith.constant dense<0xFF800000> : vector<128xf32>
    %60 = vector.multi_reduction <maximumf>, %59, %cst_21 [1] : vector<128x128xf32> to vector<128xf32>
    %61 = vector.shape_cast %60 : vector<128xf32> to vector<128x1xf32>
    %62 = vector.broadcast %61 : vector<128x1xf32> to vector<128x128xf32>
    %63 = arith.subf %59, %62 : vector<128x128xf32>
    %64 = math.exp %63 : vector<128x128xf32>
    %cst_22 = arith.constant dense<0.000000e+00> : vector<128xf32>
    %65 = vector.multi_reduction <add>, %64, %cst_22 [1] : vector<128x128xf32> to vector<128xf32>
    %66 = vector.shape_cast %65 : vector<128xf32> to vector<128x1xf32>
    %67 = tpu.reciprocal %66 {approx = true} : vector<128x1xf32> -> vector<128x1xf32>
    %68 = vector.broadcast %67 : vector<128x1xf32> to vector<128x128xf32>
    %69 = arith.mulf %64, %68 : vector<128x128xf32>
    %70 = arith.truncf %69 : vector<128x128xf32> to vector<128x128xbf16>
    %cst_23 = arith.constant dense<0.000000e+00> : vector<128x32xf32>
    %71 = tpu.matmul %70, %54, %cst_23 {dimension_numbers = #tpu.dot_dimension_numbers<[1], [0], [0], [1], [0, 0, 1, 1], [], []>} : vector<128x128xbf16>, vector<128x32xbf16>, vector<128x32xf32> -> vector<128x32xf32>
    %72 = arith.truncf %71 : vector<128x32xf32> to vector<128x32xbf16>
    %c0_24 = arith.constant 0 : index
    %c0_25 = arith.constant 0 : index
    %c64 = arith.constant 64 : index
    %73 = vector.load %arg3[%c0_24, %c0_25, %c64] : memref<1x128x128xbf16, #tpu.memory_space<vmem>>, vector<1x128x32xbf16>
    %74 = vector.shape_cast %73 : vector<1x128x32xbf16> to vector<128x32xbf16>
    %75 = vector.shape_cast %72 : vector<128x32xbf16> to vector<1x128x32xbf16>
    tpu.vector_store %arg3[%c0_24, %c0_25, %c64], %75 {strides = array<i32>} : memref<1x128x128xbf16, #tpu.memory_space<vmem>>, vector<1x128x32xbf16>,
    %76 = vector.extract_strided_slice %1 {offsets = [0, 96], sizes = [128, 32], strides = [1, 1]} : vector<128x384xbf16> to vector<128x32xbf16>
    %77 = vector.extract_strided_slice %1 {offsets = [0, 224], sizes = [128, 32], strides = [1, 1]} : vector<128x384xbf16> to vector<128x32xbf16>
    %78 = vector.extract_strided_slice %1 {offsets = [0, 352], sizes = [128, 32], strides = [1, 1]} : vector<128x384xbf16> to vector<128x32xbf16>
    %cst_26 = arith.constant dense<0.000000e+00> : vector<128x128xf32>
    %79 = tpu.matmul %76, %77, %cst_26 {dimension_numbers = #tpu.dot_dimension_numbers<[1], [1], [0], [0], [0, 0, 1, 0], [], []>} : vector<128x32xbf16>, vector<128x32xbf16>, vector<128x128xf32> -> vector<128x128xf32>
    %cst_27 = arith.constant 0.176776692 : f32
    %80 = vector.broadcast %cst_27 : f32 to vector<128x128xf32>
    %81 = arith.mulf %79, %80 : vector<128x128xf32>
    %82 = vector.broadcast %3 : vector<1x128xf32> to vector<128x128xf32>
    %83 = arith.addf %81, %82 : vector<128x128xf32>
    %cst_28 = arith.constant dense<0xFF800000> : vector<128xf32>
    %84 = vector.multi_reduction <maximumf>, %83, %cst_28 [1] : vector<128x128xf32> to vector<128xf32>
    %85 = vector.shape_cast %84 : vector<128xf32> to vector<128x1xf32>
    %86 = vector.broadcast %85 : vector<128x1xf32> to vector<128x128xf32>
    %87 = arith.subf %83, %86 : vector<128x128xf32>
    %88 = math.exp %87 : vector<128x128xf32>
    %cst_29 = arith.constant dense<0.000000e+00> : vector<128xf32>
    %89 = vector.multi_reduction <add>, %88, %cst_29 [1] : vector<128x128xf32> to vector<128xf32>
    %90 = vector.shape_cast %89 : vector<128xf32> to vector<128x1xf32>
    %91 = tpu.reciprocal %90 {approx = true} : vector<128x1xf32> -> vector<128x1xf32>
    %92 = vector.broadcast %91 : vector<128x1xf32> to vector<128x128xf32>
    %93 = arith.mulf %88, %92 : vector<128x128xf32>
    %94 = arith.truncf %93 : vector<128x128xf32> to vector<128x128xbf16>
    %cst_30 = arith.constant dense<0.000000e+00> : vector<128x32xf32>
    %95 = tpu.matmul %94, %78, %cst_30 {dimension_numbers = #tpu.dot_dimension_numbers<[1], [0], [0], [1], [0, 0, 1, 1], [], []>} : vector<128x128xbf16>, vector<128x32xbf16>, vector<128x32xf32> -> vector<128x32xf32>
    %96 = arith.truncf %95 : vector<128x32xf32> to vector<128x32xbf16>
    %c0_31 = arith.constant 0 : index
    %c0_32 = arith.constant 0 : index
    %c96 = arith.constant 96 : index
    %97 = vector.load %arg3[%c0_31, %c0_32, %c96] : memref<1x128x128xbf16, #tpu.memory_space<vmem>>, vector<1x128x32xbf16>
    %98 = vector.shape_cast %97 : vector<1x128x32xbf16> to vector<128x32xbf16>
    %99 = vector.shape_cast %96 : vector<128x32xbf16> to vector<1x128x32xbf16>
    tpu.vector_store %arg3[%c0_31, %c0_32, %c96], %99 {strides = array<i32>} : memref<1x128x128xbf16, #tpu.memory_space<vmem>>, vector<1x128x32xbf16>,
    return
  }
  func.func @transform_0(%arg0: i32) -> (i32, i32, i32) {
    %c0_i32 = arith.constant 0 : i32
    %c0_i32_0 = arith.constant 0 : i32
    %c0_i32_1 = arith.constant 0 : i32
    return %arg0, %c0_i32, %c0_i32_0 : i32, i32, i32
  }
  func.func @transform_1(%arg0: i32) -> (i32, i32, i32) {
    %c0_i32 = arith.constant 0 : i32
    %c0_i32_0 = arith.constant 0 : i32
    %c0_i32_1 = arith.constant 0 : i32
    return %arg0, %c0_i32, %c0_i32_0 : i32, i32, i32
  }
  func.func @transform_2(%arg0: i32) -> (i32, i32, i32) {
    %c0_i32 = arith.constant 0 : i32
    %c0_i32_0 = arith.constant 0 : i32
    %c0_i32_1 = arith.constant 0 : i32
    return %arg0, %c0_i32, %c0_i32_0 : i32, i32, i32
  }
}

module attributes {stable_mosaic.version = 11 : i64} {
  func.func @_dense_ln_kernel(%arg0: i32, %arg1: i32, %arg2: memref<128x128xbf16, #tpu.memory_space<vmem>>, %arg3: memref<128x128xbf16, #tpu.memory_space<vmem>>, %arg4: memref<1x128xf32, #tpu.memory_space<vmem>>, %arg5: memref<128x128xbf16, #tpu.memory_space<vmem>>, %arg6: memref<1x128xf32, #tpu.memory_space<vmem>>, %arg7: memref<1x128xf32, #tpu.memory_space<vmem>>, %arg8: memref<128x128xbf16, #tpu.memory_space<vmem>>, %arg9: memref<128x128xf32, #tpu.memory_space<vmem>>) attributes {dimension_semantics = [#tpu.dimension_semantics<parallel>, #tpu.dimension_semantics<arbitrary>], iteration_bounds = array<i64: 4, 1>, scalar_prefetch = 0 : i64, scratch_operands = 1 : i64, tpu.core_type = #tpu.core_type<tc>, window_params = [{transform_indices = @transform_0, window_bounds = array<i64: 128, 128>}, {transform_indices = @transform_1, window_bounds = array<i64: 128, 128>}, {pipeline_mode = #tpu.pipeline_mode<synchronous>, transform_indices = @transform_2, window_bounds = array<i64: 1, 128>}, {transform_indices = @transform_3, window_bounds = array<i64: 128, 128>}, {pipeline_mode = #tpu.pipeline_mode<synchronous>, transform_indices = @transform_4, window_bounds = array<i64: 1, 128>}, {pipeline_mode = #tpu.pipeline_mode<synchronous>, transform_indices = @transform_5, window_bounds = array<i64: 1, 128>}, {transform_indices = @transform_6, window_bounds = array<i64: 128, 128>}]} {
    %c0_i32 = arith.constant 0 : i32
    %0 = arith.cmpi eq, %arg1, %c0_i32 : i32
    %1 = arith.extui %0 : i1 to i32
    %c0_i32_0 = arith.constant 0 : i32
    %2 = arith.cmpi ne, %1, %c0_i32_0 : i32
    scf.if %2 {
      %cst_10 = arith.constant 0.000000e+00 : f32
      %12 = vector.broadcast %cst_10 : f32 to vector<128x128xf32>
      %c0_11 = arith.constant 0 : index
      %c0_12 = arith.constant 0 : index
      %13 = vector.load %arg9[%c0_11, %c0_12] : memref<128x128xf32, #tpu.memory_space<vmem>>, vector<128x128xf32>
      tpu.vector_store %arg9[%c0_11, %c0_12], %12 {strides = array<i32>} : memref<128x128xf32, #tpu.memory_space<vmem>>, vector<128x128xf32>,
    } else {
    }
    %c0 = arith.constant 0 : index
    %c0_1 = arith.constant 0 : index
    %3 = vector.load %arg9[%c0, %c0_1] : memref<128x128xf32, #tpu.memory_space<vmem>>, vector<128x128xf32>
    %c0_2 = arith.constant 0 : index
    %c0_3 = arith.constant 0 : index
    %4 = vector.load %arg2[%c0_2, %c0_3] : memref<128x128xbf16, #tpu.memory_space<vmem>>, vector<128x128xbf16>
    %c0_4 = arith.constant 0 : index
    %c0_5 = arith.constant 0 : index
    %5 = vector.load %arg3[%c0_4, %c0_5] : memref<128x128xbf16, #tpu.memory_space<vmem>>, vector<128x128xbf16>
    %cst = arith.constant dense<0.000000e+00> : vector<128x128xf32>
    %6 = tpu.matmul %4, %5, %cst {dimension_numbers = #tpu.dot_dimension_numbers<[1], [0], [0], [1], [0, 0, 1, 1], [], []>} : vector<128x128xbf16>, vector<128x128xbf16>, vector<128x128xf32> -> vector<128x128xf32>
    %7 = arith.addf %3, %6 : vector<128x128xf32>
    %c0_6 = arith.constant 0 : index
    %c0_7 = arith.constant 0 : index
    %8 = vector.load %arg9[%c0_6, %c0_7] : memref<128x128xf32, #tpu.memory_space<vmem>>, vector<128x128xf32>
    tpu.vector_store %arg9[%c0_6, %c0_7], %7 {strides = array<i32>} : memref<128x128xf32, #tpu.memory_space<vmem>>, vector<128x128xf32>,
    %c0_i32_8 = arith.constant 0 : i32
    %9 = arith.cmpi eq, %arg1, %c0_i32_8 : i32
    %10 = arith.extui %9 : i1 to i32
    %c0_i32_9 = arith.constant 0 : i32
    %11 = arith.cmpi ne, %10, %c0_i32_9 : i32
    scf.if %11 {
      %c0_10 = arith.constant 0 : index
      %c0_11 = arith.constant 0 : index
      %12 = vector.load %arg9[%c0_10, %c0_11] : memref<128x128xf32, #tpu.memory_space<vmem>>, vector<128x128xf32>
      %c0_12 = arith.constant 0 : index
      %c0_13 = arith.constant 0 : index
      %13 = vector.load %arg4[%c0_12, %c0_13] : memref<1x128xf32, #tpu.memory_space<vmem>>, vector<1x128xf32>
      %14 = vector.broadcast %13 : vector<1x128xf32> to vector<128x128xf32>
      %15 = arith.addf %12, %14 : vector<128x128xf32>
      %c0_14 = arith.constant 0 : index
      %c0_15 = arith.constant 0 : index
      %16 = vector.load %arg5[%c0_14, %c0_15] : memref<128x128xbf16, #tpu.memory_space<vmem>>, vector<128x128xbf16>
      %17 = arith.extf %16 : vector<128x128xbf16> to vector<128x128xf32>
      %18 = arith.addf %15, %17 : vector<128x128xf32>
      %cst_16 = arith.constant dense<0.000000e+00> : vector<128xf32>
      %19 = vector.multi_reduction <add>, %18, %cst_16 [1] : vector<128x128xf32> to vector<128xf32>
      %20 = vector.shape_cast %19 : vector<128xf32> to vector<128x1xf32>
      %cst_17 = arith.constant 1.280000e+02 : f32
      %21 = vector.broadcast %cst_17 : f32 to vector<128x1xf32>
      %22 = arith.divf %20, %21 : vector<128x1xf32>
      %23 = vector.broadcast %22 : vector<128x1xf32> to vector<128x128xf32>
      %24 = arith.subf %18, %23 : vector<128x128xf32>
      %25 = arith.mulf %24, %24 : vector<128x128xf32>
      %cst_18 = arith.constant dense<0.000000e+00> : vector<128xf32>
      %26 = vector.multi_reduction <add>, %25, %cst_18 [1] : vector<128x128xf32> to vector<128xf32>
      %27 = vector.shape_cast %26 : vector<128xf32> to vector<128x1xf32>
      %cst_19 = arith.constant 1.280000e+02 : f32
      %28 = vector.broadcast %cst_19 : f32 to vector<128x1xf32>
      %29 = arith.divf %27, %28 : vector<128x1xf32>
      %cst_20 = arith.constant 9.99999996E-13 : f32
      %30 = vector.broadcast %cst_20 : f32 to vector<128x1xf32>
      %31 = arith.addf %29, %30 : vector<128x1xf32>
      %32 = math.rsqrt %31 : vector<128x1xf32>
      %33 = vector.broadcast %32 : vector<128x1xf32> to vector<128x128xf32>
      %34 = arith.mulf %24, %33 : vector<128x128xf32>
      %c0_21 = arith.constant 0 : index
      %c0_22 = arith.constant 0 : index
      %35 = vector.load %arg6[%c0_21, %c0_22] : memref<1x128xf32, #tpu.memory_space<vmem>>, vector<1x128xf32>
      %36 = vector.broadcast %35 : vector<1x128xf32> to vector<128x128xf32>
      %37 = arith.mulf %34, %36 : vector<128x128xf32>
      %c0_23 = arith.constant 0 : index
      %c0_24 = arith.constant 0 : index
      %38 = vector.load %arg7[%c0_23, %c0_24] : memref<1x128xf32, #tpu.memory_space<vmem>>, vector<1x128xf32>
      %39 = vector.broadcast %38 : vector<1x128xf32> to vector<128x128xf32>
      %40 = arith.addf %37, %39 : vector<128x128xf32>
      %41 = arith.truncf %40 : vector<128x128xf32> to vector<128x128xbf16>
      %c0_25 = arith.constant 0 : index
      %c0_26 = arith.constant 0 : index
      %42 = vector.load %arg8[%c0_25, %c0_26] : memref<128x128xbf16, #tpu.memory_space<vmem>>, vector<128x128xbf16>
      tpu.vector_store %arg8[%c0_25, %c0_26], %41 {strides = array<i32>} : memref<128x128xbf16, #tpu.memory_space<vmem>>, vector<128x128xbf16>,
    } else {
    }
    return
  }
  func.func @transform_0(%arg0: i32, %arg1: i32) -> (i32, i32) {
    %c0_i32 = arith.constant 0 : i32
    return %arg0, %arg1 : i32, i32
  }
  func.func @transform_1(%arg0: i32, %arg1: i32) -> (i32, i32) {
    %c0_i32 = arith.constant 0 : i32
    %c0_i32_0 = arith.constant 0 : i32
    return %arg1, %c0_i32 : i32, i32
  }
  func.func @transform_2(%arg0: i32, %arg1: i32) -> (i32, i32) {
    %c0_i32 = arith.constant 0 : i32
    %c0_i32_0 = arith.constant 0 : i32
    %c0_i32_1 = arith.constant 0 : i32
    return %c0_i32, %c0_i32_0 : i32, i32
  }
  func.func @transform_3(%arg0: i32, %arg1: i32) -> (i32, i32) {
    %c0_i32 = arith.constant 0 : i32
    %c0_i32_0 = arith.constant 0 : i32
    return %arg0, %c0_i32 : i32, i32
  }
  func.func @transform_4(%arg0: i32, %arg1: i32) -> (i32, i32) {
    %c0_i32 = arith.constant 0 : i32
    %c0_i32_0 = arith.constant 0 : i32
    %c0_i32_1 = arith.constant 0 : i32
    return %c0_i32, %c0_i32_0 : i32, i32
  }
  func.func @transform_5(%arg0: i32, %arg1: i32) -> (i32, i32) {
    %c0_i32 = arith.constant 0 : i32
    %c0_i32_0 = arith.constant 0 : i32
    %c0_i32_1 = arith.constant 0 : i32
    return %c0_i32, %c0_i32_0 : i32, i32
  }
  func.func @transform_6(%arg0: i32, %arg1: i32) -> (i32, i32) {
    %c0_i32 = arith.constant 0 : i32
    %c0_i32_0 = arith.constant 0 : i32
    return %arg0, %c0_i32 : i32, i32
  }
}

module attributes {stable_mosaic.version = 11 : i64} {
  func.func @_dense_kernel(%arg0: i32, %arg1: i32, %arg2: memref<128x128xbf16, #tpu.memory_space<vmem>>, %arg3: memref<128x512xbf16, #tpu.memory_space<vmem>>, %arg4: memref<1x512xf32, #tpu.memory_space<vmem>>, %arg5: memref<128x512xbf16, #tpu.memory_space<vmem>>, %arg6: memref<128x512xf32, #tpu.memory_space<vmem>>) attributes {dimension_semantics = [#tpu.dimension_semantics<parallel>, #tpu.dimension_semantics<arbitrary>], iteration_bounds = array<i64: 4, 1>, scalar_prefetch = 0 : i64, scratch_operands = 1 : i64, tpu.core_type = #tpu.core_type<tc>, window_params = [{transform_indices = @transform_0, window_bounds = array<i64: 128, 128>}, {transform_indices = @transform_1, window_bounds = array<i64: 128, 512>}, {pipeline_mode = #tpu.pipeline_mode<synchronous>, transform_indices = @transform_2, window_bounds = array<i64: 1, 512>}, {transform_indices = @transform_3, window_bounds = array<i64: 128, 512>}]} {
    %c0_i32 = arith.constant 0 : i32
    %0 = arith.cmpi eq, %arg1, %c0_i32 : i32
    %1 = arith.extui %0 : i1 to i32
    %c0_i32_0 = arith.constant 0 : i32
    %2 = arith.cmpi ne, %1, %c0_i32_0 : i32
    scf.if %2 {
      %cst_10 = arith.constant 0.000000e+00 : f32
      %12 = vector.broadcast %cst_10 : f32 to vector<128x512xf32>
      %c0_11 = arith.constant 0 : index
      %c0_12 = arith.constant 0 : index
      %13 = vector.load %arg6[%c0_11, %c0_12] : memref<128x512xf32, #tpu.memory_space<vmem>>, vector<128x512xf32>
      tpu.vector_store %arg6[%c0_11, %c0_12], %12 {strides = array<i32>} : memref<128x512xf32, #tpu.memory_space<vmem>>, vector<128x512xf32>,
    } else {
    }
    %c0 = arith.constant 0 : index
    %c0_1 = arith.constant 0 : index
    %3 = vector.load %arg6[%c0, %c0_1] : memref<128x512xf32, #tpu.memory_space<vmem>>, vector<128x512xf32>
    %c0_2 = arith.constant 0 : index
    %c0_3 = arith.constant 0 : index
    %4 = vector.load %arg2[%c0_2, %c0_3] : memref<128x128xbf16, #tpu.memory_space<vmem>>, vector<128x128xbf16>
    %c0_4 = arith.constant 0 : index
    %c0_5 = arith.constant 0 : index
    %5 = vector.load %arg3[%c0_4, %c0_5] : memref<128x512xbf16, #tpu.memory_space<vmem>>, vector<128x512xbf16>
    %cst = arith.constant dense<0.000000e+00> : vector<128x512xf32>
    %6 = tpu.matmul %4, %5, %cst {dimension_numbers = #tpu.dot_dimension_numbers<[1], [0], [0], [1], [0, 0, 1, 1], [], []>} : vector<128x128xbf16>, vector<128x512xbf16>, vector<128x512xf32> -> vector<128x512xf32>
    %7 = arith.addf %3, %6 : vector<128x512xf32>
    %c0_6 = arith.constant 0 : index
    %c0_7 = arith.constant 0 : index
    %8 = vector.load %arg6[%c0_6, %c0_7] : memref<128x512xf32, #tpu.memory_space<vmem>>, vector<128x512xf32>
    tpu.vector_store %arg6[%c0_6, %c0_7], %7 {strides = array<i32>} : memref<128x512xf32, #tpu.memory_space<vmem>>, vector<128x512xf32>,
    %c0_i32_8 = arith.constant 0 : i32
    %9 = arith.cmpi eq, %arg1, %c0_i32_8 : i32
    %10 = arith.extui %9 : i1 to i32
    %c0_i32_9 = arith.constant 0 : i32
    %11 = arith.cmpi ne, %10, %c0_i32_9 : i32
    scf.if %11 {
      %c0_10 = arith.constant 0 : index
      %c0_11 = arith.constant 0 : index
      %12 = vector.load %arg6[%c0_10, %c0_11] : memref<128x512xf32, #tpu.memory_space<vmem>>, vector<128x512xf32>
      %c0_12 = arith.constant 0 : index
      %c0_13 = arith.constant 0 : index
      %13 = vector.load %arg4[%c0_12, %c0_13] : memref<1x512xf32, #tpu.memory_space<vmem>>, vector<1x512xf32>
      %14 = vector.broadcast %13 : vector<1x512xf32> to vector<128x512xf32>
      %15 = arith.addf %12, %14 : vector<128x512xf32>
      %16 = arith.mulf %15, %15 : vector<128x512xf32>
      %17 = arith.mulf %15, %16 : vector<128x512xf32>
      %cst_14 = arith.constant 4.471500e-02 : f32
      %18 = vector.broadcast %cst_14 : f32 to vector<128x512xf32>
      %19 = arith.mulf %18, %17 : vector<128x512xf32>
      %20 = arith.addf %15, %19 : vector<128x512xf32>
      %cst_15 = arith.constant 0.797884583 : f32
      %21 = vector.broadcast %cst_15 : f32 to vector<128x512xf32>
      %22 = arith.mulf %21, %20 : vector<128x512xf32>
      %23 = math.tanh %22 : vector<128x512xf32>
      %cst_16 = arith.constant 1.000000e+00 : f32
      %24 = vector.broadcast %cst_16 : f32 to vector<128x512xf32>
      %25 = arith.addf %24, %23 : vector<128x512xf32>
      %cst_17 = arith.constant 5.000000e-01 : f32
      %26 = vector.broadcast %cst_17 : f32 to vector<128x512xf32>
      %27 = arith.mulf %26, %25 : vector<128x512xf32>
      %28 = arith.mulf %15, %27 : vector<128x512xf32>
      %29 = arith.truncf %28 : vector<128x512xf32> to vector<128x512xbf16>
      %c0_18 = arith.constant 0 : index
      %c0_19 = arith.constant 0 : index
      %30 = vector.load %arg5[%c0_18, %c0_19] : memref<128x512xbf16, #tpu.memory_space<vmem>>, vector<128x512xbf16>
      tpu.vector_store %arg5[%c0_18, %c0_19], %29 {strides = array<i32>} : memref<128x512xbf16, #tpu.memory_space<vmem>>, vector<128x512xbf16>,
    } else {
    }
    return
  }
  func.func @transform_0(%arg0: i32, %arg1: i32) -> (i32, i32) {
    %c0_i32 = arith.constant 0 : i32
    return %arg0, %arg1 : i32, i32
  }
  func.func @transform_1(%arg0: i32, %arg1: i32) -> (i32, i32) {
    %c0_i32 = arith.constant 0 : i32
    %c0_i32_0 = arith.constant 0 : i32
    return %arg1, %c0_i32 : i32, i32
  }
  func.func @transform_2(%arg0: i32, %arg1: i32) -> (i32, i32) {
    %c0_i32 = arith.constant 0 : i32
    %c0_i32_0 = arith.constant 0 : i32
    %c0_i32_1 = arith.constant 0 : i32
    return %c0_i32, %c0_i32_0 : i32, i32
  }
  func.func @transform_3(%arg0: i32, %arg1: i32) -> (i32, i32) {
    %c0_i32 = arith.constant 0 : i32
    %c0_i32_0 = arith.constant 0 : i32
    return %arg0, %c0_i32 : i32, i32
  }
}

module attributes {stable_mosaic.version = 11 : i64} {
  func.func @_dense_ln_kernel(%arg0: i32, %arg1: i32, %arg2: memref<128x256xbf16, #tpu.memory_space<vmem>>, %arg3: memref<256x128xbf16, #tpu.memory_space<vmem>>, %arg4: memref<1x128xf32, #tpu.memory_space<vmem>>, %arg5: memref<128x128xbf16, #tpu.memory_space<vmem>>, %arg6: memref<1x128xf32, #tpu.memory_space<vmem>>, %arg7: memref<1x128xf32, #tpu.memory_space<vmem>>, %arg8: memref<128x128xbf16, #tpu.memory_space<vmem>>, %arg9: memref<128x128xf32, #tpu.memory_space<vmem>>) attributes {dimension_semantics = [#tpu.dimension_semantics<parallel>, #tpu.dimension_semantics<arbitrary>], iteration_bounds = array<i64: 4, 2>, scalar_prefetch = 0 : i64, scratch_operands = 1 : i64, tpu.core_type = #tpu.core_type<tc>, window_params = [{transform_indices = @transform_0, window_bounds = array<i64: 128, 256>}, {transform_indices = @transform_1, window_bounds = array<i64: 256, 128>}, {pipeline_mode = #tpu.pipeline_mode<synchronous>, transform_indices = @transform_2, window_bounds = array<i64: 1, 128>}, {transform_indices = @transform_3, window_bounds = array<i64: 128, 128>}, {pipeline_mode = #tpu.pipeline_mode<synchronous>, transform_indices = @transform_4, window_bounds = array<i64: 1, 128>}, {pipeline_mode = #tpu.pipeline_mode<synchronous>, transform_indices = @transform_5, window_bounds = array<i64: 1, 128>}, {transform_indices = @transform_6, window_bounds = array<i64: 128, 128>}]} {
    %c0_i32 = arith.constant 0 : i32
    %0 = arith.cmpi eq, %arg1, %c0_i32 : i32
    %1 = arith.extui %0 : i1 to i32
    %c0_i32_0 = arith.constant 0 : i32
    %2 = arith.cmpi ne, %1, %c0_i32_0 : i32
    scf.if %2 {
      %cst_9 = arith.constant 0.000000e+00 : f32
      %12 = vector.broadcast %cst_9 : f32 to vector<128x128xf32>
      %c0_10 = arith.constant 0 : index
      %c0_11 = arith.constant 0 : index
      %13 = vector.load %arg9[%c0_10, %c0_11] : memref<128x128xf32, #tpu.memory_space<vmem>>, vector<128x128xf32>
      tpu.vector_store %arg9[%c0_10, %c0_11], %12 {strides = array<i32>} : memref<128x128xf32, #tpu.memory_space<vmem>>, vector<128x128xf32>,
    } else {
    }
    %c0 = arith.constant 0 : index
    %c0_1 = arith.constant 0 : index
    %3 = vector.load %arg9[%c0, %c0_1] : memref<128x128xf32, #tpu.memory_space<vmem>>, vector<128x128xf32>
    %c0_2 = arith.constant 0 : index
    %c0_3 = arith.constant 0 : index
    %4 = vector.load %arg2[%c0_2, %c0_3] : memref<128x256xbf16, #tpu.memory_space<vmem>>, vector<128x256xbf16>
    %c0_4 = arith.constant 0 : index
    %c0_5 = arith.constant 0 : index
    %5 = vector.load %arg3[%c0_4, %c0_5] : memref<256x128xbf16, #tpu.memory_space<vmem>>, vector<256x128xbf16>
    %cst = arith.constant dense<0.000000e+00> : vector<128x128xf32>
    %6 = tpu.matmul %4, %5, %cst {dimension_numbers = #tpu.dot_dimension_numbers<[1], [0], [0], [1], [0, 0, 1, 1], [], []>} : vector<128x256xbf16>, vector<256x128xbf16>, vector<128x128xf32> -> vector<128x128xf32>
    %7 = arith.addf %3, %6 : vector<128x128xf32>
    %c0_6 = arith.constant 0 : index
    %c0_7 = arith.constant 0 : index
    %8 = vector.load %arg9[%c0_6, %c0_7] : memref<128x128xf32, #tpu.memory_space<vmem>>, vector<128x128xf32>
    tpu.vector_store %arg9[%c0_6, %c0_7], %7 {strides = array<i32>} : memref<128x128xf32, #tpu.memory_space<vmem>>, vector<128x128xf32>,
    %c1_i32 = arith.constant 1 : i32
    %9 = arith.cmpi eq, %arg1, %c1_i32 : i32
    %10 = arith.extui %9 : i1 to i32
    %c0_i32_8 = arith.constant 0 : i32
    %11 = arith.cmpi ne, %10, %c0_i32_8 : i32
    scf.if %11 {
      %c0_9 = arith.constant 0 : index
      %c0_10 = arith.constant 0 : index
      %12 = vector.load %arg9[%c0_9, %c0_10] : memref<128x128xf32, #tpu.memory_space<vmem>>, vector<128x128xf32>
      %c0_11 = arith.constant 0 : index
      %c0_12 = arith.constant 0 : index
      %13 = vector.load %arg4[%c0_11, %c0_12] : memref<1x128xf32, #tpu.memory_space<vmem>>, vector<1x128xf32>
      %14 = vector.broadcast %13 : vector<1x128xf32> to vector<128x128xf32>
      %15 = arith.addf %12, %14 : vector<128x128xf32>
      %c0_13 = arith.constant 0 : index
      %c0_14 = arith.constant 0 : index
      %16 = vector.load %arg5[%c0_13, %c0_14] : memref<128x128xbf16, #tpu.memory_space<vmem>>, vector<128x128xbf16>
      %17 = arith.extf %16 : vector<128x128xbf16> to vector<128x128xf32>
      %18 = arith.addf %15, %17 : vector<128x128xf32>
      %cst_15 = arith.constant dense<0.000000e+00> : vector<128xf32>
      %19 = vector.multi_reduction <add>, %18, %cst_15 [1] : vector<128x128xf32> to vector<128xf32>
      %20 = vector.shape_cast %19 : vector<128xf32> to vector<128x1xf32>
      %cst_16 = arith.constant 1.280000e+02 : f32
      %21 = vector.broadcast %cst_16 : f32 to vector<128x1xf32>
      %22 = arith.divf %20, %21 : vector<128x1xf32>
      %23 = vector.broadcast %22 : vector<128x1xf32> to vector<128x128xf32>
      %24 = arith.subf %18, %23 : vector<128x128xf32>
      %25 = arith.mulf %24, %24 : vector<128x128xf32>
      %cst_17 = arith.constant dense<0.000000e+00> : vector<128xf32>
      %26 = vector.multi_reduction <add>, %25, %cst_17 [1] : vector<128x128xf32> to vector<128xf32>
      %27 = vector.shape_cast %26 : vector<128xf32> to vector<128x1xf32>
      %cst_18 = arith.constant 1.280000e+02 : f32
      %28 = vector.broadcast %cst_18 : f32 to vector<128x1xf32>
      %29 = arith.divf %27, %28 : vector<128x1xf32>
      %cst_19 = arith.constant 9.99999996E-13 : f32
      %30 = vector.broadcast %cst_19 : f32 to vector<128x1xf32>
      %31 = arith.addf %29, %30 : vector<128x1xf32>
      %32 = math.rsqrt %31 : vector<128x1xf32>
      %33 = vector.broadcast %32 : vector<128x1xf32> to vector<128x128xf32>
      %34 = arith.mulf %24, %33 : vector<128x128xf32>
      %c0_20 = arith.constant 0 : index
      %c0_21 = arith.constant 0 : index
      %35 = vector.load %arg6[%c0_20, %c0_21] : memref<1x128xf32, #tpu.memory_space<vmem>>, vector<1x128xf32>
      %36 = vector.broadcast %35 : vector<1x128xf32> to vector<128x128xf32>
      %37 = arith.mulf %34, %36 : vector<128x128xf32>
      %c0_22 = arith.constant 0 : index
      %c0_23 = arith.constant 0 : index
      %38 = vector.load %arg7[%c0_22, %c0_23] : memref<1x128xf32, #tpu.memory_space<vmem>>, vector<1x128xf32>
      %39 = vector.broadcast %38 : vector<1x128xf32> to vector<128x128xf32>
      %40 = arith.addf %37, %39 : vector<128x128xf32>
      %41 = arith.truncf %40 : vector<128x128xf32> to vector<128x128xbf16>
      %c0_24 = arith.constant 0 : index
      %c0_25 = arith.constant 0 : index
      %42 = vector.load %arg8[%c0_24, %c0_25] : memref<128x128xbf16, #tpu.memory_space<vmem>>, vector<128x128xbf16>
      tpu.vector_store %arg8[%c0_24, %c0_25], %41 {strides = array<i32>} : memref<128x128xbf16, #tpu.memory_space<vmem>>, vector<128x128xbf16>,
    } else {
    }
    return
  }
  func.func @transform_0(%arg0: i32, %arg1: i32) -> (i32, i32) {
    %c0_i32 = arith.constant 0 : i32
    return %arg0, %arg1 : i32, i32
  }
  func.func @transform_1(%arg0: i32, %arg1: i32) -> (i32, i32) {
    %c0_i32 = arith.constant 0 : i32
    %c0_i32_0 = arith.constant 0 : i32
    return %arg1, %c0_i32 : i32, i32
  }
  func.func @transform_2(%arg0: i32, %arg1: i32) -> (i32, i32) {
    %c0_i32 = arith.constant 0 : i32
    %c0_i32_0 = arith.constant 0 : i32
    %c0_i32_1 = arith.constant 0 : i32
    return %c0_i32, %c0_i32_0 : i32, i32
  }
  func.func @transform_3(%arg0: i32, %arg1: i32) -> (i32, i32) {
    %c0_i32 = arith.constant 0 : i32
    %c0_i32_0 = arith.constant 0 : i32
    return %arg0, %c0_i32 : i32, i32
  }
  func.func @transform_4(%arg0: i32, %arg1: i32) -> (i32, i32) {
    %c0_i32 = arith.constant 0 : i32
    %c0_i32_0 = arith.constant 0 : i32
    %c0_i32_1 = arith.constant 0 : i32
    return %c0_i32, %c0_i32_0 : i32, i32
  }
  func.func @transform_5(%arg0: i32, %arg1: i32) -> (i32, i32) {
    %c0_i32 = arith.constant 0 : i32
    %c0_i32_0 = arith.constant 0 : i32
    %c0_i32_1 = arith.constant 0 : i32
    return %c0_i32, %c0_i32_0 : i32, i32
  }
  func.func @transform_6(%arg0: i32, %arg1: i32) -> (i32, i32) {
    %c0_i32 = arith.constant 0 : i32
    %c0_i32_0 = arith.constant 0 : i32
    return %arg0, %c0_i32 : i32, i32
  }
}

module attributes {stable_mosaic.version = 11 : i64} {
  func.func @_cls_head_kernel(%arg0: i32, %arg1: memref<4x128xbf16, #tpu.memory_space<vmem>>, %arg2: memref<128x50xf32, #tpu.memory_space<vmem>>, %arg3: memref<1x50xf32, #tpu.memory_space<vmem>>, %arg4: memref<50x2xf32, #tpu.memory_space<vmem>>, %arg5: memref<1x2xf32, #tpu.memory_space<vmem>>, %arg6: memref<4x2xf32, #tpu.memory_space<vmem>>) attributes {dimension_semantics = [#tpu.dimension_semantics<arbitrary>], iteration_bounds = array<i64: 1>, scalar_prefetch = 0 : i64, scratch_operands = 0 : i64, tpu.core_type = #tpu.core_type<tc>, window_params = [{pipeline_mode = #tpu.pipeline_mode<synchronous>, transform_indices = @transform_0, window_bounds = array<i64: 4, 128>}, {pipeline_mode = #tpu.pipeline_mode<synchronous>, transform_indices = @transform_1, window_bounds = array<i64: 128, 50>}, {pipeline_mode = #tpu.pipeline_mode<synchronous>, transform_indices = @transform_2, window_bounds = array<i64: 1, 50>}, {pipeline_mode = #tpu.pipeline_mode<synchronous>, transform_indices = @transform_3, window_bounds = array<i64: 50, 2>}, {pipeline_mode = #tpu.pipeline_mode<synchronous>, transform_indices = @transform_4, window_bounds = array<i64: 1, 2>}, {pipeline_mode = #tpu.pipeline_mode<synchronous>, transform_indices = @transform_5, window_bounds = array<i64: 4, 2>}]} {
    %c0 = arith.constant 0 : index
    %c0_0 = arith.constant 0 : index
    %0 = vector.load %arg1[%c0, %c0_0] : memref<4x128xbf16, #tpu.memory_space<vmem>>, vector<4x128xbf16>
    %1 = arith.extf %0 : vector<4x128xbf16> to vector<4x128xf32>
    %c0_1 = arith.constant 0 : index
    %c0_2 = arith.constant 0 : index
    %2 = vector.load %arg2[%c0_1, %c0_2] : memref<128x50xf32, #tpu.memory_space<vmem>>, vector<128x50xf32>
    %cst = arith.constant dense<0.000000e+00> : vector<4x50xf32>
    %3 = tpu.matmul %1, %2, %cst {dimension_numbers = #tpu.dot_dimension_numbers<[1], [0], [0], [1], [0, 0, 1, 1], [], []>} : vector<4x128xf32>, vector<128x50xf32>, vector<4x50xf32> -> vector<4x50xf32>
    %c0_3 = arith.constant 0 : index
    %c0_4 = arith.constant 0 : index
    %4 = vector.load %arg3[%c0_3, %c0_4] : memref<1x50xf32, #tpu.memory_space<vmem>>, vector<1x50xf32>
    %5 = vector.broadcast %4 : vector<1x50xf32> to vector<4x50xf32>
    %6 = arith.addf %3, %5 : vector<4x50xf32>
    %cst_5 = arith.constant 0.000000e+00 : f32
    %7 = vector.broadcast %cst_5 : f32 to vector<4x50xf32>
    %8 = arith.maximumf %6, %7 : vector<4x50xf32>
    %c0_6 = arith.constant 0 : index
    %c0_7 = arith.constant 0 : index
    %9 = vector.load %arg4[%c0_6, %c0_7] : memref<50x2xf32, #tpu.memory_space<vmem>>, vector<50x2xf32>
    %cst_8 = arith.constant dense<0.000000e+00> : vector<4x2xf32>
    %10 = tpu.matmul %8, %9, %cst_8 {dimension_numbers = #tpu.dot_dimension_numbers<[1], [0], [0], [1], [0, 0, 1, 1], [], []>} : vector<4x50xf32>, vector<50x2xf32>, vector<4x2xf32> -> vector<4x2xf32>
    %c0_9 = arith.constant 0 : index
    %c0_10 = arith.constant 0 : index
    %11 = vector.load %arg5[%c0_9, %c0_10] : memref<1x2xf32, #tpu.memory_space<vmem>>, vector<1x2xf32>
    %12 = vector.broadcast %11 : vector<1x2xf32> to vector<4x2xf32>
    %13 = arith.addf %10, %12 : vector<4x2xf32>
    %c0_11 = arith.constant 0 : index
    %c0_12 = arith.constant 0 : index
    %14 = vector.load %arg6[%c0_11, %c0_12] : memref<4x2xf32, #tpu.memory_space<vmem>>, vector<4x2xf32>
    tpu.vector_store %arg6[%c0_11, %c0_12], %13 {strides = array<i32>} : memref<4x2xf32, #tpu.memory_space<vmem>>, vector<4x2xf32>,
    return
  }
  func.func @transform_0(%arg0: i32) -> (i32, i32) {
    %c0_i32 = arith.constant 0 : i32
    %c0_i32_0 = arith.constant 0 : i32
    %c0_i32_1 = arith.constant 0 : i32
    return %c0_i32, %c0_i32_0 : i32, i32
  }
  func.func @transform_1(%arg0: i32) -> (i32, i32) {
    %c0_i32 = arith.constant 0 : i32
    %c0_i32_0 = arith.constant 0 : i32
    %c0_i32_1 = arith.constant 0 : i32
    return %c0_i32, %c0_i32_0 : i32, i32
  }
  func.func @transform_2(%arg0: i32) -> (i32, i32) {
    %c0_i32 = arith.constant 0 : i32
    %c0_i32_0 = arith.constant 0 : i32
    %c0_i32_1 = arith.constant 0 : i32
    return %c0_i32, %c0_i32_0 : i32, i32
  }
  func.func @transform_3(%arg0: i32) -> (i32, i32) {
    %c0_i32 = arith.constant 0 : i32
    %c0_i32_0 = arith.constant 0 : i32
    %c0_i32_1 = arith.constant 0 : i32
    return %c0_i32, %c0_i32_0 : i32, i32
  }
  func.func @transform_4(%arg0: i32) -> (i32, i32) {
    %c0_i32 = arith.constant 0 : i32
    %c0_i32_0 = arith.constant 0 : i32
    %c0_i32_1 = arith.constant 0 : i32
    return %c0_i32, %c0_i32_0 : i32, i32
  }
  func.func @transform_5(%arg0: i32) -> (i32, i32) {
    %c0_i32 = arith.constant 0 : i32
    %c0_i32_0 = arith.constant 0 : i32
    %c0_i32_1 = arith.constant 0 : i32
    return %c0_i32, %c0_i32_0 : i32, i32
  }
}

</mosaic_0001>

<bundles_post_ra>
// kernel: bert_classifier_forward.12
= control target key start
LH: loop header
LB: loop body
LE: loop exit
PB: predicated region body
PF: predicated region fallthrough
CT: control target
= control target key end

     0   :  { %s709_s12 = smov 0   ;;  %s882_s0 = inlined_call_operand.vmem [shape: f32[512,128], index: 0, kind: input, shape index: {}]   ;;  %s883_s1 = inlined_call_operand.vmem [shape: f32[1,128], index: 1, kind: input, shape index: {}]   ;;  %s884_s2 = inlined_call_operand.vmem [shape: f32[1,128], index: 2, kind: input, shape index: {}]   ;;  %s885_s3 = inlined_call_operand.vmem [shape: bf16[512,128], index: 3, kind: output, shape index: {}]  }
   0x1 LB: > { %s549_s13 = sadd.s32 4294967295, %s687_s12   ;;  %p553_p0 = scmp.ge.s32.totalorder %s687_s12, 1  ;;  %s687_s12 = sphi %s709_s12, %s13_s12  }
   0x2   : > { %p138_p1 = scmp.lt.s32.totalorder %s687_s12, 5 }
   0x4   : > { %p139_p2 = pnand %p553_p0, %p138_p1 }
   0x5   : > { %s554_s14 = sshll.u32 (!%p139_p2), %s549_s13, 4 }
   0x6   : > { %142 = sbr.rel (%p139_p2) target bundleno = 363 (0x16b), region = 32  ;;  %p163_p3 = scmp.lt.s32.totalorder (!%p139_p2), %s554_s14, 63 }
   0xd   : > { %s887_s14 = smov (!%p163_p3, %s554_s14), 63 }
   0xe   : > { %s555_s15 = sshll.u32 %s887_s14, 3  ;;  %s557_s23 = sshll.u32 %s887_s14, 2 }
   0xf   : > { %s166_s18 = scalar_lea.vmem %s882_s0, %s555_s15  ;;  %s830_s26 = scalar_lea.vmem %s885_s3, %s557_s23 }
  0x10   : > { %v174_v0 = vld [vmem:[%s166_s18] sm:$0xff]  ;;  %v176_v1 = vld [vmem:[%s166_s18 + $0x10] sm:$0xff]  ;;  %v175_v2 = vld [vmem:[%s166_s18 + $0x8] sm:$0xff] }
  0x11   : > { %190 = vadd.xlane.f32.xlu0 %v174_v0  ;;  %194 = vadd.xlane.f32.xlu1 %v176_v1  ;;  %v177_v3 = vld [vmem:[%s166_s18 + $0x18] sm:$0xff]  ;;  %v178_v4 = vld [vmem:[%s166_s18 + $0x20] sm:$0xff]  ;;  %v179_v5 = vld [vmem:[%s166_s18 + $0x28] sm:$0xff] }
  0x12   : > { %v180_v6 = vld [vmem:[%s166_s18 + $0x30] sm:$0xff]  ;;  %v181_v7 = vld [vmem:[%s166_s18 + $0x38] sm:$0xff]  ;;  %v182_v8 = vld [vmem:[%s166_s18 + $0x40] sm:$0xff] }
  0x13   : > { %v183_v9 = vld [vmem:[%s166_s18 + $0x48] sm:$0xff]  ;;  %v184_v10 = vld [vmem:[%s166_s18 + $0x50] sm:$0xff]  ;;  %v723_v11 = vld [vmem:[%s166_s18 + $0x58] sm:$0xff] }
  0x14   : > { %v726_v12 = vld [vmem:[%s166_s18 + $0x60] sm:$0xff]  ;;  %v728_v13 = vld [vmem:[%s166_s18 + $0x68] sm:$0xff]  ;;  %v732_v14 = vld [vmem:[%s166_s18 + $0x70] sm:$0xff] }
  0x15   : > { %192 = vadd.xlane.f32.xlu0 %v175_v2  ;;  %196 = vadd.xlane.f32.xlu1 %v177_v3  ;;  %v734_v15 = vld [vmem:[%s166_s18 + $0x78] sm:$0xff] }
  0x19   : > { %198 = vadd.xlane.f32.xlu0 %v178_v4  ;;  %200 = vadd.xlane.f32.xlu1 %v179_v5 }
  0x1d   : > { %202 = vadd.xlane.f32.xlu0 %v180_v6  ;;  %204 = vadd.xlane.f32.xlu1 %v181_v7 }
  0x21   : > { %206 = vadd.xlane.f32.xlu0 %v182_v8  ;;  %208 = vadd.xlane.f32.xlu1 %v183_v9 }
  0x25   : > { %210 = vadd.xlane.f32.xlu0 %v184_v10  ;;  %212 = vadd.xlane.f32.xlu1 %v723_v11 }
  0x29   : > { %214 = vadd.xlane.f32.xlu0 %v726_v12  ;;  %216 = vadd.xlane.f32.xlu1 %v728_v13 }
  0x2d   : > { %218 = vadd.xlane.f32.xlu0 %v732_v14  ;;  %220 = vadd.xlane.f32.xlu1 %v734_v15 }
  0x9e   : > { %v191_v16 = vpop.xlane.xlu0 %190  ;;  %v195_v17 = vpop.xlane.xlu1 %194 }
  0x9f   : > { %v223_v18 = vmul.f32 0.0078125, %v191_v16  ;;  %v225_v19 = vmul.f32 0.0078125, %v195_v17 }
  0xa1   : > { %v738_v20 = vsub.f32 %v174_v0, %v223_v18  ;;  %v740_v21 = vsub.f32 %v176_v1, %v225_v19 }
  0xa2   : > { %v193_v22 = vpop.xlane.xlu0 %192  ;;  %v197_v23 = vpop.xlane.xlu1 %196 }
  0xa3   : > { %v224_v24 = vmul.f32 0.0078125, %v193_v22  ;;  %v255_v25 = vmul.f32 %v738_v20, %v738_v20  ;;  %v226_v26 = vmul.f32 0.0078125, %v197_v23  ;;  %v257_v29 = vmul.f32 %v740_v21, %v740_v21 }
  0xa5   : > { %v744_v27 = vsub.f32 %v175_v2, %v224_v24  ;;  %271 = vadd.xlane.f32.xlu0 %v255_v25  ;;  %v746_v28 = vsub.f32 %v177_v3, %v226_v26 }
  0xa6   : > { %v199_v30 = vpop.xlane.xlu0 %198  ;;  %v201_v31 = vpop.xlane.xlu1 %200 }
  0xa7   : > { %v227_v32 = vmul.f32 0.0078125, %v199_v30  ;;  %v256_v33 = vmul.f32 %v744_v27, %v744_v27  ;;  %v228_v34 = vmul.f32 0.0078125, %v201_v31  ;;  %v258_v37 = vmul.f32 %v746_v28, %v746_v28 }
  0xa9   : > { %v752_v35 = vsub.f32 %v178_v4, %v227_v32  ;;  %275 = vadd.xlane.f32.xlu0 %v257_v29  ;;  %273 = vadd.xlane.f32.xlu1 %v256_v33  ;;  %v754_v36 = vsub.f32 %v179_v5, %v228_v34 }
  0xaa   : > { %v203_v38 = vpop.xlane.xlu0 %202  ;;  %v205_v39 = vpop.xlane.xlu1 %204 }
  0xab   : > { %v229_v40 = vmul.f32 0.0078125, %v203_v38  ;;  %v259_v41 = vmul.f32 %v752_v35, %v752_v35  ;;  %v230_v42 = vmul.f32 0.0078125, %v205_v39  ;;  %v260_v45 = vmul.f32 %v754_v36, %v754_v36 }
  0xad   : > { %v760_v43 = vsub.f32 %v180_v6, %v229_v40  ;;  %277 = vadd.xlane.f32.xlu1 %v258_v37  ;;  %279 = vadd.xlane.f32.xlu0 %v259_v41  ;;  %v762_v44 = vsub.f32 %v181_v7, %v230_v42 }
  0xae   : > { %v207_v46 = vpop.xlane.xlu0 %206  ;;  %v209_v47 = vpop.xlane.xlu1 %208 }
  0xaf   : > { %v231_v48 = vmul.f32 0.0078125, %v207_v46  ;;  %v261_v49 = vmul.f32 %v760_v43, %v760_v43  ;;  %v232_v50 = vmul.f32 0.0078125, %v209_v47  ;;  %v262_v53 = vmul.f32 %v762_v44, %v762_v44 }
  0xb1   : > { %v768_v51 = vsub.f32 %v182_v8, %v231_v48  ;;  %281 = vadd.xlane.f32.xlu1 %v260_v45  ;;  %283 = vadd.xlane.f32.xlu0 %v261_v49  ;;  %v770_v52 = vsub.f32 %v183_v9, %v232_v50  ;;  %v811_v49 = vld [vmem:[%s883_s1] ss:$0 sm:$0xff] }
  0xb2   : > { %v211_v54 = vpop.xlane.xlu0 %210  ;;  %v213_v55 = vpop.xlane.xlu1 %212 }
  0xb3   : > { %v233_v56 = vmul.f32 0.0078125, %v211_v54  ;;  %v263_v57 = vmul.f32 %v768_v51, %v768_v51  ;;  %v234_v58 = vmul.f32 0.0078125, %v213_v55  ;;  %v264_v61 = vmul.f32 %v770_v52, %v770_v52 }
  0xb5   : > { %v776_v59 = vsub.f32 %v184_v10, %v233_v56  ;;  %285 = vadd.xlane.f32.xlu1 %v262_v53  ;;  %287 = vadd.xlane.f32.xlu0 %v263_v57  ;;  %v779_v60 = vsub.f32 %v723_v11, %v234_v58 }
  0xb6   : > { %v215_v62 = vpop.xlane.xlu0 %214  ;;  %v217_v63 = vpop.xlane.xlu1 %216 }
  0xb7   : > { %v235_v0 = vmul.f32 0.0078125, %v215_v62  ;;  %v265_v1 = vmul.f32 %v776_v59, %v776_v59  ;;  %v236_v2 = vmul.f32 0.0078125, %v217_v63  ;;  %v266_v5 = vmul.f32 %v779_v60, %v779_v60  ;;  %v818_v63 = vld [vmem:[%s884_s2] ss:$0 sm:$0xff] }
  0xb9   : > { %v786_v3 = vsub.f32 %v726_v12, %v235_v0  ;;  %289 = vadd.xlane.f32.xlu1 %v264_v61  ;;  %291 = vadd.xlane.f32.xlu0 %v265_v1  ;;  %v789_v4 = vsub.f32 %v728_v13, %v236_v2 }
  0xba   : > { %v219_v6 = vpop.xlane.xlu0 %218  ;;  %v221_v7 = vpop.xlane.xlu1 %220 }
  0xbb   : > { %v237_v8 = vmul.f32 0.0078125, %v219_v6  ;;  %v267_v9 = vmul.f32 %v786_v3, %v786_v3  ;;  %v238_v10 = vmul.f32 0.0078125, %v221_v7  ;;  %v268_v13 = vmul.f32 %v789_v4, %v789_v4 }
  0xbd   : > { %v796_v11 = vsub.f32 %v732_v14, %v237_v8  ;;  %293 = vadd.xlane.f32.xlu1 %v266_v5  ;;  %295 = vadd.xlane.f32.xlu0 %v267_v9  ;;  %v799_v12 = vsub.f32 %v734_v15, %v238_v10 }
  0xbf   : > { %v269_v16 = vmul.f32 %v796_v11, %v796_v11  ;;  %v270_v17 = vmul.f32 %v799_v12, %v799_v12 }
  0xc1   : > { %297 = vadd.xlane.f32.xlu1 %v268_v13  ;;  %299 = vadd.xlane.f32.xlu0 %v269_v16 }
  0xc5   : > { %301 = vadd.xlane.f32.xlu1 %v270_v17 }
 0x132   : > { %v272_v18 = vpop.xlane.xlu0 %271 }
 0x133   : > { %v303_v14 = vmul.f32 0.0078125, %v272_v18 }
 0x135   : > { %v319_v19 = vadd.f32 1e-12, %v303_v14 }
 0x136   : > { %v274_v22 = vpop.xlane.xlu1 %273  ;;  %v276_v23 = vpop.xlane.xlu0 %275 }
 0x137   : > { %649 = vrsqrt.f32 %v319_v19  ;;  %v304_v15 = vmul.f32 0.0078125, %v274_v22  ;;  %v305_v24 = vmul.f32 0.0078125, %v276_v23 }
 0x139   : > { %v320_v25 = vadd.f32 1e-12, %v304_v15  ;;  %v321_v26 = vadd.f32 1e-12, %v305_v24 }
 0x13a   : > { %v278_v29 = vpop.xlane.xlu1 %277  ;;  %v280_v30 = vpop.xlane.xlu0 %279 }
 0x13b   : > { %651 = vrsqrt.f32 %v320_v25  ;;  %v306_v31 = vmul.f32 0.0078125, %v278_v29  ;;  %v307_v32 = vmul.f32 0.0078125, %v280_v30 }
 0x13c   : > { %653 = vrsqrt.f32 %v321_v26 }
 0x13d   : > { %v322_v33 = vadd.f32 1e-12, %v306_v31  ;;  %v323_v34 = vadd.f32 1e-12, %v307_v32 }
 0x13e   : > { %v282_v37 = vpop.xlane.xlu1 %281  ;;  %v284_v38 = vpop.xlane.xlu0 %283 }
 0x13f   : > { %655 = vrsqrt.f32 %v322_v33  ;;  %v308_v39 = vmul.f32 0.0078125, %v282_v37  ;;  %v309_v40 = vmul.f32 0.0078125, %v284_v38 }
 0x140   : > { %657 = vrsqrt.f32 %v323_v34 }
 0x141   : > { %v650_v41 = vpop.eup %649  ;;  %v324_v42 = vadd.f32 1e-12, %v308_v39  ;;  %v325_v45 = vadd.f32 1e-12, %v309_v40 }
 0x142   : > { %v351_v46 = vmul.f32 %v650_v41, %v738_v20  ;;  %v286_v47 = vpop.xlane.xlu1 %285  ;;  %v288_v48 = vpop.xlane.xlu0 %287 }
 0x143   : > { %659 = vrsqrt.f32 %v324_v42  ;;  %v310_v50 = vmul.f32 0.0078125, %v286_v47  ;;  %v311_v53 = vmul.f32 0.0078125, %v288_v48 }
 0x144   : > { %661 = vrsqrt.f32 %v325_v45  ;;  %v374_v58 = vmul.f32 %v811_v49, %v351_v46 }
 0x145   : > { %v652_v54 = vpop.eup %651  ;;  %v326_v55 = vadd.f32 1e-12, %v310_v50  ;;  %v327_v56 = vadd.f32 1e-12, %v311_v53 }
 0x146   : > { %v654_v57 = vpop.eup %653  ;;  %v352_v20 = vmul.f32 %v652_v54, %v744_v27  ;;  %v290_v61 = vpop.xlane.xlu1 %289  ;;  %v397_v9 = vadd.f32 %v818_v63, %v374_v58 }
 0x147   : > { %v292_v62 = vpop.xlane.xlu0 %291  ;;  %v353_v0 = vmul.f32 %v654_v57, %v740_v21  ;;  %663 = vrsqrt.f32 %v326_v55  ;;  %v312_v1 = vmul.f32 0.0078125, %v290_v61 }
 0x148   : > { %v313_v2 = vmul.f32 0.0078125, %v292_v62  ;;  %v375_v5 = vmul.f32 %v811_v49, %v352_v20  ;;  %665 = vrsqrt.f32 %v327_v56 }
 0x149   : > { %v656_v6 = vpop.eup %655  ;;  %v328_v7 = vadd.f32 1e-12, %v312_v1  ;;  %v376_v13 = vmul.f32 %v811_v49, %v353_v0 }
 0x14a   : > { %v329_v8 = vadd.f32 1e-12, %v313_v2  ;;  %v658_v27 = vpop.eup %657  ;;  %v398_v10 = vadd.f32 %v818_v63, %v375_v5  ;;  %v354_v16 = vmul.f32 %v656_v6, %v746_v28  ;;  %v294_v21 = vpop.xlane.xlu1 %293 }
 0x14b   : > { %v296_v17 = vpop.xlane.xlu0 %295  ;;  %v355_v18 = vmul.f32 %v658_v27, %v752_v35  ;;  %667 = vrsqrt.f32 %v328_v7  ;;  %v314_v14 = vmul.f32 0.0078125, %v294_v21  ;;  %v399_v26 = vadd.f32 %v818_v63, %v376_v13 }
 0x14c   : > { %v597_v19 = vpack.c.bf16 %v398_v10, %v397_v9  ;;  %v377_v22 = vmul.f32 %v811_v49, %v354_v16  ;;  %669 = vrsqrt.f32 %v329_v8  ;;  %v315_v23 = vmul.f32 0.0078125, %v296_v17 }
 0x14d   : > { %v660_v15 = vpop.eup %659  ;;  %v378_v28 = vmul.f32 %v811_v49, %v355_v18  ;;  %v330_v24 = vadd.f32 1e-12, %v314_v14 }
 0x14e   : > { %v662_v25 = vpop.eup %661  ;;  %598 = vst [vmem:[%s830_s26] sm:$0xff] %v597_v19   ;;  %v400_v29 = vadd.f32 %v818_v63, %v377_v22  ;;  %v356_v35 = vmul.f32 %v660_v15, %v754_v36  ;;  %v331_v30 = vadd.f32 1e-12, %v315_v23  ;;  %v298_v31 = vpop.xlane.xlu1 %297 }
 0x14f   : > { %v300_v32 = vpop.xlane.xlu0 %299  ;;  %v357_v33 = vmul.f32 %v662_v25, %v760_v43  ;;  %671 = vrsqrt.f32 %v330_v24  ;;  %v316_v34 = vmul.f32 0.0078125, %v298_v31  ;;  %v401_v41 = vadd.f32 %v818_v63, %v378_v28 }
 0x150   : > { %v602_v37 = vpack.c.bf16 %v400_v29, %v399_v26  ;;  %v379_v38 = vmul.f32 %v811_v49, %v356_v35  ;;  %673 = vrsqrt.f32 %v331_v30  ;;  %v317_v39 = vmul.f32 0.0078125, %v300_v32 }
 0x151   : > { %v664_v40 = vpop.eup %663  ;;  %v332_v42 = vadd.f32 1e-12, %v316_v34  ;;  %v380_v46 = vmul.f32 %v811_v49, %v357_v33 }
 0x152   : > { %v666_v45 = vpop.eup %665  ;;  %634 = vst [vmem:[%s830_s26 + $0x8] sm:$0xff] %v602_v37   ;;  %v402_v36 = vadd.f32 %v818_v63, %v379_v38  ;;  %v358_v43 = vmul.f32 %v664_v40, %v762_v44  ;;  %v333_v47 = vadd.f32 1e-12, %v317_v39  ;;  %v302_v48 = vpop.xlane.xlu1 %301 }
 0x153   : > { %v359_v50 = vmul.f32 %v666_v45, %v768_v51  ;;  %675 = vrsqrt.f32 %v332_v42  ;;  %v318_v53 = vmul.f32 0.0078125, %v302_v48  ;;  %v403_v20 = vadd.f32 %v818_v63, %v380_v46 }
 0x154   : > { %v607_v54 = vpack.c.bf16 %v402_v36, %v401_v41  ;;  %v381_v55 = vmul.f32 %v811_v49, %v358_v43  ;;  %677 = vrsqrt.f32 %v333_v47 }
 0x155   : > { %v668_v56 = vpop.eup %667  ;;  %v334_v57 = vadd.f32 1e-12, %v318_v53  ;;  %v382_v44 = vmul.f32 %v811_v49, %v359_v50 }
 0x156   : > { %v670_v58 = vpop.eup %669  ;;  %635 = vst [vmem:[%s830_s26 + $0x10] sm:$0xff] %v607_v54   ;;  %v404_v61 = vadd.f32 %v818_v63, %v381_v55  ;;  %v360_v62 = vmul.f32 %v668_v56, %v770_v52 }
 0x157   : > { %v361_v51 = vmul.f32 %v670_v58, %v776_v59  ;;  %679 = vrsqrt.f32 %v334_v57  ;;  %v405_v6 = vadd.f32 %v818_v63, %v382_v44 }
 0x158   : > { %v612_v0 = vpack.c.bf16 %v404_v61, %v403_v20  ;;  %v383_v1 = vmul.f32 %v811_v49, %v360_v62 }
 0x159   : > { %v672_v2 = vpop.eup %671  ;;  %v384_v8 = vmul.f32 %v811_v49, %v361_v51 }
 0x15a   : > { %v674_v5 = vpop.eup %673  ;;  %636 = vst [vmem:[%s830_s26 + $0x18] sm:$0xff] %v612_v0   ;;  %v406_v7 = vadd.f32 %v818_v63, %v383_v1  ;;  %v362_v27 = vmul.f32 %v672_v2, %v779_v60 }
 0x15b   : > { %v363_v52 = vmul.f32 %v674_v5, %v786_v3  ;;  %v407_v16 = vadd.f32 %v818_v63, %v384_v8 }
 0x15c   : > { %v617_v59 = vpack.c.bf16 %v406_v7, %v405_v6  ;;  %v385_v9 = vmul.f32 %v811_v49, %v362_v27 }
 0x15d   : > { %v676_v10 = vpop.eup %675  ;;  %v386_v17 = vmul.f32 %v811_v49, %v363_v52 }
 0x15e   : > { %v678_v13 = vpop.eup %677  ;;  %637 = vst [vmem:[%s830_s26 + $0x20] sm:$0xff] %v617_v59   ;;  %v408_v21 = vadd.f32 %v818_v63, %v385_v9  ;;  %v364_v18 = vmul.f32 %v676_v10, %v789_v4 }
 0x15f   : > { %v365_v60 = vmul.f32 %v678_v13, %v796_v11  ;;  %v409_v22 = vadd.f32 %v818_v63, %v386_v17 }
 0x160   : > { %v622_v14 = vpack.c.bf16 %v408_v21, %v407_v16  ;;  %v387_v3 = vmul.f32 %v811_v49, %v364_v18 }
 0x161   : > { %v680_v19 = vpop.eup %679  ;;  %v388_v15 = vmul.f32 %v811_v49, %v365_v60 }
 0x162   : > { %638 = vst [vmem:[%s830_s26 + $0x28] sm:$0xff] %v622_v14   ;;  %v410_v23 = vadd.f32 %v818_v63, %v387_v3  ;;  %v366_v28 = vmul.f32 %v680_v19, %v799_v12 }
 0x163   : > { %v411_v4 = vadd.f32 %v818_v63, %v388_v15 }
 0x164   : > { %v627_v24 = vpack.c.bf16 %v410_v23, %v409_v22  ;;  %v389_v25 = vmul.f32 %v811_v49, %v366_v28 }
 0x166   : > { %639 = vst [vmem:[%s830_s26 + $0x30] sm:$0xff] %v627_v24   ;;  %v412_v11 = vadd.f32 %v818_v63, %v389_v25 }
 0x168   : > { %v632_v26 = vpack.c.bf16 %v412_v11, %v411_v4 }
 0x16a   : > { %640 = vst [vmem:[%s830_s26 + $0x38] sm:$0xff] %v632_v26  }
 0x16b PF: > { %s13_s12 = sadd.s32 1, %s687_s12  }
 0x16c   : > { %p10_p4 = scmp.ge.s32.totalorder %s13_s12, 6  }
 0x16e   :  { %12 = sbr.rel (!%p10_p4) target bundleno = 1 (0x1), region = 62 }

// kernel: bert_classifier_forward.15
= control target key start
LH: loop header
LB: loop body
LE: loop exit
PB: predicated region body
PF: predicated region fallthrough
CT: control target
= control target key end

     0   :  { %s1450_s21 = smov 0   ;;  %s1452_s22 = smov 0   ;;  %s1752_s0 = inlined_call_operand.vmem [shape: bf16[512,128], index: 0, kind: input, shape index: {}]   ;;  %s1753_s1 = inlined_call_operand.vmem [shape: bf16[128,128], index: 1, kind: input, shape index: {}]   ;;  %s1754_s2 = inlined_call_operand.vmem [shape: f32[1,128], index: 2, kind: input, shape index: {}]   ;;  %s1755_s3 = inlined_call_operand.vmem [shape: bf16[512,128], index: 3, kind: input, shape index: {}]   ;;  %s1756_s4 = inlined_call_operand.vmem [shape: f32[1,128], index: 4, kind: input, shape index: {}]   ;;  %s1757_s5 = inlined_call_operand.vmem [shape: f32[1,128], index: 5, kind: input, shape index: {}]   ;;  %s1758_s6 = inlined_call_operand.vmem [shape: bf16[512,128], index: 6, kind: output, shape index: {}]  }
   0x1   :  { %s1454_s23 = smov 0  }
   0x2 LB: > { %s28_s24 = sadd.s32 1, %s1409_s22  ;;  %p1109_p0 = scmp.ge.s32.totalorder %s1413_s23, 1  ;;  %s1413_s23 = sphi %s1454_s23, %s16_s23   ;;  %s1409_s22 = sphi %s1452_s22, %s1760_s22   ;;  %s1405_s21 = sphi %s1450_s21, %s1759_s21  }
   0x3   : > { %p30_p1 = scmp.ge.s32.totalorder %s28_s24, 4  ;;  %p252_p2 = scmp.lt.s32.totalorder %s1413_s23, 5 }
   0x5   : > { %s1762_s24 = smov (%p30_p1, %s28_s24), 0  ;;  %p253_p3 = pnand %p1109_p0, %p252_p2 }
   0x6   : > { %v1343_v0 = vld [vmem:[%s1753_s1] sm:$0xff] (!%p253_p3)   ;;  %s1110_s27 = sshll.u32 (!%p253_p3), %s1405_s21, 4  ;;  %v1344_v1 = vld [vmem:[%s1753_s1 + $0x8] sm:$0xff] (!%p253_p3)   ;;  %v1345_v2 = vld [vmem:[%s1753_s1 + $0x10] sm:$0xff] (!%p253_p3)  }
   0x7   : > { %256 = sbr.rel (%p253_p3) target bundleno = 602 (0x25a), region = 44  ;;  %p296_p4 = scmp.lt.s32.totalorder (!%p253_p3), %s1110_s27, 63  ;;  %1271 = vmatprep.subr.bf16.mxu0 (!%p253_p3), %v1343_v0  ;;  %1303 = vmatprep.subr.bf16.mxu1 (!%p253_p3), %v1343_v0  ;;  %v1346_v3 = vld [vmem:[%s1753_s1 + $0x18] sm:$0xff] (!%p253_p3)   ;;  %v1347_v6 = vld [vmem:[%s1753_s1 + $0x20] sm:$0xff] (!%p253_p3)   ;;  %v1348_v7 = vld [vmem:[%s1753_s1 + $0x28] sm:$0xff] (!%p253_p3)  }
   0x8   : > { %1272 = vmatpush3.bf16.msra.mxu0 (!%p253_p3), %v1343_v0  ;;  %1311 = vmatpush3.bf16.msra.mxu1 (!%p253_p3), %v1343_v0  ;;  %v1349_v8 = vld [vmem:[%s1753_s1 + $0x30] sm:$0xff] (!%p253_p3)   ;;  %v1350_v9 = vld [vmem:[%s1753_s1 + $0x38] sm:$0xff] (!%p253_p3)   ;;  %v1519_v18 = vld [vmem:[%s1754_s2] ss:$0 sm:$0xff] (!%p253_p3) }
   0x9   : > { %1273 = vmatprep.subr.bf16.mxu0 (!%p253_p3), %v1344_v1  ;;  %1304 = vmatprep.subr.bf16.mxu1 (!%p253_p3), %v1344_v1 }
   0xc   : > { %1274 = vmatpush3.bf16.msra.mxu0 (!%p253_p3), %v1344_v1  ;;  %1312 = vmatpush3.bf16.msra.mxu1 (!%p253_p3), %v1344_v1 }
   0xd   : > { %1275 = vmatprep.subr.bf16.mxu0 (!%p253_p3), %v1345_v2  ;;  %1305 = vmatprep.subr.bf16.mxu1 (!%p253_p3), %v1345_v2 }
   0xe   : > { %s1764_s27 = smov (!%p296_p4, %s1110_s27), 63 }
   0xf   : > { %s1477_s8 = sshll.u32 %s1764_s27, 2 }
  0x10   : > { %s1483_s11 = scalar_lea.vmem %s1752_s0, %s1477_s8  ;;  %1276 = vmatpush3.bf16.msra.mxu0 %v1345_v2  ;;  %1313 = vmatpush3.bf16.msra.mxu1 %v1345_v2  ;;  %s1512_s27 = scalar_lea.vmem %s1755_s3, %s1477_s8 }
  0x11   : > { %v1351_v4 = vld [vmem:[%s1483_s11] sm:$0xff]   ;;  %1277 = vmatprep.subr.bf16.mxu0 %v1346_v3  ;;  %1306 = vmatprep.subr.bf16.mxu1 %v1346_v3  ;;  %v1353_v10 = vld [vmem:[%s1483_s11 + $0x8] sm:$0xff]   ;;  %v1355_v12 = vld [vmem:[%s1483_s11 + $0x10] sm:$0xff]   ;;  %s1695_s13 = scalar_lea.vmem %s1758_s6, %s1477_s8 }
  0x12   : > { %v1352_v5 = vld [vmem:[%s1483_s11 + $0x20] sm:$0xff]   ;;  %1287 = vmatprep.mubr.bf16.mxu0 %v1351_v4  ;;  %v1354_v11 = vld [vmem:[%s1483_s11 + $0x28] sm:$0xff]   ;;  %v1357_v13 = vld [vmem:[%s1483_s11 + $0x30] sm:$0xff]  }
  0x13   : > { %1295 = vmatprep.mubr.bf16.mxu1 %v1352_v5  ;;  %v1356_v14 = vld [vmem:[%s1483_s11 + $0x18] sm:$0xff]   ;;  %v1245_v16 = vld [vmem:[%s1512_s27 + $0x28] sm:$0xff]   ;;  %v1170_v21 = vld [vmem:[%s1512_s27] sm:$0xff]  }
  0x14   : > { %1278 = vmatpush3.bf16.msra.mxu0 %v1346_v3  ;;  %1314 = vmatpush3.bf16.msra.mxu1 %v1346_v3  ;;  %v1358_v15 = vld [vmem:[%s1483_s11 + $0x38] sm:$0xff]   ;;  %v1241_v17 = vld [vmem:[%s1512_s27 + $0x8] sm:$0xff]   ;;  %v1191_v19 = vunpack.c.l.bf16 %v1245_v16  ;;  %v1171_v30 = vunpack.c.l.bf16 %v1170_v21  ;;  %v1244_v38 = vld [vmem:[%s1512_s27 + $0x20] sm:$0xff]   ;;  %v1192_v40 = vunpack.c.h.bf16 %v1245_v16  ;;  %v1172_v51 = vunpack.c.h.bf16 %v1170_v21 }
  0x15   : > { %1279 = vmatprep.subr.bf16.mxu0 %v1347_v6  ;;  %1307 = vmatprep.subr.bf16.mxu1 %v1347_v6  ;;  %v1175_v20 = vunpack.c.l.bf16 %v1241_v17  ;;  %v1176_v31 = vunpack.c.h.bf16 %v1241_v17  ;;  %v1187_v39 = vunpack.c.l.bf16 %v1244_v38  ;;  %v1188_v50 = vunpack.c.h.bf16 %v1244_v38  ;;  %v1243_v52 = vld [vmem:[%s1512_s27 + $0x18] sm:$0xff]   ;;  %v1242_v2 = vld [vmem:[%s1512_s27 + $0x10] sm:$0xff]  }
  0x16   : > { %v1183_v62 = vunpack.c.l.bf16 %v1243_v52  ;;  %v1184_v63 = vunpack.c.h.bf16 %v1243_v52  ;;  %v1246_v5 = vld [vmem:[%s1512_s27 + $0x30] sm:$0xff]   ;;  %v1247_v16 = vld [vmem:[%s1512_s27 + $0x38] sm:$0xff]  }
  0x18   : > { %1280 = vmatpush3.bf16.msra.mxu0 %v1347_v6  ;;  %1315 = vmatpush3.bf16.msra.mxu1 %v1347_v6 }
  0x19   : > { %1281 = vmatprep.subr.bf16.mxu0 %v1348_v7  ;;  %1308 = vmatprep.subr.bf16.mxu1 %v1348_v7 }
  0x1c   : > { %1282 = vmatpush3.bf16.msra.mxu0 %v1348_v7  ;;  %1316 = vmatpush3.bf16.msra.mxu1 %v1348_v7 }
  0x1d   : > { %1283 = vmatprep.subr.bf16.mxu0 %v1349_v8  ;;  %1309 = vmatprep.subr.bf16.mxu1 %v1349_v8 }
  0x20   : > { %1284 = vmatpush3.bf16.msra.mxu0 %v1349_v8  ;;  %1317 = vmatpush3.bf16.msra.mxu1 %v1349_v8  ;;  %v1179_v8 = vunpack.c.l.bf16 %v1242_v2 }
  0x21   : > { %1285 = vmatprep.subr.bf16.mxu0 %v1350_v9  ;;  %1310 = vmatprep.subr.bf16.mxu1 %v1350_v9 }
  0x24   : > { %1286 = vmatpush3.bf16.msra.mxu0 %v1350_v9  ;;  %1318 = vmatpush3.bf16.msra.mxu1 %v1350_v9  ;;  %v1180_v9 = vunpack.c.h.bf16 %v1242_v2 }
  0x27   : > { %1288 = vmatmul.mubr.bf16.vlgmr.msra.gmra.mrb[0].mxu0 %v1353_v10  ;;  %1296 = vmatmul.mubr.bf16.vlgmr.msra.gmra.mrb[0].mxu1 %v1354_v11 }
  0x28   : > { %1291 = vmatprep.mubr.bf16.mxu0 %v1355_v12  ;;  %1299 = vmatprep.mubr.bf16.mxu1 %v1357_v13  ;;  %v1195_v12 = vunpack.c.l.bf16 %v1246_v5  ;;  %v1196_v13 = vunpack.c.h.bf16 %v1246_v5 }
  0x2f   : > { %1292 = vmatmul.mubr.bf16.gmra.mrb[4].mxu0 %v1356_v14  ;;  %1300 = vmatmul.mubr.bf16.gmra.mrb[4].mxu1 %v1358_v15 }
  0xfa   : > { %v1289_v22 = vpop.f32.mrb[0].mxu0  ;;  %v1297_v23 = vpop.f32.mrb[0].mxu1 }
  0xfb   : > { %v644_v24 = vadd.f32 %v1289_v22, %v1519_v18  ;;  %v652_v25 = vadd.f32 %v1297_v23, %v1519_v18  ;;  %v521_v26 = vpop.f32.mrb[1].mxu0  ;;  %v553_v27 = vpop.f32.mrb[1].mxu1  ;;  %v1199_v22 = vunpack.c.l.bf16 %v1247_v16  ;;  %v1200_v23 = vunpack.c.h.bf16 %v1247_v16 }
  0xfc   : > { %v1290_v28 = vpop.f32.mrb[2].mxu0  ;;  %v1298_v29 = vpop.f32.mrb[2].mxu1  ;;  %v642_v32 = vadd.f32 %v1519_v18, %v521_v26  ;;  %v650_v41 = vadd.f32 %v1519_v18, %v553_v27 }
  0xfd   : > { %v645_v33 = vadd.f32 %v1290_v28, %v1519_v18  ;;  %v524_v34 = vpop.f32.mrb[3].mxu0  ;;  %v556_v35 = vpop.f32.mrb[3].mxu1  ;;  %v1526_v36 = vadd.f32 %v1191_v19, %v652_v25  ;;  %v1528_v37 = vadd.f32 %v1175_v20, %v644_v24  ;;  %v653_v42 = vadd.f32 %v1298_v29, %v1519_v18 }
  0xfe   : > { %v1535_v43 = vadd.f32 %v1171_v30, %v642_v32  ;;  %v643_v54 = vadd.f32 %v1519_v18, %v524_v34  ;;  %v651_v55 = vadd.f32 %v1519_v18, %v556_v35  ;;  %v1544_v56 = vadd.f32 %v1187_v39, %v650_v41 }
  0xff   : > { %726 = vadd.xlane.f32.xlu0 %v1526_v36  ;;  %710 = vadd.xlane.f32.xlu1 %v1528_v37  ;;  %v1537_v44 = vadd.f32 %v1176_v31, %v645_v33  ;;  %v1546_v57 = vadd.f32 %v1192_v40, %v653_v42 }
 0x100   : > { %v1552_v0 = vadd.f32 %v1188_v50, %v651_v55  ;;  %v1554_v1 = vadd.f32 %v1172_v51, %v643_v54 }
 0x102   : > { %v1293_v45 = vpop.f32.mrb[4].mxu0  ;;  %v1301_v46 = vpop.f32.mrb[4].mxu1 }
 0x103   : > { %706 = vadd.xlane.f32.xlu0 %v1535_v43  ;;  %712 = vadd.xlane.f32.xlu1 %v1537_v44  ;;  %v537_v47 = vpop.f32.mrb[5].mxu0  ;;  %v569_v48 = vpop.f32.mrb[5].mxu1  ;;  %v648_v60 = vadd.f32 %v1293_v45, %v1519_v18  ;;  %v656_v20 = vadd.f32 %v1301_v46, %v1519_v18 }
 0x104   : > { %v1294_v49 = vpop.f32.mrb[6].mxu0  ;;  %v1302_v53 = vpop.f32.mrb[6].mxu1  ;;  %v646_v6 = vadd.f32 %v1519_v18, %v537_v47  ;;  %v654_v10 = vadd.f32 %v1519_v18, %v569_v48 }
 0x105   : > { %v540_v58 = vpop.f32.mrb[7].mxu0  ;;  %v572_v59 = vpop.f32.mrb[7].mxu1  ;;  %v649_v61 = vadd.f32 %v1294_v49, %v1519_v18  ;;  %v1559_v3 = vadd.f32 %v1183_v62, %v648_v60  ;;  %v657_v21 = vadd.f32 %v1302_v53, %v1519_v18  ;;  %v1585_v24 = vadd.f32 %v1199_v22, %v656_v20 }
 0x106   : > { %v647_v7 = vadd.f32 %v1519_v18, %v540_v58  ;;  %v655_v11 = vadd.f32 %v1519_v18, %v572_v59  ;;  %v1570_v14 = vadd.f32 %v1179_v8, %v646_v6  ;;  %v1577_v17 = vadd.f32 %v1195_v12, %v654_v10 }
 0x107   : > { %722 = vadd.xlane.f32.xlu0 %v1544_v56  ;;  %728 = vadd.xlane.f32.xlu1 %v1546_v57  ;;  %v1561_v4 = vadd.f32 %v1184_v63, %v649_v61  ;;  %v1587_v25 = vadd.f32 %v1200_v23, %v657_v21 }
 0x108   : > { %v1572_v15 = vadd.f32 %v1180_v9, %v647_v7  ;;  %v1579_v19 = vadd.f32 %v1196_v13, %v655_v11 }
 0x10b   : > { %724 = vadd.xlane.f32.xlu1 %v1552_v0  ;;  %708 = vadd.xlane.f32.xlu0 %v1554_v1 }
 0x10f   : > { %718 = vadd.xlane.f32.xlu0 %v1559_v3  ;;  %720 = vadd.xlane.f32.xlu1 %v1561_v4 }
 0x113   : > { %714 = vadd.xlane.f32.xlu0 %v1570_v14  ;;  %716 = vadd.xlane.f32.xlu1 %v1572_v15 }
 0x117   : > { %730 = vadd.xlane.f32.xlu0 %v1577_v17  ;;  %732 = vadd.xlane.f32.xlu1 %v1579_v19 }
 0x11b   : > { %734 = vadd.xlane.f32.xlu0 %v1585_v24  ;;  %736 = vadd.xlane.f32.xlu1 %v1587_v25 }
 0x18c   : > { %v727_v26 = vpop.xlane.xlu0 %726  ;;  %v711_v27 = vpop.xlane.xlu1 %710 }
 0x18d   : > { %v749_v28 = vmul.f32 0.0078125, %v727_v26  ;;  %v741_v29 = vmul.f32 0.0078125, %v711_v27 }
 0x18f   : > { %v1592_v18 = vsub.f32 %v1528_v37, %v741_v29  ;;  %v1595_v32 = vsub.f32 %v1526_v36, %v749_v28 }
 0x190   : > { %v707_v30 = vpop.xlane.xlu0 %706  ;;  %v713_v31 = vpop.xlane.xlu1 %712 }
 0x191   : > { %v739_v33 = vmul.f32 0.0078125, %v707_v30  ;;  %v742_v34 = vmul.f32 0.0078125, %v713_v31  ;;  %v773_v35 = vmul.f32 %v1592_v18, %v1592_v18  ;;  %v781_v36 = vmul.f32 %v1595_v32, %v1595_v32 }
 0x193   : > { %v1600_v38 = vsub.f32 %v1537_v44, %v742_v34  ;;  %791 = vadd.xlane.f32.xlu0 %v773_v35  ;;  %v1603_v39 = vsub.f32 %v1535_v43, %v739_v33 }
 0x194   : > { %v723_v40 = vpop.xlane.xlu0 %722  ;;  %v729_v37 = vpop.xlane.xlu1 %728 }
 0x195   : > { %v747_v41 = vmul.f32 0.0078125, %v723_v40  ;;  %v750_v42 = vmul.f32 0.0078125, %v729_v37  ;;  %v774_v45 = vmul.f32 %v1600_v38, %v1600_v38  ;;  %v771_v43 = vmul.f32 %v1603_v39, %v1603_v39 }
 0x197   : > { %v1610_v46 = vsub.f32 %v1546_v57, %v750_v42  ;;  %807 = vadd.xlane.f32.xlu0 %v781_v36  ;;  %793 = vadd.xlane.f32.xlu1 %v774_v45  ;;  %v1615_v48 = vsub.f32 %v1544_v56, %v747_v41 }
 0x198   : > { %v725_v44 = vpop.xlane.xlu1 %724  ;;  %v709_v47 = vpop.xlane.xlu0 %708 }
 0x199   : > { %v748_v49 = vmul.f32 0.0078125, %v725_v44  ;;  %v740_v50 = vmul.f32 0.0078125, %v709_v47  ;;  %v782_v51 = vmul.f32 %v1610_v46, %v1610_v46  ;;  %v779_v56 = vmul.f32 %v1615_v48, %v1615_v48 }
 0x19b   : > { %v1620_v52 = vsub.f32 %v1554_v1, %v740_v50  ;;  %787 = vadd.xlane.f32.xlu0 %v771_v43  ;;  %809 = vadd.xlane.f32.xlu1 %v782_v51  ;;  %v1623_v53 = vsub.f32 %v1552_v0, %v748_v49 }
 0x19c   : > { %v719_v54 = vpop.xlane.xlu0 %718  ;;  %v721_v55 = vpop.xlane.xlu1 %720 }
 0x19d   : > { %v745_v57 = vmul.f32 0.0078125, %v719_v54  ;;  %v746_v58 = vmul.f32 0.0078125, %v721_v55  ;;  %v772_v59 = vmul.f32 %v1620_v52, %v1620_v52  ;;  %v780_v63 = vmul.f32 %v1623_v53, %v1623_v53 }
 0x19f   : > { %v1630_v60 = vsub.f32 %v1559_v3, %v745_v57  ;;  %803 = vadd.xlane.f32.xlu0 %v779_v56  ;;  %789 = vadd.xlane.f32.xlu1 %v772_v59  ;;  %v1635_v0 = vsub.f32 %v1561_v4, %v746_v58  ;;  %v1675_v56 = vld [vmem:[%s1756_s4] ss:$0 sm:$0xff] }
 0x1a0   : > { %v715_v61 = vpop.xlane.xlu0 %714  ;;  %v717_v62 = vpop.xlane.xlu1 %716 }
 0x1a1   : > { %v743_v1 = vmul.f32 0.0078125, %v715_v61  ;;  %v744_v2 = vmul.f32 0.0078125, %v717_v62  ;;  %v777_v5 = vmul.f32 %v1630_v60, %v1630_v60  ;;  %v778_v11 = vmul.f32 %v1635_v0, %v1635_v0 }
 0x1a3   : > { %v1640_v6 = vsub.f32 %v1570_v14, %v743_v1  ;;  %799 = vadd.xlane.f32.xlu0 %v777_v5  ;;  %805 = vadd.xlane.f32.xlu1 %v780_v63  ;;  %v1643_v3 = vsub.f32 %v1572_v15, %v744_v2 }
 0x1a4   : > { %v731_v7 = vpop.xlane.xlu0 %730  ;;  %v733_v8 = vpop.xlane.xlu1 %732 }
 0x1a5   : > { %v751_v9 = vmul.f32 0.0078125, %v731_v7  ;;  %v752_v10 = vmul.f32 0.0078125, %v733_v8  ;;  %v775_v4 = vmul.f32 %v1640_v6, %v1640_v6  ;;  %v776_v15 = vmul.f32 %v1643_v3, %v1643_v3 }
 0x1a7   : > { %v1650_v12 = vsub.f32 %v1577_v17, %v751_v9  ;;  %795 = vadd.xlane.f32.xlu0 %v775_v4  ;;  %801 = vadd.xlane.f32.xlu1 %v778_v11  ;;  %v1655_v16 = vsub.f32 %v1579_v19, %v752_v10  ;;  %v1682_v9 = vld [vmem:[%s1757_s5] ss:$0 sm:$0xff] }
 0x1a8   : > { %v735_v13 = vpop.xlane.xlu0 %734  ;;  %v737_v14 = vpop.xlane.xlu1 %736 }
 0x1a9   : > { %v753_v20 = vmul.f32 0.0078125, %v735_v13  ;;  %v754_v21 = vmul.f32 0.0078125, %v737_v14  ;;  %v783_v22 = vmul.f32 %v1650_v12, %v1650_v12  ;;  %v784_v19 = vmul.f32 %v1655_v16, %v1655_v16 }
 0x1ab   : > { %v1660_v23 = vsub.f32 %v1585_v24, %v753_v20  ;;  %811 = vadd.xlane.f32.xlu0 %v783_v22  ;;  %797 = vadd.xlane.f32.xlu1 %v776_v15  ;;  %v1663_v17 = vsub.f32 %v1587_v25, %v754_v21 }
 0x1ad   : > { %v785_v26 = vmul.f32 %v1660_v23, %v1660_v23  ;;  %v786_v27 = vmul.f32 %v1663_v17, %v1663_v17 }
 0x1af   : > { %815 = vadd.xlane.f32.xlu0 %v785_v26  ;;  %813 = vadd.xlane.f32.xlu1 %v784_v19 }
 0x1b3   : > { %817 = vadd.xlane.f32.xlu1 %v786_v27 }
 0x220   : > { %v792_v28 = vpop.xlane.xlu0 %791 }
 0x221   : > { %v821_v24 = vmul.f32 0.0078125, %v792_v28 }
 0x223   : > { %v837_v29 = vadd.f32 1e-12, %v821_v24 }
 0x224   : > { %v808_v30 = vpop.xlane.xlu0 %807  ;;  %v794_v31 = vpop.xlane.xlu1 %793 }
 0x225   : > { %1359 = vrsqrt.f32 %v837_v29  ;;  %v829_v25 = vmul.f32 0.0078125, %v808_v30  ;;  %v822_v33 = vmul.f32 0.0078125, %v794_v31 }
 0x227   : > { %v845_v34 = vadd.f32 1e-12, %v829_v25  ;;  %v838_v35 = vadd.f32 1e-12, %v822_v33 }
 0x228   : > { %v788_v40 = vpop.xlane.xlu0 %787  ;;  %v810_v37 = vpop.xlane.xlu1 %809 }
 0x229   : > { %1361 = vrsqrt.f32 %v845_v34  ;;  %v819_v41 = vmul.f32 0.0078125, %v788_v40  ;;  %v830_v42 = vmul.f32 0.0078125, %v810_v37 }
 0x22a   : > { %1363 = vrsqrt.f32 %v838_v35 }
 0x22b   : > { %v835_v36 = vadd.f32 1e-12, %v819_v41  ;;  %v846_v45 = vadd.f32 1e-12, %v830_v42 }
 0x22c   : > { %v804_v44 = vpop.xlane.xlu0 %803  ;;  %v790_v47 = vpop.xlane.xlu1 %789 }
 0x22d   : > { %1365 = vrsqrt.f32 %v835_v36  ;;  %v827_v43 = vmul.f32 0.0078125, %v804_v44  ;;  %v820_v49 = vmul.f32 0.0078125, %v790_v47 }
 0x22e   : > { %1367 = vrsqrt.f32 %v846_v45 }
 0x22f   : > { %v1360_v50 = vpop.eup %1359  ;;  %v843_v51 = vadd.f32 1e-12, %v827_v43  ;;  %v836_v54 = vadd.f32 1e-12, %v820_v49 }
 0x230   : > { %v869_v55 = vmul.f32 %v1360_v50, %v1592_v18  ;;  %v800_v57 = vpop.xlane.xlu0 %799  ;;  %v806_v58 = vpop.xlane.xlu1 %805 }
 0x231   : > { %1369 = vrsqrt.f32 %v843_v51  ;;  %v825_v59 = vmul.f32 0.0078125, %v800_v57  ;;  %v828_v61 = vmul.f32 0.0078125, %v806_v58 }
 0x232   : > { %1371 = vrsqrt.f32 %v836_v54  ;;  %v892_v5 = vmul.f32 %v1675_v56, %v869_v55 }
 0x233   : > { %v1362_v62 = vpop.eup %1361  ;;  %v841_v63 = vadd.f32 1e-12, %v825_v59  ;;  %v844_v1 = vadd.f32 1e-12, %v828_v61 }
 0x234   : > { %v1364_v2 = vpop.eup %1363  ;;  %v877_v7 = vmul.f32 %v1362_v62, %v1595_v32  ;;  %v796_v18 = vpop.xlane.xlu0 %795  ;;  %v915_v21 = vadd.f32 %v1682_v9, %v892_v5 }
 0x235   : > { %v802_v8 = vpop.xlane.xlu1 %801  ;;  %v870_v10 = vmul.f32 %v1364_v2, %v1600_v38  ;;  %1373 = vrsqrt.f32 %v841_v63  ;;  %v823_v4 = vmul.f32 0.0078125, %v796_v18 }
 0x236   : > { %v826_v11 = vmul.f32 0.0078125, %v802_v8  ;;  %1375 = vrsqrt.f32 %v844_v1  ;;  %v900_v22 = vmul.f32 %v1675_v56, %v877_v7 }
 0x237   : > { %v1366_v13 = vpop.eup %1365  ;;  %v893_v14 = vmul.f32 %v1675_v56, %v870_v10  ;;  %v839_v15 = vadd.f32 1e-12, %v823_v4 }
 0x238   : > { %v842_v20 = vadd.f32 1e-12, %v826_v11  ;;  %v1368_v32 = vpop.eup %1367  ;;  %v867_v26 = vmul.f32 %v1366_v13, %v1603_v39  ;;  %v812_v19 = vpop.xlane.xlu0 %811  ;;  %v923_v34 = vadd.f32 %v1682_v9, %v900_v22 }
 0x239   : > { %v798_v27 = vpop.xlane.xlu1 %797  ;;  %v916_v38 = vadd.f32 %v1682_v9, %v893_v14  ;;  %v878_v28 = vmul.f32 %v1368_v32, %v1610_v46  ;;  %1377 = vrsqrt.f32 %v839_v15  ;;  %v831_v24 = vmul.f32 0.0078125, %v812_v19 }
 0x23a   : > { %1379 = vrsqrt.f32 %v842_v20  ;;  %v824_v29 = vmul.f32 0.0078125, %v798_v27  ;;  %v890_v46 = vmul.f32 %v1675_v56, %v867_v26 }
 0x23b   : > { %v1370_v30 = vpop.eup %1369  ;;  %v1209_v31 = vpack.c.bf16 %v916_v38, %v915_v21  ;;  %v901_v39 = vmul.f32 %v1675_v56, %v878_v28  ;;  %v847_v25 = vadd.f32 1e-12, %v831_v24 }
 0x23c   : > { %v1372_v33 = vpop.eup %1371  ;;  %v875_v35 = vmul.f32 %v1370_v30, %v1615_v48  ;;  %v840_v40 = vadd.f32 1e-12, %v824_v29  ;;  %v816_v37 = vpop.xlane.xlu0 %815  ;;  %v913_v48 = vadd.f32 %v1682_v9, %v890_v46 }
 0x23d   : > { %v814_v41 = vpop.xlane.xlu1 %813  ;;  %1248 = vst [vmem:[%s1695_s13 + $0x8] sm:$0xff] %v1209_v31   ;;  %v924_v42 = vadd.f32 %v1682_v9, %v901_v39  ;;  %v868_v36 = vmul.f32 %v1372_v33, %v1620_v52  ;;  %1381 = vrsqrt.f32 %v847_v25  ;;  %v833_v45 = vmul.f32 0.0078125, %v816_v37 }
 0x23e   : > { %1383 = vrsqrt.f32 %v840_v40  ;;  %v832_v44 = vmul.f32 0.0078125, %v814_v41  ;;  %v898_v54 = vmul.f32 %v1675_v56, %v875_v35 }
 0x23f   : > { %v1374_v47 = vpop.eup %1373  ;;  %v1229_v43 = vpack.c.bf16 %v924_v42, %v923_v34  ;;  %v891_v49 = vmul.f32 %v1675_v56, %v868_v36  ;;  %v849_v50 = vadd.f32 1e-12, %v833_v45 }
 0x240   : > { %v1376_v51 = vpop.eup %1375  ;;  %v873_v55 = vmul.f32 %v1374_v47, %v1630_v60  ;;  %v848_v57 = vadd.f32 1e-12, %v832_v44  ;;  %v921_v60 = vadd.f32 %v1682_v9, %v898_v54 }
 0x241   : > { %v818_v58 = vpop.xlane.xlu1 %817  ;;  %1252 = vst [vmem:[%s1695_s13 + $0x28] sm:$0xff] %v1229_v43   ;;  %v914_v52 = vadd.f32 %v1682_v9, %v891_v49  ;;  %v876_v59 = vmul.f32 %v1376_v51, %v1623_v53  ;;  %1385 = vrsqrt.f32 %v849_v50 }
 0x242   : > { %v834_v61 = vmul.f32 0.0078125, %v818_v58  ;;  %1387 = vrsqrt.f32 %v848_v57  ;;  %v896_v7 = vmul.f32 %v1675_v56, %v873_v55 }
 0x243   : > { %v1378_v62 = vpop.eup %1377  ;;  %v1204_v63 = vpack.c.bf16 %v914_v52, %v913_v48  ;;  %v899_v1 = vmul.f32 %v1675_v56, %v876_v59 }
 0x244   : > { %v850_v2 = vadd.f32 1e-12, %v834_v61  ;;  %v1380_v5 = vpop.eup %1379  ;;  %v871_v8 = vmul.f32 %v1378_v62, %v1640_v6  ;;  %v919_v14 = vadd.f32 %v1682_v9, %v896_v7 }
 0x245   : > { %1205 = vst [vmem:[%s1695_s13] sm:$0xff] %v1204_v63   ;;  %v922_v18 = vadd.f32 %v1682_v9, %v899_v1  ;;  %v874_v53 = vmul.f32 %v1380_v5, %v1635_v0 }
 0x246   : > { %1389 = vrsqrt.f32 %v850_v2  ;;  %v894_v15 = vmul.f32 %v1675_v56, %v871_v8 }
 0x247   : > { %v1382_v10 = vpop.eup %1381  ;;  %v1224_v4 = vpack.c.bf16 %v922_v18, %v921_v60  ;;  %v897_v11 = vmul.f32 %v1675_v56, %v874_v53 }
 0x248   : > { %v1384_v13 = vpop.eup %1383  ;;  %v879_v32 = vmul.f32 %v1382_v10, %v1650_v12  ;;  %v917_v27 = vadd.f32 %v1682_v9, %v894_v15 }
 0x249   : > { %1251 = vst [vmem:[%s1695_s13 + $0x20] sm:$0xff] %v1224_v4   ;;  %v920_v20 = vadd.f32 %v1682_v9, %v897_v11  ;;  %v872_v6 = vmul.f32 %v1384_v13, %v1643_v3 }
 0x24a   : > { %v902_v38 = vmul.f32 %v1675_v56, %v879_v32 }
 0x24b   : > { %v1386_v21 = vpop.eup %1385  ;;  %v1219_v0 = vpack.c.bf16 %v920_v20, %v919_v14  ;;  %v895_v22 = vmul.f32 %v1675_v56, %v872_v6 }
 0x24c   : > { %v1388_v26 = vpop.eup %1387  ;;  %v881_v19 = vmul.f32 %v1386_v21, %v1660_v23  ;;  %v925_v23 = vadd.f32 %v1682_v9, %v902_v38 }
 0x24d   : > { %1250 = vst [vmem:[%s1695_s13 + $0x18] sm:$0xff] %v1219_v0   ;;  %v918_v28 = vadd.f32 %v1682_v9, %v895_v22  ;;  %v880_v12 = vmul.f32 %v1388_v26, %v1655_v16 }
 0x24e   : > { %v904_v30 = vmul.f32 %v1675_v56, %v881_v19 }
 0x24f   : > { %v1214_v24 = vpack.c.bf16 %v918_v28, %v917_v27  ;;  %v903_v29 = vmul.f32 %v1675_v56, %v880_v12 }
 0x250   : > { %v1390_v3 = vpop.eup %1389  ;;  %v927_v34 = vadd.f32 %v1682_v9, %v904_v30 }
 0x251   : > { %v882_v31 = vmul.f32 %v1390_v3, %v1663_v17  ;;  %1249 = vst [vmem:[%s1695_s13 + $0x10] sm:$0xff] %v1214_v24   ;;  %v926_v39 = vadd.f32 %v1682_v9, %v903_v29 }
 0x253   : > { %v905_v25 = vmul.f32 %v1675_v56, %v882_v31  ;;  %v1234_v33 = vpack.c.bf16 %v926_v39, %v925_v23 }
 0x255   : > { %v928_v16 = vadd.f32 %v1682_v9, %v905_v25  ;;  %1253 = vst [vmem:[%s1695_s13 + $0x30] sm:$0xff] %v1234_v33  }
 0x257   : > { %v1239_v46 = vpack.c.bf16 %v928_v16, %v927_v34 }
 0x259   : > { %1254 = vst [vmem:[%s1695_s13 + $0x38] sm:$0xff] %v1239_v46  }
 0x25a PF: > { %s16_s23 = sadd.s32 1, %s1413_s23   ;;  %s1759_s21 = smov %s1409_s22 }
 0x25b   : > { %p13_p5 = scmp.ge.s32.totalorder %s16_s23, 6   ;;  %s1760_s22 = smov %s1762_s24 }
 0x25d   :  { %15 = sbr.rel (!%p13_p5) target bundleno = 2 (0x2), region = 88 }

// kernel: bert_classifier_forward.13
= control target key start
LH: loop header
LB: loop body
LE: loop exit
PB: predicated region body
PF: predicated region fallthrough
CT: control target
= control target key end

     0   :  { %s1515_s12 = smov 0   ;;  %s1517_s13 = smov 0   ;;  %s1733_s0 = inlined_call_operand.vmem [shape: bf16[512,128], index: 0, kind: input, shape index: {}]   ;;  %s1734_s1 = inlined_call_operand.vmem [shape: bf16[128,384], index: 1, kind: input, shape index: {}]   ;;  %s1735_s2 = inlined_call_operand.vmem [shape: f32[1,384], index: 2, kind: input, shape index: {}]   ;;  %s1736_s3 = inlined_call_operand.vmem [shape: bf16[512,384], index: 3, kind: output, shape index: {}]  }
   0x1   :  { %s1519_s14 = smov 0  }
   0x2 LB: > { %s25_s15 = sadd.s32 1, %s1488_s13  ;;  %p1253_p0 = scmp.ge.s32.totalorder %s1492_s14, 1  ;;  %s1492_s14 = sphi %s1519_s14, %s13_s14   ;;  %s1488_s13 = sphi %s1517_s13, %s1738_s13   ;;  %s1484_s12 = sphi %s1515_s12, %s1737_s12  }
   0x3   : > { %p27_p1 = scmp.ge.s32.totalorder %s25_s15, 4  ;;  %p167_p2 = scmp.lt.s32.totalorder %s1492_s14, 5 }
   0x5   : > { %s1740_s15 = smov (%p27_p1, %s25_s15), 0  ;;  %p168_p3 = pnand %p1253_p0, %p167_p2 }
   0x6   : > { %v1430_v0 = vld [vmem:[%s1734_s1 + $0x4] ss:$12 sps:$4 sm:$0xff] (!%p168_p3)   ;;  %s1254_s18 = sshll.u32 (!%p168_p3), %s1484_s12, 4  ;;  %v1432_v1 = vld [vmem:[%s1734_s1] ss:$12 sps:$4 sm:$0xff] (!%p168_p3)   ;;  %v1494_v2 = vmov (!%p168_p3), 0   ;;  %v908_v33 = vlaneseq (!%p168_p3) }
   0x7   : > { %171 = sbr.rel (%p168_p3) target bundleno = 315 (0x13b), region = 32  ;;  %581 = vmatprep.mubr.bf16.mxu0 (!%p168_p3), %v1494_v2  ;;  %p202_p4 = scmp.lt.s32.totalorder (!%p168_p3), %s1254_s18, 63  ;;  %549 = vmatprep.subr.bf16.mxu0 (!%p168_p3), %v1430_v0  ;;  %v1433_v3 = vld [vmem:[%s1734_s1 + $0x1c] ss:$12 sps:$4 sm:$0xff] (!%p168_p3)   ;;  %v1435_v4 = vld [vmem:[%s1734_s1 + $0x18] ss:$12 sps:$4 sm:$0xff] (!%p168_p3)  }
   0x8   : > { %550 = vmatpush1.bf16.msra.mxu0 (!%p168_p3), %v1432_v1  ;;  %v1436_v5 = vld [vmem:[%s1734_s1 + $0x34] ss:$12 sps:$4 sm:$0xff] (!%p168_p3)   ;;  %v1438_v6 = vld [vmem:[%s1734_s1 + $0x30] ss:$12 sps:$4 sm:$0xff] (!%p168_p3)   ;;  %v1439_v7 = vld [vmem:[%s1734_s1 + $0x4c] ss:$12 sps:$4 sm:$0xff] (!%p168_p3)  }
   0x9   : > { %551 = vmatprep.subr.bf16.mxu0 (!%p168_p3), %v1433_v3  ;;  %v1441_v8 = vld [vmem:[%s1734_s1 + $0x48] ss:$12 sps:$4 sm:$0xff] (!%p168_p3)   ;;  %v1442_v9 = vld [vmem:[%s1734_s1 + $0x64] ss:$12 sps:$4 sm:$0xff] (!%p168_p3)   ;;  %v1456_v12 = vld [vmem:[%s1734_s1 + $0x20] ss:$12 sps:$4 sm:$0xff] (!%p168_p3)  }
   0xa   : > { %v1454_v10 = vld [vmem:[%s1734_s1 + $0x8] ss:$12 sps:$4 sm:$0xff] (!%p168_p3)   ;;  %v1444_v13 = vld [vmem:[%s1734_s1 + $0x60] ss:$12 sps:$4 sm:$0xff] (!%p168_p3)   ;;  %v1457_v14 = vld [vmem:[%s1734_s1 + $0x38] ss:$12 sps:$4 sm:$0xff] (!%p168_p3)  }
   0xb   : > { %1372 = vmatprep.subr.bf16.mxu1 (!%p168_p3), %v1454_v10  ;;  %v1445_v15 = vld [vmem:[%s1734_s1 + $0x7c] ss:$12 sps:$4 sm:$0xff] (!%p168_p3)   ;;  %v1447_v16 = vld [vmem:[%s1734_s1 + $0x78] ss:$12 sps:$4 sm:$0xff] (!%p168_p3)   ;;  %v1448_v18 = vld [vmem:[%s1734_s1 + $0x94] ss:$12 sps:$4 sm:$0xff] (!%p168_p3)  }
   0xc   : > { %552 = vmatpush1.bf16.msra.mxu0 (!%p168_p3), %v1435_v4  ;;  %1373 = vmatpush3.bf16.msra.mxu1 (!%p168_p3), %v1454_v10  ;;  %v1459_v17 = vld [vmem:[%s1734_s1 + $0x50] ss:$12 sps:$4 sm:$0xff] (!%p168_p3)   ;;  %v1460_v20 = vld [vmem:[%s1734_s1 + $0x68] ss:$12 sps:$4 sm:$0xff] (!%p168_p3)   ;;  %v1451_v21 = vld [vmem:[%s1734_s1 + $0xac] ss:$12 sps:$4 sm:$0xff] (!%p168_p3)  }
   0xd   : > { %553 = vmatprep.subr.bf16.mxu0 (!%p168_p3), %v1436_v5  ;;  %1374 = vmatprep.subr.bf16.mxu1 (!%p168_p3), %v1456_v12  ;;  %v1450_v19 = vld [vmem:[%s1734_s1 + $0x90] ss:$12 sps:$4 sm:$0xff] (!%p168_p3)   ;;  %v1453_v22 = vld [vmem:[%s1734_s1 + $0xa8] ss:$12 sps:$4 sm:$0xff] (!%p168_p3)   ;;  %v1462_v23 = vld [vmem:[%s1734_s1 + $0x80] ss:$12 sps:$4 sm:$0xff] (!%p168_p3)  }
   0xe   : > { %s1742_s18 = smov (!%p202_p4, %s1254_s18), 63  ;;  %v1463_v24 = vld [vmem:[%s1734_s1 + $0x98] ss:$12 sps:$4 sm:$0xff]   ;;  %v1465_v25 = vld [vmem:[%s1734_s1 + $0xb0] ss:$12 sps:$4 sm:$0xff]   ;;  %v909_v34 = vshrl.u32 %v908_v33, 7 }
   0xf   : > { %s1255_s27 = sshll.u32 %s1742_s18, 2  ;;  %v906_v36 = vld [vmem:[%s1735_s2] sm:$0x7] }
  0x10   : > { %s1561_s7 = scalar_lea.vmem %s1733_s0, %s1255_s27  ;;  %554 = vmatpush1.bf16.msra.mxu0 %v1438_v6  ;;  %1375 = vmatpush3.bf16.msra.mxu1 %v1456_v12  ;;  %v910_v35 = vsub.s32 0, %v909_v34  ;;  %v914_v37 = vsub.s32 1, %v909_v34  ;;  %v918_v49 = vsub.s32 2, %v909_v34 }
  0x11   : > { %555 = vmatprep.subr.bf16.mxu0 %v1439_v7  ;;  %v1455_v11 = vld [vmem:[%s1561_s7] sm:$0xff]   ;;  %1376 = vmatprep.subr.bf16.mxu1 %v1457_v14  ;;  %v1458_v26 = vld [vmem:[%s1561_s7 + $0x8] sm:$0xff]   ;;  %v1461_v27 = vld [vmem:[%s1561_s7 + $0x10] sm:$0xff]  }
  0x12   : > { %1388 = vmatprep.mubr.bf16.mxu1 %v1455_v11  ;;  %v1464_v28 = vld [vmem:[%s1561_s7 + $0x18] sm:$0xff]   ;;  %v1466_v29 = vld [vmem:[%s1561_s7 + $0x20] sm:$0xff]   ;;  %v1467_v30 = vld [vmem:[%s1561_s7 + $0x28] sm:$0xff]   ;;  %v1632_v38 = vrot.slane %v906_v36, %v910_v35  ;;  %v1634_v39 = vrot.slane %v906_v36, %v914_v37  ;;  %v1648_v52 = vrot.slane %v906_v36, %v918_v49 }
  0x13   : > { %v1468_v31 = vld [vmem:[%s1561_s7 + $0x30] sm:$0xff]   ;;  %v1469_v32 = vld [vmem:[%s1561_s7 + $0x38] sm:$0xff]   ;;  %s1404_s7 = smul.u32 12, %s1742_s18 }
  0x14   : > { %556 = vmatpush1.bf16.msra.mxu0 %v1441_v8  ;;  %1377 = vmatpush3.bf16.msra.mxu1 %v1457_v14 }
  0x15   : > { %557 = vmatprep.subr.bf16.mxu0 %v1442_v9  ;;  %1378 = vmatprep.subr.bf16.mxu1 %v1459_v17  ;;  %s1642_s28 = scalar_lea.vmem %s1736_s3, %s1404_s7 }
  0x18   : > { %558 = vmatpush1.bf16.msra.mxu0 %v1444_v13  ;;  %1379 = vmatpush3.bf16.msra.mxu1 %v1459_v17 }
  0x19   : > { %559 = vmatprep.subr.bf16.mxu0 %v1445_v15  ;;  %1380 = vmatprep.subr.bf16.mxu1 %v1460_v20 }
  0x1c   : > { %560 = vmatpush1.bf16.msra.mxu0 %v1447_v16  ;;  %1381 = vmatpush3.bf16.msra.mxu1 %v1460_v20 }
  0x1d   : > { %561 = vmatprep.subr.bf16.mxu0 %v1448_v18  ;;  %1382 = vmatprep.subr.bf16.mxu1 %v1462_v23 }
  0x20   : > { %562 = vmatpush1.bf16.msra.mxu0 %v1450_v19  ;;  %1383 = vmatpush3.bf16.msra.mxu1 %v1462_v23 }
  0x21   : > { %563 = vmatprep.subr.bf16.mxu0 %v1451_v21  ;;  %1384 = vmatprep.subr.bf16.mxu1 %v1463_v24 }
  0x24   : > { %564 = vmatpush1.bf16.msra.mxu0 %v1453_v22  ;;  %1385 = vmatpush3.bf16.msra.mxu1 %v1463_v24 }
  0x25   : > { %1386 = vmatprep.subr.bf16.mxu1 %v1465_v25 }
  0x27   : > { %582 = vmatmul.mubr.bf16.vlgmr.msra.gmra.mrb[0].mxu0 %v1455_v11 }
  0x28   : > { %591 = vmatprep.mubr.bf16.mxu0 %v1494_v2  ;;  %1387 = vmatpush3.bf16.msra.mxu1 %v1465_v25 }
  0x2b   : > { %1389 = vmatmul.mubr.bf16.vlgmr.msra.gmra.mrb[0].mxu1 %v1458_v26 }
  0x2c   : > { %1392 = vmatprep.mubr.bf16.mxu1 %v1461_v27 }
  0x2f   : > { %592 = vmatmul.mubr.bf16.gmra.mrb[4].mxu0 %v1458_v26 }
  0x30   : > { %601 = vmatprep.mubr.bf16.mxu0 %v1494_v2 }
  0x33   : > { %1393 = vmatmul.mubr.bf16.gmra.mrb[4].mxu1 %v1464_v28 }
  0x34   : > { %1396 = vmatprep.mubr.bf16.mxu1 %v1466_v29 }
  0x37   : > { %602 = vmatmul.mubr.bf16.gmra.mrb[8].mxu0 %v1461_v27 }
  0x38   : > { %611 = vmatprep.mubr.bf16.mxu0 %v1494_v2 }
  0x3b   : > { %1397 = vmatmul.mubr.bf16.gmra.mrb[8].mxu1 %v1467_v30 }
  0x3c   : > { %1400 = vmatprep.mubr.bf16.mxu1 %v1468_v31 }
  0x3f   : > { %612 = vmatmul.mubr.bf16.gmra.mrb[12].mxu0 %v1464_v28 }
  0x40   : > { %621 = vmatprep.mubr.bf16.mxu0 %v1494_v2 }
  0x43   : > { %1401 = vmatmul.mubr.bf16.gmra.mrb[12].mxu1 %v1469_v32 }
  0x47   : > { %622 = vmatmul.mubr.bf16.gmra.mrb[16].mxu0 %v1466_v29 }
  0x48   : > { %631 = vmatprep.mubr.bf16.mxu0 %v1494_v2 }
  0x4f   : > { %632 = vmatmul.mubr.bf16.gmra.mrb[20].mxu0 %v1467_v30 }
  0x50   : > { %641 = vmatprep.mubr.bf16.mxu0 %v1494_v2 }
  0x57   : > { %642 = vmatmul.mubr.bf16.gmra.mrb[24].mxu0 %v1468_v31 }
  0x58   : > { %651 = vmatprep.mubr.bf16.mxu0 %v1494_v2 }
  0x5f   : > { %652 = vmatmul.mubr.bf16.gmra.mrb[28].mxu0 %v1469_v32 }
  0xfa   : > { %v583_v40 = vpop.f32.mrb[0].mxu0 }
  0xfb   : > { %v923_v41 = vadd.f32 %v1632_v38, %v583_v40  ;;  %v585_v42 = vpop.f32.mrb[1].mxu0 }
  0xfc   : > { %v924_v43 = vadd.f32 %v1634_v39, %v585_v42  ;;  %v587_v44 = vpop.f32.mrb[2].mxu0 }
  0xfd   : > { %v926_v45 = vadd.f32 %v1632_v38, %v587_v44  ;;  %v589_v46 = vpop.f32.mrb[3].mxu0 }
  0xfe   : > { %v1324_v47 = vpack.c.bf16 %v924_v43, %v923_v41  ;;  %v927_v48 = vadd.f32 %v1634_v39, %v589_v46  ;;  %v1390_v59 = vpop.f32.mrb[0].mxu1 }
  0xff   : > { %v931_v62 = vadd.f32 %v1390_v59, %v1648_v52  ;;  %v696_v63 = vpop.f32.mrb[1].mxu1 }
 0x100   : > { %1131 = vst [vmem:[%s1642_s28] sm:$0xff] %v1324_v47  ;;  %v1326_v50 = vpack.c.bf16 %v927_v48, %v926_v45  ;;  %v925_v0 = vadd.f32 %v1648_v52, %v696_v63  ;;  %v1391_v1 = vpop.f32.mrb[2].mxu1 }
 0x101   : > { %v1329_v3 = vpack.c.bf16 %v931_v62, %v931_v62  ;;  %v934_v4 = vadd.f32 %v1391_v1, %v1648_v52  ;;  %v699_v5 = vpop.f32.mrb[3].mxu1 }
 0x102   : > { %1133 = vst [vmem:[%s1642_s28 + $0xc] sm:$0xff] %v1326_v50  ;;  %v593_v51 = vpop.f32.mrb[4].mxu0  ;;  %v1325_v6 = vpack.c.bf16 %v925_v0, %v925_v0  ;;  %v928_v7 = vadd.f32 %v1648_v52, %v699_v5 }
 0x103   : > { %v929_v53 = vadd.f32 %v1632_v38, %v593_v51  ;;  %v595_v54 = vpop.f32.mrb[5].mxu0  ;;  %1136 = vst [vmem:[%s1642_s28 + $0x20] sm:$0xf] %v1329_v3  ;;  %v1331_v9 = vpack.c.bf16 %v934_v4, %v934_v4 }
 0x104   : > { %v930_v55 = vadd.f32 %v1634_v39, %v595_v54  ;;  %v597_v56 = vpop.f32.mrb[6].mxu0  ;;  %1132 = vst [vmem:[%s1642_s28 + $0x8] sm:$0xf] %v1325_v6  ;;  %v1327_v12 = vpack.c.bf16 %v928_v7, %v928_v7 }
 0x105   : > { %v932_v57 = vadd.f32 %v1632_v38, %v597_v56  ;;  %v599_v58 = vpop.f32.mrb[7].mxu0  ;;  %1138 = vst [vmem:[%s1642_s28 + $0x2c] sm:$0xf] %v1331_v9 }
 0x106   : > { %v1328_v60 = vpack.c.bf16 %v930_v55, %v929_v53  ;;  %v933_v61 = vadd.f32 %v1634_v39, %v599_v58  ;;  %1134 = vst [vmem:[%s1642_s28 + $0x14] sm:$0xf] %v1327_v12  ;;  %v1394_v17 = vpop.f32.mrb[4].mxu1 }
 0x107   : > { %v943_v20 = vadd.f32 %v1394_v17, %v1648_v52  ;;  %v712_v21 = vpop.f32.mrb[5].mxu1 }
 0x108   : > { %1135 = vst [vmem:[%s1642_s28 + $0x18] sm:$0xff] %v1328_v60  ;;  %v1330_v2 = vpack.c.bf16 %v933_v61, %v932_v57  ;;  %v937_v22 = vadd.f32 %v1648_v52, %v712_v21  ;;  %v1395_v23 = vpop.f32.mrb[6].mxu1 }
 0x109   : > { %v1337_v25 = vpack.c.bf16 %v943_v20, %v943_v20  ;;  %v946_v26 = vadd.f32 %v1395_v23, %v1648_v52  ;;  %v715_v27 = vpop.f32.mrb[7].mxu1 }
 0x10a   : > { %1137 = vst [vmem:[%s1642_s28 + $0x24] sm:$0xff] %v1330_v2  ;;  %v603_v8 = vpop.f32.mrb[8].mxu0  ;;  %v1333_v28 = vpack.c.bf16 %v937_v22, %v937_v22  ;;  %v940_v29 = vadd.f32 %v1648_v52, %v715_v27 }
 0x10b   : > { %v935_v10 = vadd.f32 %v1632_v38, %v603_v8  ;;  %v605_v11 = vpop.f32.mrb[9].mxu0  ;;  %1144 = vst [vmem:[%s1642_s28 + $0x50] sm:$0xf] %v1337_v25  ;;  %v1339_v31 = vpack.c.bf16 %v946_v26, %v946_v26 }
 0x10c   : > { %v936_v13 = vadd.f32 %v1634_v39, %v605_v11  ;;  %v607_v14 = vpop.f32.mrb[10].mxu0  ;;  %1140 = vst [vmem:[%s1642_s28 + $0x38] sm:$0xf] %v1333_v28  ;;  %v1335_v34 = vpack.c.bf16 %v940_v29, %v940_v29 }
 0x10d   : > { %v938_v15 = vadd.f32 %v1632_v38, %v607_v14  ;;  %v609_v16 = vpop.f32.mrb[11].mxu0  ;;  %1146 = vst [vmem:[%s1642_s28 + $0x5c] sm:$0xf] %v1339_v31 }
 0x10e   : > { %v1332_v18 = vpack.c.bf16 %v936_v13, %v935_v10  ;;  %v939_v19 = vadd.f32 %v1634_v39, %v609_v16  ;;  %1142 = vst [vmem:[%s1642_s28 + $0x44] sm:$0xf] %v1335_v34  ;;  %v1398_v41 = vpop.f32.mrb[8].mxu1 }
 0x10f   : > { %v955_v44 = vadd.f32 %v1398_v41, %v1648_v52  ;;  %v728_v45 = vpop.f32.mrb[9].mxu1 }
 0x110   : > { %1139 = vst [vmem:[%s1642_s28 + $0x30] sm:$0xff] %v1332_v18  ;;  %v1334_v24 = vpack.c.bf16 %v939_v19, %v938_v15  ;;  %v949_v46 = vadd.f32 %v1648_v52, %v728_v45  ;;  %v1399_v47 = vpop.f32.mrb[10].mxu1 }
 0x111   : > { %v1345_v49 = vpack.c.bf16 %v955_v44, %v955_v44  ;;  %v958_v50 = vadd.f32 %v1399_v47, %v1648_v52  ;;  %v731_v51 = vpop.f32.mrb[11].mxu1 }
 0x112   : > { %1141 = vst [vmem:[%s1642_s28 + $0x3c] sm:$0xff] %v1334_v24  ;;  %v613_v30 = vpop.f32.mrb[12].mxu0  ;;  %v1341_v53 = vpack.c.bf16 %v949_v46, %v949_v46  ;;  %v952_v54 = vadd.f32 %v1648_v52, %v731_v51 }
 0x113   : > { %v941_v32 = vadd.f32 %v1632_v38, %v613_v30  ;;  %v615_v33 = vpop.f32.mrb[13].mxu0  ;;  %1152 = vst [vmem:[%s1642_s28 + $0x80] sm:$0xf] %v1345_v49  ;;  %v1347_v56 = vpack.c.bf16 %v958_v50, %v958_v50 }
 0x114   : > { %v942_v35 = vadd.f32 %v1634_v39, %v615_v33  ;;  %v617_v36 = vpop.f32.mrb[14].mxu0  ;;  %1148 = vst [vmem:[%s1642_s28 + $0x68] sm:$0xf] %v1341_v53  ;;  %v1343_v59 = vpack.c.bf16 %v952_v54, %v952_v54 }
 0x115   : > { %v944_v37 = vadd.f32 %v1632_v38, %v617_v36  ;;  %v619_v40 = vpop.f32.mrb[15].mxu0  ;;  %1154 = vst [vmem:[%s1642_s28 + $0x8c] sm:$0xf] %v1347_v56 }
 0x116   : > { %v1336_v42 = vpack.c.bf16 %v942_v35, %v941_v32  ;;  %v945_v43 = vadd.f32 %v1634_v39, %v619_v40  ;;  %1150 = vst [vmem:[%s1642_s28 + $0x74] sm:$0xf] %v1343_v59  ;;  %v1402_v0 = vpop.f32.mrb[12].mxu1 }
 0x117   : > { %v967_v3 = vadd.f32 %v1402_v0, %v1648_v52  ;;  %v744_v4 = vpop.f32.mrb[13].mxu1 }
 0x118   : > { %1143 = vst [vmem:[%s1642_s28 + $0x48] sm:$0xff] %v1336_v42  ;;  %v1338_v48 = vpack.c.bf16 %v945_v43, %v944_v37  ;;  %v961_v5 = vadd.f32 %v1648_v52, %v744_v4  ;;  %v1403_v6 = vpop.f32.mrb[14].mxu1 }
 0x119   : > { %v1353_v8 = vpack.c.bf16 %v967_v3, %v967_v3  ;;  %v970_v9 = vadd.f32 %v1403_v6, %v1648_v52  ;;  %v747_v10 = vpop.f32.mrb[15].mxu1 }
 0x11a   : > { %1145 = vst [vmem:[%s1642_s28 + $0x54] sm:$0xff] %v1338_v48  ;;  %v623_v55 = vpop.f32.mrb[16].mxu0  ;;  %v1349_v11 = vpack.c.bf16 %v961_v5, %v961_v5  ;;  %v964_v12 = vadd.f32 %v1648_v52, %v747_v10 }
 0x11b   : > { %v947_v57 = vadd.f32 %v1632_v38, %v623_v55  ;;  %v625_v58 = vpop.f32.mrb[17].mxu0  ;;  %1160 = vst [vmem:[%s1642_s28 + $0xb0] sm:$0xf] %v1353_v8  ;;  %v1355_v14 = vpack.c.bf16 %v970_v9, %v970_v9 }
 0x11c   : > { %v948_v60 = vadd.f32 %v1634_v39, %v625_v58  ;;  %v627_v61 = vpop.f32.mrb[18].mxu0  ;;  %1156 = vst [vmem:[%s1642_s28 + $0x98] sm:$0xf] %v1349_v11  ;;  %v1351_v17 = vpack.c.bf16 %v964_v12, %v964_v12 }
 0x11d   : > { %v950_v62 = vadd.f32 %v1632_v38, %v627_v61  ;;  %v629_v63 = vpop.f32.mrb[19].mxu0  ;;  %1162 = vst [vmem:[%s1642_s28 + $0xbc] sm:$0xf] %v1355_v14 }
 0x11e   : > { %v1340_v1 = vpack.c.bf16 %v948_v60, %v947_v57  ;;  %v951_v2 = vadd.f32 %v1634_v39, %v629_v63  ;;  %1158 = vst [vmem:[%s1642_s28 + $0xa4] sm:$0xf] %v1351_v17 }
 0x120   : > { %1147 = vst [vmem:[%s1642_s28 + $0x60] sm:$0xff] %v1340_v1  ;;  %v1342_v7 = vpack.c.bf16 %v951_v2, %v950_v62 }
 0x122   : > { %1149 = vst [vmem:[%s1642_s28 + $0x6c] sm:$0xff] %v1342_v7  ;;  %v633_v13 = vpop.f32.mrb[20].mxu0 }
 0x123   : > { %v953_v15 = vadd.f32 %v1632_v38, %v633_v13  ;;  %v635_v16 = vpop.f32.mrb[21].mxu0 }
 0x124   : > { %v954_v18 = vadd.f32 %v1634_v39, %v635_v16  ;;  %v637_v19 = vpop.f32.mrb[22].mxu0 }
 0x125   : > { %v956_v20 = vadd.f32 %v1632_v38, %v637_v19  ;;  %v639_v21 = vpop.f32.mrb[23].mxu0 }
 0x126   : > { %v1344_v52 = vpack.c.bf16 %v954_v18, %v953_v15  ;;  %v957_v22 = vadd.f32 %v1634_v39, %v639_v21 }
 0x128   : > { %1151 = vst [vmem:[%s1642_s28 + $0x78] sm:$0xff] %v1344_v52  ;;  %v1346_v23 = vpack.c.bf16 %v957_v22, %v956_v20 }
 0x12a   : > { %1153 = vst [vmem:[%s1642_s28 + $0x84] sm:$0xff] %v1346_v23  ;;  %v643_v24 = vpop.f32.mrb[24].mxu0 }
 0x12b   : > { %v959_v25 = vadd.f32 %v1632_v38, %v643_v24  ;;  %v645_v26 = vpop.f32.mrb[25].mxu0 }
 0x12c   : > { %v960_v27 = vadd.f32 %v1634_v39, %v645_v26  ;;  %v647_v28 = vpop.f32.mrb[26].mxu0 }
 0x12d   : > { %v962_v29 = vadd.f32 %v1632_v38, %v647_v28  ;;  %v649_v30 = vpop.f32.mrb[27].mxu0 }
 0x12e   : > { %v1348_v31 = vpack.c.bf16 %v960_v27, %v959_v25  ;;  %v963_v32 = vadd.f32 %v1634_v39, %v649_v30 }
 0x130   : > { %1155 = vst [vmem:[%s1642_s28 + $0x90] sm:$0xff] %v1348_v31  ;;  %v1350_v33 = vpack.c.bf16 %v963_v32, %v962_v29 }
 0x132   : > { %1157 = vst [vmem:[%s1642_s28 + $0x9c] sm:$0xff] %v1350_v33  ;;  %v653_v34 = vpop.f32.mrb[28].mxu0 }
 0x133   : > { %v965_v35 = vadd.f32 %v1632_v38, %v653_v34  ;;  %v655_v36 = vpop.f32.mrb[29].mxu0 }
 0x134   : > { %v966_v37 = vadd.f32 %v1634_v39, %v655_v36  ;;  %v657_v40 = vpop.f32.mrb[30].mxu0 }
 0x135   : > { %v968_v41 = vadd.f32 %v1632_v38, %v657_v40  ;;  %v659_v42 = vpop.f32.mrb[31].mxu0 }
 0x136   : > { %v1352_v43 = vpack.c.bf16 %v966_v37, %v965_v35  ;;  %v969_v44 = vadd.f32 %v1634_v39, %v659_v42 }
 0x138   : > { %1159 = vst [vmem:[%s1642_s28 + $0xa8] sm:$0xff] %v1352_v43  ;;  %v1354_v45 = vpack.c.bf16 %v969_v44, %v968_v41 }
 0x13a   : > { %1161 = vst [vmem:[%s1642_s28 + $0xb4] sm:$0xff] %v1354_v45 }
 0x13b PF: > { %s13_s14 = sadd.s32 1, %s1492_s14   ;;  %s1737_s12 = smov %s1488_s13 }
 0x13c   : > { %p10_p5 = scmp.ge.s32.totalorder %s13_s14, 6   ;;  %s1738_s13 = smov %s1740_s15 }
 0x13e   :  { %12 = sbr.rel (!%p10_p5) target bundleno = 2 (0x2), region = 73 }

// kernel: bert_classifier_forward.14
= control target key start
LH: loop header
LB: loop body
LE: loop exit
PB: predicated region body
PF: predicated region fallthrough
CT: control target
= control target key end

     0   :  { %s3635_s9 = smov 0   ;;  %s4997_s0 = inlined_call_operand.vmem [shape: bf16[4,128,384], index: 0, kind: input, shape index: {}]   ;;  %s4998_s1 = inlined_call_operand.vmem [shape: f32[4,1,128], index: 1, kind: input, shape index: {}]   ;;  %s4999_s2 = inlined_call_operand.vmem [shape: bf16[4,128,128], index: 2, kind: output, shape index: {}]  }
   0x1 LB: > { %s2667_s10 = sadd.s32 4294967295, %s3615_s9   ;;  %p2671_p0 = scmp.ge.s32.totalorder %s3615_s9, 1  ;;  %s3615_s9 = sphi %s3635_s9, %s12_s9  }
   0x2   : > { %p120_p1 = scmp.lt.s32.totalorder %s3615_s9, 5 }
   0x4   : > { %p121_p2 = pnand %p2671_p0, %p120_p1 }
   0x6   : > { %124 = sbr.rel (%p121_p2) target bundleno = 2916 (0xb64), region = 28 }
   0xd   : > { %p145_p3 = scmp.lt.s32.totalorder %s2667_s10, 3  ;;  %vm256_vm0 = vcmask 261120   ;;  %s3617_s15 = smov 96   ;;  %vm801_vm1 = vcmask 257024   ;;  %vm1396_vm2 = vcmask 519424   ;;  %vm1991_vm3 = vcmask 781824  }
   0xe   : > { %s3618_s19 = smov 64   ;;  %s3619_s24 = smov 32   ;;  %vm2586_vm4 = vcmask 1044224  }
   0xf   : > { %s5005_s10 = smov (!%p145_p3, %s2667_s10), 3 }
  0x10   : > { %s3279_s11 = smul.u32 192, %s5005_s10  ;;  %s3799_s18 = scalar_lea.vmem %s4998_s1, %s5005_s10 }
  0x11   : > { %v3802_v33 = vld [vmem:[%s3799_s18] ss:$0 sm:$0xff]  ;;  %s2798_s20 = sshll.u32 %s5005_s10, 6 }
  0x12   : > { %s3649_s14 = scalar_lea.vmem %s4997_s0, %s3279_s11  ;;  %s4032_s23 = scalar_lea.vmem %s4999_s2, %s2798_s20 }
  0x13   : > { %v3652_v0 = vld [vmem:[%s3649_s14 + $0x4] ss:$12 sps:$4 sm:$0xff]   ;;  %v3655_v1 = vld [vmem:[%s3649_s14 + $0x1c] ss:$12 sps:$4 sm:$0xff]   ;;  %v3670_v4 = vld [vmem:[%s3649_s14 + $0x34] ss:$12 sps:$4 sm:$0xff]  }
  0x14   : > { %3247 = vmatprep.subr.msk.bf16.mxu0 %vm256_vm0, %v3652_v0  ;;  %v282_v2 = vsel %vm256_vm0, %v3652_v0, 0  ;;  %834 = vrot.lane.b32.xlu0 %v3652_v0, %s3617_s15  ;;  %v285_v3 = vsel %vm256_vm0, %v3655_v1, 0  ;;  %v3673_v5 = vld [vmem:[%s3649_s14] ss:$12 sps:$4 sm:$0xff]   ;;  %v288_v7 = vsel %vm256_vm0, %v3670_v4, 0 }
  0x15   : > { %2992 = vmatpush3.bf16.xpose.msra.mxu0 %v282_v2  ;;  %836 = vrot.lane.b32.xlu1 %v3655_v1, %s3617_s15  ;;  %v3680_v6 = vld [vmem:[%s3649_s14 + $0x4c] ss:$12 sps:$4 sm:$0xff]   ;;  %v3689_v9 = vld [vmem:[%s3649_s14 + $0x64] ss:$12 sps:$4 sm:$0xff]   ;;  %v3696_v11 = vld [vmem:[%s3649_s14 + $0x7c] ss:$12 sps:$4 sm:$0xff]  }
  0x16   : > { %3248 = vmatprep.subr.msk.bf16.mxu0 %vm256_vm0, %v3655_v1  ;;  %3007 = vmatprep.mubr.msk.bf16.mxu0 %vm256_vm0, %v3673_v5  ;;  %v291_v8 = vsel %vm256_vm0, %v3680_v6, 0  ;;  %v294_v10 = vsel %vm256_vm0, %v3689_v9, 0  ;;  %v297_v12 = vsel %vm256_vm0, %v3696_v11, 0  ;;  %v3703_v13 = vld [vmem:[%s3649_s14 + $0x94] ss:$12 sps:$4 sm:$0xff]  }
  0x17   : > { %v300_v14 = vsel %vm256_vm0, %v3703_v13, 0  ;;  %v3710_v15 = vld [vmem:[%s3649_s14 + $0xac] ss:$12 sps:$4 sm:$0xff]   ;;  %v3720_v18 = vld [vmem:[%s3649_s14 + $0x30] ss:$12 sps:$4 sm:$0xff]  }
  0x18   : > { %v303_v16 = vsel %vm256_vm0, %v3710_v15, 0  ;;  %v3717_v17 = vld [vmem:[%s3649_s14 + $0x18] ss:$12 sps:$4 sm:$0xff]   ;;  %v3727_v19 = vld [vmem:[%s3649_s14 + $0x48] ss:$12 sps:$4 sm:$0xff]  }
  0x19   : > { %v3730_v20 = vld [vmem:[%s3649_s14 + $0x60] ss:$12 sps:$4 sm:$0xff]   ;;  %v3737_v21 = vld [vmem:[%s3649_s14 + $0x78] ss:$12 sps:$4 sm:$0xff]   ;;  %v3740_v22 = vld [vmem:[%s3649_s14 + $0x90] ss:$12 sps:$4 sm:$0xff]  }
  0x1a   : > { %v3747_v23 = vld [vmem:[%s3649_s14 + $0xa8] ss:$12 sps:$4 sm:$0xff]   ;;  %v3755_v25 = vld [vmem:[%s3649_s14 + $0x20] ss:$12 sps:$4 sm:$0xff]   ;;  %v3761_v26 = vld [vmem:[%s3649_s14 + $0x38] ss:$12 sps:$4 sm:$0xff]  }
  0x1b   : > { %v3752_v24 = vld [vmem:[%s3649_s14 + $0x8] ss:$12 sps:$4 sm:$0xff]   ;;  %v3766_v27 = vld [vmem:[%s3649_s14 + $0x50] ss:$12 sps:$4 sm:$0xff]   ;;  %v3777_v29 = vld [vmem:[%s3649_s14 + $0x80] ss:$12 sps:$4 sm:$0xff]  }
  0x1c   : > { %3023 = vmatprep.subr.bf16.mxu1 %v3752_v24  ;;  %v3771_v28 = vld [vmem:[%s3649_s14 + $0x68] ss:$12 sps:$4 sm:$0xff]   ;;  %v3782_v30 = vld [vmem:[%s3649_s14 + $0x98] ss:$12 sps:$4 sm:$0xff]   ;;  %v3785_v31 = vld [vmem:[%s3649_s14 + $0xb0] ss:$12 sps:$4 sm:$0xff]  }
  0x1d   : > { %2994 = vmatpush3.bf16.xpose.msra.mxu0 %v285_v3  ;;  %3024 = vmatpush3.bf16.msra.mxu1 %v3752_v24 }
  0x1e   : > { %3249 = vmatprep.subr.msk.bf16.mxu0 %vm256_vm0, %v3670_v4  ;;  %3025 = vmatprep.subr.bf16.mxu1 %v3755_v25 }
  0x21   : > { %3026 = vmatpush3.bf16.msra.mxu1 %v3755_v25 }
  0x22   : > { %3027 = vmatprep.subr.bf16.mxu1 %v3761_v26 }
  0x25   : > { %2996 = vmatpush3.bf16.xpose.msra.mxu0 %v288_v7  ;;  %3028 = vmatpush3.bf16.msra.mxu1 %v3761_v26 }
  0x26   : > { %3250 = vmatprep.subr.msk.bf16.mxu0 %vm256_vm0, %v3680_v6  ;;  %3029 = vmatprep.subr.bf16.mxu1 %v3766_v27 }
  0x29   : > { %3030 = vmatpush3.bf16.msra.mxu1 %v3766_v27 }
  0x2a   : > { %3031 = vmatprep.subr.bf16.mxu1 %v3771_v28 }
  0x2d   : > { %2998 = vmatpush3.bf16.xpose.msra.mxu0 %v291_v8  ;;  %3032 = vmatpush3.bf16.msra.mxu1 %v3771_v28 }
  0x2e   : > { %3251 = vmatprep.subr.msk.bf16.mxu0 %vm256_vm0, %v3689_v9  ;;  %3033 = vmatprep.subr.bf16.mxu1 %v3777_v29 }
  0x31   : > { %3034 = vmatpush3.bf16.msra.mxu1 %v3777_v29 }
  0x32   : > { %3035 = vmatprep.subr.bf16.mxu1 %v3782_v30 }
  0x35   : > { %3000 = vmatpush3.bf16.xpose.msra.mxu0 %v294_v10  ;;  %3036 = vmatpush3.bf16.msra.mxu1 %v3782_v30 }
  0x36   : > { %3252 = vmatprep.subr.msk.bf16.mxu0 %vm256_vm0, %v3696_v11  ;;  %3037 = vmatprep.subr.bf16.mxu1 %v3785_v31 }
  0x39   : > { %3038 = vmatpush3.bf16.msra.mxu1 %v3785_v31 }
  0x3d   : > { %3002 = vmatpush3.bf16.xpose.msra.mxu0 %v297_v12 }
  0x3e   : > { %3253 = vmatprep.subr.msk.bf16.mxu0 %vm256_vm0, %v3703_v13 }
  0x45   : > { %3004 = vmatpush3.bf16.xpose.msra.mxu0 %v300_v14 }
  0x46   : > { %3254 = vmatprep.subr.msk.bf16.mxu0 %vm256_vm0, %v3710_v15 }
  0x4d   : > { %3006 = vmatpush3.bf16.xpose.msra.mxu0 %v303_v16 }
  0x54   : > { %3008 = vmatmul.mubr.msk.bf16.vlgmr.msra.gmra.mrb[0].mxu0 %vm256_vm0, %v3717_v17 }
  0x55   : > { %3011 = vmatprep.mubr.msk.bf16.mxu0 %vm256_vm0, %v3720_v18 }
  0x5c   : > { %3012 = vmatmul.mubr.msk.bf16.gmra.mrb[4].mxu0 %vm256_vm0, %v3727_v19 }
  0x5d   : > { %3015 = vmatprep.mubr.msk.bf16.mxu0 %vm256_vm0, %v3730_v20 }
  0x64   : > { %3016 = vmatmul.mubr.msk.bf16.gmra.mrb[8].mxu0 %vm256_vm0, %v3737_v21 }
  0x65   : > { %3019 = vmatprep.mubr.msk.bf16.mxu0 %vm256_vm0, %v3740_v22 }
  0x6c   : > { %3020 = vmatmul.mubr.msk.bf16.gmra.mrb[12].mxu0 %vm256_vm0, %v3747_v23 }
  0x86   : > { %v3790_v32 = vpop.permute.xlu0 %834 }
  0x87   : > { %3255 = vmatprep.subr.msk.bf16.mxu1 %vm256_vm0, %v3790_v32 }
 0x127   : > { %v3009_v34 = vpop.f32.mrb[0].mxu0 }
 0x128   : > { %v404_v35 = vmul.f32 0.17677669, %v3009_v34  ;;  %v339_v36 = vpop.f32.mrb[1].mxu0 }
 0x129   : > { %v402_v37 = vmul.f32 0.17677669, %v339_v36  ;;  %v3010_v38 = vpop.f32.mrb[2].mxu0 }
 0x12a   : > { %v405_v39 = vmul.f32 0.17677669, %v3010_v38  ;;  %v342_v40 = vpop.f32.mrb[3].mxu0  ;;  %v3805_v41 = vadd.f32 %v3802_v33, %v404_v35 }
 0x12b   : > { %v403_v42 = vmul.f32 0.17677669, %v342_v40  ;;  %v3808_v43 = vadd.f32 %v3802_v33, %v402_v37 }
 0x12c   : > { %444 = vmax.xlane.f32.xlu1 %v3805_v41  ;;  %v3813_v44 = vadd.f32 %v3802_v33, %v405_v39 }
 0x12d   : > { %440 = vmax.xlane.f32.xlu0 %v3808_v43  ;;  %v3816_v46 = vadd.f32 %v3802_v33, %v403_v42 }
 0x12f   : > { %v3013_v45 = vpop.f32.mrb[4].mxu0 }
 0x130   : > { %v408_v47 = vmul.f32 0.17677669, %v3013_v45  ;;  %446 = vmax.xlane.f32.xlu1 %v3813_v44  ;;  %v355_v48 = vpop.f32.mrb[5].mxu0 }
 0x131   : > { %v406_v49 = vmul.f32 0.17677669, %v355_v48  ;;  %442 = vmax.xlane.f32.xlu0 %v3816_v46  ;;  %v3014_v50 = vpop.f32.mrb[6].mxu0  ;;  %v3872_v48 = vpop.permute.xlu1 %836 }
 0x132   : > { %v409_v51 = vmul.f32 0.17677669, %v3014_v50  ;;  %v3821_v52 = vadd.f32 %v3802_v33, %v408_v47  ;;  %v358_v53 = vpop.f32.mrb[7].mxu0 }
 0x133   : > { %v407_v54 = vmul.f32 0.17677669, %v358_v53  ;;  %v3828_v56 = vadd.f32 %v3802_v33, %v406_v49 }
 0x134   : > { %v3824_v55 = vadd.f32 %v3802_v33, %v409_v51 }
 0x135   : > { %452 = vmax.xlane.f32.xlu0 %v3821_v52  ;;  %v3832_v57 = vadd.f32 %v3802_v33, %v407_v54 }
 0x136   : > { %454 = vmax.xlane.f32.xlu1 %v3824_v55 }
 0x137   : > { %v3017_v58 = vpop.f32.mrb[8].mxu0 }
 0x138   : > { %v412_v59 = vmul.f32 0.17677669, %v3017_v58  ;;  %v371_v60 = vpop.f32.mrb[9].mxu0 }
 0x139   : > { %v410_v61 = vmul.f32 0.17677669, %v371_v60  ;;  %448 = vmax.xlane.f32.xlu0 %v3828_v56  ;;  %v3018_v62 = vpop.f32.mrb[10].mxu0 }
 0x13a   : > { %v413_v63 = vmul.f32 0.17677669, %v3018_v62  ;;  %450 = vmax.xlane.f32.xlu1 %v3832_v57  ;;  %v3837_v2 = vadd.f32 %v3802_v33, %v412_v59  ;;  %v374_v3 = vpop.f32.mrb[11].mxu0 }
 0x13b   : > { %v411_v7 = vmul.f32 0.17677669, %v374_v3  ;;  %v3844_v10 = vadd.f32 %v3802_v33, %v410_v61 }
 0x13c   : > { %v3840_v8 = vadd.f32 %v3802_v33, %v413_v63 }
 0x13d   : > { %460 = vmax.xlane.f32.xlu0 %v3837_v2  ;;  %v3848_v12 = vadd.f32 %v3802_v33, %v411_v7 }
 0x13e   : > { %462 = vmax.xlane.f32.xlu1 %v3840_v8 }
 0x13f   : > { %v3021_v14 = vpop.f32.mrb[12].mxu0 }
 0x140   : > { %v416_v16 = vmul.f32 0.17677669, %v3021_v14  ;;  %v387_v34 = vpop.f32.mrb[13].mxu0 }
 0x141   : > { %456 = vmax.xlane.f32.xlu0 %v3844_v10  ;;  %v414_v35 = vmul.f32 0.17677669, %v387_v34  ;;  %v3022_v36 = vpop.f32.mrb[14].mxu0 }
 0x142   : > { %458 = vmax.xlane.f32.xlu1 %v3848_v12  ;;  %v3853_v37 = vadd.f32 %v3802_v33, %v416_v16  ;;  %v390_v38 = vpop.f32.mrb[15].mxu0  ;;  %v417_v40 = vmul.f32 0.17677669, %v3022_v36 }
 0x143   : > { %v3857_v39 = vadd.f32 %v3802_v33, %v414_v35  ;;  %v415_v42 = vmul.f32 0.17677669, %v390_v38 }
 0x144   : > { %v3865_v45 = vadd.f32 %v3802_v33, %v417_v40 }
 0x145   : > { %468 = vmax.xlane.f32.xlu0 %v3853_v37  ;;  %v3869_v47 = vadd.f32 %v3802_v33, %v415_v42 }
 0x149   : > { %464 = vmax.xlane.f32.xlu0 %v3857_v39 }
 0x153   : > { %840 = vrot.lane.b32.xlu1 %v3680_v6, %s3617_s15 }
 0x15f   : > { %838 = vrot.lane.b32.xlu0 %v3670_v4, %s3617_s15 }
 0x177   : > { %470 = vmax.xlane.f32.xlu1 %v3865_v45 }
 0x17b   : > { %466 = vmax.xlane.f32.xlu1 %v3869_v47 }
 0x1b9   : > { %v445_v49 = vpop.xlane.xlu1 %444 }
 0x1ba   : > { %v474_v6 = vsub.f32 %v3805_v41, %v445_v49  ;;  %v441_v50 = vpop.xlane.xlu0 %440 }
 0x1bb   : > { %v472_v4 = vsub.f32 %v3808_v43, %v441_v50 }
 0x1bc   : > { %v492_v51 = vmul.f32 1.442695, %v474_v6 }
 0x1bd   : > { %v488_v53 = vmul.f32 1.442695, %v472_v4  ;;  %v447_v54 = vpop.xlane.xlu1 %446 }
 0x1be   : > { %3323 = vpow2.f32 %v492_v51  ;;  %v475_v58 = vsub.f32 %v3813_v44, %v447_v54  ;;  %v443_v59 = vpop.xlane.xlu0 %442 }
 0x1bf   : > { %v473_v60 = vsub.f32 %v3816_v46, %v443_v59  ;;  %3325 = vpow2.f32 %v488_v53 }
 0x1c0   : > { %v494_v61 = vmul.f32 1.442695, %v475_v58 }
 0x1c1   : > { %v490_v62 = vmul.f32 1.442695, %v473_v60 }
 0x1c2   : > { %3327 = vpow2.f32 %v494_v61  ;;  %v453_v46 = vpop.xlane.xlu0 %452 }
 0x1c3   : > { %3329 = vpow2.f32 %v490_v62  ;;  %v455_v14 = vpop.xlane.xlu1 %454  ;;  %v478_v35 = vsub.f32 %v3821_v52, %v453_v46 }
 0x1c4   : > { %v479_v6 = vsub.f32 %v3824_v55, %v455_v14 }
 0x1c5   : > { %v500_v40 = vmul.f32 1.442695, %v478_v35 }
 0x1c6   : > { %v449_v3 = vpop.xlane.xlu0 %448  ;;  %v502_v51 = vmul.f32 1.442695, %v479_v6 }
 0x1c7   : > { %v451_v34 = vpop.xlane.xlu1 %450  ;;  %v476_v36 = vsub.f32 %v3828_v56, %v449_v3  ;;  %3331 = vpow2.f32 %v500_v40 }
 0x1c8   : > { %v3878_v63 = vpop.eup %3323  ;;  %v477_v42 = vsub.f32 %v3832_v57, %v451_v34 }
 0x1c9   : > { %524 = vadd.xlane.f32.xlu0 %v3878_v63  ;;  %v3881_v41 = vpop.eup %3325  ;;  %v496_v50 = vmul.f32 1.442695, %v476_v36 }
 0x1ca   : > { %v461_v7 = vpop.xlane.xlu0 %460 }
 0x1cb   : > { %v463_v49 = vpop.xlane.xlu1 %462  ;;  %3333 = vpow2.f32 %v496_v50  ;;  %v482_v53 = vsub.f32 %v3837_v2, %v461_v7 }
 0x1cc   : > { %v3883_v43 = vpop.eup %3327  ;;  %v483_v2 = vsub.f32 %v3840_v8, %v463_v49 }
 0x1cd   : > { %520 = vadd.xlane.f32.xlu0 %v3881_v41  ;;  %526 = vadd.xlane.f32.xlu1 %v3883_v43  ;;  %v3887_v44 = vpop.eup %3329  ;;  %v508_v57 = vmul.f32 1.442695, %v482_v53 }
 0x1ce   : > { %v457_v16 = vpop.xlane.xlu0 %456  ;;  %v510_v46 = vmul.f32 1.442695, %v483_v2 }
 0x1cf   : > { %v459_v52 = vpop.xlane.xlu1 %458  ;;  %v480_v58 = vsub.f32 %v3844_v10, %v457_v16 }
 0x1d0   : > { %v481_v3 = vsub.f32 %v3848_v12, %v459_v52 }
 0x1d1   : > { %522 = vadd.xlane.f32.xlu1 %v3887_v44  ;;  %v3904_v60 = vpop.eup %3331 }
 0x1d2   : > { %v469_v38 = vpop.xlane.xlu0 %468 }
 0x1d3   : > { %v3902_v59 = vpop.permute.xlu1 %840 }
 0x1d5   : > { %v3908_v61 = vpop.eup %3333 }
 0x1d6   : > { %v465_v4 = vpop.xlane.xlu0 %464 }
 0x1d7   : > { %v484_v54 = vsub.f32 %v3857_v39, %v465_v4 }
 0x1d9   : > { %v512_v55 = vmul.f32 1.442695, %v484_v54 }
 0x1e2   : > { %844 = vrot.lane.b32.xlu1 %v3696_v11, %s3617_s15  ;;  %v498_v11 = vmul.f32 1.442695, %v477_v42 }
 0x1e3   : > { %842 = vrot.lane.b32.xlu0 %v3689_v9, %s3617_s15  ;;  %v486_v9 = vsub.f32 %v3853_v37, %v469_v38  ;;  %v504_v37 = vmul.f32 1.442695, %v480_v58 }
 0x1e4   : > { %3335 = vpow2.f32 %v498_v11 }
 0x1e5   : > { %v516_v56 = vmul.f32 1.442695, %v486_v9  ;;  %3337 = vpow2.f32 %v502_v51 }
 0x1e7   : > { %3339 = vpow2.f32 %v516_v56 }
 0x1e8   : > { %3341 = vpow2.f32 %v508_v57 }
 0x1e9   : > { %3343 = vpow2.f32 %v512_v55 }
 0x1ea   : > { %3345 = vpow2.f32 %v504_v37 }
 0x1ee   : > { %v3910_v62 = vpop.eup %3335 }
 0x1ef   : > { %v3916_v14 = vpop.eup %3337 }
 0x1f1   : > { %v3918_v16 = vpop.eup %3339 }
 0x1f2   : > { %v3923_v35 = vpop.eup %3341 }
 0x1f3   : > { %v3925_v36 = vpop.eup %3343 }
 0x1f4   : > { %v3929_v38 = vpop.eup %3345 }
 0x202   : > { %532 = vadd.xlane.f32.xlu0 %v3904_v60 }
 0x204   : > { %v471_v39 = vpop.xlane.xlu1 %470 }
 0x205   : > { %v487_v10 = vsub.f32 %v3865_v45, %v471_v39  ;;  %v506_v45 = vmul.f32 1.442695, %v481_v3 }
 0x206   : > { %530 = vadd.xlane.f32.xlu0 %v3910_v62  ;;  %528 = vadd.xlane.f32.xlu1 %v3908_v61 }
 0x207   : > { %v518_v7 = vmul.f32 1.442695, %v487_v10 }
 0x208   : > { %v467_v8 = vpop.xlane.xlu1 %466 }
 0x209   : > { %3347 = vpow2.f32 %v518_v7  ;;  %v485_v34 = vsub.f32 %v3869_v47, %v467_v8 }
 0x20a   : > { %548 = vadd.xlane.f32.xlu0 %v3918_v16  ;;  %534 = vadd.xlane.f32.xlu1 %v3916_v14  ;;  %3349 = vpow2.f32 %v510_v46 }
 0x20b   : > { %3351 = vpow2.f32 %v506_v45  ;;  %v514_v12 = vmul.f32 1.442695, %v485_v34 }
 0x20d   : > { %3353 = vpow2.f32 %v514_v12 }
 0x20e   : > { %544 = vadd.xlane.f32.xlu0 %v3925_v36  ;;  %540 = vadd.xlane.f32.xlu1 %v3923_v35 }
 0x212   : > { %536 = vadd.xlane.f32.xlu1 %v3929_v38 }
 0x213   : > { %v3932_v40 = vpop.eup %3347 }
 0x214   : > { %550 = vadd.xlane.f32.xlu0 %v3932_v40  ;;  %v3935_v47 = vpop.eup %3349 }
 0x215   : > { %v3938_v42 = vpop.eup %3351 }
 0x216   : > { %542 = vadd.xlane.f32.xlu1 %v3935_v47 }
 0x217   : > { %v3941_v49 = vpop.eup %3353 }
 0x21a   : > { %538 = vadd.xlane.f32.xlu1 %v3938_v42 }
 0x21e   : > { %546 = vadd.xlane.f32.xlu1 %v3941_v49 }
 0x22a   : > { %846 = vrot.lane.b32.xlu0 %v3703_v13, %s3617_s15 }
 0x22e   : > { %818 = vrot.lane.b32.xlu0 %v3673_v5, %s3617_s15  ;;  %v839_v5 = vpop.permute.xlu0 %838 }
 0x22f   : > { %848 = vrot.lane.b32.xlu1 %v3710_v15, %s3617_s15 }
 0x232   : > { %822 = vrot.lane.b32.xlu0 %v3720_v18, %s3617_s15 }
 0x233   : > { %820 = vrot.lane.b32.xlu1 %v3717_v17, %s3617_s15 }
 0x236   : > { %826 = vrot.lane.b32.xlu0 %v3730_v20, %s3617_s15 }
 0x237   : > { %824 = vrot.lane.b32.xlu1 %v3727_v19, %s3617_s15 }
 0x23a   : > { %830 = vrot.lane.b32.xlu0 %v3740_v22, %s3617_s15 }
 0x23b   : > { %828 = vrot.lane.b32.xlu1 %v3737_v21, %s3617_s15 }
 0x23e   : > { %1179 = vrot.lane.b32.xlu0 %v3752_v24, %s3617_s15 }
 0x23f   : > { %832 = vrot.lane.b32.xlu1 %v3747_v23, %s3617_s15 }
 0x242   : > { %1183 = vrot.lane.b32.xlu0 %v3761_v26, %s3617_s15 }
 0x243   : > { %1181 = vrot.lane.b32.xlu1 %v3755_v25, %s3617_s15 }
 0x246   : > { %1187 = vrot.lane.b32.xlu0 %v3771_v28, %s3617_s15 }
 0x247   : > { %1185 = vrot.lane.b32.xlu1 %v3766_v27, %s3617_s15 }
 0x24a   : > { %1191 = vrot.lane.b32.xlu0 %v3782_v30, %s3617_s15  ;;  %v878_v30 = vsel %vm256_vm0, %v3872_v48, 0 }
 0x24b   : > { %1189 = vrot.lane.b32.xlu1 %v3777_v29, %s3617_s15  ;;  %v875_v29 = vsel %vm256_vm0, %v3790_v32, 0 }
 0x24e   : > { %1429 = vrot.lane.b32.xlu0 %v3652_v0, %s3618_s19 }
 0x24f   : > { %1193 = vrot.lane.b32.xlu1 %v3785_v31, %s3617_s15  ;;  %v881_v31 = vsel %vm256_vm0, %v839_v5, 0 }
 0x253   : > { %1431 = vrot.lane.b32.xlu1 %v3655_v1, %s3618_s19 }
 0x256   : > { %v525_v13 = vpop.xlane.xlu0 %524 }
 0x25a   : > { %v521_v15 = vpop.xlane.xlu0 %520  ;;  %v527_v17 = vpop.xlane.xlu1 %526 }
 0x25b   : > { %3355 = vrcp.f32 %v527_v17 }
 0x25c   : > { %3357 = vrcp.f32 %v521_v15 }
 0x25d   : > { %3359 = vrcp.f32 %v525_v13 }
 0x25e   : > { %v523_v18 = vpop.xlane.xlu1 %522  ;;  %v843_v32 = vpop.permute.xlu0 %842 }
 0x25f   : > { %3361 = vrcp.f32 %v523_v18 }
 0x265   : > { %v3356_v19 = vpop.eup %3355 }
 0x266   : > { %v3358_v20 = vpop.eup %3357  ;;  %v571_v23 = vmul.f32 %v3356_v19, %v3883_v43 }
 0x267   : > { %v3360_v21 = vpop.eup %3359  ;;  %v568_v24 = vmul.f32 %v3358_v20, %v3881_v41  ;;  %v845_v41 = vpop.permute.xlu1 %844 }
 0x268   : > { %v570_v26 = vmul.f32 %v3360_v21, %v3878_v63  ;;  %v884_v63 = vsel %vm256_vm0, %v3902_v59, 0  ;;  %v890_v11 = vsel %vm256_vm0, %v845_v41, 0 }
 0x269   : > { %v3362_v22 = vpop.eup %3361 }
 0x26a   : > { %v569_v25 = vmul.f32 %v3362_v22, %v3887_v44  ;;  %v585_v28 = vpack.c.bf16 %v571_v23, %v570_v26 }
 0x26c   : > { %v584_v27 = vpack.c.bf16 %v569_v25, %v568_v24 }
 0x26e   : > { %3039 = vmatprep.mubr.bf16.mxu1 %v584_v27 }
 0x26f   : > { %3040 = vmatmul.mubr.bf16.vlgmr.msra.gmra.mrb[0].mxu1 %v585_v28 }
 0x270   : > { %3056 = vmatpush3.bf16.xpose.msra.mxu1 %v875_v29 }
 0x271   : > { %3256 = vmatprep.subr.msk.bf16.mxu1 %vm256_vm0, %v3872_v48  ;;  %v887_v48 = vsel %vm256_vm0, %v843_v32, 0 }
 0x278   : > { %3058 = vmatpush3.bf16.xpose.msra.mxu1 %v878_v30 }
 0x279   : > { %3257 = vmatprep.subr.msk.bf16.mxu1 %vm256_vm0, %v839_v5 }
 0x280   : > { %3060 = vmatpush3.bf16.xpose.msra.mxu1 %v881_v31 }
 0x281   : > { %3258 = vmatprep.subr.msk.bf16.mxu1 %vm256_vm0, %v3902_v59 }
 0x288   : > { %3062 = vmatpush3.bf16.xpose.msra.mxu1 %v884_v63 }
 0x289   : > { %3259 = vmatprep.subr.msk.bf16.mxu1 %vm256_vm0, %v843_v32 }
 0x28f   : > { %v533_v43 = vpop.xlane.xlu0 %532 }
 0x290   : > { %3064 = vmatpush3.bf16.xpose.msra.mxu1 %v887_v48 }
 0x291   : > { %3260 = vmatprep.subr.msk.bf16.mxu1 %vm256_vm0, %v845_v41 }
 0x293   : > { %v531_v44 = vpop.xlane.xlu0 %530  ;;  %v529_v6 = vpop.xlane.xlu1 %528 }
 0x294   : > { %3363 = vrcp.f32 %v531_v44 }
 0x295   : > { %3365 = vrcp.f32 %v529_v6 }
 0x296   : > { %3367 = vrcp.f32 %v533_v43 }
 0x297   : > { %v549_v50 = vpop.xlane.xlu0 %548  ;;  %v535_v9 = vpop.xlane.xlu1 %534 }
 0x298   : > { %3066 = vmatpush3.bf16.xpose.msra.mxu1 %v890_v11  ;;  %3369 = vrcp.f32 %v535_v9 }
 0x29b   : > { %v541_v4 = vpop.xlane.xlu1 %540  ;;  %v545_v51 = vpop.xlane.xlu0 %544 }
 0x29e   : > { %v3364_v53 = vpop.eup %3363 }
 0x29f   : > { %v3366_v52 = vpop.eup %3365  ;;  %v537_v56 = vpop.xlane.xlu1 %536  ;;  %v573_v54 = vmul.f32 %v3364_v53, %v3910_v62 }
 0x2a0   : > { %v572_v57 = vmul.f32 %v3366_v52, %v3908_v61  ;;  %v3368_v58 = vpop.eup %3367 }
 0x2a1   : > { %v551_v55 = vpop.xlane.xlu0 %550  ;;  %v574_v39 = vmul.f32 %v3368_v58, %v3904_v60 }
 0x2a2   : > { %v586_v59 = vpack.c.bf16 %v573_v54, %v572_v57  ;;  %v3370_v2 = vpop.eup %3369 }
 0x2a3   : > { %v543_v37 = vpop.xlane.xlu1 %542  ;;  %v575_v10 = vmul.f32 %v3370_v2, %v3916_v14 }
 0x2a4   : > { %3043 = vmatprep.mubr.bf16.mxu1 %v586_v59  ;;  %3371 = vrcp.f32 %v543_v37 }
 0x2a5   : > { %v847_v46 = vpop.permute.xlu0 %846  ;;  %3373 = vrcp.f32 %v537_v56  ;;  %v587_v3 = vpack.c.bf16 %v575_v10, %v574_v39 }
 0x2a6   : > { %3261 = vmatprep.subr.msk.bf16.mxu1 %vm256_vm0, %v847_v46  ;;  %v893_v62 = vsel %vm256_vm0, %v847_v46, 0  ;;  %3375 = vrcp.f32 %v541_v4 }
 0x2a7   : > { %v539_v61 = vpop.xlane.xlu1 %538  ;;  %3068 = vmatpush3.bf16.xpose.msra.mxu1 %v893_v62 }
 0x2a8   : > { %3044 = vmatmul.mubr.bf16.gmra.mrb[4].mxu1 %v587_v3  ;;  %3377 = vrcp.f32 %v539_v61 }
 0x2a9   : > { %3379 = vrcp.f32 %v545_v51  ;;  %v819_v27 = vpop.permute.xlu0 %818 }
 0x2ab   : > { %v547_v7 = vpop.xlane.xlu1 %546 }
 0x2ac   : > { %3381 = vrcp.f32 %v547_v7 }
 0x2ad   : > { %3383 = vrcp.f32 %v551_v55  ;;  %v823_v28 = vpop.permute.xlu0 %822 }
 0x2ae   : > { %v3372_v60 = vpop.eup %3371  ;;  %3385 = vrcp.f32 %v549_v50 }
 0x2af   : > { %v849_v14 = vpop.permute.xlu1 %848  ;;  %v3374_v8 = vpop.eup %3373  ;;  %v579_v5 = vmul.f32 %v3372_v60, %v3935_v47 }
 0x2b0   : > { %3262 = vmatprep.subr.msk.bf16.mxu1 %vm256_vm0, %v849_v14  ;;  %v896_v45 = vsel %vm256_vm0, %v849_v14, 0  ;;  %v3376_v34 = vpop.eup %3375  ;;  %v576_v13 = vmul.f32 %v3374_v8, %v3929_v38 }
 0x2b1   : > { %3070 = vmatpush3.bf16.xpose.msra.mxu1 %v896_v45  ;;  %v578_v18 = vmul.f32 %v3376_v34, %v3923_v35 }
 0x2b2   : > { %v3378_v12 = vpop.eup %3377 }
 0x2b3   : > { %v577_v15 = vmul.f32 %v3378_v12, %v3938_v42  ;;  %v3380_v17 = vpop.eup %3379  ;;  %v589_v21 = vpack.c.bf16 %v579_v5, %v578_v18  ;;  %v821_v35 = vpop.permute.xlu1 %820 }
 0x2b4   : > { %v580_v23 = vmul.f32 %v3380_v17, %v3925_v36 }
 0x2b5   : > { %v588_v19 = vpack.c.bf16 %v577_v15, %v576_v13 }
 0x2b6   : > { %v3382_v20 = vpop.eup %3381 }
 0x2b7   : > { %v3384_v22 = vpop.eup %3383  ;;  %3047 = vmatprep.mubr.bf16.mxu1 %v588_v19  ;;  %v581_v24 = vmul.f32 %v3382_v20, %v3941_v49  ;;  %v825_v36 = vpop.permute.xlu1 %824 }
 0x2b8   : > { %3048 = vmatmul.mubr.bf16.gmra.mrb[8].mxu1 %v589_v21  ;;  %v3386_v25 = vpop.eup %3385  ;;  %v583_v47 = vmul.f32 %v3384_v22, %v3932_v40  ;;  %v827_v49 = vpop.permute.xlu0 %826 }
 0x2b9   : > { %v590_v26 = vpack.c.bf16 %v581_v24, %v580_v23  ;;  %v582_v38 = vmul.f32 %v3386_v25, %v3918_v16 }
 0x2bb   : > { %3051 = vmatprep.mubr.bf16.mxu1 %v590_v26  ;;  %v591_v42 = vpack.c.bf16 %v583_v47, %v582_v38  ;;  %v829_v40 = vpop.permute.xlu1 %828 }
 0x2bc   : > { %v831_v16 = vpop.permute.xlu0 %830 }
 0x2bf   : > { %v833_v29 = vpop.permute.xlu1 %832 }
 0x2c0   : > { %3052 = vmatmul.mubr.bf16.gmra.mrb[12].mxu1 %v591_v42  ;;  %v1180_v48 = vpop.permute.xlu0 %1179 }
 0x2c1   : > { %3071 = vmatprep.mubr.msk.bf16.mxu1 %vm256_vm0, %v819_v27  ;;  %3087 = vmatprep.subr.bf16.mxu0 %v1180_v48 }
 0x2c2   : > { %3088 = vmatpush3.bf16.msra.mxu0 %v1180_v48 }
 0x2c3   : > { %v1182_v44 = vpop.permute.xlu1 %1181 }
 0x2c4   : > { %3089 = vmatprep.subr.bf16.mxu0 %v1182_v44  ;;  %v1184_v6 = vpop.permute.xlu0 %1183 }
 0x2c6   : > { %3090 = vmatpush3.bf16.msra.mxu0 %v1182_v44 }
 0x2c7   : > { %3091 = vmatprep.subr.bf16.mxu0 %v1184_v6  ;;  %v1186_v50 = vpop.permute.xlu1 %1185 }
 0x2c8   : > { %3072 = vmatmul.mubr.msk.bf16.vlgmr.msra.gmra.mrb[16].mxu1 %vm256_vm0, %v821_v35  ;;  %v1188_v11 = vpop.permute.xlu0 %1187 }
 0x2c9   : > { %3075 = vmatprep.mubr.msk.bf16.mxu1 %vm256_vm0, %v823_v28 }
 0x2ca   : > { %3092 = vmatpush3.bf16.msra.mxu0 %v1184_v6 }
 0x2cb   : > { %3093 = vmatprep.subr.bf16.mxu0 %v1186_v50  ;;  %v1190_v9 = vpop.permute.xlu1 %1189 }
 0x2cc   : > { %v1192_v4 = vpop.permute.xlu0 %1191 }
 0x2ce   : > { %3094 = vmatpush3.bf16.msra.mxu0 %v1186_v50 }
 0x2cf   : > { %3095 = vmatprep.subr.bf16.mxu0 %v1188_v11  ;;  %v1194_v51 = vpop.permute.xlu1 %1193 }
 0x2d0   : > { %3076 = vmatmul.mubr.msk.bf16.gmra.mrb[20].mxu1 %vm256_vm0, %v825_v36  ;;  %v4042_v53 = vpop.permute.xlu0 %1429 }
 0x2d1   : > { %3079 = vmatprep.mubr.msk.bf16.mxu1 %vm256_vm0, %v827_v49 }
 0x2d2   : > { %3096 = vmatpush3.bf16.msra.mxu0 %v1188_v11 }
 0x2d3   : > { %3097 = vmatprep.subr.bf16.mxu0 %v1190_v9 }
 0x2d6   : > { %3098 = vmatpush3.bf16.msra.mxu0 %v1190_v9 }
 0x2d7   : > { %3099 = vmatprep.subr.bf16.mxu0 %v1192_v4 }
 0x2d8   : > { %3080 = vmatmul.mubr.msk.bf16.gmra.mrb[24].mxu1 %vm256_vm0, %v829_v40 }
 0x2d9   : > { %3083 = vmatprep.mubr.msk.bf16.mxu1 %vm256_vm0, %v831_v16 }
 0x2da   : > { %3100 = vmatpush3.bf16.msra.mxu0 %v1192_v4 }
 0x2db   : > { %3101 = vmatprep.subr.bf16.mxu0 %v1194_v51 }
 0x2de   : > { %3102 = vmatpush3.bf16.msra.mxu0 %v1194_v51 }
 0x2df   : > { %3263 = vmatprep.subr.msk.bf16.mxu0 %vm256_vm0, %v4042_v53 }
 0x2e0   : > { %3084 = vmatmul.mubr.msk.bf16.gmra.mrb[28].mxu1 %vm256_vm0, %v833_v29 }
 0x342   : > { %v3041_v30 = vpop.f32.mrb[0].mxu1 }
 0x343   : > { %v2801_v31 = vpack.c.bf16 %v3041_v30, %v3041_v30  ;;  %v674_v63 = vpop.f32.mrb[1].mxu1 }
 0x344   : > { %v2799_v32 = vpack.c.bf16 %v674_v63, %v674_v63  ;;  %v3042_v41 = vpop.f32.mrb[2].mxu1 }
 0x345   : > { %804 = vst.msk [vmem:[%s4032_s23 + $0x8] sm:$0xf] %vm801_vm1, %v2801_v31  ;;  %v2802_v1 = vpack.c.bf16 %v3042_v41, %v3042_v41  ;;  %v677_v0 = vpop.f32.mrb[3].mxu1 }
 0x346   : > { %802 = vst.msk [vmem:[%s4032_s23] sm:$0xf] %vm801_vm1, %v2799_v32  ;;  %v2800_v43 = vpack.c.bf16 %v677_v0, %v677_v0 }
 0x347   : > { %805 = vst.msk [vmem:[%s4032_s23 + $0xc] sm:$0xf] %vm801_vm1, %v2802_v1 }
 0x348   : > { %803 = vst.msk [vmem:[%s4032_s23 + $0x4] sm:$0xf] %vm801_vm1, %v2800_v43 }
 0x37b   : > { %v3045_v52 = vpop.f32.mrb[4].mxu1 }
 0x37c   : > { %v2805_v56 = vpack.c.bf16 %v3045_v52, %v3045_v52  ;;  %v690_v54 = vpop.f32.mrb[5].mxu1 }
 0x37d   : > { %v2803_v57 = vpack.c.bf16 %v690_v54, %v690_v54  ;;  %v3046_v58 = vpop.f32.mrb[6].mxu1 }
 0x37e   : > { %808 = vst.msk [vmem:[%s4032_s23 + $0x18] sm:$0xf] %vm801_vm1, %v2805_v56  ;;  %v2806_v55 = vpack.c.bf16 %v3046_v58, %v3046_v58  ;;  %v693_v59 = vpop.f32.mrb[7].mxu1 }
 0x37f   : > { %806 = vst.msk [vmem:[%s4032_s23 + $0x10] sm:$0xf] %vm801_vm1, %v2803_v57  ;;  %v2804_v2 = vpack.c.bf16 %v693_v59, %v693_v59  ;;  %v4127_v59 = vld [vmem:[%s3649_s14 + $0x4c] ss:$12 sps:$4 sm:$0xff]  }
 0x380   : > { %809 = vst.msk [vmem:[%s4032_s23 + $0x1c] sm:$0xf] %vm801_vm1, %v2806_v55 }
 0x381   : > { %807 = vst.msk [vmem:[%s4032_s23 + $0x14] sm:$0xf] %vm801_vm1, %v2804_v2  ;;  %v4132_v2 = vld [vmem:[%s3649_s14 + $0x34] ss:$12 sps:$4 sm:$0xff]  }
 0x38b   : > { %v3049_v37 = vpop.f32.mrb[8].mxu1 }
 0x38c   : > { %v2809_v39 = vpack.c.bf16 %v3049_v37, %v3049_v37  ;;  %v706_v10 = vpop.f32.mrb[9].mxu1 }
 0x38d   : > { %v2807_v46 = vpack.c.bf16 %v706_v10, %v706_v10  ;;  %v3050_v3 = vpop.f32.mrb[10].mxu1 }
 0x38e   : > { %812 = vst.msk [vmem:[%s4032_s23 + $0x28] sm:$0xf] %vm801_vm1, %v2809_v39  ;;  %v2810_v62 = vpack.c.bf16 %v3050_v3, %v3050_v3  ;;  %v709_v61 = vpop.f32.mrb[11].mxu1  ;;  %v4144_v3 = vpop.permute.xlu1 %1431 }
 0x38f   : > { %810 = vst.msk [vmem:[%s4032_s23 + $0x20] sm:$0xf] %vm801_vm1, %v2807_v46  ;;  %v2808_v7 = vpack.c.bf16 %v709_v61, %v709_v61 }
 0x390   : > { %813 = vst.msk [vmem:[%s4032_s23 + $0x2c] sm:$0xf] %vm801_vm1, %v2810_v62 }
 0x391   : > { %811 = vst.msk [vmem:[%s4032_s23 + $0x24] sm:$0xf] %vm801_vm1, %v2808_v7 }
 0x393   : > { %v3053_v60 = vpop.f32.mrb[12].mxu1 }
 0x394   : > { %v2813_v14 = vpack.c.bf16 %v3053_v60, %v3053_v60  ;;  %v722_v8 = vpop.f32.mrb[13].mxu1 }
 0x395   : > { %v2811_v45 = vpack.c.bf16 %v722_v8, %v722_v8  ;;  %v3054_v34 = vpop.f32.mrb[14].mxu1 }
 0x396   : > { %816 = vst.msk [vmem:[%s4032_s23 + $0x38] sm:$0xf] %vm801_vm1, %v2813_v14  ;;  %v2814_v12 = vpack.c.bf16 %v3054_v34, %v3054_v34  ;;  %v725_v5 = vpop.f32.mrb[15].mxu1 }
 0x397   : > { %814 = vst.msk [vmem:[%s4032_s23 + $0x30] sm:$0xf] %vm801_vm1, %v2811_v45  ;;  %v2812_v13 = vpack.c.bf16 %v725_v5, %v725_v5 }
 0x398   : > { %817 = vst.msk [vmem:[%s4032_s23 + $0x3c] sm:$0xf] %vm801_vm1, %v2814_v12 }
 0x399   : > { %815 = vst.msk [vmem:[%s4032_s23 + $0x34] sm:$0xf] %vm801_vm1, %v2812_v13 }
 0x39b   : > { %v3073_v15 = vpop.f32.mrb[16].mxu1 }
 0x39c   : > { %v997_v17 = vmul.f32 0.17677669, %v3073_v15  ;;  %v932_v18 = vpop.f32.mrb[17].mxu1 }
 0x39d   : > { %v3074_v19 = vpop.f32.mrb[18].mxu1  ;;  %v995_v20 = vmul.f32 0.17677669, %v932_v18 }
 0x39e   : > { %v935_v21 = vpop.f32.mrb[19].mxu1  ;;  %v4071_v22 = vadd.f32 %v3802_v33, %v997_v17  ;;  %v998_v25 = vmul.f32 0.17677669, %v3074_v19 }
 0x39f   : > { %v996_v23 = vmul.f32 0.17677669, %v935_v21  ;;  %v4078_v26 = vadd.f32 %v3802_v33, %v995_v20  ;;  %v4163_v21 = vld [vmem:[%s3649_s14 + $0x7c] ss:$12 sps:$4 sm:$0xff]  }
 0x3a0   : > { %1031 = vmax.xlane.f32.xlu0 %v4071_v22  ;;  %v4083_v28 = vadd.f32 %v3802_v33, %v998_v25 }
 0x3a1   : > { %v4075_v24 = vadd.f32 %v3802_v33, %v996_v23 }
 0x3a3   : > { %1029 = vmax.xlane.f32.xlu1 %v4075_v24  ;;  %v3077_v47 = vpop.f32.mrb[20].mxu1 }
 0x3a4   : > { %v1001_v38 = vmul.f32 0.17677669, %v3077_v47  ;;  %1027 = vmax.xlane.f32.xlu0 %v4078_v26  ;;  %v948_v42 = vpop.f32.mrb[21].mxu1 }
 0x3a5   : > { %v3078_v27 = vpop.f32.mrb[22].mxu1  ;;  %v999_v29 = vmul.f32 0.17677669, %v948_v42 }
 0x3a6   : > { %v1002_v35 = vmul.f32 0.17677669, %v3078_v27  ;;  %v951_v36 = vpop.f32.mrb[23].mxu1  ;;  %v4090_v16 = vadd.f32 %v3802_v33, %v1001_v38 }
 0x3a7   : > { %v1000_v49 = vmul.f32 0.17677669, %v951_v36  ;;  %v4099_v0 = vadd.f32 %v3802_v33, %v999_v29 }
 0x3a8   : > { %1033 = vmax.xlane.f32.xlu0 %v4083_v28  ;;  %v4087_v40 = vadd.f32 %v3802_v33, %v1002_v35 }
 0x3a9   : > { %v4094_v30 = vadd.f32 %v3802_v33, %v1000_v49 }
 0x3aa   : > { %1041 = vmax.xlane.f32.xlu1 %v4087_v40 }
 0x3ab   : > { %v3081_v31 = vpop.f32.mrb[24].mxu1 }
 0x3ac   : > { %v1005_v63 = vmul.f32 0.17677669, %v3081_v31  ;;  %1039 = vmax.xlane.f32.xlu0 %v4090_v16  ;;  %v964_v32 = vpop.f32.mrb[25].mxu1 }
 0x3ad   : > { %v3082_v41 = vpop.f32.mrb[26].mxu1  ;;  %v1003_v50 = vmul.f32 0.17677669, %v964_v32 }
 0x3ae   : > { %v1006_v1 = vmul.f32 0.17677669, %v3082_v41  ;;  %1037 = vmax.xlane.f32.xlu1 %v4094_v30  ;;  %v967_v43 = vpop.f32.mrb[27].mxu1  ;;  %v4106_v6 = vadd.f32 %v3802_v33, %v1005_v63 }
 0x3af   : > { %v1004_v48 = vmul.f32 0.17677669, %v967_v43  ;;  %v4115_v56 = vadd.f32 %v3802_v33, %v1003_v50 }
 0x3b0   : > { %1035 = vmax.xlane.f32.xlu0 %v4099_v0  ;;  %v4103_v44 = vadd.f32 %v3802_v33, %v1006_v1 }
 0x3b1   : > { %v4110_v11 = vadd.f32 %v3802_v33, %v1004_v48 }
 0x3b2   : > { %1049 = vmax.xlane.f32.xlu1 %v4103_v44 }
 0x3b3   : > { %v3085_v9 = vpop.f32.mrb[28].mxu1 }
 0x3b4   : > { %1047 = vmax.xlane.f32.xlu0 %v4106_v6  ;;  %v1009_v4 = vmul.f32 0.17677669, %v3085_v9  ;;  %v980_v51 = vpop.f32.mrb[29].mxu1 }
 0x3b5   : > { %v3086_v52 = vpop.f32.mrb[30].mxu1  ;;  %v1007_v57 = vmul.f32 0.17677669, %v980_v51 }
 0x3b6   : > { %1045 = vmax.xlane.f32.xlu1 %v4110_v11  ;;  %v983_v54 = vpop.f32.mrb[31].mxu1  ;;  %v4119_v58 = vadd.f32 %v3802_v33, %v1009_v4  ;;  %v1010_v37 = vmul.f32 0.17677669, %v3086_v52 }
 0x3b7   : > { %v4123_v55 = vadd.f32 %v3802_v33, %v1007_v57  ;;  %v1008_v39 = vmul.f32 0.17677669, %v983_v54 }
 0x3b8   : > { %1043 = vmax.xlane.f32.xlu0 %v4115_v56  ;;  %v4137_v10 = vadd.f32 %v3802_v33, %v1010_v37 }
 0x3b9   : > { %v4141_v46 = vadd.f32 %v3802_v33, %v1008_v39 }
 0x3bc   : > { %1055 = vmax.xlane.f32.xlu0 %v4119_v58 }
 0x3c0   : > { %1051 = vmax.xlane.f32.xlu0 %v4123_v55 }
 0x3c7   : > { %1435 = vrot.lane.b32.xlu1 %v4127_v59, %s3618_s19 }
 0x3d6   : > { %1433 = vrot.lane.b32.xlu0 %v4132_v2, %s3618_s19 }
 0x3eb   : > { %1057 = vmax.xlane.f32.xlu1 %v4137_v10 }
 0x3ef   : > { %1053 = vmax.xlane.f32.xlu1 %v4141_v46 }
 0x42d   : > { %v1032_v62 = vpop.xlane.xlu0 %1031 }
 0x42e   : > { %v1061_v61 = vsub.f32 %v4071_v22, %v1032_v62  ;;  %v4168_v22 = vld [vmem:[%s3649_s14 + $0x64] ss:$12 sps:$4 sm:$0xff]  }
 0x430   : > { %v1079_v7 = vmul.f32 1.442695, %v1061_v61  ;;  %v1030_v60 = vpop.xlane.xlu1 %1029 }
 0x431   : > { %v1060_v14 = vsub.f32 %v4075_v24, %v1030_v60  ;;  %v1028_v8 = vpop.xlane.xlu0 %1027 }
 0x432   : > { %3387 = vpow2.f32 %v1079_v7  ;;  %v1059_v45 = vsub.f32 %v4078_v26, %v1028_v8 }
 0x433   : > { %v1077_v34 = vmul.f32 1.442695, %v1060_v14 }
 0x434   : > { %v1075_v12 = vmul.f32 1.442695, %v1059_v45 }
 0x435   : > { %3389 = vpow2.f32 %v1077_v34  ;;  %v1034_v33 = vpop.xlane.xlu0 %1033  ;;  %v4223_v34 = vld [vmem:[%s3649_s14 + $0x94] ss:$12 sps:$4 sm:$0xff]  }
 0x436   : > { %3391 = vpow2.f32 %v1075_v12  ;;  %v1062_v5 = vsub.f32 %v4083_v28, %v1034_v33  ;;  %v4228_v12 = vld [vmem:[%s3649_s14 + $0xac] ss:$12 sps:$4 sm:$0xff]  }
 0x437   : > { %v1042_v24 = vpop.xlane.xlu1 %1041  ;;  %v4233_v33 = vld [vmem:[%s3649_s14] ss:$12 sps:$4 sm:$0xff]  }
 0x438   : > { %v1081_v13 = vmul.f32 1.442695, %v1062_v5  ;;  %v1066_v49 = vsub.f32 %v4087_v40, %v1042_v24  ;;  %v4238_v5 = vld [vmem:[%s3649_s14 + $0x18] ss:$12 sps:$4 sm:$0xff]  }
 0x439   : > { %v1040_v20 = vpop.xlane.xlu0 %1039  ;;  %v4258_v24 = vld [vmem:[%s3649_s14 + $0x78] ss:$12 sps:$4 sm:$0xff]  }
 0x43a   : > { %3393 = vpow2.f32 %v1081_v13  ;;  %v1065_v26 = vsub.f32 %v4090_v16, %v1040_v20  ;;  %v1089_v32 = vmul.f32 1.442695, %v1066_v49  ;;  %v4243_v13 = vld [vmem:[%s3649_s14 + $0x30] ss:$12 sps:$4 sm:$0xff]   ;;  %v4248_v20 = vld [vmem:[%s3649_s14 + $0x48] ss:$12 sps:$4 sm:$0xff]  }
 0x43b   : > { %v1038_v47 = vpop.xlane.xlu1 %1037  ;;  %v3600_v49 = vld [vmem:[%s3649_s14 + $0xb0] ss:$12 sps:$4 sm:$0xff]  }
 0x43c   : > { %v4150_v15 = vpop.eup %3387  ;;  %v1087_v42 = vmul.f32 1.442695, %v1065_v26  ;;  %v1064_v35 = vsub.f32 %v4094_v30, %v1038_v47  ;;  %v4268_v26 = vld [vmem:[%s3649_s14 + $0xa8] ss:$12 sps:$4 sm:$0xff]  }
 0x43d   : > { %1111 = vadd.xlane.f32.xlu1 %v4150_v15  ;;  %v1036_v23 = vpop.xlane.xlu0 %1035  ;;  %v4273_v47 = vld [vmem:[%s3649_s14 + $0x8] ss:$12 sps:$4 sm:$0xff]  }
 0x43e   : > { %v1063_v27 = vsub.f32 %v4099_v0, %v1036_v23  ;;  %3395 = vpow2.f32 %v1087_v42  ;;  %v1085_v31 = vmul.f32 1.442695, %v1064_v35  ;;  %v4253_v23 = vld [vmem:[%s3649_s14 + $0x60] ss:$12 sps:$4 sm:$0xff]   ;;  %v4283_v42 = vld [vmem:[%s3649_s14 + $0x38] ss:$12 sps:$4 sm:$0xff]  }
 0x43f   : > { %v4153_v17 = vpop.eup %3389  ;;  %v1050_v28 = vpop.xlane.xlu1 %1049  ;;  %v3597_v35 = vld [vmem:[%s3649_s14 + $0x68] ss:$12 sps:$4 sm:$0xff]  }
 0x440   : > { %v4155_v18 = vpop.eup %3391  ;;  %1109 = vadd.xlane.f32.xlu0 %v4153_v17  ;;  %v1083_v29 = vmul.f32 1.442695, %v1063_v27  ;;  %v1070_v40 = vsub.f32 %v4103_v44, %v1050_v28  ;;  %v3596_v27 = vld [vmem:[%s3649_s14 + $0x50] ss:$12 sps:$4 sm:$0xff]   ;;  %v3598_v28 = vld [vmem:[%s3649_s14 + $0x80] ss:$12 sps:$4 sm:$0xff]  }
 0x441   : > { %1107 = vadd.xlane.f32.xlu1 %v4155_v18  ;;  %v1048_v25 = vpop.xlane.xlu0 %1047 }
 0x442   : > { %v1069_v63 = vsub.f32 %v4106_v6, %v1048_v25  ;;  %3397 = vpow2.f32 %v1083_v29  ;;  %v1097_v51 = vmul.f32 1.442695, %v1070_v40  ;;  %v4263_v25 = vld [vmem:[%s3649_s14 + $0x90] ss:$12 sps:$4 sm:$0xff]  }
 0x443   : > { %v1046_v41 = vpop.xlane.xlu1 %1045  ;;  %3399 = vpow2.f32 %v1085_v31 }
 0x444   : > { %v4159_v19 = vpop.eup %3393  ;;  %v1095_v1 = vmul.f32 1.442695, %v1069_v63  ;;  %3401 = vpow2.f32 %v1089_v32  ;;  %v1068_v52 = vsub.f32 %v4110_v11, %v1046_v41 }
 0x445   : > { %1113 = vadd.xlane.f32.xlu1 %v4159_v19  ;;  %v1044_v38 = vpop.xlane.xlu0 %1043 }
 0x446   : > { %v1067_v0 = vsub.f32 %v4115_v56, %v1044_v38  ;;  %3403 = vpow2.f32 %v1095_v1  ;;  %v4278_v38 = vld [vmem:[%s3649_s14 + $0x20] ss:$12 sps:$4 sm:$0xff]  }
 0x447   : > { %v4183_v6 = vpop.permute.xlu1 %1435 }
 0x448   : > { %v1091_v50 = vmul.f32 1.442695, %v1067_v0  ;;  %v4181_v9 = vpop.eup %3395 }
 0x449   : > { %v1056_v36 = vpop.xlane.xlu0 %1055 }
 0x44a   : > { %v1073_v16 = vsub.f32 %v4119_v58, %v1056_v36  ;;  %v1093_v58 = vmul.f32 1.442695, %v1068_v52  ;;  %v3599_v36 = vld [vmem:[%s3649_s14 + $0x98] ss:$12 sps:$4 sm:$0xff]   ;;  %v1470_v52 = vsel %vm256_vm0, %v4042_v53, 0 }
 0x44c   : > { %v1103_v30 = vmul.f32 1.442695, %v1073_v16  ;;  %v4187_v56 = vpop.eup %3397 }
 0x44d   : > { %v1052_v43 = vpop.xlane.xlu0 %1051  ;;  %v4189_v57 = vpop.eup %3399 }
 0x44e   : > { %v1071_v48 = vsub.f32 %v4123_v55, %v1052_v43  ;;  %3405 = vpow2.f32 %v1103_v30  ;;  %v4194_v37 = vpop.eup %3401 }
 0x44f   : > { %3407 = vpow2.f32 %v1091_v50 }
 0x450   : > { %v1099_v4 = vmul.f32 1.442695, %v1071_v48  ;;  %v4196_v11 = vpop.eup %3403 }
 0x451   : > { %v1434_v29 = vpop.permute.xlu0 %1433 }
 0x452   : > { %3409 = vpow2.f32 %v1099_v4 }
 0x453   : > { %3411 = vpow2.f32 %v1097_v51 }
 0x456   : > { %1439 = vrot.lane.b32.xlu1 %v4163_v21, %s3618_s19  ;;  %1437 = vrot.lane.b32.xlu0 %v4168_v22, %s3618_s19 }
 0x458   : > { %v4201_v61 = vpop.eup %3405 }
 0x459   : > { %v4203_v7 = vpop.eup %3407 }
 0x45c   : > { %v4207_v60 = vpop.eup %3409 }
 0x475   : > { %1119 = vadd.xlane.f32.xlu0 %v4181_v9 }
 0x478   : > { %v1058_v54 = vpop.xlane.xlu1 %1057 }
 0x479   : > { %v1074_v44 = vsub.f32 %v4137_v10, %v1058_v54  ;;  %1115 = vadd.xlane.f32.xlu0 %v4187_v56 }
 0x47a   : > { %1117 = vadd.xlane.f32.xlu1 %v4189_v57 }
 0x47b   : > { %v1105_v55 = vmul.f32 1.442695, %v1074_v44 }
 0x47c   : > { %v1054_v39 = vpop.xlane.xlu1 %1053 }
 0x47d   : > { %3413 = vpow2.f32 %v1105_v55  ;;  %v1072_v62 = vsub.f32 %v4141_v46, %v1054_v39  ;;  %1121 = vadd.xlane.f32.xlu0 %v4194_v37  ;;  %v4209_v46 = vpop.eup %3411 }
 0x47e   : > { %1127 = vadd.xlane.f32.xlu1 %v4196_v11  ;;  %3415 = vpow2.f32 %v1093_v58 }
 0x47f   : > { %v1101_v10 = vmul.f32 1.442695, %v1072_v62 }
 0x481   : > { %1135 = vadd.xlane.f32.xlu0 %v4201_v61  ;;  %3417 = vpow2.f32 %v1101_v10 }
 0x482   : > { %1123 = vadd.xlane.f32.xlu1 %v4203_v7 }
 0x485   : > { %1131 = vadd.xlane.f32.xlu0 %v4207_v60 }
 0x486   : > { %1129 = vadd.xlane.f32.xlu1 %v4209_v46 }
 0x487   : > { %v4213_v14 = vpop.eup %3413 }
 0x488   : > { %v4215_v8 = vpop.eup %3415 }
 0x489   : > { %1137 = vadd.xlane.f32.xlu0 %v4213_v14 }
 0x48a   : > { %1125 = vadd.xlane.f32.xlu1 %v4215_v8 }
 0x48b   : > { %v4219_v45 = vpop.eup %3417 }
 0x48e   : > { %1133 = vadd.xlane.f32.xlu1 %v4219_v45 }
 0x49f   : > { %1441 = vrot.lane.b32.xlu0 %v4223_v34, %s3618_s19  ;;  %1443 = vrot.lane.b32.xlu1 %v4228_v12, %s3618_s19 }
 0x4a3   : > { %1413 = vrot.lane.b32.xlu0 %v4233_v33, %s3618_s19  ;;  %1415 = vrot.lane.b32.xlu1 %v4238_v5, %s3618_s19 }
 0x4a7   : > { %1417 = vrot.lane.b32.xlu0 %v4243_v13, %s3618_s19  ;;  %1419 = vrot.lane.b32.xlu1 %v4248_v20, %s3618_s19 }
 0x4ab   : > { %1421 = vrot.lane.b32.xlu0 %v4253_v23, %s3618_s19  ;;  %1423 = vrot.lane.b32.xlu1 %v4258_v24, %s3618_s19 }
 0x4af   : > { %1425 = vrot.lane.b32.xlu0 %v4263_v25, %s3618_s19  ;;  %1427 = vrot.lane.b32.xlu1 %v4268_v26, %s3618_s19 }
 0x4b3   : > { %1774 = vrot.lane.b32.xlu0 %v4273_v47, %s3618_s19  ;;  %1776 = vrot.lane.b32.xlu1 %v4278_v38, %s3618_s19 }
 0x4b7   : > { %1778 = vrot.lane.b32.xlu0 %v4283_v42, %s3618_s19  ;;  %1780 = vrot.lane.b32.xlu1 %v3596_v27, %s3618_s19 }
 0x4bb   : > { %1782 = vrot.lane.b32.xlu0 %v3597_v35, %s3618_s19  ;;  %1784 = vrot.lane.b32.xlu1 %v3598_v28, %s3618_s19 }
 0x4bf   : > { %1786 = vrot.lane.b32.xlu0 %v3599_v36, %s3618_s19  ;;  %1788 = vrot.lane.b32.xlu1 %v3600_v49, %s3618_s19 }
 0x4ca   : > { %v1112_v31 = vpop.xlane.xlu1 %1111 }
 0x4cd   : > { %v1110_v63 = vpop.xlane.xlu0 %1109 }
 0x4ce   : > { %3419 = vrcp.f32 %v1110_v63  ;;  %v1108_v32 = vpop.xlane.xlu1 %1107 }
 0x4cf   : > { %3421 = vrcp.f32 %v1108_v32 }
 0x4d0   : > { %3423 = vrcp.f32 %v1112_v31 }
 0x4d1   : > { %v1438_v53 = vpop.permute.xlu0 %1437 }
 0x4d2   : > { %v1114_v41 = vpop.xlane.xlu1 %1113  ;;  %v1482_v54 = vsel %vm256_vm0, %v1438_v53, 0 }
 0x4d3   : > { %3425 = vrcp.f32 %v1114_v41 }
 0x4d8   : > { %v3420_v16 = vpop.eup %3419 }
 0x4d9   : > { %v3422_v1 = vpop.eup %3421  ;;  %v1156_v0 = vmul.f32 %v3420_v16, %v4153_v17  ;;  %v1473_v17 = vsel %vm256_vm0, %v4144_v3, 0 }
 0x4da   : > { %v1155_v43 = vmul.f32 %v3422_v1, %v4155_v18  ;;  %v3424_v30 = vpop.eup %3423  ;;  %v1479_v18 = vsel %vm256_vm0, %v4183_v6, 0 }
 0x4db   : > { %v1157_v50 = vmul.f32 %v3424_v30, %v4150_v15  ;;  %v1476_v15 = vsel %vm256_vm0, %v1434_v29, 0 }
 0x4dc   : > { %v1171_v48 = vpack.c.bf16 %v1156_v0, %v1155_v43 }
 0x4dd   : > { %v3426_v40 = vpop.eup %3425 }
 0x4de   : > { %v1158_v4 = vmul.f32 %v3426_v40, %v4159_v19  ;;  %3103 = vmatprep.mubr.bf16.mxu0 %v1171_v48 }
 0x4e0   : > { %v1172_v51 = vpack.c.bf16 %v1158_v4, %v1157_v50 }
 0x4e2   : > { %3104 = vmatmul.mubr.bf16.vlgmr.msra.gmra.mrb[16].mxu0 %v1172_v51 }
 0x4e3   : > { %3120 = vmatpush3.bf16.xpose.msra.mxu0 %v1470_v52 }
 0x4e4   : > { %3264 = vmatprep.subr.msk.bf16.mxu0 %vm256_vm0, %v4144_v3  ;;  %v1440_v3 = vpop.permute.xlu1 %1439 }
 0x4e5   : > { %v1485_v39 = vsel %vm256_vm0, %v1440_v3, 0 }
 0x4eb   : > { %3122 = vmatpush3.bf16.xpose.msra.mxu0 %v1473_v17 }
 0x4ec   : > { %3265 = vmatprep.subr.msk.bf16.mxu0 %vm256_vm0, %v1434_v29 }
 0x4f3   : > { %3124 = vmatpush3.bf16.xpose.msra.mxu0 %v1476_v15 }
 0x4f4   : > { %3266 = vmatprep.subr.msk.bf16.mxu0 %vm256_vm0, %v4183_v6 }
 0x4fb   : > { %3126 = vmatpush3.bf16.xpose.msra.mxu0 %v1479_v18 }
 0x4fc   : > { %3267 = vmatprep.subr.msk.bf16.mxu0 %vm256_vm0, %v1438_v53 }
 0x502   : > { %v1120_v19 = vpop.xlane.xlu0 %1119 }
 0x503   : > { %3128 = vmatpush3.bf16.xpose.msra.mxu0 %v1482_v54 }
 0x504   : > { %3268 = vmatprep.subr.msk.bf16.mxu0 %vm256_vm0, %v1440_v3 }
 0x506   : > { %v1116_v44 = vpop.xlane.xlu0 %1115 }
 0x507   : > { %3427 = vrcp.f32 %v1116_v44  ;;  %v1118_v58 = vpop.xlane.xlu1 %1117 }
 0x508   : > { %3429 = vrcp.f32 %v1118_v58 }
 0x509   : > { %3431 = vrcp.f32 %v1120_v19 }
 0x50a   : > { %v1122_v55 = vpop.xlane.xlu0 %1121 }
 0x50b   : > { %3433 = vrcp.f32 %v1122_v55  ;;  %3130 = vmatpush3.bf16.xpose.msra.mxu0 %v1485_v39  ;;  %v1128_v6 = vpop.xlane.xlu1 %1127 }
 0x50e   : > { %v1136_v62 = vpop.xlane.xlu0 %1135 }
 0x50f   : > { %v1124_v10 = vpop.xlane.xlu1 %1123 }
 0x511   : > { %v3428_v27 = vpop.eup %3427 }
 0x512   : > { %v3430_v35 = vpop.eup %3429  ;;  %v1132_v28 = vpop.xlane.xlu0 %1131  ;;  %v1159_v36 = vmul.f32 %v3428_v27, %v4187_v56  ;;  %v3601_v27 = vld [vmem:[%s3649_s14 + $0x1c] ss:$12 sps:$4 sm:$0xff]  }
 0x513   : > { %v3432_v49 = vpop.eup %3431  ;;  %v1130_v29 = vpop.xlane.xlu1 %1129  ;;  %v1160_v31 = vmul.f32 %v3430_v35, %v4189_v57  ;;  %2026 = vrot.lane.b32.xlu1 %v3601_v27, %s3619_s24  ;;  %v3602_v35 = vld [vmem:[%s3649_s14 + $0x4] ss:$12 sps:$4 sm:$0xff]  }
 0x514   : > { %3435 = vrcp.f32 %v1130_v29  ;;  %v1161_v16 = vmul.f32 %v3432_v49, %v4181_v9  ;;  %2024 = vrot.lane.b32.xlu0 %v3602_v35, %s3619_s24 }
 0x515   : > { %v3434_v63 = vpop.eup %3433  ;;  %v1173_v32 = vpack.c.bf16 %v1160_v31, %v1159_v36  ;;  %3437 = vrcp.f32 %v1124_v10 }
 0x516   : > { %v1138_v41 = vpop.xlane.xlu0 %1137  ;;  %v1162_v1 = vmul.f32 %v3434_v63, %v4194_v37  ;;  %3439 = vrcp.f32 %v1128_v6 }
 0x517   : > { %3107 = vmatprep.mubr.bf16.mxu0 %v1173_v32  ;;  %v1126_v0 = vpop.xlane.xlu1 %1125 }
 0x518   : > { %3441 = vrcp.f32 %v1126_v0  ;;  %v1174_v43 = vpack.c.bf16 %v1162_v1, %v1161_v16 }
 0x519   : > { %3443 = vrcp.f32 %v1132_v28 }
 0x51a   : > { %3108 = vmatmul.mubr.bf16.gmra.mrb[20].mxu0 %v1174_v43  ;;  %v1442_v56 = vpop.permute.xlu0 %1441 }
 0x51b   : > { %v1134_v30 = vpop.xlane.xlu1 %1133  ;;  %3269 = vmatprep.subr.msk.bf16.mxu0 %vm256_vm0, %v1442_v56  ;;  %v1488_v57 = vsel %vm256_vm0, %v1442_v56, 0 }
 0x51c   : > { %3445 = vrcp.f32 %v1134_v30  ;;  %3132 = vmatpush3.bf16.xpose.msra.mxu0 %v1488_v57 }
 0x51d   : > { %3447 = vrcp.f32 %v1138_v41 }
 0x51e   : > { %v3436_v48 = vpop.eup %3435  ;;  %3449 = vrcp.f32 %v1136_v62 }
 0x51f   : > { %v1444_v9 = vpop.permute.xlu1 %1443  ;;  %v3438_v37 = vpop.eup %3437  ;;  %v1166_v51 = vmul.f32 %v3436_v48, %v4209_v46 }
 0x520   : > { %3270 = vmatprep.subr.msk.bf16.mxu0 %vm256_vm0, %v1444_v9  ;;  %v3440_v40 = vpop.eup %3439  ;;  %v1491_v50 = vsel %vm256_vm0, %v1444_v9, 0  ;;  %v1163_v52 = vmul.f32 %v3438_v37, %v4203_v7 }
 0x521   : > { %v1165_v18 = vmul.f32 %v3440_v40, %v4196_v11  ;;  %v1414_v11 = vpop.permute.xlu0 %1413 }
 0x522   : > { %v3442_v4 = vpop.eup %3441 }
 0x523   : > { %v1164_v17 = vmul.f32 %v3442_v4, %v4215_v8  ;;  %v3444_v15 = vpop.eup %3443  ;;  %v1176_v54 = vpack.c.bf16 %v1166_v51, %v1165_v18  ;;  %v1416_v6 = vpop.permute.xlu1 %1415 }
 0x524   : > { %3134 = vmatpush3.bf16.xpose.msra.mxu0 %v1491_v50  ;;  %v1167_v44 = vmul.f32 %v3444_v15, %v4207_v60 }
 0x525   : > { %v1175_v53 = vpack.c.bf16 %v1164_v17, %v1163_v52  ;;  %v1418_v62 = vpop.permute.xlu0 %1417 }
 0x526   : > { %v3446_v19 = vpop.eup %3445 }
 0x527   : > { %v3448_v3 = vpop.eup %3447  ;;  %3111 = vmatprep.mubr.bf16.mxu0 %v1175_v53  ;;  %v1168_v58 = vmul.f32 %v3446_v19, %v4219_v45  ;;  %v1420_v60 = vpop.permute.xlu1 %1419 }
 0x528   : > { %3112 = vmatmul.mubr.bf16.gmra.mrb[24].mxu0 %v1176_v54  ;;  %v3450_v55 = vpop.eup %3449  ;;  %v1170_v7 = vmul.f32 %v3448_v3, %v4213_v14  ;;  %v4382_v3 = vld [vmem:[%s3799_s18] ss:$0 sm:$0xff] }
 0x529   : > { %v1177_v46 = vpack.c.bf16 %v1168_v58, %v1167_v44  ;;  %v1169_v8 = vmul.f32 %v3450_v55, %v4201_v61  ;;  %v1422_v45 = vpop.permute.xlu0 %1421 }
 0x52b   : > { %3115 = vmatprep.mubr.bf16.mxu0 %v1177_v46  ;;  %v1178_v39 = vpack.c.bf16 %v1170_v7, %v1169_v8  ;;  %v1424_v61 = vpop.permute.xlu1 %1423 }
 0x52d   : > { %v1426_v14 = vpop.permute.xlu0 %1425 }
 0x52f   : > { %v1428_v10 = vpop.permute.xlu1 %1427 }
 0x530   : > { %3116 = vmatmul.mubr.bf16.gmra.mrb[28].mxu0 %v1178_v39 }
 0x531   : > { %3135 = vmatprep.mubr.msk.bf16.mxu0 %vm256_vm0, %v1414_v11  ;;  %v1775_v29 = vpop.permute.xlu0 %1774 }
 0x532   : > { %3151 = vmatprep.subr.bf16.mxu1 %v1775_v29 }
 0x533   : > { %v1777_v63 = vpop.permute.xlu1 %1776  ;;  %3152 = vmatpush3.bf16.msra.mxu1 %v1775_v29 }
 0x534   : > { %3153 = vmatprep.subr.bf16.mxu1 %v1777_v63 }
 0x535   : > { %v1779_v32 = vpop.permute.xlu0 %1778 }
 0x537   : > { %3154 = vmatpush3.bf16.msra.mxu1 %v1777_v63  ;;  %v1781_v41 = vpop.permute.xlu1 %1780 }
 0x538   : > { %3136 = vmatmul.mubr.msk.bf16.vlgmr.msra.gmra.mrb[32].mxu0 %vm256_vm0, %v1416_v6  ;;  %3155 = vmatprep.subr.bf16.mxu1 %v1779_v32 }
 0x539   : > { %3139 = vmatprep.mubr.msk.bf16.mxu0 %vm256_vm0, %v1418_v62  ;;  %v1783_v16 = vpop.permute.xlu0 %1782 }
 0x53b   : > { %3156 = vmatpush3.bf16.msra.mxu1 %v1779_v32  ;;  %v1785_v1 = vpop.permute.xlu1 %1784 }
 0x53c   : > { %3157 = vmatprep.subr.bf16.mxu1 %v1781_v41 }
 0x53d   : > { %v1787_v0 = vpop.permute.xlu0 %1786 }
 0x53f   : > { %3158 = vmatpush3.bf16.msra.mxu1 %v1781_v41  ;;  %v1789_v43 = vpop.permute.xlu1 %1788 }
 0x540   : > { %3140 = vmatmul.mubr.msk.bf16.gmra.mrb[36].mxu0 %vm256_vm0, %v1420_v60  ;;  %3159 = vmatprep.subr.bf16.mxu1 %v1783_v16 }
 0x541   : > { %3143 = vmatprep.mubr.msk.bf16.mxu0 %vm256_vm0, %v1422_v45 }
 0x543   : > { %3160 = vmatpush3.bf16.msra.mxu1 %v1783_v16 }
 0x544   : > { %3161 = vmatprep.subr.bf16.mxu1 %v1785_v1 }
 0x547   : > { %3162 = vmatpush3.bf16.msra.mxu1 %v1785_v1 }
 0x548   : > { %3144 = vmatmul.mubr.msk.bf16.gmra.mrb[40].mxu0 %vm256_vm0, %v1424_v61  ;;  %3163 = vmatprep.subr.bf16.mxu1 %v1787_v0 }
 0x549   : > { %3147 = vmatprep.mubr.msk.bf16.mxu0 %vm256_vm0, %v1426_v14 }
 0x54b   : > { %3164 = vmatpush3.bf16.msra.mxu1 %v1787_v0 }
 0x54c   : > { %3165 = vmatprep.subr.bf16.mxu1 %v1789_v43 }
 0x54f   : > { %3166 = vmatpush3.bf16.msra.mxu1 %v1789_v43 }
 0x550   : > { %3148 = vmatmul.mubr.msk.bf16.gmra.mrb[44].mxu0 %vm256_vm0, %v1428_v10 }
 0x586   : > { %v4353_v56 = vpop.permute.xlu0 %2024 }
 0x587   : > { %3271 = vmatprep.subr.msk.bf16.mxu1 %vm256_vm0, %v4353_v56 }
 0x5b5   : > { %v4345_v28 = vpop.f32.mrb[16].mxu0 }
 0x5b6   : > { %v4347_v36 = vpop.f32.mrb[17].mxu0 }
 0x5b7   : > { %v4349_v49 = vpop.f32.mrb[18].mxu0 }
 0x5b8   : > { %v4351_v31 = vpop.f32.mrb[19].mxu0 }
 0x5ed   : > { %v4357_v30 = vpop.f32.mrb[20].mxu0 }
 0x5ee   : > { %v4359_v57 = vpop.f32.mrb[21].mxu0 }
 0x5ef   : > { %v4361_v48 = vpop.f32.mrb[22].mxu0 }
 0x5f0   : > { %v4363_v9 = vpop.f32.mrb[23].mxu0 }
 0x5fb   : > { %v4365_v37 = vpop.f32.mrb[24].mxu0 }
 0x5fc   : > { %v4367_v40 = vpop.f32.mrb[25].mxu0 }
 0x5fd   : > { %v4369_v50 = vpop.f32.mrb[26].mxu0 }
 0x5fe   : > { %v4371_v4 = vpop.f32.mrb[27].mxu0 }
 0x603   : > { %v4373_v51 = vpop.f32.mrb[28].mxu0 }
 0x604   : > { %5000 = vst [vmem:[#allocation2_spill] sm:$0xff] %v4373_v51  ;;  %v4375_v52 = vpop.f32.mrb[29].mxu0 }
 0x605   : > { %5001 = vst [vmem:[#allocation3_spill] sm:$0xff] %v4375_v52  ;;  %v4377_v17 = vpop.f32.mrb[30].mxu0 }
 0x606   : > { %v4379_v15 = vpop.f32.mrb[31].mxu0 }
 0x60b   : > { %v3137_v18 = vpop.f32.mrb[32].mxu0 }
 0x60c   : > { %v1592_v53 = vmul.f32 0.17677669, %v3137_v18  ;;  %v1527_v19 = vpop.f32.mrb[33].mxu0 }
 0x60d   : > { %v3138_v54 = vpop.f32.mrb[34].mxu0  ;;  %v1590_v58 = vmul.f32 0.17677669, %v1527_v19 }
 0x60e   : > { %v4385_v44 = vadd.f32 %v4382_v3, %v1592_v53  ;;  %v1530_v55 = vpop.f32.mrb[35].mxu0  ;;  %v1593_v39 = vmul.f32 0.17677669, %v3138_v54 }
 0x60f   : > { %v1591_v46 = vmul.f32 0.17677669, %v1530_v55  ;;  %v4392_v8 = vadd.f32 %v4382_v3, %v1590_v58 }
 0x610   : > { %1626 = vmax.xlane.f32.xlu0 %v4385_v44  ;;  %v4397_v45 = vadd.f32 %v4382_v3, %v1593_v39 }
 0x611   : > { %v4389_v7 = vadd.f32 %v4382_v3, %v1591_v46 }
 0x613   : > { %1624 = vmax.xlane.f32.xlu1 %v4389_v7  ;;  %v3141_v11 = vpop.f32.mrb[36].mxu0 }
 0x614   : > { %v1596_v6 = vmul.f32 0.17677669, %v3141_v11  ;;  %1622 = vmax.xlane.f32.xlu0 %v4392_v8  ;;  %v1543_v62 = vpop.f32.mrb[37].mxu0 }
 0x615   : > { %v3142_v60 = vpop.f32.mrb[38].mxu0  ;;  %v1594_v29 = vmul.f32 0.17677669, %v1543_v62 }
 0x616   : > { %v1597_v61 = vmul.f32 0.17677669, %v3142_v60  ;;  %v1546_v14 = vpop.f32.mrb[39].mxu0  ;;  %v4400_v27 = vadd.f32 %v4382_v3, %v1596_v6 }
 0x617   : > { %v1595_v10 = vmul.f32 0.17677669, %v1546_v14  ;;  %v4412_v0 = vadd.f32 %v4382_v3, %v1594_v29 }
 0x618   : > { %v4403_v35 = vadd.f32 %v4382_v3, %v1597_v61  ;;  %1628 = vmax.xlane.f32.xlu0 %v4397_v45 }
 0x619   : > { %v4407_v63 = vadd.f32 %v4382_v3, %v1595_v10 }
 0x61a   : > { %1636 = vmax.xlane.f32.xlu1 %v4403_v35 }
 0x61b   : > { %v3145_v32 = vpop.f32.mrb[40].mxu0 }
 0x61c   : > { %v1600_v41 = vmul.f32 0.17677669, %v3145_v32  ;;  %1634 = vmax.xlane.f32.xlu0 %v4400_v27  ;;  %v1559_v16 = vpop.f32.mrb[41].mxu0 }
 0x61d   : > { %v3146_v1 = vpop.f32.mrb[42].mxu0  ;;  %v1598_v58 = vmul.f32 0.17677669, %v1559_v16 }
 0x61e   : > { %v1601_v43 = vmul.f32 0.17677669, %v3146_v1  ;;  %1632 = vmax.xlane.f32.xlu1 %v4407_v63  ;;  %v1562_v18 = vpop.f32.mrb[43].mxu0  ;;  %v4416_v19 = vadd.f32 %v4382_v3, %v1600_v41  ;;  %v4452_v1 = vpop.permute.xlu1 %2026 }
 0x61f   : > { %v1599_v53 = vmul.f32 0.17677669, %v1562_v18  ;;  %v4428_v62 = vadd.f32 %v4382_v3, %v1598_v58 }
 0x620   : > { %v4419_v54 = vadd.f32 %v4382_v3, %v1601_v43  ;;  %1630 = vmax.xlane.f32.xlu0 %v4412_v0 }
 0x621   : > { %v4423_v55 = vadd.f32 %v4382_v3, %v1599_v53 }
 0x622   : > { %1644 = vmax.xlane.f32.xlu1 %v4419_v54 }
 0x623   : > { %v3149_v46 = vpop.f32.mrb[44].mxu0 }
 0x624   : > { %1642 = vmax.xlane.f32.xlu0 %v4416_v19  ;;  %v1604_v39 = vmul.f32 0.17677669, %v3149_v46  ;;  %v1575_v11 = vpop.f32.mrb[45].mxu0 }
 0x625   : > { %v3150_v6 = vpop.f32.mrb[46].mxu0  ;;  %v1602_v14 = vmul.f32 0.17677669, %v1575_v11 }
 0x626   : > { %1640 = vmax.xlane.f32.xlu1 %v4423_v55  ;;  %v1578_v60 = vpop.f32.mrb[47].mxu0  ;;  %v4432_v61 = vadd.f32 %v4382_v3, %v1604_v39  ;;  %v1605_v29 = vmul.f32 0.17677669, %v3150_v6 }
 0x627   : > { %v4436_v10 = vadd.f32 %v4382_v3, %v1602_v14  ;;  %v1603_v41 = vmul.f32 0.17677669, %v1578_v60 }
 0x628   : > { %1638 = vmax.xlane.f32.xlu0 %v4428_v62  ;;  %v4445_v32 = vadd.f32 %v4382_v3, %v1605_v29 }
 0x629   : > { %v4448_v16 = vadd.f32 %v4382_v3, %v1603_v41 }
 0x62c   : > { %1650 = vmax.xlane.f32.xlu0 %v4432_v61 }
 0x630   : > { %1646 = vmax.xlane.f32.xlu0 %v4436_v10 }
 0x637   : > { %2030 = vrot.lane.b32.xlu1 %v4127_v59, %s3619_s24 }
 0x646   : > { %2028 = vrot.lane.b32.xlu0 %v4132_v2, %s3619_s24 }
 0x65b   : > { %1652 = vmax.xlane.f32.xlu1 %v4445_v32 }
 0x65f   : > { %1648 = vmax.xlane.f32.xlu1 %v4448_v16 }
 0x69d   : > { %v1627_v43 = vpop.xlane.xlu0 %1626 }
 0x69e   : > { %v1656_v59 = vsub.f32 %v4385_v44, %v1627_v43 }
 0x6a0   : > { %v1674_v18 = vmul.f32 1.442695, %v1656_v59  ;;  %v1625_v53 = vpop.xlane.xlu1 %1624 }
 0x6a1   : > { %v1655_v2 = vsub.f32 %v4389_v7, %v1625_v53  ;;  %v1623_v58 = vpop.xlane.xlu0 %1622 }
 0x6a2   : > { %3451 = vpow2.f32 %v1674_v18  ;;  %v1654_v46 = vsub.f32 %v4392_v8, %v1623_v58 }
 0x6a3   : > { %v1672_v39 = vmul.f32 1.442695, %v1655_v2 }
 0x6a4   : > { %v1670_v11 = vmul.f32 1.442695, %v1654_v46 }
 0x6a5   : > { %3453 = vpow2.f32 %v1672_v39  ;;  %v1629_v6 = vpop.xlane.xlu0 %1628 }
 0x6a6   : > { %3455 = vpow2.f32 %v1670_v11  ;;  %v1657_v60 = vsub.f32 %v4397_v45, %v1629_v6 }
 0x6a7   : > { %v1637_v43 = vpop.xlane.xlu1 %1636 }
 0x6a8   : > { %v1676_v14 = vmul.f32 1.442695, %v1657_v60  ;;  %v1661_v60 = vsub.f32 %v4403_v35, %v1637_v43 }
 0x6a9   : > { %v1635_v41 = vpop.xlane.xlu0 %1634 }
 0x6aa   : > { %3457 = vpow2.f32 %v1676_v14  ;;  %v1660_v18 = vsub.f32 %v4400_v27, %v1635_v41  ;;  %v1684_v51 = vmul.f32 1.442695, %v1661_v60 }
 0x6ab   : > { %v1633_v53 = vpop.xlane.xlu1 %1632 }
 0x6ac   : > { %v4458_v29 = vpop.eup %3451  ;;  %v1682_v58 = vmul.f32 1.442695, %v1660_v18  ;;  %v1659_v39 = vsub.f32 %v4407_v63, %v1633_v53 }
 0x6ad   : > { %1706 = vadd.xlane.f32.xlu1 %v4458_v29  ;;  %v1631_v45 = vpop.xlane.xlu0 %1630 }
 0x6ae   : > { %v1658_v46 = vsub.f32 %v4412_v0, %v1631_v45  ;;  %3459 = vpow2.f32 %v1682_v58  ;;  %v1680_v14 = vmul.f32 1.442695, %v1659_v39 }
 0x6af   : > { %v4461_v44 = vpop.eup %3453  ;;  %v1645_v11 = vpop.xlane.xlu1 %1644 }
 0x6b0   : > { %v4463_v7 = vpop.eup %3455  ;;  %1704 = vadd.xlane.f32.xlu0 %v4461_v44  ;;  %v1665_v35 = vsub.f32 %v4419_v54, %v1645_v11 }
 0x6b1   : > { %1702 = vadd.xlane.f32.xlu1 %v4463_v7  ;;  %v1643_v59 = vpop.xlane.xlu0 %1642 }
 0x6b3   : > { %v1641_v52 = vpop.xlane.xlu1 %1640 }
 0x6b4   : > { %v4467_v8 = vpop.eup %3457 }
 0x6b5   : > { %1708 = vadd.xlane.f32.xlu1 %v4467_v8  ;;  %v1639_v2 = vpop.xlane.xlu0 %1638 }
 0x6b6   : > { %v1662_v0 = vsub.f32 %v4428_v62, %v1639_v2  ;;  %v1663_v62 = vsub.f32 %v4423_v55, %v1641_v52 }
 0x6b8   : > { %v1686_v43 = vmul.f32 1.442695, %v1662_v0  ;;  %v4483_v53 = vpop.eup %3459  ;;  %v1688_v58 = vmul.f32 1.442695, %v1663_v62 }
 0x6b9   : > { %v1651_v6 = vpop.xlane.xlu0 %1650 }
 0x6ba   : > { %v1668_v27 = vsub.f32 %v4432_v61, %v1651_v6 }
 0x6bc   : > { %v1698_v63 = vmul.f32 1.442695, %v1668_v27 }
 0x6bd   : > { %v1647_v45 = vpop.xlane.xlu0 %1646 }
 0x6be   : > { %v1666_v18 = vsub.f32 %v4436_v10, %v1647_v45  ;;  %v2065_v45 = vsel %vm256_vm0, %v4353_v56, 0 }
 0x6c0   : > { %v1694_v61 = vmul.f32 1.442695, %v1666_v18 }
 0x6c6   : > { %2034 = vrot.lane.b32.xlu1 %v4163_v21, %s3619_s24  ;;  %2032 = vrot.lane.b32.xlu0 %v4168_v22, %s3619_s24  ;;  %v1678_v21 = vmul.f32 1.442695, %v1658_v46  ;;  %v1664_v22 = vsub.f32 %v4416_v19, %v1643_v59  ;;  %v4485_v19 = vpop.permute.xlu1 %2030  ;;  %v1692_v59 = vmul.f32 1.442695, %v1665_v35 }
 0x6c8   : > { %3461 = vpow2.f32 %v1678_v21  ;;  %v1690_v41 = vmul.f32 1.442695, %v1664_v22 }
 0x6c9   : > { %3463 = vpow2.f32 %v1680_v14 }
 0x6ca   : > { %3465 = vpow2.f32 %v1684_v51 }
 0x6cb   : > { %3467 = vpow2.f32 %v1690_v41 }
 0x6cc   : > { %3469 = vpow2.f32 %v1698_v63 }
 0x6cd   : > { %3471 = vpow2.f32 %v1686_v43 }
 0x6ce   : > { %3473 = vpow2.f32 %v1694_v61 }
 0x6cf   : > { %3475 = vpow2.f32 %v1692_v59 }
 0x6d2   : > { %v4489_v51 = vpop.eup %3461 }
 0x6d3   : > { %v4491_v10 = vpop.eup %3463 }
 0x6d4   : > { %v4496_v39 = vpop.eup %3465 }
 0x6d5   : > { %v4498_v52 = vpop.eup %3467 }
 0x6d6   : > { %v4503_v6 = vpop.eup %3469 }
 0x6d7   : > { %v4505_v60 = vpop.eup %3471 }
 0x6d8   : > { %v4509_v21 = vpop.eup %3473 }
 0x6d9   : > { %v4511_v14 = vpop.eup %3475 }
 0x6e5   : > { %1714 = vadd.xlane.f32.xlu0 %v4483_v53 }
 0x6e8   : > { %v1653_v2 = vpop.xlane.xlu1 %1652 }
 0x6e9   : > { %v1669_v54 = vsub.f32 %v4445_v32, %v1653_v2  ;;  %1710 = vadd.xlane.f32.xlu0 %v4489_v51 }
 0x6ea   : > { %1712 = vadd.xlane.f32.xlu1 %v4491_v10 }
 0x6eb   : > { %v1700_v46 = vmul.f32 1.442695, %v1669_v54 }
 0x6ec   : > { %v1649_v11 = vpop.xlane.xlu1 %1648 }
 0x6ed   : > { %3477 = vpow2.f32 %v1700_v46  ;;  %v1667_v55 = vsub.f32 %v4448_v16, %v1649_v11  ;;  %1716 = vadd.xlane.f32.xlu0 %v4496_v39 }
 0x6ee   : > { %1722 = vadd.xlane.f32.xlu1 %v4498_v52  ;;  %3479 = vpow2.f32 %v1688_v58 }
 0x6ef   : > { %v1696_v32 = vmul.f32 1.442695, %v1667_v55 }
 0x6f1   : > { %1730 = vadd.xlane.f32.xlu0 %v4503_v6  ;;  %3481 = vpow2.f32 %v1696_v32 }
 0x6f2   : > { %1718 = vadd.xlane.f32.xlu1 %v4505_v60 }
 0x6f5   : > { %1726 = vadd.xlane.f32.xlu0 %v4509_v21 }
 0x6f6   : > { %1724 = vadd.xlane.f32.xlu1 %v4511_v14 }
 0x6f7   : > { %v4515_v16 = vpop.eup %3477 }
 0x6f8   : > { %v4517_v22 = vpop.eup %3479 }
 0x6f9   : > { %1732 = vadd.xlane.f32.xlu0 %v4515_v16 }
 0x6fa   : > { %1720 = vadd.xlane.f32.xlu1 %v4517_v22 }
 0x6fb   : > { %v4521_v27 = vpop.eup %3481 }
 0x6fe   : > { %1728 = vadd.xlane.f32.xlu1 %v4521_v27 }
 0x70f   : > { %2036 = vrot.lane.b32.xlu0 %v4223_v34, %s3619_s24  ;;  %2038 = vrot.lane.b32.xlu1 %v4228_v12, %s3619_s24  ;;  %v2029_v34 = vpop.permute.xlu0 %2028 }
 0x713   : > { %2008 = vrot.lane.b32.xlu0 %v4233_v33, %s3619_s24  ;;  %2010 = vrot.lane.b32.xlu1 %v4238_v5, %s3619_s24 }
 0x717   : > { %2012 = vrot.lane.b32.xlu0 %v4243_v13, %s3619_s24  ;;  %2014 = vrot.lane.b32.xlu1 %v4248_v20, %s3619_s24 }
 0x71b   : > { %2016 = vrot.lane.b32.xlu0 %v4253_v23, %s3619_s24  ;;  %2018 = vrot.lane.b32.xlu1 %v4258_v24, %s3619_s24 }
 0x71f   : > { %2020 = vrot.lane.b32.xlu0 %v4263_v25, %s3619_s24  ;;  %2022 = vrot.lane.b32.xlu1 %v4268_v26, %s3619_s24 }
 0x723   : > { %2369 = vrot.lane.b32.xlu0 %v4273_v47, %s3619_s24  ;;  %2371 = vrot.lane.b32.xlu1 %v4278_v38, %s3619_s24 }
 0x727   : > { %2373 = vrot.lane.b32.xlu0 %v4283_v42, %s3619_s24 }
 0x73a   : > { %v1707_v12 = vpop.xlane.xlu1 %1706 }
 0x73d   : > { %v1705_v33 = vpop.xlane.xlu0 %1704 }
 0x73e   : > { %3483 = vrcp.f32 %v1705_v33  ;;  %v1703_v5 = vpop.xlane.xlu1 %1702 }
 0x73f   : > { %3485 = vrcp.f32 %v1703_v5 }
 0x740   : > { %3487 = vrcp.f32 %v1707_v12 }
 0x741   : > { %v2033_v56 = vpop.permute.xlu0 %2032 }
 0x742   : > { %v1709_v13 = vpop.xlane.xlu1 %1708  ;;  %v2077_v63 = vsel %vm256_vm0, %v2033_v56, 0 }
 0x743   : > { %3489 = vrcp.f32 %v1709_v13 }
 0x748   : > { %v3484_v20 = vpop.eup %3483 }
 0x749   : > { %v3486_v23 = vpop.eup %3485  ;;  %v1751_v24 = vmul.f32 %v3484_v20, %v4461_v44  ;;  %v2068_v44 = vsel %vm256_vm0, %v4452_v1, 0 }
 0x74a   : > { %v1750_v25 = vmul.f32 %v3486_v23, %v4463_v7  ;;  %v3488_v26 = vpop.eup %3487  ;;  %v2074_v7 = vsel %vm256_vm0, %v4485_v19, 0 }
 0x74b   : > { %v1752_v42 = vmul.f32 %v3488_v26, %v4458_v29  ;;  %v2071_v29 = vsel %vm256_vm0, %v2029_v34, 0 }
 0x74c   : > { %v1766_v47 = vpack.c.bf16 %v1751_v24, %v1750_v25 }
 0x74d   : > { %v3490_v38 = vpop.eup %3489 }
 0x74e   : > { %v1753_v41 = vmul.f32 %v3490_v38, %v4467_v8  ;;  %3167 = vmatprep.mubr.bf16.mxu1 %v1766_v47 }
 0x750   : > { %v1767_v0 = vpack.c.bf16 %v1753_v41, %v1752_v42 }
 0x752   : > { %3168 = vmatmul.mubr.bf16.vlgmr.msra.gmra.mrb[32].mxu1 %v1767_v0 }
 0x753   : > { %3184 = vmatpush3.bf16.xpose.msra.mxu1 %v2065_v45 }
 0x754   : > { %3272 = vmatprep.subr.msk.bf16.mxu1 %vm256_vm0, %v4452_v1  ;;  %v2035_v1 = vpop.permute.xlu1 %2034 }
 0x755   : > { %v2080_v61 = vsel %vm256_vm0, %v2035_v1, 0 }
 0x75b   : > { %3186 = vmatpush3.bf16.xpose.msra.mxu1 %v2068_v44 }
 0x75c   : > { %3273 = vmatprep.subr.msk.bf16.mxu1 %vm256_vm0, %v2029_v34 }
 0x763   : > { %3188 = vmatpush3.bf16.xpose.msra.mxu1 %v2071_v29 }
 0x764   : > { %3274 = vmatprep.subr.msk.bf16.mxu1 %vm256_vm0, %v4485_v19 }
 0x76b   : > { %3190 = vmatpush3.bf16.xpose.msra.mxu1 %v2074_v7 }
 0x76c   : > { %3275 = vmatprep.subr.msk.bf16.mxu1 %vm256_vm0, %v2033_v56 }
 0x772   : > { %v1715_v8 = vpop.xlane.xlu0 %1714 }
 0x773   : > { %3192 = vmatpush3.bf16.xpose.msra.mxu1 %v2077_v63 }
 0x774   : > { %3276 = vmatprep.subr.msk.bf16.mxu1 %vm256_vm0, %v2035_v1 }
 0x776   : > { %v1711_v18 = vpop.xlane.xlu0 %1710 }
 0x777   : > { %3491 = vrcp.f32 %v1711_v18  ;;  %v1713_v35 = vpop.xlane.xlu1 %1712 }
 0x778   : > { %3493 = vrcp.f32 %v1713_v35 }
 0x779   : > { %3495 = vrcp.f32 %v1715_v8 }
 0x77a   : > { %v1717_v43 = vpop.xlane.xlu0 %1716 }
 0x77b   : > { %3497 = vrcp.f32 %v1717_v43  ;;  %3194 = vmatpush3.bf16.xpose.msra.mxu1 %v2080_v61  ;;  %v1723_v19 = vpop.xlane.xlu1 %1722 }
 0x77e   : > { %v1731_v59 = vpop.xlane.xlu0 %1730 }
 0x77f   : > { %v1719_v62 = vpop.xlane.xlu1 %1718 }
 0x781   : > { %v3492_v2 = vpop.eup %3491 }
 0x782   : > { %v3494_v54 = vpop.eup %3493  ;;  %v1727_v58 = vpop.xlane.xlu0 %1726  ;;  %v1754_v46 = vmul.f32 %v3492_v2, %v4489_v51 }
 0x783   : > { %v3496_v11 = vpop.eup %3495  ;;  %v1725_v55 = vpop.xlane.xlu1 %1724  ;;  %v1755_v32 = vmul.f32 %v3494_v54, %v4491_v10 }
 0x784   : > { %3499 = vrcp.f32 %v1725_v55  ;;  %v1756_v5 = vmul.f32 %v3496_v11, %v4483_v53 }
 0x785   : > { %v3498_v34 = vpop.eup %3497  ;;  %v1768_v12 = vpack.c.bf16 %v1755_v32, %v1754_v46  ;;  %3501 = vrcp.f32 %v1719_v62 }
 0x786   : > { %v1733_v33 = vpop.xlane.xlu0 %1732  ;;  %v1757_v13 = vmul.f32 %v3498_v34, %v4496_v39  ;;  %3503 = vrcp.f32 %v1723_v19 }
 0x787   : > { %3171 = vmatprep.mubr.bf16.mxu1 %v1768_v12  ;;  %v1721_v20 = vpop.xlane.xlu1 %1720 }
 0x788   : > { %3505 = vrcp.f32 %v1721_v20  ;;  %v1769_v23 = vpack.c.bf16 %v1757_v13, %v1756_v5 }
 0x789   : > { %3507 = vrcp.f32 %v1727_v58 }
 0x78a   : > { %3172 = vmatmul.mubr.bf16.gmra.mrb[36].mxu1 %v1769_v23  ;;  %v2037_v51 = vpop.permute.xlu0 %2036 }
 0x78b   : > { %v1729_v24 = vpop.xlane.xlu1 %1728  ;;  %v2083_v10 = vsel %vm256_vm0, %v2037_v51, 0  ;;  %3277 = vmatprep.subr.msk.bf16.mxu1 %vm256_vm0, %v2037_v51 }
 0x78c   : > { %3509 = vrcp.f32 %v1729_v24  ;;  %3196 = vmatpush3.bf16.xpose.msra.mxu1 %v2083_v10 }
 0x78d   : > { %3511 = vrcp.f32 %v1733_v33 }
 0x78e   : > { %v3500_v25 = vpop.eup %3499  ;;  %3513 = vrcp.f32 %v1731_v59 }
 0x78f   : > { %v2039_v53 = vpop.permute.xlu1 %2038  ;;  %v3502_v39 = vpop.eup %3501  ;;  %v1761_v42 = vmul.f32 %v3500_v25, %v4511_v14 }
 0x790   : > { %3278 = vmatprep.subr.msk.bf16.mxu1 %vm256_vm0, %v2039_v53  ;;  %v3504_v26 = vpop.eup %3503  ;;  %v2086_v47 = vsel %vm256_vm0, %v2039_v53, 0  ;;  %v1758_v41 = vmul.f32 %v3502_v39, %v4505_v60 }
 0x791   : > { %v1760_v44 = vmul.f32 %v3504_v26, %v4498_v52  ;;  %v2009_v52 = vpop.permute.xlu0 %2008 }
 0x792   : > { %v3506_v38 = vpop.eup %3505 }
 0x793   : > { %v1759_v0 = vmul.f32 %v3506_v38, %v4517_v22  ;;  %v3508_v45 = vpop.eup %3507  ;;  %v1771_v56 = vpack.c.bf16 %v1761_v42, %v1760_v44  ;;  %v2011_v43 = vpop.permute.xlu1 %2010 }
 0x794   : > { %3198 = vmatpush3.bf16.xpose.msra.mxu1 %v2086_v47  ;;  %v1762_v63 = vmul.f32 %v3508_v45, %v4509_v21 }
 0x795   : > { %v1770_v29 = vpack.c.bf16 %v1759_v0, %v1758_v41  ;;  %v2013_v61 = vpop.permute.xlu0 %2012 }
 0x796   : > { %v3510_v7 = vpop.eup %3509 }
 0x797   : > { %v3512_v8 = vpop.eup %3511  ;;  %3175 = vmatprep.mubr.bf16.mxu1 %v1770_v29  ;;  %v1763_v1 = vmul.f32 %v3510_v7, %v4521_v27  ;;  %v2015_v21 = vpop.permute.xlu1 %2014 }
 0x798   : > { %3176 = vmatmul.mubr.bf16.gmra.mrb[40].mxu1 %v1771_v56  ;;  %v3514_v18 = vpop.eup %3513  ;;  %v1765_v60 = vmul.f32 %v3512_v8, %v4515_v16 }
 0x799   : > { %v1772_v14 = vpack.c.bf16 %v1763_v1, %v1762_v63  ;;  %v1764_v22 = vmul.f32 %v3514_v18, %v4503_v6  ;;  %v2017_v27 = vpop.permute.xlu0 %2016 }
 0x79b   : > { %3179 = vmatprep.mubr.bf16.mxu1 %v1772_v14  ;;  %v1773_v35 = vpack.c.bf16 %v1765_v60, %v1764_v22  ;;  %v2019_v16 = vpop.permute.xlu1 %2018 }
 0x79d   : > { %v2021_v19 = vpop.permute.xlu0 %2020 }
 0x79f   : > { %v2023_v6 = vpop.permute.xlu1 %2022 }
 0x7a0   : > { %3180 = vmatmul.mubr.bf16.gmra.mrb[44].mxu1 %v1773_v35 }
 0x7a1   : > { %3199 = vmatprep.mubr.msk.bf16.mxu1 %vm256_vm0, %v2009_v52  ;;  %v2370_v58 = vpop.permute.xlu0 %2369 }
 0x7a2   : > { %3215 = vmatprep.subr.bf16.mxu0 %v2370_v58 }
 0x7a3   : > { %3216 = vmatpush3.bf16.msra.mxu0 %v2370_v58  ;;  %v2372_v46 = vpop.permute.xlu1 %2371 }
 0x7a4   : > { %3217 = vmatprep.subr.bf16.mxu0 %v2372_v46 }
 0x7a5   : > { %v2374_v11 = vpop.permute.xlu0 %2373 }
 0x7a7   : > { %3218 = vmatpush3.bf16.msra.mxu0 %v2372_v46 }
 0x7a8   : > { %3200 = vmatmul.mubr.msk.bf16.vlgmr.msra.gmra.mrb[48].mxu1 %vm256_vm0, %v2011_v43  ;;  %3219 = vmatprep.subr.bf16.mxu0 %v2374_v11 }
 0x7a9   : > { %3203 = vmatprep.mubr.msk.bf16.mxu1 %vm256_vm0, %v2013_v61 }
 0x7ab   : > { %3220 = vmatpush3.bf16.msra.mxu0 %v2374_v11 }
 0x7b0   : > { %3204 = vmatmul.mubr.msk.bf16.gmra.mrb[52].mxu1 %vm256_vm0, %v2015_v21 }
 0x7b1   : > { %3207 = vmatprep.mubr.msk.bf16.mxu1 %vm256_vm0, %v2017_v27 }
 0x7b8   : > { %3208 = vmatmul.mubr.msk.bf16.gmra.mrb[56].mxu1 %vm256_vm0, %v2019_v16 }
 0x7b9   : > { %3211 = vmatprep.mubr.msk.bf16.mxu1 %vm256_vm0, %v2021_v19 }
 0x7c0   : > { %3212 = vmatmul.mubr.msk.bf16.gmra.mrb[60].mxu1 %vm256_vm0, %v2023_v6 }
 0x825   : > { %v4594_v59 = vpop.f32.mrb[32].mxu1 }
 0x826   : > { %v4596_v62 = vpop.f32.mrb[33].mxu1 }
 0x827   : > { %v4598_v2 = vpop.f32.mrb[34].mxu1 }
 0x828   : > { %v4600_v54 = vpop.f32.mrb[35].mxu1 }
 0x85d   : > { %v4602_v55 = vpop.f32.mrb[36].mxu1 }
 0x85e   : > { %v4604_v32 = vpop.f32.mrb[37].mxu1 }
 0x85f   : > { %v4606_v34 = vpop.f32.mrb[38].mxu1 }
 0x860   : > { %v4608_v12 = vpop.f32.mrb[39].mxu1 }
 0x86b   : > { %v4610_v33 = vpop.f32.mrb[40].mxu1 }
 0x86c   : > { %v4612_v5 = vpop.f32.mrb[41].mxu1 }
 0x86d   : > { %v4614_v13 = vpop.f32.mrb[42].mxu1 }
 0x86e   : > { %v4616_v20 = vpop.f32.mrb[43].mxu1 }
 0x873   : > { %v4618_v23 = vpop.f32.mrb[44].mxu1 }
 0x874   : > { %v4620_v51 = vpop.f32.mrb[45].mxu1 }
 0x875   : > { %v4622_v24 = vpop.f32.mrb[46].mxu1 }
 0x876   : > { %v4624_v10 = vpop.f32.mrb[47].mxu1 }
 0x87b   : > { %v3201_v25 = vpop.f32.mrb[48].mxu1 }
 0x87c   : > { %v2187_v53 = vmul.f32 0.17677669, %v3201_v25  ;;  %v2122_v39 = vpop.f32.mrb[49].mxu1 }
 0x87d   : > { %v3202_v26 = vpop.f32.mrb[50].mxu1  ;;  %v2185_v38 = vmul.f32 0.17677669, %v2122_v39 }
 0x87e   : > { %v4627_v47 = vadd.f32 %v4382_v3, %v2187_v53  ;;  %v2125_v42 = vpop.f32.mrb[51].mxu1  ;;  %v2188_v44 = vmul.f32 0.17677669, %v3202_v26 }
 0x87f   : > { %v2186_v41 = vmul.f32 0.17677669, %v2125_v42  ;;  %v4634_v45 = vadd.f32 %v4382_v3, %v2185_v38 }
 0x880   : > { %2221 = vmax.xlane.f32.xlu0 %v4627_v47  ;;  %v4639_v63 = vadd.f32 %v4382_v3, %v2188_v44 }
 0x881   : > { %v4631_v0 = vadd.f32 %v4382_v3, %v2186_v41 }
 0x883   : > { %2219 = vmax.xlane.f32.xlu1 %v4631_v0  ;;  %v3205_v29 = vpop.f32.mrb[52].mxu1 }
 0x884   : > { %v2191_v7 = vmul.f32 0.17677669, %v3205_v29  ;;  %2217 = vmax.xlane.f32.xlu0 %v4634_v45  ;;  %v2138_v56 = vpop.f32.mrb[53].mxu1 }
 0x885   : > { %v3206_v8 = vpop.f32.mrb[54].mxu1  ;;  %v2189_v35 = vmul.f32 0.17677669, %v2138_v56 }
 0x886   : > { %v2192_v1 = vmul.f32 0.17677669, %v3206_v8  ;;  %v2141_v18 = vpop.f32.mrb[55].mxu1  ;;  %v4642_v14 = vadd.f32 %v4382_v3, %v2191_v7  ;;  %v3604_v8 = vld [vmem:[%s3649_s14 + $0x68] ss:$12 sps:$4 sm:$0xff]  }
 0x887   : > { %v2190_v22 = vmul.f32 0.17677669, %v2141_v18  ;;  %v4654_v16 = vadd.f32 %v4382_v3, %v2189_v35 }
 0x888   : > { %v4645_v60 = vadd.f32 %v4382_v3, %v2192_v1  ;;  %2223 = vmax.xlane.f32.xlu0 %v4639_v63  ;;  %v3605_v1 = vld [vmem:[%s3649_s14 + $0x50] ss:$12 sps:$4 sm:$0xff]  }
 0x889   : > { %v4650_v43 = vadd.f32 %v4382_v3, %v2190_v22 }
 0x88a   : > { %2231 = vmax.xlane.f32.xlu1 %v4645_v60 }
 0x88b   : > { %v3209_v52 = vpop.f32.mrb[56].mxu1 }
 0x88c   : > { %v2195_v61 = vmul.f32 0.17677669, %v3209_v52  ;;  %2229 = vmax.xlane.f32.xlu0 %v4642_v14  ;;  %v2154_v21 = vpop.f32.mrb[57].mxu1 }
 0x88d   : > { %v3210_v27 = vpop.f32.mrb[58].mxu1  ;;  %v2193_v25 = vmul.f32 0.17677669, %v2154_v21 }
 0x88e   : > { %v2196_v19 = vmul.f32 0.17677669, %v3210_v27  ;;  %2227 = vmax.xlane.f32.xlu1 %v4650_v43  ;;  %v2157_v6 = vpop.f32.mrb[59].mxu1  ;;  %v4658_v46 = vadd.f32 %v4382_v3, %v2195_v61  ;;  %v3606_v61 = vld [vmem:[%s3649_s14 + $0x80] ss:$12 sps:$4 sm:$0xff]  }
 0x88f   : > { %v2194_v58 = vmul.f32 0.17677669, %v2157_v6  ;;  %v4670_v41 = vadd.f32 %v4382_v3, %v2193_v25 }
 0x890   : > { %v4661_v11 = vadd.f32 %v4382_v3, %v2196_v19  ;;  %2225 = vmax.xlane.f32.xlu0 %v4654_v16 }
 0x891   : > { %v4665_v53 = vadd.f32 %v4382_v3, %v2194_v58 }
 0x892   : > { %2239 = vmax.xlane.f32.xlu1 %v4661_v11 }
 0x893   : > { %v3213_v39 = vpop.f32.mrb[60].mxu1 }
 0x894   : > { %2237 = vmax.xlane.f32.xlu0 %v4658_v46  ;;  %v2199_v26 = vmul.f32 0.17677669, %v3213_v39  ;;  %v2170_v38 = vpop.f32.mrb[61].mxu1 }
 0x895   : > { %v3214_v42 = vpop.f32.mrb[62].mxu1  ;;  %v2197_v7 = vmul.f32 0.17677669, %v2170_v38 }
 0x896   : > { %2235 = vmax.xlane.f32.xlu1 %v4665_v53  ;;  %v2173_v44 = vpop.f32.mrb[63].mxu1  ;;  %v4674_v29 = vadd.f32 %v4382_v3, %v2199_v26  ;;  %v2200_v18 = vmul.f32 0.17677669, %v3214_v42 }
 0x897   : > { %v4678_v56 = vadd.f32 %v4382_v3, %v2197_v7  ;;  %v2198_v35 = vmul.f32 0.17677669, %v2173_v44 }
 0x898   : > { %2233 = vmax.xlane.f32.xlu0 %v4670_v41  ;;  %v4687_v22 = vadd.f32 %v4382_v3, %v2200_v18 }
 0x899   : > { %v4691_v52 = vadd.f32 %v4382_v3, %v2198_v35 }
 0x89c   : > { %2245 = vmax.xlane.f32.xlu0 %v4674_v29 }
 0x8a0   : > { %2241 = vmax.xlane.f32.xlu0 %v4678_v56 }
 0x8a7   : > { %2377 = vrot.lane.b32.xlu1 %v3604_v8, %s3619_s24 }
 0x8b6   : > { %2375 = vrot.lane.b32.xlu0 %v3605_v1, %s3619_s24 }
 0x8cb   : > { %2247 = vmax.xlane.f32.xlu1 %v4687_v22 }
 0x8cf   : > { %2243 = vmax.xlane.f32.xlu1 %v4691_v52 }
 0x8e0   : > { %2379 = vrot.lane.b32.xlu1 %v3606_v61, %s3619_s24 }
 0x90d   : > { %v2222_v21 = vpop.xlane.xlu0 %2221 }
 0x90e   : > { %v2251_v27 = vsub.f32 %v4627_v47, %v2222_v21 }
 0x910   : > { %v2269_v19 = vmul.f32 1.442695, %v2251_v27  ;;  %v2220_v58 = vpop.xlane.xlu1 %2219 }
 0x911   : > { %v2218_v6 = vpop.xlane.xlu0 %2217  ;;  %v2250_v26 = vsub.f32 %v4631_v0, %v2220_v58 }
 0x912   : > { %3515 = vpow2.f32 %v2269_v19  ;;  %v2249_v25 = vsub.f32 %v4634_v45, %v2218_v6 }
 0x913   : > { %v2267_v7 = vmul.f32 1.442695, %v2250_v26 }
 0x914   : > { %v2265_v39 = vmul.f32 1.442695, %v2249_v25 }
 0x915   : > { %v2224_v38 = vpop.xlane.xlu0 %2223 }
 0x916   : > { %3517 = vpow2.f32 %v2265_v39  ;;  %v2252_v3 = vsub.f32 %v4639_v63, %v2224_v38 }
 0x917   : > { %v2232_v42 = vpop.xlane.xlu1 %2231 }
 0x918   : > { %v2271_v44 = vmul.f32 1.442695, %v2252_v3  ;;  %v2256_v0 = vsub.f32 %v4645_v60, %v2232_v42 }
 0x919   : > { %v2230_v8 = vpop.xlane.xlu0 %2229 }
 0x91a   : > { %3519 = vpow2.f32 %v2271_v44  ;;  %v2255_v47 = vsub.f32 %v4642_v14, %v2230_v8  ;;  %v2279_v58 = vmul.f32 1.442695, %v2256_v0 }
 0x91b   : > { %v2228_v1 = vpop.xlane.xlu1 %2227  ;;  %3521 = vpow2.f32 %v2267_v7 }
 0x91c   : > { %v4701_v18 = vpop.eup %3515  ;;  %v2277_v35 = vmul.f32 1.442695, %v2255_v47  ;;  %v2254_v45 = vsub.f32 %v4650_v43, %v2228_v1 }
 0x91d   : > { %v2226_v61 = vpop.xlane.xlu0 %2225  ;;  %2301 = vadd.xlane.f32.xlu1 %v4701_v18 }
 0x91e   : > { %3523 = vpow2.f32 %v2277_v35  ;;  %v2275_v63 = vmul.f32 1.442695, %v2254_v45  ;;  %v2253_v21 = vsub.f32 %v4654_v16, %v2226_v61 }
 0x91f   : > { %v2240_v14 = vpop.xlane.xlu1 %2239 }
 0x920   : > { %v4707_v27 = vpop.eup %3517  ;;  %v2273_v19 = vmul.f32 1.442695, %v2253_v21  ;;  %3525 = vpow2.f32 %v2275_v63  ;;  %v2260_v60 = vsub.f32 %v4661_v11, %v2240_v14 }
 0x921   : > { %v2238_v6 = vpop.xlane.xlu0 %2237  ;;  %2297 = vadd.xlane.f32.xlu1 %v4707_v27 }
 0x922   : > { %3527 = vpow2.f32 %v2273_v19  ;;  %v2259_v43 = vsub.f32 %v4658_v46, %v2238_v6  ;;  %v2287_v7 = vmul.f32 1.442695, %v2260_v60  ;;  %v2816_v60 = vpack.c.bf16 %v4351_v31, %v4351_v31 }
 0x923   : > { %3529 = vpow2.f32 %v2279_v58  ;;  %v2236_v16 = vpop.xlane.xlu1 %2235 }
 0x924   : > { %v4711_v25 = vpop.eup %3519  ;;  %v2285_v39 = vmul.f32 1.442695, %v2259_v43  ;;  %v2258_v46 = vsub.f32 %v4665_v53, %v2236_v16  ;;  %v3607_v43 = vld [vmem:[%s3649_s14 + $0xb0] ss:$12 sps:$4 sm:$0xff]   ;;  %v2818_v16 = vpack.c.bf16 %v4349_v49, %v4349_v49 }
 0x925   : > { %v2234_v26 = vpop.xlane.xlu0 %2233  ;;  %2303 = vadd.xlane.f32.xlu1 %v4711_v25  ;;  %v4716_v3 = vpop.eup %3521 }
 0x926   : > { %v2257_v38 = vsub.f32 %v4670_v41, %v2234_v26  ;;  %3531 = vpow2.f32 %v2285_v39  ;;  %v2283_v35 = vmul.f32 1.442695, %v2258_v46  ;;  %v3608_v39 = vld [vmem:[%s3649_s14 + $0x98] ss:$12 sps:$4 sm:$0xff]   ;;  %v2817_v26 = vpack.c.bf16 %v4345_v28, %v4345_v28 }
 0x927   : > { %v2378_v21 = vpop.permute.xlu1 %2377  ;;  %v2822_v46 = vpack.c.bf16 %v4361_v48, %v4361_v48  ;;  %v2828_v48 = vpack.c.bf16 %v4379_v15, %v4379_v15  ;;  %v2834_v15 = vpack.c.bf16 %v4598_v2, %v4598_v2  ;;  %v2842_v2 = vpack.c.bf16 %v4614_v13, %v4614_v13 }
 0x928   : > { %v4718_v42 = vpop.eup %3523  ;;  %v2281_v44 = vmul.f32 1.442695, %v2257_v38  ;;  %v2823_v13 = vpack.c.bf16 %v4367_v40, %v4367_v40  ;;  %v2831_v40 = vpack.c.bf16 %v4596_v62, %v4596_v62  ;;  %v2839_v62 = vpack.c.bf16 %v4612_v5, %v4612_v5 }
 0x929   : > { %v2246_v8 = vpop.xlane.xlu0 %2245  ;;  %2309 = vadd.xlane.f32.xlu0 %v4718_v42  ;;  %2299 = vadd.xlane.f32.xlu1 %v4716_v3 }
 0x92a   : > { %3533 = vpow2.f32 %v2281_v44  ;;  %v2263_v11 = vsub.f32 %v4674_v29, %v2246_v8  ;;  %v4724_v47 = vpop.eup %3525  ;;  %v2820_v44 = vpack.c.bf16 %v4363_v9, %v4363_v9 }
 0x92b   : > { %3535 = vpow2.f32 %v2287_v7 }
 0x92c   : > { %v4726_v41 = vpop.eup %3527  ;;  %v2293_v1 = vmul.f32 1.442695, %v2263_v11  ;;  %v2824_v11 = vpack.c.bf16 %v4371_v4, %v4371_v4 }
 0x92d   : > { %2305 = vadd.xlane.f32.xlu0 %v4726_v41  ;;  %v2242_v45 = vpop.xlane.xlu0 %2241  ;;  %2307 = vadd.xlane.f32.xlu1 %v4724_v47  ;;  %v4731_v61 = vpop.eup %3529 }
 0x92e   : > { %3537 = vpow2.f32 %v2293_v1  ;;  %v2261_v53 = vsub.f32 %v4678_v56, %v2242_v45  ;;  %v2815_v45 = vpack.c.bf16 %v4347_v36, %v4347_v36  ;;  %v2821_v36 = vpack.c.bf16 %v4357_v30, %v4357_v30  ;;  %v5003_v30 = vld [vmem:[#allocation2_spill] sm:$0xff] }
 0x92f   : > { %3539 = vpow2.f32 %v2283_v35  ;;  %v2838_v35 = vpack.c.bf16 %v4606_v34, %v4606_v34  ;;  %v2819_v34 = vpack.c.bf16 %v4359_v57, %v4359_v57  ;;  %v2825_v57 = vpack.c.bf16 %v4365_v37, %v4365_v37 }
 0x930   : > { %v2289_v0 = vmul.f32 1.442695, %v2261_v53  ;;  %v4734_v63 = vpop.eup %3531  ;;  %v2829_v53 = vpack.c.bf16 %v5003_v30, %v5003_v30  ;;  %v2833_v37 = vpack.c.bf16 %v4594_v59, %v4594_v59 }
 0x931   : > { %v2376_v29 = vpop.permute.xlu0 %2375  ;;  %2311 = vadd.xlane.f32.xlu0 %v4731_v61 }
 0x932   : > { %3541 = vpow2.f32 %v2289_v0  ;;  %3221 = vmatprep.subr.bf16.mxu0 %v2376_v29 }
 0x933   : > { %3222 = vmatpush3.bf16.msra.mxu0 %v2376_v29  ;;  %v2835_v29 = vpack.c.bf16 %v4604_v32, %v4604_v32  ;;  %v2841_v32 = vpack.c.bf16 %v4610_v33, %v4610_v33 }
 0x934   : > { %v4736_v19 = vpop.eup %3533  ;;  %3223 = vmatprep.subr.bf16.mxu0 %v2378_v21 }
 0x935   : > { %2317 = vadd.xlane.f32.xlu0 %v4734_v63  ;;  %2313 = vadd.xlane.f32.xlu1 %v4736_v19  ;;  %v4740_v56 = vpop.eup %3535 }
 0x937   : > { %3224 = vmatpush3.bf16.msra.mxu0 %v2378_v21 }
 0x938   : > { %v4742_v14 = vpop.eup %3537 }
 0x939   : > { %2325 = vadd.xlane.f32.xlu1 %v4742_v14  ;;  %2319 = vadd.xlane.f32.xlu0 %v4740_v56  ;;  %v4746_v6 = vpop.eup %3539 }
 0x93c   : > { %v4748_v58 = vpop.eup %3541 }
 0x93d   : > { %2321 = vadd.xlane.f32.xlu1 %v4748_v58  ;;  %2315 = vadd.xlane.f32.xlu0 %v4746_v6 }
 0x94e   : > { %2383 = vrot.lane.b32.xlu1 %v3607_v43, %s3619_s24  ;;  %v2837_v43 = vpack.c.bf16 %v4602_v55, %v4602_v55  ;;  %v2843_v55 = vpack.c.bf16 %v4620_v51, %v4620_v51 }
 0x952   : > { %1350 = vrot.lane.b32.xlu1 %v2816_v60, %s3619_s24 }
 0x953   : > { %2381 = vrot.lane.b32.xlu0 %v3608_v39, %s3619_s24 }
 0x956   : > { %1352 = vrot.lane.b32.xlu1 %v2817_v26, %s3619_s24 }
 0x958   : > { %v2248_v38 = vpop.xlane.xlu1 %2247 }
 0x959   : > { %v2264_v49 = vsub.f32 %v4687_v22, %v2248_v38  ;;  %v2830_v22 = vpack.c.bf16 %v4377_v17, %v4377_v17  ;;  %v2836_v17 = vpack.c.bf16 %v4608_v12, %v4608_v12  ;;  %v2844_v12 = vpack.c.bf16 %v4624_v10, %v4624_v10 }
 0x95a   : > { %1354 = vrot.lane.b32.xlu1 %v2818_v16, %s3619_s24 }
 0x95b   : > { %v2295_v9 = vmul.f32 1.442695, %v2264_v49 }
 0x95c   : > { %v2244_v31 = vpop.xlane.xlu1 %2243 }
 0x95d   : > { %v2262_v7 = vsub.f32 %v4691_v52, %v2244_v31  ;;  %v2826_v52 = vpack.c.bf16 %v4369_v50, %v4369_v50  ;;  %v2832_v50 = vpack.c.bf16 %v4600_v54, %v4600_v54  ;;  %v2840_v54 = vpack.c.bf16 %v4616_v20, %v4616_v20 }
 0x95e   : > { %1358 = vrot.lane.b32.xlu1 %v2820_v44, %s3619_s24  ;;  %v2846_v20 = vpack.c.bf16 %v4622_v24, %v4622_v24  ;;  %v5002_v24 = vld [vmem:[#allocation3_spill] sm:$0xff]  ;;  %v2845_v31 = vpack.c.bf16 %v4618_v23, %v4618_v23 }
 0x95f   : > { %v2291_v8 = vmul.f32 1.442695, %v2262_v7  ;;  %v2827_v10 = vpack.c.bf16 %v5002_v24, %v5002_v24 }
 0x960   : > { %v2380_v28 = vpop.permute.xlu1 %2379 }
 0x961   : > { %3225 = vmatprep.subr.bf16.mxu0 %v2380_v28  ;;  %3543 = vpow2.f32 %v2291_v8 }
 0x962   : > { %1362 = vrot.lane.b32.xlu1 %v2822_v46, %s3619_s24  ;;  %3226 = vmatpush3.bf16.msra.mxu0 %v2380_v28  ;;  %3545 = vpow2.f32 %v2295_v9 }
 0x966   : > { %1366 = vrot.lane.b32.xlu1 %v2824_v11, %s3619_s24 }
 0x96a   : > { %1370 = vrot.lane.b32.xlu1 %v2826_v52, %s3619_s24 }
 0x96b   : > { %v4784_v1 = vpop.eup %3543 }
 0x96c   : > { %v4790_v4 = vpop.eup %3545 }
 0x96e   : > { %1374 = vrot.lane.b32.xlu1 %v2828_v48, %s3619_s24 }
 0x972   : > { %1378 = vrot.lane.b32.xlu1 %v2830_v22, %s3619_s24  ;;  %2323 = vadd.xlane.f32.xlu0 %v4784_v1 }
 0x976   : > { %1945 = vrot.lane.b32.xlu1 %v2832_v50, %s3618_s19  ;;  %2327 = vadd.xlane.f32.xlu0 %v4790_v4 }
 0x97a   : > { %1949 = vrot.lane.b32.xlu1 %v2834_v15, %s3618_s19 }
 0x97e   : > { %1953 = vrot.lane.b32.xlu1 %v2836_v17, %s3618_s19 }
 0x982   : > { %1957 = vrot.lane.b32.xlu1 %v2838_v35, %s3618_s19 }
 0x986   : > { %1961 = vrot.lane.b32.xlu1 %v2840_v54, %s3618_s19 }
 0x98a   : > { %1965 = vrot.lane.b32.xlu1 %v2842_v2, %s3618_s19 }
 0x98c   : > { %1348 = vrot.lane.b32.xlu0 %v2815_v45, %s3619_s24 }
 0x98e   : > { %1969 = vrot.lane.b32.xlu1 %v2844_v12, %s3618_s19 }
 0x990   : > { %1356 = vrot.lane.b32.xlu0 %v2819_v34, %s3619_s24 }
 0x992   : > { %1973 = vrot.lane.b32.xlu1 %v2846_v20, %s3618_s19 }
 0x994   : > { %1360 = vrot.lane.b32.xlu0 %v2821_v36, %s3619_s24 }
 0x998   : > { %1364 = vrot.lane.b32.xlu0 %v2823_v13, %s3619_s24 }
 0x99c   : > { %1368 = vrot.lane.b32.xlu0 %v2825_v57, %s3619_s24 }
 0x9a0   : > { %1372 = vrot.lane.b32.xlu0 %v2827_v10, %s3619_s24 }
 0x9a4   : > { %1376 = vrot.lane.b32.xlu0 %v2829_v53, %s3619_s24 }
 0x9a8   : > { %1943 = vrot.lane.b32.xlu0 %v2831_v40, %s3618_s19 }
 0x9aa   : > { %v2302_v0 = vpop.xlane.xlu1 %2301 }
 0x9ac   : > { %1947 = vrot.lane.b32.xlu0 %v2833_v37, %s3618_s19 }
 0x9ae   : > { %v2298_v21 = vpop.xlane.xlu1 %2297 }
 0x9af   : > { %3547 = vrcp.f32 %v2298_v21 }
 0x9b0   : > { %1951 = vrot.lane.b32.xlu0 %v2835_v29, %s3618_s19 }
 0x9b2   : > { %v2304_v60 = vpop.xlane.xlu1 %2303 }
 0x9b4   : > { %1955 = vrot.lane.b32.xlu0 %v2837_v43, %s3618_s19 }
 0x9b6   : > { %v2310_v59 = vpop.xlane.xlu0 %2309  ;;  %v2300_v39 = vpop.xlane.xlu1 %2299 }
 0x9b7   : > { %3549 = vrcp.f32 %v2300_v39 }
 0x9b8   : > { %1959 = vrot.lane.b32.xlu0 %v2839_v62, %s3618_s19  ;;  %3551 = vrcp.f32 %v2304_v60 }
 0x9b9   : > { %v3548_v44 = vpop.eup %3547 }
 0x9ba   : > { %v2306_v26 = vpop.xlane.xlu0 %2305  ;;  %v2308_v16 = vpop.xlane.xlu1 %2307  ;;  %v2345_v33 = vmul.f32 %v3548_v44, %v4707_v27 }
 0x9bb   : > { %3553 = vrcp.f32 %v2306_v26 }
 0x9bc   : > { %1963 = vrot.lane.b32.xlu0 %v2841_v32, %s3618_s19  ;;  %3555 = vrcp.f32 %v2308_v16 }
 0x9bd   : > { %3557 = vrcp.f32 %v2302_v0 }
 0x9be   : > { %v2312_v38 = vpop.xlane.xlu0 %2311 }
 0x9bf   : > { %3559 = vrcp.f32 %v2312_v38 }
 0x9c0   : > { %1967 = vrot.lane.b32.xlu0 %v2843_v55, %s3618_s19 }
 0x9c1   : > { %v3550_v5 = vpop.eup %3549 }
 0x9c2   : > { %v2318_v7 = vpop.xlane.xlu0 %2317  ;;  %v2314_v46 = vpop.xlane.xlu1 %2313  ;;  %v2346_v28 = vmul.f32 %v3550_v5, %v4716_v3 }
 0x9c3   : > { %v3552_v23 = vpop.eup %3551 }
 0x9c4   : > { %1971 = vrot.lane.b32.xlu0 %v2845_v31, %s3618_s19  ;;  %v2361_v51 = vpack.c.bf16 %v2346_v28, %v2345_v33  ;;  %v2348_v50 = vmul.f32 %v3552_v23, %v4711_v25 }
 0x9c5   : > { %v3554_v52 = vpop.eup %3553 }
 0x9c6   : > { %v2320_v49 = vpop.xlane.xlu0 %2319  ;;  %v4862_v8 = vpop.xlane.xlu1 %2325  ;;  %3231 = vmatprep.mubr.bf16.mxu0 %v2361_v51  ;;  %v2349_v17 = vmul.f32 %v3554_v52, %v4726_v41 }
 0x9c7   : > { %v3556_v48 = vpop.eup %3555 }
 0x9c8   : > { %v3558_v22 = vpop.eup %3557  ;;  %v2350_v35 = vmul.f32 %v3556_v48, %v4724_v47 }
 0x9c9   : > { %v2347_v54 = vmul.f32 %v3558_v22, %v4701_v18  ;;  %v3560_v45 = vpop.eup %3559 }
 0x9ca   : > { %v2316_v11 = vpop.xlane.xlu0 %2315  ;;  %v4864_v9 = vpop.xlane.xlu1 %2321  ;;  %v2363_v34 = vpack.c.bf16 %v2350_v35, %v2349_v17  ;;  %v2352_v18 = vmul.f32 %v3560_v45, %v4731_v61 }
 0x9cb   : > { %3561 = vrcp.f32 %v2316_v11  ;;  %v2362_v2 = vpack.c.bf16 %v2348_v50, %v2347_v54 }
 0x9cc   : > { %3563 = vrcp.f32 %v2310_v59 }
 0x9cd   : > { %3565 = vrcp.f32 %v2314_v46 }
 0x9ce   : > { %v2382_v27 = vpop.permute.xlu0 %2381  ;;  %v2384_v3 = vpop.permute.xlu1 %2383  ;;  %3567 = vrcp.f32 %v2320_v49 }
 0x9cf   : > { %3227 = vmatprep.subr.bf16.mxu0 %v2382_v27  ;;  %3569 = vrcp.f32 %v2318_v7 }
 0x9d0   : > { %3228 = vmatpush3.bf16.msra.mxu0 %v2382_v27  ;;  %3571 = vrcp.f32 %v4864_v9 }
 0x9d1   : > { %3229 = vmatprep.subr.bf16.mxu0 %v2384_v3 }
 0x9d2   : > { %v1351_v15 = vpop.permute.xlu1 %1350 }
 0x9d3   : > { %1398 = vst.msk [vmem:[%s4032_s23 + $0x4] sm:$0xf] %vm1396_vm2, %v1351_v15 }
 0x9d4   : > { %3230 = vmatpush3.bf16.msra.mxu0 %v2384_v3 }
 0x9d5   : > { %v3562_v20 = vpop.eup %3561 }
 0x9d6   : > { %v1353_v12 = vpop.permute.xlu1 %1352  ;;  %v3564_v25 = vpop.eup %3563  ;;  %v2354_v36 = vmul.f32 %v3562_v20, %v4746_v6 }
 0x9d7   : > { %1399 = vst.msk [vmem:[%s4032_s23 + $0x8] sm:$0xf] %vm1396_vm2, %v1353_v12  ;;  %3232 = vmatmul.mubr.bf16.vlgmr.msra.gmra.mrb[48].mxu0 %v2362_v2  ;;  %v3566_v47 = vpop.eup %3565  ;;  %v2351_v13 = vmul.f32 %v3564_v25, %v4718_v42 }
 0x9d8   : > { %3235 = vmatprep.mubr.bf16.mxu0 %v2363_v34  ;;  %v2353_v57 = vmul.f32 %v3566_v47, %v4736_v19  ;;  %v3568_v10 = vpop.eup %3567 }
 0x9d9   : > { %v2364_v24 = vpack.c.bf16 %v2352_v18, %v2351_v13  ;;  %v3570_v61 = vpop.eup %3569  ;;  %v2356_v6 = vmul.f32 %v3568_v10, %v4740_v56 }
 0x9da   : > { %v1355_v41 = vpop.permute.xlu1 %1354  ;;  %v2365_v53 = vpack.c.bf16 %v2354_v36, %v2353_v57  ;;  %v2355_v42 = vmul.f32 %v3570_v61, %v4734_v63  ;;  %v3572_v26 = vpop.eup %3571 }
 0x9db   : > { %1400 = vst.msk [vmem:[%s4032_s23 + $0xc] sm:$0xf] %vm1396_vm2, %v1355_v41  ;;  %v2357_v44 = vmul.f32 %v3572_v26, %v4748_v58 }
 0x9dc   : > { %v2366_v19 = vpack.c.bf16 %v2356_v6, %v2355_v42 }
 0x9de   : > { %v1359_v30 = vpop.permute.xlu1 %1358 }
 0x9df   : > { %1402 = vst.msk [vmem:[%s4032_s23 + $0x14] sm:$0xf] %vm1396_vm2, %v1359_v30  ;;  %3236 = vmatmul.mubr.bf16.gmra.mrb[52].mxu0 %v2364_v24 }
 0x9e0   : > { %3239 = vmatprep.mubr.bf16.mxu0 %v2365_v53 }
 0x9e2   : > { %v1363_v40 = vpop.permute.xlu1 %1362 }
 0x9e3   : > { %1404 = vst.msk [vmem:[%s4032_s23 + $0x1c] sm:$0xf] %vm1396_vm2, %v1363_v40 }
 0x9e6   : > { %v1367_v37 = vpop.permute.xlu1 %1366 }
 0x9e7   : > { %1406 = vst.msk [vmem:[%s4032_s23 + $0x24] sm:$0xf] %vm1396_vm2, %v1367_v37  ;;  %3240 = vmatmul.mubr.bf16.gmra.mrb[56].mxu0 %v2366_v19 }
 0x9ea   : > { %v1371_v0 = vpop.permute.xlu1 %1370 }
 0x9eb   : > { %1408 = vst.msk [vmem:[%s4032_s23 + $0x2c] sm:$0xf] %vm1396_vm2, %v1371_v0 }
 0x9ee   : > { %v1375_v29 = vpop.permute.xlu1 %1374 }
 0x9ef   : > { %1410 = vst.msk [vmem:[%s4032_s23 + $0x34] sm:$0xf] %vm1396_vm2, %v1375_v29 }
 0x9f2   : > { %v1379_v56 = vpop.permute.xlu1 %1378 }
 0x9f3   : > { %1412 = vst.msk [vmem:[%s4032_s23 + $0x3c] sm:$0xf] %vm1396_vm2, %v1379_v56 }
 0x9f6   : > { %v1946_v21 = vpop.permute.xlu1 %1945 }
 0x9f7   : > { %1993 = vst.msk [vmem:[%s4032_s23 + $0x4] sm:$0xf] %vm1991_vm3, %v1946_v21 }
 0x9fa   : > { %v1950_v63 = vpop.permute.xlu1 %1949 }
 0x9fb   : > { %1995 = vst.msk [vmem:[%s4032_s23 + $0xc] sm:$0xf] %vm1991_vm3, %v1950_v63 }
 0x9fe   : > { %v1954_v43 = vpop.permute.xlu1 %1953 }
 0x9ff   : > { %1997 = vst.msk [vmem:[%s4032_s23 + $0x14] sm:$0xf] %vm1991_vm3, %v1954_v43  ;;  %v2324_v60 = vpop.xlane.xlu0 %2323 }
 0xa00   : > { %3573 = vrcp.f32 %v2324_v60 }
 0xa01   : > { %3575 = vrcp.f32 %v4862_v8 }
 0xa02   : > { %v1958_v62 = vpop.permute.xlu1 %1957 }
 0xa03   : > { %1999 = vst.msk [vmem:[%s4032_s23 + $0x1c] sm:$0xf] %vm1991_vm3, %v1958_v62  ;;  %v2328_v59 = vpop.xlane.xlu0 %2327 }
 0xa04   : > { %3577 = vrcp.f32 %v2328_v59 }
 0xa06   : > { %v1962_v39 = vpop.permute.xlu1 %1961 }
 0xa07   : > { %2001 = vst.msk [vmem:[%s4032_s23 + $0x24] sm:$0xf] %vm1991_vm3, %v1962_v39  ;;  %v1349_v32 = vpop.permute.xlu0 %1348 }
 0xa08   : > { %1397 = vst.msk [vmem:[%s4032_s23] sm:$0xf] %vm1396_vm2, %v1349_v32 }
 0xa0a   : > { %v3574_v55 = vpop.eup %3573  ;;  %v1966_v16 = vpop.permute.xlu1 %1965 }
 0xa0b   : > { %2003 = vst.msk [vmem:[%s4032_s23 + $0x2c] sm:$0xf] %vm1991_vm3, %v1966_v16  ;;  %v1357_v38 = vpop.permute.xlu0 %1356  ;;  %v2358_v5 = vmul.f32 %v3574_v55, %v4784_v1  ;;  %v3576_v31 = vpop.eup %3575 }
 0xa0c   : > { %1401 = vst.msk [vmem:[%s4032_s23 + $0x10] sm:$0xf] %vm1396_vm2, %v1357_v38  ;;  %v2359_v51 = vmul.f32 %v3576_v31, %v4742_v14 }
 0xa0d   : > { %v2367_v7 = vpack.c.bf16 %v2358_v5, %v2357_v44 }
 0xa0e   : > { %v3578_v46 = vpop.eup %3577  ;;  %v1970_v33 = vpop.permute.xlu1 %1969 }
 0xa0f   : > { %2005 = vst.msk [vmem:[%s4032_s23 + $0x34] sm:$0xf] %vm1991_vm3, %v1970_v33  ;;  %v1361_v28 = vpop.permute.xlu0 %1360  ;;  %3243 = vmatprep.mubr.bf16.mxu0 %v2367_v7  ;;  %v2360_v58 = vmul.f32 %v3578_v46, %v4790_v4 }
 0xa10   : > { %1403 = vst.msk [vmem:[%s4032_s23 + $0x18] sm:$0xf] %vm1396_vm2, %v1361_v28 }
 0xa11   : > { %v2368_v1 = vpack.c.bf16 %v2360_v58, %v2359_v51 }
 0xa12   : > { %v1974_v49 = vpop.permute.xlu1 %1973 }
 0xa13   : > { %2007 = vst.msk [vmem:[%s4032_s23 + $0x3c] sm:$0xf] %vm1991_vm3, %v1974_v49  ;;  %v1365_v8 = vpop.permute.xlu0 %1364  ;;  %3244 = vmatmul.mubr.bf16.gmra.mrb[60].mxu0 %v2368_v1 }
 0xa14   : > { %1405 = vst.msk [vmem:[%s4032_s23 + $0x20] sm:$0xf] %vm1396_vm2, %v1365_v8 }
 0xa17   : > { %v1369_v11 = vpop.permute.xlu0 %1368 }
 0xa18   : > { %1407 = vst.msk [vmem:[%s4032_s23 + $0x28] sm:$0xf] %vm1396_vm2, %v1369_v11 }
 0xa1b   : > { %v1373_v14 = vpop.permute.xlu0 %1372 }
 0xa1c   : > { %1409 = vst.msk [vmem:[%s4032_s23 + $0x30] sm:$0xf] %vm1396_vm2, %v1373_v14 }
 0xa1f   : > { %v1377_v4 = vpop.permute.xlu0 %1376 }
 0xa20   : > { %1411 = vst.msk [vmem:[%s4032_s23 + $0x38] sm:$0xf] %vm1396_vm2, %v1377_v4 }
 0xa23   : > { %v1944_v9 = vpop.permute.xlu0 %1943 }
 0xa24   : > { %1992 = vst.msk [vmem:[%s4032_s23] sm:$0xf] %vm1991_vm3, %v1944_v9 }
 0xa27   : > { %v1948_v23 = vpop.permute.xlu0 %1947 }
 0xa28   : > { %1994 = vst.msk [vmem:[%s4032_s23 + $0x8] sm:$0xf] %vm1991_vm3, %v1948_v23 }
 0xa2b   : > { %v1952_v52 = vpop.permute.xlu0 %1951 }
 0xa2c   : > { %1996 = vst.msk [vmem:[%s4032_s23 + $0x10] sm:$0xf] %vm1991_vm3, %v1952_v52 }
 0xa2f   : > { %v1956_v27 = vpop.permute.xlu0 %1955 }
 0xa30   : > { %1998 = vst.msk [vmem:[%s4032_s23 + $0x18] sm:$0xf] %vm1991_vm3, %v1956_v27 }
 0xa33   : > { %v1960_v3 = vpop.permute.xlu0 %1959 }
 0xa34   : > { %2000 = vst.msk [vmem:[%s4032_s23 + $0x20] sm:$0xf] %vm1991_vm3, %v1960_v3 }
 0xa37   : > { %v1964_v48 = vpop.permute.xlu0 %1963 }
 0xa38   : > { %2002 = vst.msk [vmem:[%s4032_s23 + $0x28] sm:$0xf] %vm1991_vm3, %v1964_v48 }
 0xa3b   : > { %v1968_v22 = vpop.permute.xlu0 %1967 }
 0xa3c   : > { %2004 = vst.msk [vmem:[%s4032_s23 + $0x30] sm:$0xf] %vm1991_vm3, %v1968_v22 }
 0xa3f   : > { %v1972_v50 = vpop.permute.xlu0 %1971 }
 0xa40   : > { %2006 = vst.msk [vmem:[%s4032_s23 + $0x38] sm:$0xf] %vm1991_vm3, %v1972_v50 }
 0xaaa   : > { %v3233_v15 = vpop.f32.mrb[48].mxu0 }
 0xaab   : > { %v2849_v17 = vpack.c.bf16 %v3233_v15, %v3233_v15  ;;  %v2427_v35 = vpop.f32.mrb[49].mxu0 }
 0xaac   : > { %v3234_v54 = vpop.f32.mrb[50].mxu0  ;;  %v2847_v12 = vpack.c.bf16 %v2427_v35, %v2427_v35 }
 0xaad   : > { %v2850_v2 = vpack.c.bf16 %v3234_v54, %v3234_v54  ;;  %2542 = vrot.lane.b32.xlu0 %v2849_v17, %s3617_s15  ;;  %v2430_v45 = vpop.f32.mrb[51].mxu0 }
 0xaae   : > { %v2848_v34 = vpack.c.bf16 %v2430_v45, %v2430_v45 }
 0xaaf   : > { %2544 = vrot.lane.b32.xlu1 %v2850_v2, %s3617_s15 }
 0xab1   : > { %2538 = vrot.lane.b32.xlu0 %v2847_v12, %s3617_s15 }
 0xab2   : > { %v3237_v20 = vpop.f32.mrb[52].mxu0 }
 0xab3   : > { %v2853_v25 = vpack.c.bf16 %v3237_v20, %v3237_v20  ;;  %2540 = vrot.lane.b32.xlu1 %v2848_v34, %s3617_s15  ;;  %v2443_v47 = vpop.f32.mrb[53].mxu0 }
 0xab4   : > { %v3238_v18 = vpop.f32.mrb[54].mxu0  ;;  %v2851_v13 = vpack.c.bf16 %v2443_v47, %v2443_v47 }
 0xab5   : > { %v2854_v41 = vpack.c.bf16 %v3238_v18, %v3238_v18  ;;  %2550 = vrot.lane.b32.xlu0 %v2853_v25, %s3617_s15  ;;  %v2446_v36 = vpop.f32.mrb[55].mxu0 }
 0xab6   : > { %v2852_v57 = vpack.c.bf16 %v2446_v36, %v2446_v36 }
 0xab7   : > { %2552 = vrot.lane.b32.xlu1 %v2854_v41, %s3617_s15 }
 0xab9   : > { %2546 = vrot.lane.b32.xlu0 %v2851_v13, %s3617_s15 }
 0xaba   : > { %v3241_v24 = vpop.f32.mrb[56].mxu0 }
 0xabb   : > { %v2857_v10 = vpack.c.bf16 %v3241_v24, %v3241_v24  ;;  %2548 = vrot.lane.b32.xlu1 %v2852_v57, %s3617_s15  ;;  %v2459_v30 = vpop.f32.mrb[57].mxu0 }
 0xabc   : > { %v3242_v53 = vpop.f32.mrb[58].mxu0  ;;  %v2855_v40 = vpack.c.bf16 %v2459_v30, %v2459_v30 }
 0xabd   : > { %v2858_v61 = vpack.c.bf16 %v3242_v53, %v3242_v53  ;;  %2558 = vrot.lane.b32.xlu0 %v2857_v10, %s3617_s15  ;;  %v2462_v6 = vpop.f32.mrb[59].mxu0 }
 0xabe   : > { %v2856_v42 = vpack.c.bf16 %v2462_v6, %v2462_v6 }
 0xabf   : > { %2560 = vrot.lane.b32.xlu1 %v2858_v61, %s3617_s15 }
 0xac1   : > { %2554 = vrot.lane.b32.xlu0 %v2855_v40, %s3617_s15 }
 0xac3   : > { %2556 = vrot.lane.b32.xlu1 %v2856_v42, %s3617_s15 }
 0xae6   : > { %v3245_v19 = vpop.f32.mrb[60].mxu0 }
 0xae7   : > { %v2475_v37 = vpop.f32.mrb[61].mxu0  ;;  %v2861_v63 = vpack.c.bf16 %v3245_v19, %v3245_v19 }
 0xae8   : > { %v2859_v0 = vpack.c.bf16 %v2475_v37, %v2475_v37  ;;  %v3246_v29 = vpop.f32.mrb[62].mxu0 }
 0xae9   : > { %v2478_v56 = vpop.f32.mrb[63].mxu0  ;;  %v2862_v43 = vpack.c.bf16 %v3246_v29, %v3246_v29 }
 0xaea   : > { %v2860_v21 = vpack.c.bf16 %v2478_v56, %v2478_v56  ;;  %2562 = vrot.lane.b32.xlu0 %v2859_v0, %s3617_s15 }
 0xaec   : > { %2564 = vrot.lane.b32.xlu1 %v2860_v21, %s3617_s15 }
 0xaee   : > { %2566 = vrot.lane.b32.xlu0 %v2861_v63, %s3617_s15 }
 0xaf0   : > { %2568 = vrot.lane.b32.xlu1 %v2862_v43, %s3617_s15 }
 0xb1f   : > { %v2543_v60 = vpop.permute.xlu0 %2542 }
 0xb20   : > { %2589 = vst.msk [vmem:[%s4032_s23 + $0x8] sm:$0xf] %vm2586_vm4, %v2543_v60 }
 0xb21   : > { %v2545_v62 = vpop.permute.xlu1 %2544 }
 0xb22   : > { %2590 = vst.msk [vmem:[%s4032_s23 + $0xc] sm:$0xf] %vm2586_vm4, %v2545_v62 }
 0xb23   : > { %v2539_v59 = vpop.permute.xlu0 %2538 }
 0xb24   : > { %2587 = vst.msk [vmem:[%s4032_s23] sm:$0xf] %vm2586_vm4, %v2539_v59 }
 0xb25   : > { %v2541_v39 = vpop.permute.xlu1 %2540 }
 0xb26   : > { %2588 = vst.msk [vmem:[%s4032_s23 + $0x4] sm:$0xf] %vm2586_vm4, %v2541_v39 }
 0xb27   : > { %v2551_v32 = vpop.permute.xlu0 %2550 }
 0xb28   : > { %2593 = vst.msk [vmem:[%s4032_s23 + $0x18] sm:$0xf] %vm2586_vm4, %v2551_v32 }
 0xb29   : > { %v2553_v26 = vpop.permute.xlu1 %2552 }
 0xb2a   : > { %2594 = vst.msk [vmem:[%s4032_s23 + $0x1c] sm:$0xf] %vm2586_vm4, %v2553_v26 }
 0xb2b   : > { %v2547_v55 = vpop.permute.xlu0 %2546 }
 0xb2c   : > { %2591 = vst.msk [vmem:[%s4032_s23 + $0x10] sm:$0xf] %vm2586_vm4, %v2547_v55 }
 0xb2d   : > { %v2549_v16 = vpop.permute.xlu1 %2548 }
 0xb2e   : > { %2592 = vst.msk [vmem:[%s4032_s23 + $0x14] sm:$0xf] %vm2586_vm4, %v2549_v16 }
 0xb2f   : > { %v2559_v38 = vpop.permute.xlu0 %2558 }
 0xb30   : > { %2597 = vst.msk [vmem:[%s4032_s23 + $0x28] sm:$0xf] %vm2586_vm4, %v2559_v38 }
 0xb31   : > { %v2561_v44 = vpop.permute.xlu1 %2560 }
 0xb32   : > { %2598 = vst.msk [vmem:[%s4032_s23 + $0x2c] sm:$0xf] %vm2586_vm4, %v2561_v44 }
 0xb33   : > { %v2555_v5 = vpop.permute.xlu0 %2554 }
 0xb34   : > { %2595 = vst.msk [vmem:[%s4032_s23 + $0x20] sm:$0xf] %vm2586_vm4, %v2555_v5 }
 0xb35   : > { %v2557_v31 = vpop.permute.xlu1 %2556 }
 0xb36   : > { %2596 = vst.msk [vmem:[%s4032_s23 + $0x24] sm:$0xf] %vm2586_vm4, %v2557_v31 }
 0xb5c   : > { %v2563_v7 = vpop.permute.xlu0 %2562 }
 0xb5d   : > { %2599 = vst.msk [vmem:[%s4032_s23 + $0x30] sm:$0xf] %vm2586_vm4, %v2563_v7 }
 0xb5e   : > { %v2565_v46 = vpop.permute.xlu1 %2564 }
 0xb5f   : > { %2600 = vst.msk [vmem:[%s4032_s23 + $0x34] sm:$0xf] %vm2586_vm4, %v2565_v46 }
 0xb60   : > { %v2567_v33 = vpop.permute.xlu0 %2566 }
 0xb61   : > { %2601 = vst.msk [vmem:[%s4032_s23 + $0x38] sm:$0xf] %vm2586_vm4, %v2567_v33 }
 0xb62   : > { %v2569_v28 = vpop.permute.xlu1 %2568 }
 0xb63   : > { %2602 = vst.msk [vmem:[%s4032_s23 + $0x3c] sm:$0xf] %vm2586_vm4, %v2569_v28 }
 0xb64 PF: > { %s12_s9 = sadd.s32 1, %s3615_s9  }
 0xb65   : > { %p9_p4 = scmp.ge.s32.totalorder %s12_s9, 6  }
 0xb67   :  { %11 = sbr.rel (!%p9_p4) target bundleno = 1 (0x1), region = 61 }

// kernel: bert_classifier_forward.17
= control target key start
LH: loop header
LB: loop body
LE: loop exit
PB: predicated region body
PF: predicated region fallthrough
CT: control target
= control target key end

     0   :  { %s1772_s21 = smov 0   ;;  %s1774_s22 = smov 0   ;;  %s2150_s0 = inlined_call_operand.vmem [shape: bf16[512,512], index: 0, kind: input, shape index: {}]   ;;  %s2151_s1 = inlined_call_operand.vmem [shape: bf16[512,128], index: 1, kind: input, shape index: {}]   ;;  %s2152_s2 = inlined_call_operand.vmem [shape: f32[1,128], index: 2, kind: input, shape index: {}]   ;;  %s2153_s3 = inlined_call_operand.vmem [shape: bf16[512,128], index: 3, kind: input, shape index: {}]   ;;  %s2154_s4 = inlined_call_operand.vmem [shape: f32[1,128], index: 4, kind: input, shape index: {}]   ;;  %s2155_s5 = inlined_call_operand.vmem [shape: f32[1,128], index: 5, kind: input, shape index: {}]   ;;  %s2156_s6 = inlined_call_operand.vmem [shape: bf16[512,128], index: 6, kind: output, shape index: {}]  }
   0x1   :  { %s1776_s23 = smov 0   ;;  %s1778_s24 = smov 0  }
   0x2   :  { %s1780_s25 = smov 0   ;;  %s1782_s26 = smov 0  }
   0x3   :  { %s1784_s27 = smov 0  }
   0x4 LB: > { %s25_s28 = sadd.s32 1, %s1726_s25  ;;  %s28_s29 = sadd.s32 1, %s1730_s26  ;;  %s1734_s27 = sphi %s1784_s27, %s16_s27   ;;  %s1730_s26 = sphi %s1782_s26, %s2162_s26   ;;  %s1726_s25 = sphi %s1780_s25, %s2161_s25   ;;  %s1722_s24 = sphi %s1778_s24, %s2160_s24   ;;  %s1718_s23 = sphi %s1776_s23, %s2159_s23   ;;  %s1714_s22 = sphi %s1774_s22, %s2158_s22   ;;  %s1710_s21 = sphi %s1772_s21, %s2157_s21  }
   0x5   : > { %p26_p0 = scmp.ge.s32.totalorder %s25_s28, 2  ;;  %p44_p1 = scmp.ne.s32.totalorder %s1714_s22, %s1710_s21 }
   0x6   : > { %p45_p2 = scmp.eq.s32.totalorder %s1734_s27, 0  ;;  %s37_s9 = sadd.s32 1, %s1714_s22 }
   0x7   : > { %s2164_s28 = smov (%p26_p0, %s25_s28), 0  ;;  %s2166_s29 = smov (!%p26_p0, %s28_s29), %s1730_s26 }
   0x8   : > { %p46_p3 = por %p45_p2, %p44_p1  ;;  %p30_p4 = scmp.ge.s32.totalorder %s2166_s29, 4 }
   0x9   : > { %s33_s30 = ssub.s32 %s1726_s25, %s2164_s28  ;;  %p1299_p6 = scmp.ge.s32.totalorder %s1734_s27, 8 }
   0xa   : > { %s2168_s29 = smov (%p30_p4, %s2166_s29), 0 }
   0xb   : > { %s32_s7 = ssub.s32 %s1730_s26, %s2168_s29  ;;  %220 = sbr.rel (%p1299_p6) target bundleno = 33 (0x21), region = 28 }
   0xc   : > { %s34_s8 = sor.u32 %s33_s30, %s32_s7 }
   0xd   : > { %p35_p5 = scmp.eq.s32.totalorder %s34_s8, 0 }
   0xf   : > { %s1823_s10 = scalar_select %p35_p5, %s1714_s22, %s37_s9  }
  0x12   : > { %223 = sbr.rel (!%p46_p3) target bundleno = 33 (0x21), region = 32  ;;  %s225_s11 = sand.u32 (%p46_p3), 1, %s1714_s22  }
  0x13   : > { %s1302_s12 = sshll.u32 (%p46_p3), %s1726_s25, 1  ;;  %s1300_s13 = sshll.u32 (%p46_p3), %s225_s11, 7 }
  0x14   : > { %s1368_s14 = sshll.u32 (%p46_p3), %s1730_s26, 6  ;;  %s227_s20 = scalar_lea.vmem (%p46_p3), [#allocation3], %s1300_s13 }
  0x15   : > { %s231_s15 = sadd.s32 (%p46_p3), %s1368_s14, %s1302_s12 }
  0x16   : > { %s1304_s16 = sshll.u32 (%p46_p3), %s231_s15, 2 }
  0x17   : > { %s1832_s19 = scalar_lea.vmem (%p46_p3), %s2150_s0, %s1304_s16 }
  0x18   : > { %v291_v0 = vld [vmem:[%s1832_s19] sm:$0xff] (%p46_p3)  ;;  %v293_v1 = vld [vmem:[%s1832_s19 + $0x10] sm:$0xff] (%p46_p3) }
  0x19   : > { %v295_v2 = vld [vmem:[%s1832_s19 + $0x20] sm:$0xff]  ;;  %292 = vst [vmem:[%s227_s20] sm:$0xff] %v291_v0  ;;  %294 = vst [vmem:[%s227_s20 + $0x8] sm:$0xff] %v293_v1  ;;  %v297_v3 = vld [vmem:[%s1832_s19 + $0x30] sm:$0xff] }
  0x1a   : > { %296 = vst [vmem:[%s227_s20 + $0x10] sm:$0xff] %v295_v2  ;;  %v299_v4 = vld [vmem:[%s1832_s19 + $0x40] sm:$0xff]  ;;  %v301_v5 = vld [vmem:[%s1832_s19 + $0x50] sm:$0xff]  ;;  %298 = vst [vmem:[%s227_s20 + $0x18] sm:$0xff] %v297_v3 }
  0x1b   : > { %300 = vst [vmem:[%s227_s20 + $0x20] sm:$0xff] %v299_v4  ;;  %302 = vst [vmem:[%s227_s20 + $0x28] sm:$0xff] %v301_v5  ;;  %v303_v6 = vld [vmem:[%s1832_s19 + $0x60] sm:$0xff]  ;;  %v305_v7 = vld [vmem:[%s1832_s19 + $0x70] sm:$0xff] }
  0x1c   : > { %v307_v8 = vld [vmem:[%s1832_s19 + $0x80] sm:$0xff]  ;;  %304 = vst [vmem:[%s227_s20 + $0x30] sm:$0xff] %v303_v6  ;;  %306 = vst [vmem:[%s227_s20 + $0x38] sm:$0xff] %v305_v7  ;;  %v309_v9 = vld [vmem:[%s1832_s19 + $0x90] sm:$0xff] }
  0x1d   : > { %308 = vst [vmem:[%s227_s20 + $0x40] sm:$0xff] %v307_v8  ;;  %v311_v10 = vld [vmem:[%s1832_s19 + $0xa0] sm:$0xff]  ;;  %v313_v11 = vld [vmem:[%s1832_s19 + $0xb0] sm:$0xff]  ;;  %310 = vst [vmem:[%s227_s20 + $0x48] sm:$0xff] %v309_v9 }
  0x1e   : > { %312 = vst [vmem:[%s227_s20 + $0x50] sm:$0xff] %v311_v10  ;;  %314 = vst [vmem:[%s227_s20 + $0x58] sm:$0xff] %v313_v11  ;;  %v315_v12 = vld [vmem:[%s1832_s19 + $0xc0] sm:$0xff]  ;;  %v317_v13 = vld [vmem:[%s1832_s19 + $0xd0] sm:$0xff] }
  0x1f   : > { %v319_v14 = vld [vmem:[%s1832_s19 + $0xe0] sm:$0xff]  ;;  %316 = vst [vmem:[%s227_s20 + $0x60] sm:$0xff] %v315_v12  ;;  %318 = vst [vmem:[%s227_s20 + $0x68] sm:$0xff] %v317_v13  ;;  %v321_v15 = vld [vmem:[%s1832_s19 + $0xf0] sm:$0xff] }
  0x20   : > { %320 = vst [vmem:[%s227_s20 + $0x70] sm:$0xff] %v319_v14  ;;  %322 = vst [vmem:[%s227_s20 + $0x78] sm:$0xff] %v321_v15 }
  0x21 PF: > { %p1305_p7 = scmp.ge.s32.totalorder %s1734_s27, 1  ;;  %p345_p8 = scmp.lt.s32.totalorder %s1734_s27, 9 }
  0x23   : > { %p346_p9 = pnand %p1305_p7, %p345_p8 }
  0x24   : > { %s352_s30 = sand.u32 (!%p346_p9), 1, %s1710_s21   ;;  %s1307_s7 = sshll.u32 (!%p346_p9), %s1718_s23, 5 }
  0x25   : > { %349 = sbr.rel (%p346_p9) target bundleno = 672 (0x2a0), region = 78  ;;  %s1306_s8 = sshll.u32 (!%p346_p9), %s352_s30, 7 }
  0x26   : > { %p394_p10 = scmp.lt.s32.totalorder (!%p346_p9), %s1307_s7, 63  ;;  %s1309_s9 = sshll.u32 (!%p346_p9), %s1722_s24, 4 }
  0x27   : > { %p400_p11 = scmp.lt.s32.totalorder (!%p346_p9), %s1309_s9, 63  ;;  %s1870_s24 = scalar_lea.vmem (!%p346_p9), [#allocation3], %s1306_s8 }
  0x28   : > { %p1313_p12 = scmp.ne.s32.totalorder (!%p346_p9), %s1718_s23, 0 }
  0x2c   : > { %s2170_s7 = smov (!%p394_p10, %s1307_s7), 63  ;;  %s2172_s9 = smov (!%p400_p11, %s1309_s9), 63 }
  0x2d   : > { %s1308_s11 = sshll.u32 %s2170_s7, 2  ;;  %s1310_s15 = sshll.u32 %s2172_s9, 2  ;;  %v1736_v16 = vmov (!%p1313_p12), 0.0  }
  0x2e   : > { %s1858_s14 = scalar_lea.vmem %s2151_s1, %s1308_s11  ;;  %s1863_s18 = scalar_lea.vmem %s2153_s3, %s1310_s15  ;;  %416 = vst [vmem:[#allocation2] sm:$0xff] (!%p1313_p12), %v1736_v16  ;;  %417 = vst [vmem:[#allocation2 + $0x8] sm:$0xff] (!%p1313_p12), %v1736_v16 }
  0x2f   : > { %s1868_s20 = scalar_lea.vmem %s2156_s6, %s1310_s15  ;;  %415 = sbr.rel (%p1313_p12) target bundleno = 54 (0x36), region = 86  ;;  %418 = vst [vmem:[#allocation2 + $0x10] sm:$0xff] (!%p1313_p12), %v1736_v16  ;;  %419 = vst [vmem:[#allocation2 + $0x18] sm:$0xff] (!%p1313_p12), %v1736_v16 }
  0x30   : > { %420 = vst [vmem:[#allocation2 + $0x20] sm:$0xff] (!%p1313_p12), %v1736_v16  ;;  %421 = vst [vmem:[#allocation2 + $0x28] sm:$0xff] (!%p1313_p12), %v1736_v16 }
  0x31   : > { %422 = vst [vmem:[#allocation2 + $0x30] sm:$0xff] (!%p1313_p12), %v1736_v16  ;;  %423 = vst [vmem:[#allocation2 + $0x38] sm:$0xff] (!%p1313_p12), %v1736_v16 }
  0x32   : > { %424 = vst [vmem:[#allocation2 + $0x40] sm:$0xff] (!%p1313_p12), %v1736_v16  ;;  %425 = vst [vmem:[#allocation2 + $0x48] sm:$0xff] (!%p1313_p12), %v1736_v16 }
  0x33   : > { %426 = vst [vmem:[#allocation2 + $0x50] sm:$0xff] (!%p1313_p12), %v1736_v16  ;;  %427 = vst [vmem:[#allocation2 + $0x58] sm:$0xff] (!%p1313_p12), %v1736_v16 }
  0x34   : > { %428 = vst [vmem:[#allocation2 + $0x60] sm:$0xff] (!%p1313_p12), %v1736_v16  ;;  %429 = vst [vmem:[#allocation2 + $0x68] sm:$0xff] (!%p1313_p12), %v1736_v16 }
  0x35   : > { %430 = vst [vmem:[#allocation2 + $0x70] sm:$0xff] (!%p1313_p12), %v1736_v16  ;;  %431 = vst [vmem:[#allocation2 + $0x78] sm:$0xff] (!%p1313_p12), %v1736_v16 }
  0x36 PF: > { %v1608_v17 = vld [vmem:[%s1858_s14 + $0x40] sm:$0xff]   ;;  %v1610_v19 = vld [vmem:[%s1858_s14 + $0x48] sm:$0xff]   ;;  %v1612_v21 = vld [vmem:[%s1858_s14 + $0x50] sm:$0xff]   ;;  %p1346_p13 = scmp.ne.s32.totalorder %s1718_s23, 1 }
  0x37   : > { %v1609_v18 = vld [vmem:[%s1858_s14] sm:$0xff]   ;;  %1471 = vmatprep.subr.bf16.mxu0 %v1608_v17  ;;  %1535 = vmatprep.subr.bf16.mxu1 %v1608_v17  ;;  %v1611_v20 = vld [vmem:[%s1858_s14 + $0x8] sm:$0xff]   ;;  %v1613_v22 = vld [vmem:[%s1858_s14 + $0x10] sm:$0xff]  }
  0x38   : > { %1472 = vmatpush3.bf16.msra.mxu0 %v1609_v18  ;;  %1543 = vmatpush3.bf16.msra.mxu1 %v1609_v18  ;;  %v1614_v23 = vld [vmem:[%s1858_s14 + $0x58] sm:$0xff]   ;;  %v1616_v25 = vld [vmem:[%s1858_s14 + $0x60] sm:$0xff]   ;;  %v1618_v27 = vld [vmem:[%s1858_s14 + $0x68] sm:$0xff]  }
  0x39   : > { %1473 = vmatprep.subr.bf16.mxu0 %v1610_v19  ;;  %1536 = vmatprep.subr.bf16.mxu1 %v1610_v19  ;;  %v1615_v24 = vld [vmem:[%s1858_s14 + $0x18] sm:$0xff]   ;;  %v1617_v26 = vld [vmem:[%s1858_s14 + $0x20] sm:$0xff]   ;;  %v1619_v30 = vld [vmem:[%s1858_s14 + $0x28] sm:$0xff]  }
  0x3a   : > { %v1626_v28 = vld [vmem:[%s1870_s24 + $0x4] ss:$8 sps:$4 sm:$0xff]   ;;  %v1620_v31 = vld [vmem:[%s1858_s14 + $0x70] sm:$0xff]   ;;  %v1622_v33 = vld [vmem:[%s1858_s14 + $0x78] sm:$0xff]  }
  0x3b   : > { %v1629_v29 = vld [vmem:[%s1870_s24 + $0x44] ss:$8 sps:$4 sm:$0xff]   ;;  %704 = vmatprep.mubr.bf16.mxu0 %v1626_v28  ;;  %v1621_v32 = vld [vmem:[%s1858_s14 + $0x30] sm:$0xff]   ;;  %v1623_v34 = vld [vmem:[%s1858_s14 + $0x38] sm:$0xff]  }
  0x3c   : > { %1474 = vmatpush3.bf16.msra.mxu0 %v1611_v20  ;;  %1544 = vmatpush3.bf16.msra.mxu1 %v1611_v20  ;;  %v1624_v35 = vld [vmem:[%s1870_s24] ss:$8 sps:$4 sm:$0xff]   ;;  %v1630_v37 = vld [vmem:[%s1870_s24 + $0x14] ss:$8 sps:$4 sm:$0xff]   ;;  %v1634_v39 = vld [vmem:[%s1870_s24 + $0x10] ss:$8 sps:$4 sm:$0xff]  }
  0x3d   : > { %1475 = vmatprep.subr.bf16.mxu0 %v1612_v21  ;;  %1537 = vmatprep.subr.bf16.mxu1 %v1612_v21  ;;  %v1627_v36 = vld [vmem:[%s1870_s24 + $0x40] ss:$8 sps:$4 sm:$0xff]   ;;  %v1632_v38 = vld [vmem:[%s1870_s24 + $0x54] ss:$8 sps:$4 sm:$0xff]   ;;  %v1635_v40 = vld [vmem:[%s1870_s24 + $0x50] ss:$8 sps:$4 sm:$0xff]  }
  0x3e   : > { %736 = vmatprep.mubr.bf16.mxu1 %v1629_v29  ;;  %v1636_v41 = vld [vmem:[%s1870_s24 + $0x24] ss:$8 sps:$4 sm:$0xff]   ;;  %v1640_v43 = vld [vmem:[%s1870_s24 + $0x20] ss:$8 sps:$4 sm:$0xff]   ;;  %v1642_v45 = vld [vmem:[%s1870_s24 + $0x34] ss:$8 sps:$4 sm:$0xff]  }
  0x3f   : > { %v1638_v42 = vld [vmem:[%s1870_s24 + $0x64] ss:$8 sps:$4 sm:$0xff]   ;;  %v1641_v44 = vld [vmem:[%s1870_s24 + $0x60] ss:$8 sps:$4 sm:$0xff]   ;;  %v1644_v46 = vld [vmem:[%s1870_s24 + $0x74] ss:$8 sps:$4 sm:$0xff]  }
  0x40   : > { %1476 = vmatpush3.bf16.msra.mxu0 %v1613_v22  ;;  %1545 = vmatpush3.bf16.msra.mxu1 %v1613_v22  ;;  %v1646_v47 = vld [vmem:[%s1870_s24 + $0x30] ss:$8 sps:$4 sm:$0xff]   ;;  %v432_v51 = vld [vmem:[#allocation2] sm:$0xff]  ;;  %v433_v59 = vld [vmem:[#allocation2 + $0x8] sm:$0xff] }
  0x41   : > { %1477 = vmatprep.subr.bf16.mxu0 %v1614_v23  ;;  %1538 = vmatprep.subr.bf16.mxu1 %v1614_v23  ;;  %v1647_v48 = vld [vmem:[%s1870_s24 + $0x70] ss:$8 sps:$4 sm:$0xff]   ;;  %v440_v53 = vld [vmem:[#allocation2 + $0x40] sm:$0xff]  ;;  %v441_v61 = vld [vmem:[#allocation2 + $0x48] sm:$0xff] }
  0x42   : > { %v434_v7 = vld [vmem:[#allocation2 + $0x10] sm:$0xff]  ;;  %v435_v15 = vld [vmem:[#allocation2 + $0x18] sm:$0xff]  ;;  %v444_v29 = vld [vmem:[#allocation2 + $0x60] sm:$0xff] }
  0x43   : > { %v442_v9 = vld [vmem:[#allocation2 + $0x50] sm:$0xff]  ;;  %v443_v17 = vld [vmem:[#allocation2 + $0x58] sm:$0xff] }
  0x44   : > { %1478 = vmatpush3.bf16.msra.mxu0 %v1615_v24  ;;  %1546 = vmatpush3.bf16.msra.mxu1 %v1615_v24 }
  0x45   : > { %1479 = vmatprep.subr.bf16.mxu0 %v1616_v25  ;;  %1539 = vmatprep.subr.bf16.mxu1 %v1616_v25 }
  0x48   : > { %1480 = vmatpush3.bf16.msra.mxu0 %v1617_v26  ;;  %1547 = vmatpush3.bf16.msra.mxu1 %v1617_v26 }
  0x49   : > { %1481 = vmatprep.subr.bf16.mxu0 %v1618_v27  ;;  %1540 = vmatprep.subr.bf16.mxu1 %v1618_v27  ;;  %v436_v27 = vld [vmem:[#allocation2 + $0x20] sm:$0xff] }
  0x4c   : > { %1482 = vmatpush3.bf16.msra.mxu0 %v1619_v30  ;;  %1548 = vmatpush3.bf16.msra.mxu1 %v1619_v30 }
  0x4d   : > { %1483 = vmatprep.subr.bf16.mxu0 %v1620_v31  ;;  %1541 = vmatprep.subr.bf16.mxu1 %v1620_v31 }
  0x50   : > { %1484 = vmatpush3.bf16.msra.mxu0 %v1621_v32  ;;  %1549 = vmatpush3.bf16.msra.mxu1 %v1621_v32 }
  0x51   : > { %1485 = vmatprep.subr.bf16.mxu0 %v1622_v33  ;;  %1542 = vmatprep.subr.bf16.mxu1 %v1622_v33 }
  0x54   : > { %1486 = vmatpush3.bf16.msra.mxu0 %v1623_v34  ;;  %1550 = vmatpush3.bf16.msra.mxu1 %v1623_v34 }
  0x57   : > { %705 = vmatmul.mubr.bf16.vlgmr.msra.gmra.mrb[0].mxu0 %v1624_v35  ;;  %737 = vmatmul.mubr.bf16.vlgmr.msra.gmra.mrb[0].mxu1 %v1627_v36  ;;  %v437_v35 = vld [vmem:[#allocation2 + $0x28] sm:$0xff] }
  0x58   : > { %712 = vmatprep.mubr.bf16.mxu0 %v1630_v37  ;;  %744 = vmatprep.mubr.bf16.mxu1 %v1632_v38  ;;  %v445_v37 = vld [vmem:[#allocation2 + $0x68] sm:$0xff] }
  0x5f   : > { %713 = vmatmul.mubr.bf16.gmra.mrb[4].mxu0 %v1634_v39  ;;  %745 = vmatmul.mubr.bf16.gmra.mrb[4].mxu1 %v1635_v40 }
  0x60   : > { %720 = vmatprep.mubr.bf16.mxu0 %v1636_v41  ;;  %752 = vmatprep.mubr.bf16.mxu1 %v1638_v42 }
  0x67   : > { %721 = vmatmul.mubr.bf16.gmra.mrb[8].mxu0 %v1640_v43  ;;  %753 = vmatmul.mubr.bf16.gmra.mrb[8].mxu1 %v1641_v44 }
  0x68   : > { %728 = vmatprep.mubr.bf16.mxu0 %v1642_v45  ;;  %760 = vmatprep.mubr.bf16.mxu1 %v1644_v46 }
  0x6f   : > { %729 = vmatmul.mubr.bf16.gmra.mrb[12].mxu0 %v1646_v47  ;;  %761 = vmatmul.mubr.bf16.gmra.mrb[12].mxu1 %v1647_v48  ;;  %v438_v47 = vld [vmem:[#allocation2 + $0x30] sm:$0xff] }
 0x12a   : > { %v1487_v49 = vpop.f32.mrb[0].mxu0  ;;  %v1511_v50 = vpop.f32.mrb[0].mxu1 }
 0x12b   : > { %v1488_v52 = vpop.f32.mrb[1].mxu0  ;;  %v1512_v54 = vpop.f32.mrb[1].mxu1 }
 0x12c   : > { %v1489_v55 = vadd.f32 %v1488_v52, %v1487_v49  ;;  %v1513_v56 = vadd.f32 %v1512_v54, %v1511_v50  ;;  %v1490_v57 = vpop.f32.mrb[2].mxu0  ;;  %v1514_v58 = vpop.f32.mrb[2].mxu1  ;;  %v446_v49 = vld [vmem:[#allocation2 + $0x70] sm:$0xff] }
 0x12d   : > { %v1491_v60 = vpop.f32.mrb[3].mxu0  ;;  %v1515_v62 = vpop.f32.mrb[3].mxu1 }
 0x12e   : > { %v769_v63 = vadd.f32 %v1489_v55, %v432_v51  ;;  %v777_v0 = vadd.f32 %v1513_v56, %v440_v53  ;;  %v1492_v1 = vadd.f32 %v1491_v60, %v1490_v57  ;;  %v1516_v2 = vadd.f32 %v1515_v62, %v1514_v58  ;;  %v439_v55 = vld [vmem:[#allocation2 + $0x38] sm:$0xff] }
 0x12f   : > { %v447_v57 = vld [vmem:[#allocation2 + $0x78] sm:$0xff] }
 0x130   : > { %785 = vst [vmem:[#allocation2] sm:$0xff] %v769_v63  ;;  %793 = vst [vmem:[#allocation2 + $0x40] sm:$0xff] %v777_v0  ;;  %v770_v3 = vadd.f32 %v1492_v1, %v433_v59  ;;  %v778_v4 = vadd.f32 %v1516_v2, %v441_v61  ;;  %v1909_v2 = vld [vmem:[%s2152_s2] ss:$0 sm:$0xff] (!%p1346_p13) }
 0x132   : > { %786 = vst [vmem:[#allocation2 + $0x8] sm:$0xff] %v770_v3  ;;  %794 = vst [vmem:[#allocation2 + $0x48] sm:$0xff] %v778_v4  ;;  %v1493_v5 = vpop.f32.mrb[4].mxu0  ;;  %v1517_v6 = vpop.f32.mrb[4].mxu1  ;;  %v1386_v3 = vld [vmem:[%s1863_s18] sm:$0xff] (!%p1346_p13)  }
 0x133   : > { %v1494_v8 = vpop.f32.mrb[5].mxu0  ;;  %v1518_v10 = vpop.f32.mrb[5].mxu1 }
 0x134   : > { %v1495_v11 = vadd.f32 %v1494_v8, %v1493_v5  ;;  %v1519_v12 = vadd.f32 %v1518_v10, %v1517_v6  ;;  %v1496_v13 = vpop.f32.mrb[6].mxu0  ;;  %v1520_v14 = vpop.f32.mrb[6].mxu1  ;;  %v1387_v5 = vunpack.c.l.bf16 (!%p1346_p13), %v1386_v3 }
 0x135   : > { %v1497_v16 = vpop.f32.mrb[7].mxu0  ;;  %v1521_v18 = vpop.f32.mrb[7].mxu1 }
 0x136   : > { %v771_v19 = vadd.f32 %v1495_v11, %v434_v7  ;;  %v779_v20 = vadd.f32 %v1519_v12, %v442_v9  ;;  %v1498_v21 = vadd.f32 %v1497_v16, %v1496_v13  ;;  %v1522_v22 = vadd.f32 %v1521_v18, %v1520_v14  ;;  %v1457_v7 = vld [vmem:[%s1863_s18 + $0x8] sm:$0xff] (!%p1346_p13)   ;;  %v1458_v16 = vld [vmem:[%s1863_s18 + $0x10] sm:$0xff] (!%p1346_p13)  }
 0x137   : > { %v805_v1 = vld [vmem:[#allocation2] sm:$0xff] (!%p1346_p13)  ;;  %v1388_v9 = vunpack.c.h.bf16 (!%p1346_p13), %v1386_v3  ;;  %v1391_v11 = vunpack.c.l.bf16 (!%p1346_p13), %v1457_v7  ;;  %v1392_v14 = vunpack.c.h.bf16 (!%p1346_p13), %v1457_v7 }
 0x138   : > { %787 = vst [vmem:[#allocation2 + $0x10] sm:$0xff] %v771_v19  ;;  %795 = vst [vmem:[#allocation2 + $0x50] sm:$0xff] %v779_v20  ;;  %v772_v23 = vadd.f32 %v1498_v21, %v435_v15  ;;  %v780_v24 = vadd.f32 %v1522_v22, %v443_v17  ;;  %v828_v4 = vadd.f32 (!%p1346_p13), %v1909_v2, %v805_v1 }
 0x139   : > { %v806_v8 = vld [vmem:[#allocation2 + $0x8] sm:$0xff] (!%p1346_p13) }
 0x13a   : > { %788 = vst [vmem:[#allocation2 + $0x18] sm:$0xff] %v772_v23  ;;  %796 = vst [vmem:[#allocation2 + $0x58] sm:$0xff] %v780_v24  ;;  %v1499_v25 = vpop.f32.mrb[8].mxu0  ;;  %v1523_v26 = vpop.f32.mrb[8].mxu1  ;;  %v829_v12 = vadd.f32 (!%p1346_p13), %v1909_v2, %v806_v8  ;;  %v1917_v17 = vadd.f32 (!%p1346_p13), %v1387_v5, %v828_v4  ;;  %v1395_v23 = vunpack.c.l.bf16 (!%p1346_p13), %v1458_v16 }
 0x13b   : > { %v1500_v28 = vpop.f32.mrb[9].mxu0  ;;  %v1524_v30 = vpop.f32.mrb[9].mxu1 }
 0x13c   : > { %v1501_v31 = vadd.f32 %v1500_v28, %v1499_v25  ;;  %v1525_v32 = vadd.f32 %v1524_v30, %v1523_v26  ;;  %v1502_v33 = vpop.f32.mrb[10].mxu0  ;;  %v1526_v34 = vpop.f32.mrb[10].mxu1  ;;  %892 = vadd.xlane.f32.xlu0 (!%p1346_p13), %v1917_v17  ;;  %v1923_v21 = vadd.f32 (!%p1346_p13), %v1388_v9, %v829_v12  ;;  %v1396_v26 = vunpack.c.h.bf16 (!%p1346_p13), %v1458_v16  ;;  %v1459_v28 = vld [vmem:[%s1863_s18 + $0x18] sm:$0xff] (!%p1346_p13)  }
 0x13d   : > { %v1503_v36 = vpop.f32.mrb[11].mxu0  ;;  %v1527_v38 = vpop.f32.mrb[11].mxu1 }
 0x13e   : > { %v773_v39 = vadd.f32 %v1501_v31, %v436_v27  ;;  %v781_v40 = vadd.f32 %v1525_v32, %v444_v29  ;;  %v1504_v41 = vadd.f32 %v1503_v36, %v1502_v33  ;;  %v1528_v42 = vadd.f32 %v1527_v38, %v1526_v34  ;;  %v813_v36 = vld [vmem:[#allocation2 + $0x40] sm:$0xff] (!%p1346_p13)  ;;  %v814_v38 = vld [vmem:[#allocation2 + $0x48] sm:$0xff] (!%p1346_p13) }
 0x13f   : > { %v807_v6 = vld [vmem:[#allocation2 + $0x10] sm:$0xff] (!%p1346_p13)  ;;  %v1399_v32 = vunpack.c.l.bf16 (!%p1346_p13), %v1459_v28 }
 0x140   : > { %789 = vst [vmem:[#allocation2 + $0x20] sm:$0xff] %v773_v39  ;;  %797 = vst [vmem:[#allocation2 + $0x60] sm:$0xff] %v781_v40  ;;  %v774_v43 = vadd.f32 %v1504_v41, %v437_v35  ;;  %v782_v44 = vadd.f32 %v1528_v42, %v445_v37  ;;  %v830_v10 = vadd.f32 (!%p1346_p13), %v1909_v2, %v807_v6  ;;  %894 = vadd.xlane.f32.xlu0 (!%p1346_p13), %v1923_v21  ;;  %v1460_v37 = vld [vmem:[%s1863_s18 + $0x20] sm:$0xff] (!%p1346_p13)  }
 0x141   : > { %v808_v13 = vld [vmem:[#allocation2 + $0x18] sm:$0xff] (!%p1346_p13)  ;;  %v1400_v35 = vunpack.c.h.bf16 (!%p1346_p13), %v1459_v28  ;;  %v836_v40 = vadd.f32 (!%p1346_p13), %v1909_v2, %v813_v36  ;;  %v1403_v41 = vunpack.c.l.bf16 (!%p1346_p13), %v1460_v37 }
 0x142   : > { %790 = vst [vmem:[#allocation2 + $0x28] sm:$0xff] %v774_v43  ;;  %798 = vst [vmem:[#allocation2 + $0x68] sm:$0xff] %v782_v44  ;;  %v1505_v45 = vpop.f32.mrb[12].mxu0  ;;  %v1529_v46 = vpop.f32.mrb[12].mxu1  ;;  %v831_v18 = vadd.f32 (!%p1346_p13), %v1909_v2, %v808_v13  ;;  %v1920_v20 = vadd.f32 (!%p1346_p13), %v1391_v11, %v830_v10  ;;  %v837_v43 = vadd.f32 (!%p1346_p13), %v1909_v2, %v814_v38  ;;  %v1404_v44 = vunpack.c.h.bf16 (!%p1346_p13), %v1460_v37 }
 0x143   : > { %v1506_v48 = vpop.f32.mrb[13].mxu0  ;;  %v1530_v50 = vpop.f32.mrb[13].mxu1 }
 0x144   : > { %v1507_v51 = vadd.f32 %v1506_v48, %v1505_v45  ;;  %v1531_v52 = vadd.f32 %v1530_v50, %v1529_v46  ;;  %v1508_v53 = vpop.f32.mrb[14].mxu0  ;;  %v1532_v54 = vpop.f32.mrb[14].mxu1  ;;  %804 = sbr.rel (%p1346_p13) target bundleno = 672 (0x2a0), region = 90  ;;  %896 = vadd.xlane.f32.xlu1 (!%p1346_p13), %v1920_v20  ;;  %v1927_v24 = vadd.f32 (!%p1346_p13), %v1392_v14, %v831_v18  ;;  %v815_v45 = vld [vmem:[#allocation2 + $0x50] sm:$0xff] (!%p1346_p13)  ;;  %v1461_v46 = vld [vmem:[%s1863_s18 + $0x28] sm:$0xff] (!%p1346_p13)   ;;  %v1950_v48 = vadd.f32 (!%p1346_p13), %v1403_v41, %v836_v40 }
 0x145   : > { %v1509_v56 = vpop.f32.mrb[15].mxu0  ;;  %v1533_v58 = vpop.f32.mrb[15].mxu1  ;;  %v1407_v50 = vunpack.c.l.bf16 (!%p1346_p13), %v1461_v46 }
 0x146   : > { %v775_v59 = vadd.f32 %v1507_v51, %v438_v47  ;;  %v783_v60 = vadd.f32 %v1531_v52, %v446_v49  ;;  %v1510_v61 = vadd.f32 %v1509_v56, %v1508_v53  ;;  %v1534_v62 = vadd.f32 %v1533_v58, %v1532_v54  ;;  %v816_v47 = vld [vmem:[#allocation2 + $0x58] sm:$0xff] (!%p1346_p13) }
 0x147   : > { %v809_v15 = vld [vmem:[#allocation2 + $0x20] sm:$0xff] (!%p1346_p13)  ;;  %v838_v49 = vadd.f32 (!%p1346_p13), %v1909_v2, %v815_v45  ;;  %v1954_v51 = vadd.f32 (!%p1346_p13), %v1404_v44, %v837_v43  ;;  %v839_v52 = vadd.f32 (!%p1346_p13), %v1909_v2, %v816_v47  ;;  %v1408_v53 = vunpack.c.h.bf16 (!%p1346_p13), %v1461_v46 }
 0x148   : > { %791 = vst [vmem:[#allocation2 + $0x30] sm:$0xff] %v775_v59  ;;  %799 = vst [vmem:[#allocation2 + $0x70] sm:$0xff] %v783_v60  ;;  %v776_v63 = vadd.f32 %v1510_v61, %v439_v55  ;;  %v784_v0 = vadd.f32 %v1534_v62, %v447_v57  ;;  %v832_v22 = vadd.f32 (!%p1346_p13), %v1909_v2, %v809_v15  ;;  %898 = vadd.xlane.f32.xlu1 (!%p1346_p13), %v1927_v24  ;;  %v817_v54 = vld [vmem:[#allocation2 + $0x60] sm:$0xff] (!%p1346_p13)  ;;  %v1462_v55 = vld [vmem:[%s1863_s18 + $0x30] sm:$0xff] (!%p1346_p13)  }
 0x149   : > { %v810_v19 = vld [vmem:[#allocation2 + $0x28] sm:$0xff] (!%p1346_p13)  ;;  %v1959_v57 = vadd.f32 (!%p1346_p13), %v1407_v50, %v838_v49  ;;  %v840_v58 = vadd.f32 (!%p1346_p13), %v1909_v2, %v817_v54  ;;  %v1411_v59 = vunpack.c.l.bf16 (!%p1346_p13), %v1462_v55  ;;  %v1963_v60 = vadd.f32 (!%p1346_p13), %v1408_v53, %v839_v52 }
 0x14a   : > { %792 = vst [vmem:[#allocation2 + $0x38] sm:$0xff] %v776_v63  ;;  %800 = vst [vmem:[#allocation2 + $0x78] sm:$0xff] %v784_v0  ;;  %v833_v25 = vadd.f32 (!%p1346_p13), %v1909_v2, %v810_v19  ;;  %v1932_v30 = vadd.f32 (!%p1346_p13), %v1395_v23, %v832_v22  ;;  %v818_v56 = vld [vmem:[#allocation2 + $0x68] sm:$0xff] (!%p1346_p13)  ;;  %v1412_v62 = vunpack.c.h.bf16 (!%p1346_p13), %v1462_v55  ;;  %v1463_v0 = vld [vmem:[%s1863_s18 + $0x38] sm:$0xff] (!%p1346_p13)  }
 0x14b   : > { %v841_v61 = vadd.f32 %v1909_v2, %v818_v56  ;;  %v1968_v3 = vadd.f32 %v1411_v59, %v840_v58  ;;  %v1415_v5 = vunpack.c.l.bf16 %v1463_v0  ;;  %v1416_v8 = vunpack.c.h.bf16 %v1463_v0 }
 0x14c   : > { %v1936_v33 = vadd.f32 %v1396_v26, %v833_v25  ;;  %900 = vadd.xlane.f32.xlu0 %v1932_v30 }
 0x14d   : > { %v1972_v6 = vadd.f32 %v1412_v62, %v841_v61 }
 0x14e   : > { %902 = vadd.xlane.f32.xlu1 %v1936_v33 }
 0x14f   : > { %v811_v27 = vld [vmem:[#allocation2 + $0x30] sm:$0xff] }
 0x150   : > { %v834_v31 = vadd.f32 %v1909_v2, %v811_v27  ;;  %v819_v63 = vld [vmem:[#allocation2 + $0x70] sm:$0xff] }
 0x151   : > { %v812_v29 = vld [vmem:[#allocation2 + $0x38] sm:$0xff]  ;;  %v842_v4 = vadd.f32 %v1909_v2, %v819_v63 }
 0x152   : > { %v835_v34 = vadd.f32 %v1909_v2, %v812_v29  ;;  %v1941_v39 = vadd.f32 %v1399_v32, %v834_v31  ;;  %v820_v1 = vld [vmem:[#allocation2 + $0x78] sm:$0xff] }
 0x153   : > { %v843_v7 = vadd.f32 %v1909_v2, %v820_v1  ;;  %v1976_v9 = vadd.f32 %v1415_v5, %v842_v4 }
 0x154   : > { %v1945_v42 = vadd.f32 %v1400_v35, %v835_v34  ;;  %904 = vadd.xlane.f32.xlu0 %v1941_v39 }
 0x155   : > { %v1979_v10 = vadd.f32 %v1416_v8, %v843_v7 }
 0x156   : > { %906 = vadd.xlane.f32.xlu1 %v1945_v42 }
 0x158   : > { %908 = vadd.xlane.f32.xlu0 %v1950_v48 }
 0x15a   : > { %910 = vadd.xlane.f32.xlu1 %v1954_v51 }
 0x15c   : > { %912 = vadd.xlane.f32.xlu0 %v1959_v57 }
 0x15e   : > { %914 = vadd.xlane.f32.xlu1 %v1963_v60 }
 0x160   : > { %916 = vadd.xlane.f32.xlu0 %v1968_v3 }
 0x162   : > { %918 = vadd.xlane.f32.xlu1 %v1972_v6 }
 0x164   : > { %920 = vadd.xlane.f32.xlu0 %v1976_v9 }
 0x166   : > { %922 = vadd.xlane.f32.xlu1 %v1979_v10 }
 0x1c9   : > { %v893_v11 = vpop.xlane.xlu0 %892 }
 0x1ca   : > { %v925_v12 = vmul.f32 0.0078125, %v893_v11 }
 0x1cc   : > { %v1984_v15 = vsub.f32 %v1917_v17, %v925_v12 }
 0x1cd   : > { %v895_v16 = vpop.xlane.xlu0 %894 }
 0x1ce   : > { %v926_v18 = vmul.f32 0.0078125, %v895_v16  ;;  %v957_v19 = vmul.f32 %v1984_v15, %v1984_v15 }
 0x1d0   : > { %v1992_v25 = vsub.f32 %v1923_v21, %v926_v18  ;;  %973 = vadd.xlane.f32.xlu0 %v957_v19 }
 0x1d1   : > { %v897_v13 = vpop.xlane.xlu1 %896 }
 0x1d2   : > { %v927_v14 = vmul.f32 0.0078125, %v897_v13  ;;  %v958_v28 = vmul.f32 %v1992_v25, %v1992_v25 }
 0x1d4   : > { %v1987_v2 = vsub.f32 %v1920_v20, %v927_v14  ;;  %975 = vadd.xlane.f32.xlu1 %v958_v28 }
 0x1d5   : > { %v899_v22 = vpop.xlane.xlu1 %898 }
 0x1d6   : > { %v928_v23 = vmul.f32 0.0078125, %v899_v22  ;;  %v959_v26 = vmul.f32 %v1987_v2, %v1987_v2 }
 0x1d8   : > { %v1997_v17 = vsub.f32 %v1927_v24, %v928_v23  ;;  %977 = vadd.xlane.f32.xlu0 %v959_v26 }
 0x1d9   : > { %v901_v27 = vpop.xlane.xlu0 %900 }
 0x1da   : > { %v929_v20 = vmul.f32 0.0078125, %v901_v27  ;;  %v960_v21 = vmul.f32 %v1997_v17, %v1997_v17 }
 0x1db   : > { %v903_v29 = vpop.xlane.xlu1 %902 }
 0x1dc   : > { %v930_v31 = vmul.f32 0.0078125, %v903_v29  ;;  %v2002_v32 = vsub.f32 %v1932_v30, %v929_v20  ;;  %979 = vadd.xlane.f32.xlu1 %v960_v21 }
 0x1de   : > { %v2007_v34 = vsub.f32 %v1936_v33, %v930_v31  ;;  %v961_v36 = vmul.f32 %v2002_v32, %v2002_v32 }
 0x1e0   : > { %981 = vadd.xlane.f32.xlu0 %v961_v36  ;;  %v962_v30 = vmul.f32 %v2007_v34, %v2007_v34 }
 0x1e1   : > { %v905_v24 = vpop.xlane.xlu0 %904 }
 0x1e2   : > { %v931_v35 = vmul.f32 0.0078125, %v905_v24  ;;  %983 = vadd.xlane.f32.xlu1 %v962_v30 }
 0x1e3   : > { %v907_v37 = vpop.xlane.xlu1 %906 }
 0x1e4   : > { %v932_v38 = vmul.f32 0.0078125, %v907_v37  ;;  %v2012_v40 = vsub.f32 %v1941_v39, %v931_v35 }
 0x1e5   : > { %v909_v33 = vpop.xlane.xlu0 %908 }
 0x1e6   : > { %v2017_v41 = vsub.f32 %v1945_v42, %v932_v38  ;;  %v933_v43 = vmul.f32 0.0078125, %v909_v33  ;;  %v963_v44 = vmul.f32 %v2012_v40, %v2012_v40 }
 0x1e7   : > { %v911_v45 = vpop.xlane.xlu1 %910 }
 0x1e8   : > { %v934_v46 = vmul.f32 0.0078125, %v911_v45  ;;  %v2022_v47 = vsub.f32 %v1950_v48, %v933_v43  ;;  %985 = vadd.xlane.f32.xlu0 %v963_v44  ;;  %v964_v39 = vmul.f32 %v2017_v41, %v2017_v41  ;;  %v2067_v45 = vld [vmem:[%s2154_s4] ss:$0 sm:$0xff] }
 0x1e9   : > { %v913_v42 = vpop.xlane.xlu0 %912 }
 0x1ea   : > { %v2027_v49 = vsub.f32 %v1954_v51, %v934_v46  ;;  %v935_v50 = vmul.f32 0.0078125, %v913_v42  ;;  %v965_v52 = vmul.f32 %v2022_v47, %v2022_v47  ;;  %987 = vadd.xlane.f32.xlu1 %v964_v39 }
 0x1eb   : > { %v915_v53 = vpop.xlane.xlu1 %914 }
 0x1ec   : > { %v936_v54 = vmul.f32 0.0078125, %v915_v53  ;;  %v2032_v55 = vsub.f32 %v1959_v57, %v935_v50  ;;  %989 = vadd.xlane.f32.xlu0 %v965_v52  ;;  %v966_v48 = vmul.f32 %v2027_v49, %v2027_v49 }
 0x1ed   : > { %v917_v51 = vpop.xlane.xlu0 %916 }
 0x1ee   : > { %v2037_v56 = vsub.f32 %v1963_v60, %v936_v54  ;;  %v937_v58 = vmul.f32 0.0078125, %v917_v51  ;;  %v967_v59 = vmul.f32 %v2032_v55, %v2032_v55  ;;  %991 = vadd.xlane.f32.xlu1 %v966_v48 }
 0x1ef   : > { %v919_v61 = vpop.xlane.xlu1 %918 }
 0x1f0   : > { %v938_v62 = vmul.f32 0.0078125, %v919_v61  ;;  %v2042_v63 = vsub.f32 %v1968_v3, %v937_v58  ;;  %993 = vadd.xlane.f32.xlu0 %v967_v59  ;;  %v968_v57 = vmul.f32 %v2037_v56, %v2037_v56  ;;  %v2074_v58 = vld [vmem:[%s2155_s5] ss:$0 sm:$0xff] }
 0x1f1   : > { %v921_v60 = vpop.xlane.xlu0 %920 }
 0x1f2   : > { %v2047_v0 = vsub.f32 %v1972_v6, %v938_v62  ;;  %v939_v1 = vmul.f32 0.0078125, %v921_v60  ;;  %v969_v4 = vmul.f32 %v2042_v63, %v2042_v63  ;;  %995 = vadd.xlane.f32.xlu1 %v968_v57 }
 0x1f3   : > { %v923_v5 = vpop.xlane.xlu1 %922 }
 0x1f4   : > { %v940_v7 = vmul.f32 0.0078125, %v923_v5  ;;  %v2052_v8 = vsub.f32 %v1976_v9, %v939_v1  ;;  %997 = vadd.xlane.f32.xlu0 %v969_v4  ;;  %v970_v3 = vmul.f32 %v2047_v0, %v2047_v0 }
 0x1f6   : > { %v2057_v11 = vsub.f32 %v1979_v10, %v940_v7  ;;  %v971_v6 = vmul.f32 %v2052_v8, %v2052_v8  ;;  %999 = vadd.xlane.f32.xlu1 %v970_v3 }
 0x1f8   : > { %1001 = vadd.xlane.f32.xlu0 %v971_v6  ;;  %v972_v12 = vmul.f32 %v2057_v11, %v2057_v11 }
 0x1fa   : > { %1003 = vadd.xlane.f32.xlu1 %v972_v12 }
 0x25d   : > { %v974_v13 = vpop.xlane.xlu0 %973 }
 0x25e   : > { %v1005_v9 = vmul.f32 0.0078125, %v974_v13 }
 0x260   : > { %v1021_v14 = vadd.f32 1e-12, %v1005_v9 }
 0x261   : > { %v976_v16 = vpop.xlane.xlu1 %975 }
 0x262   : > { %1648 = vrsqrt.f32 %v1021_v14  ;;  %v1006_v19 = vmul.f32 0.0078125, %v976_v16 }
 0x264   : > { %v1022_v23 = vadd.f32 1e-12, %v1006_v19 }
 0x265   : > { %v978_v18 = vpop.xlane.xlu0 %977 }
 0x266   : > { %v1007_v22 = vmul.f32 0.0078125, %v978_v18  ;;  %1650 = vrsqrt.f32 %v1022_v23 }
 0x268   : > { %v1023_v10 = vadd.f32 1e-12, %v1007_v22 }
 0x269   : > { %v980_v26 = vpop.xlane.xlu1 %979 }
 0x26a   : > { %v1008_v20 = vmul.f32 0.0078125, %v980_v26  ;;  %1652 = vrsqrt.f32 %v1023_v10 }
 0x26c   : > { %v1024_v29 = vadd.f32 1e-12, %v1008_v20  ;;  %v1649_v37 = vpop.eup %1648 }
 0x26d   : > { %v982_v27 = vpop.xlane.xlu0 %981  ;;  %v1053_v33 = vmul.f32 %v1649_v37, %v1984_v15 }
 0x26e   : > { %v1009_v28 = vmul.f32 0.0078125, %v982_v27  ;;  %1654 = vrsqrt.f32 %v1024_v29 }
 0x26f   : > { %v984_v21 = vpop.xlane.xlu1 %983  ;;  %v1076_v54 = vmul.f32 %v2067_v45, %v1053_v33 }
 0x270   : > { %v1025_v31 = vadd.f32 1e-12, %v1009_v28  ;;  %v1010_v35 = vmul.f32 0.0078125, %v984_v21  ;;  %v1651_v42 = vpop.eup %1650 }
 0x271   : > { %v1054_v48 = vmul.f32 %v1651_v42, %v1992_v25  ;;  %v1099_v25 = vadd.f32 %v2074_v58, %v1076_v54 }
 0x272   : > { %1656 = vrsqrt.f32 %v1025_v31  ;;  %v1026_v38 = vadd.f32 1e-12, %v1010_v35 }
 0x273   : > { %v1077_v57 = vmul.f32 %v2067_v45, %v1054_v48 }
 0x274   : > { %1658 = vrsqrt.f32 %v1026_v38  ;;  %v1653_v53 = vpop.eup %1652 }
 0x275   : > { %v986_v24 = vpop.xlane.xlu0 %985  ;;  %v1055_v59 = vmul.f32 %v1653_v53, %v1987_v2  ;;  %v1100_v7 = vadd.f32 %v2074_v58, %v1077_v57 }
 0x276   : > { %v1011_v36 = vmul.f32 0.0078125, %v986_v24 }
 0x277   : > { %v988_v43 = vpop.xlane.xlu1 %987  ;;  %v1078_v3 = vmul.f32 %v2067_v45, %v1055_v59  ;;  %v1420_v14 = vpack.c.bf16 %v1100_v7, %v1099_v25 }
 0x278   : > { %v1027_v30 = vadd.f32 1e-12, %v1011_v36  ;;  %v1012_v46 = vmul.f32 0.0078125, %v988_v43  ;;  %v1655_v60 = vpop.eup %1654 }
 0x279   : > { %v990_v44 = vpop.xlane.xlu0 %989  ;;  %v1056_v6 = vmul.f32 %v1655_v60, %v1997_v17  ;;  %1421 = vst [vmem:[%s1868_s20] sm:$0xff] %v1420_v14   ;;  %v1101_v26 = vadd.f32 %v2074_v58, %v1078_v3 }
 0x27a   : > { %v1013_v39 = vmul.f32 0.0078125, %v990_v44  ;;  %1660 = vrsqrt.f32 %v1027_v30  ;;  %v1028_v50 = vadd.f32 1e-12, %v1012_v46 }
 0x27b   : > { %v992_v15 = vpop.xlane.xlu1 %991  ;;  %v1079_v16 = vmul.f32 %v2067_v45, %v1056_v6 }
 0x27c   : > { %v1029_v52 = vadd.f32 1e-12, %v1013_v39  ;;  %1662 = vrsqrt.f32 %v1028_v50  ;;  %v1014_v61 = vmul.f32 0.0078125, %v992_v15  ;;  %v1657_v5 = vpop.eup %1656 }
 0x27d   : > { %v994_v51 = vpop.xlane.xlu0 %993  ;;  %v1057_v13 = vmul.f32 %v1657_v5, %v2002_v32  ;;  %v1102_v17 = vadd.f32 %v2074_v58, %v1079_v16 }
 0x27e   : > { %v1015_v62 = vmul.f32 0.0078125, %v994_v51  ;;  %1664 = vrsqrt.f32 %v1029_v52  ;;  %v1030_v1 = vadd.f32 1e-12, %v1014_v61  ;;  %v1659_v19 = vpop.eup %1658 }
 0x27f   : > { %v996_v2 = vpop.xlane.xlu1 %995  ;;  %v1080_v22 = vmul.f32 %v2067_v45, %v1057_v13  ;;  %v1058_v32 = vmul.f32 %v1659_v19, %v2007_v34  ;;  %v1425_v21 = vpack.c.bf16 %v1102_v17, %v1101_v26 }
 0x280   : > { %v1031_v4 = vadd.f32 1e-12, %v1015_v62  ;;  %1666 = vrsqrt.f32 %v1030_v1  ;;  %v1016_v9 = vmul.f32 0.0078125, %v996_v2 }
 0x281   : > { %v998_v12 = vpop.xlane.xlu0 %997  ;;  %v1081_v24 = vmul.f32 %v2067_v45, %v1058_v32  ;;  %v1103_v37 = vadd.f32 %v2074_v58, %v1080_v22  ;;  %1464 = vst [vmem:[%s1868_s20 + $0x8] sm:$0xff] %v1425_v21  }
 0x282   : > { %1668 = vrsqrt.f32 %v1031_v4  ;;  %v1017_v18 = vmul.f32 0.0078125, %v998_v12  ;;  %v1032_v23 = vadd.f32 1e-12, %v1016_v9 }
 0x283   : > { %v1000_v20 = vpop.xlane.xlu1 %999  ;;  %v1104_v34 = vadd.f32 %v2074_v58, %v1081_v24 }
 0x284   : > { %v1661_v10 = vpop.eup %1660  ;;  %v1033_v27 = vadd.f32 1e-12, %v1017_v18  ;;  %1670 = vrsqrt.f32 %v1032_v23  ;;  %v1018_v31 = vmul.f32 0.0078125, %v1000_v20 }
 0x285   : > { %v1002_v28 = vpop.xlane.xlu0 %1001  ;;  %v1059_v29 = vmul.f32 %v1661_v10, %v2012_v40  ;;  %v1430_v42 = vpack.c.bf16 %v1104_v34, %v1103_v37 }
 0x286   : > { %1672 = vrsqrt.f32 %v1033_v27  ;;  %v1019_v35 = vmul.f32 0.0078125, %v1002_v28  ;;  %v1663_v36 = vpop.eup %1662  ;;  %v1034_v38 = vadd.f32 1e-12, %v1018_v31 }
 0x287   : > { %v1082_v33 = vmul.f32 %v2067_v45, %v1059_v29  ;;  %v1060_v40 = vmul.f32 %v1663_v36, %v2017_v41  ;;  %v1004_v44 = vpop.xlane.xlu1 %1003  ;;  %1465 = vst [vmem:[%s1868_s20 + $0x10] sm:$0xff] %v1430_v42  }
 0x288   : > { %v1665_v30 = vpop.eup %1664  ;;  %v1035_v43 = vadd.f32 1e-12, %v1019_v35  ;;  %1674 = vrsqrt.f32 %v1034_v38  ;;  %v1020_v39 = vmul.f32 0.0078125, %v1004_v44 }
 0x289   : > { %v1061_v46 = vmul.f32 %v1665_v30, %v2022_v47  ;;  %v1083_v50 = vmul.f32 %v2067_v45, %v1060_v40  ;;  %v1105_v48 = vadd.f32 %v2074_v58, %v1082_v33 }
 0x28a   : > { %1676 = vrsqrt.f32 %v1035_v43  ;;  %v1667_v52 = vpop.eup %1666  ;;  %v1036_v53 = vadd.f32 1e-12, %v1020_v39 }
 0x28b   : > { %v1106_v15 = vadd.f32 %v2074_v58, %v1083_v50  ;;  %v1084_v41 = vmul.f32 %v2067_v45, %v1061_v46  ;;  %v1062_v51 = vmul.f32 %v1667_v52, %v2027_v49 }
 0x28c   : > { %v1669_v54 = vpop.eup %1668  ;;  %1678 = vrsqrt.f32 %v1036_v53 }
 0x28d   : > { %v1063_v47 = vmul.f32 %v1669_v54, %v2032_v55  ;;  %v1435_v59 = vpack.c.bf16 %v1106_v15, %v1105_v48  ;;  %v1085_v61 = vmul.f32 %v2067_v45, %v1062_v51  ;;  %v1107_v60 = vadd.f32 %v2074_v58, %v1084_v41 }
 0x28e   : > { %v1671_v62 = vpop.eup %1670 }
 0x28f   : > { %1466 = vst [vmem:[%s1868_s20 + $0x18] sm:$0xff] %v1435_v59   ;;  %v1108_v1 = vadd.f32 %v2074_v58, %v1085_v61  ;;  %v1086_v4 = vmul.f32 %v2067_v45, %v1063_v47  ;;  %v1064_v5 = vmul.f32 %v1671_v62, %v2037_v56 }
 0x290   : > { %v1673_v57 = vpop.eup %1672 }
 0x291   : > { %v1065_v49 = vmul.f32 %v1673_v57, %v2042_v63  ;;  %v1440_v55 = vpack.c.bf16 %v1108_v1, %v1107_v60  ;;  %v1087_v25 = vmul.f32 %v2067_v45, %v1064_v5  ;;  %v1109_v6 = vadd.f32 %v2074_v58, %v1086_v4 }
 0x292   : > { %v1675_v7 = vpop.eup %1674 }
 0x293   : > { %1467 = vst [vmem:[%s1868_s20 + $0x20] sm:$0xff] %v1440_v55   ;;  %v1110_v2 = vadd.f32 %v2074_v58, %v1087_v25  ;;  %v1088_v12 = vmul.f32 %v2067_v45, %v1065_v49  ;;  %v1066_v13 = vmul.f32 %v1675_v7, %v2047_v0 }
 0x294   : > { %v1677_v3 = vpop.eup %1676 }
 0x295   : > { %v1067_v56 = vmul.f32 %v1677_v3, %v2052_v8  ;;  %v1445_v9 = vpack.c.bf16 %v1110_v2, %v1109_v6  ;;  %v1089_v63 = vmul.f32 %v2067_v45, %v1066_v13  ;;  %v1111_v16 = vadd.f32 %v2074_v58, %v1088_v12 }
 0x296   : > { %v1679_v14 = vpop.eup %1678 }
 0x297   : > { %1468 = vst [vmem:[%s1868_s20 + $0x28] sm:$0xff] %v1445_v9   ;;  %v1112_v18 = vadd.f32 %v2074_v58, %v1089_v63  ;;  %v1090_v19 = vmul.f32 %v2067_v45, %v1067_v56  ;;  %v1068_v22 = vmul.f32 %v1679_v14, %v2057_v11 }
 0x299   : > { %v1450_v23 = vpack.c.bf16 %v1112_v18, %v1111_v16  ;;  %v1091_v10 = vmul.f32 %v2067_v45, %v1068_v22  ;;  %v1113_v0 = vadd.f32 %v2074_v58, %v1090_v19 }
 0x29b   : > { %1469 = vst [vmem:[%s1868_s20 + $0x30] sm:$0xff] %v1450_v23   ;;  %v1114_v8 = vadd.f32 %v2074_v58, %v1091_v10 }
 0x29d   : > { %v1455_v26 = vpack.c.bf16 %v1114_v8, %v1113_v0 }
 0x29f   : > { %1470 = vst [vmem:[%s1868_s20 + $0x38] sm:$0xff] %v1455_v26  }
 0x2a0 PF: > { %s16_s27 = sadd.s32 1, %s1734_s27   ;;  %s2157_s21 = smov %s1714_s22 }
 0x2a1   : > { %p13_p0 = scmp.ge.s32.totalorder %s16_s27, 10   ;;  %s2158_s22 = smov %s1823_s10 }
 0x2a2   : > { %s2159_s23 = smov %s1726_s25  ;;  %s2160_s24 = smov %s1730_s26 }
 0x2a3   : > { %s2161_s25 = smov %s2164_s28  ;;  %s2162_s26 = smov %s2168_s29 }
 0x2a4   :  { %15 = sbr.rel (!%p13_p0) target bundleno = 4 (0x4), region = 131 }

// kernel: bert_classifier_forward.23
= control target key start
LH: loop header
LB: loop body
LE: loop exit
PB: predicated region body
PF: predicated region fallthrough
CT: control target
= control target key end

     0   :  { %v331_v0 = vmov 0.0|0.0   ;;  %vm332_vm0 = vmmov 0   ;;  %v333_v4 = vmov 0.0   ;;  %vm134_vm1 = vcmask 1041408   ;;  %s445_s1 = inlined_call_operand.vmem [shape: f32[128,50], index: 1, kind: input, shape index: {}]   ;;  %s446_s3 = inlined_call_operand.vmem [shape: f32[50,2], index: 3, kind: input, shape index: {}]   ;;  %s447_s0 = inlined_call_operand.vmem [shape: bf16[4,128], index: 0, kind: input, shape index: {}]   ;;  %s448_s2 = inlined_call_operand.vmem [shape: f32[1,50], index: 2, kind: input, shape index: {}]   ;;  %s449_s4 = inlined_call_operand.vmem [shape: f32[1,2], index: 4, kind: input, shape index: {}]   ;;  %s450_s5 = inlined_call_operand.vmem [shape: f32[4,2], index: 5, kind: output, shape index: {}]  }
   0x1   :  { %295 = vmatprep.subr.bf16.mxu0 %v331_v0  ;;  %v22_v1 = vld [vmem:[%s445_s1] sm:$0xff]  ;;  %v23_v2 = vld [vmem:[%s445_s1 + $0x8] sm:$0xff]  ;;  %v24_v3 = vld [vmem:[%s445_s1 + $0x10] sm:$0xff]  ;;  %275 = vmatprep.mubr.msk.f32.mxu0 %vm332_vm0, %v333_v4  ;;  %vm130_vm2 = vcmask 408576   ;;  %vm208_vm3 = vcmask 11264  }
   0x2   :  { %v296_v5 = vpack.c.bf16 %v23_v2, %v22_v1  ;;  %v25_v6 = vld [vmem:[%s445_s1 + $0x18] sm:$0xff]  ;;  %319 = vmatprep.subr.bf16.mxu1 %v331_v0  ;;  %292 = vmatprep.mubr.msk.f32.mxu1 %vm332_vm0, %v333_v4  ;;  %v26_v8 = vld [vmem:[%s445_s1 + $0x20] sm:$0xff]  ;;  %v27_v9 = vld [vmem:[%s445_s1 + $0x28] sm:$0xff] }
   0x3   :  { %v299_v7 = vpack.c.bf16 %v25_v6, %v24_v3  ;;  %v116_v10 = vld [vmem:[%s446_s3] sm:$0xff]  ;;  %v117_v11 = vld [vmem:[%s446_s3 + $0x8] sm:$0xff]  ;;  %v118_v12 = vld [vmem:[%s446_s3 + $0x10] sm:$0xff]  ;;  %v302_v14 = vpack.c.bf16 %v27_v9, %v26_v8 }
   0x4   :  { %297 = vmatpush3.bf16.msra.mxu0 %v296_v5  ;;  %v119_v13 = vld [vmem:[%s446_s3 + $0x18] sm:$0xff]  ;;  %v320_v15 = vpack.c.bf16 %v117_v11, %v116_v10  ;;  %v28_v16 = vld [vmem:[%s445_s1 + $0x30] sm:$0xff]  ;;  %v30_v20 = vld [vmem:[%s445_s1 + $0x40] sm:$0xff] }
   0x5   :  { %298 = vmatprep.subr.bf16.mxu0 %v331_v0  ;;  %v29_v17 = vld [vmem:[%s445_s1 + $0x38] sm:$0xff]  ;;  %v323_v18 = vpack.c.bf16 %v119_v13, %v118_v12  ;;  %v31_v21 = vld [vmem:[%s445_s1 + $0x48] sm:$0xff]  ;;  %v32_v23 = vld [vmem:[%s445_s1 + $0x50] sm:$0xff] }
   0x6   :  { %321 = vmatpush3.bf16.msra.mxu1 %v320_v15  ;;  %v305_v19 = vpack.c.bf16 %v29_v17, %v28_v16  ;;  %v308_v22 = vpack.c.bf16 %v31_v21, %v30_v20  ;;  %v33_v24 = vld [vmem:[%s445_s1 + $0x58] sm:$0xff]  ;;  %v34_v26 = vld [vmem:[%s445_s1 + $0x60] sm:$0xff]  ;;  %v35_v27 = vld [vmem:[%s445_s1 + $0x68] sm:$0xff] }
   0x7   :  { %322 = vmatprep.subr.bf16.mxu1 %v331_v0  ;;  %v311_v25 = vpack.c.bf16 %v33_v24, %v32_v23  ;;  %v314_v28 = vpack.c.bf16 %v35_v27, %v34_v26  ;;  %v36_v29 = vld [vmem:[%s445_s1 + $0x70] sm:$0xff]  ;;  %v37_v30 = vld [vmem:[%s445_s1 + $0x78] sm:$0xff]  ;;  %v20_v32 = vld [vmem:[%s447_s0] sm:$0x3] }
   0x8   :  { %300 = vmatpush3.bf16.msra.mxu0 %v299_v7  ;;  %v317_v31 = vpack.c.bf16 %v37_v30, %v36_v29  ;;  %v21_v33 = vunpack.c.l.bf16 %v20_v32  ;;  %v120_v34 = vld [vmem:[%s446_s3 + $0x20] sm:$0xff]  ;;  %v121_v35 = vld [vmem:[%s446_s3 + $0x28] sm:$0xff]  ;;  %v122_v37 = vld [vmem:[%s446_s3 + $0x30] sm:$0x3] }
   0x9   :  { %301 = vmatprep.subr.bf16.mxu0 %v331_v0  ;;  %v326_v36 = vpack.c.bf16 %v121_v35, %v120_v34  ;;  %v214_v38 = vld [vmem:[%s448_s2] ss:$0 sm:$0xff] }
   0xa   :  { %324 = vmatpush3.bf16.msra.mxu1 %v323_v18  ;;  %v215_v43 = vld [vmem:[%s449_s4] ss:$0 sm:$0xff] }
   0xb   :  { %325 = vmatprep.subr.bf16.mxu1 %v331_v0 }
   0xc   :  { %303 = vmatpush3.bf16.msra.mxu0 %v302_v14 }
   0xd   :  { %304 = vmatprep.subr.bf16.mxu0 %v331_v0 }
   0xe   :  { %327 = vmatpush3.bf16.msra.mxu1 %v326_v36 }
   0xf   :  { %290 = vmatprep.subr.mxu1 %v333_v4 }
  0x10   :  { %306 = vmatpush3.bf16.msra.mxu0 %v305_v19 }
  0x11   :  { %307 = vmatprep.subr.bf16.mxu0 %v331_v0 }
  0x12   :  { %291 = vmatpush3.msk.msra.mxu1 %vm134_vm1, %v122_v37 }
  0x14   :  { %309 = vmatpush3.bf16.msra.mxu0 %v308_v22 }
  0x15   :  { %310 = vmatprep.subr.bf16.mxu0 %v331_v0 }
  0x18   :  { %312 = vmatpush3.bf16.msra.mxu0 %v311_v25 }
  0x19   :  { %313 = vmatprep.subr.bf16.mxu0 %v331_v0 }
  0x1c   :  { %315 = vmatpush3.bf16.msra.mxu0 %v314_v28 }
  0x1d   :  { %316 = vmatprep.subr.bf16.mxu0 %v331_v0 }
  0x20   :  { %318 = vmatpush3.bf16.msra.mxu0 %v317_v31 }
  0x23   :  { %276 = vmatmul.mubr.f32.vlgmr.msra.gmra.mrb[0].mxu0 %v21_v33 }
  0xf6   :  { %v111_v39 = vpop.f32.mrb[0].mxu0 }
  0xf7   :  { %v112_v40 = vadd.f32 %v214_v38, %v111_v39  ;;  %v277_v41 = vpop.f32.mrb[1].mxu0 }
  0xf9   :  { %v115_v42 = vmax.f32 %v112_v40, 0.0 }
  0xfb   :  { %293 = vmatmul.mubr.msk.f32.vlgmr.msra.gmra.mrb[0].mxu1 %vm130_vm2, %v115_v42 }
 0x1ce   :  { %v204_v44 = vpop.f32.mrb[0].mxu1 }
 0x1cf   :  { %v205_v45 = vadd.f32 %v215_v43, %v204_v44  ;;  %v294_v46 = vpop.f32.mrb[1].mxu1 }
 0x1d1   :  { %209 = vst.msk [vmem:[%s450_s5] sm:$0xf] %vm208_vm3, %v205_v45 }

// kernel: bert_classifier_forward.16
= control target key start
LH: loop header
LB: loop body
LE: loop exit
PB: predicated region body
PF: predicated region fallthrough
CT: control target
= control target key end

     0   :  { %s2377_s12 = smov 0   ;;  %s2379_s13 = smov 0   ;;  %s3246_s0 = inlined_call_operand.vmem [shape: bf16[512,128], index: 0, kind: input, shape index: {}]   ;;  %s3247_s1 = inlined_call_operand.vmem [shape: bf16[128,512], index: 1, kind: input, shape index: {}]   ;;  %s3248_s2 = inlined_call_operand.vmem [shape: f32[1,512], index: 2, kind: input, shape index: {}]   ;;  %s3249_s3 = inlined_call_operand.vmem [shape: bf16[512,512], index: 3, kind: output, shape index: {}]  }
   0x1   :  { %s2381_s14 = smov 0  }
   0x2 LB: > { %s25_s15 = sadd.s32 1, %s2350_s13  ;;  %p2010_p0 = scmp.ge.s32.totalorder %s2354_s14, 1  ;;  %s2354_s14 = sphi %s2381_s14, %s13_s14   ;;  %s2350_s13 = sphi %s2379_s13, %s3275_s13   ;;  %s2346_s12 = sphi %s2377_s12, %s3274_s12  }
   0x3   : > { %p27_p1 = scmp.ge.s32.totalorder %s25_s15, 4  ;;  %p167_p2 = scmp.lt.s32.totalorder %s2354_s14, 5 }
   0x5   : > { %s3277_s15 = smov (%p27_p1, %s25_s15), 0  ;;  %p168_p3 = pnand %p2010_p0, %p167_p2 }
   0x7   : > { %171 = sbr.rel (%p168_p3) target bundleno = 446 (0x1be), region = 32 }
   0xe   : > { %v2148_v0 = vld [vmem:[%s3247_s1 + $0x4] ss:$16 sps:$4 sm:$0xff]   ;;  %v2150_v1 = vld [vmem:[%s3247_s1 + $0xc] ss:$16 sps:$4 sm:$0xff]   ;;  %v2356_v2 = vmov 0   ;;  %s2011_s7 = sshll.u32 %s2346_s12, 4  ;;  %v1036_v41 = vlaneseq }
   0xf   : > { %645 = vmatprep.mubr.bf16.mxu0 %v2356_v2  ;;  %758 = vmatprep.mubr.bf16.mxu1 %v2356_v2  ;;  %v2152_v3 = vld [vmem:[%s3247_s1] ss:$16 sps:$4 sm:$0xff]   ;;  %v2153_v4 = vld [vmem:[%s3247_s1 + $0x8] ss:$16 sps:$4 sm:$0xff]   ;;  %v2154_v5 = vld [vmem:[%s3247_s1 + $0x24] ss:$16 sps:$4 sm:$0xff]  }
  0x10   : > { %613 = vmatprep.subr.bf16.mxu0 %v2148_v0  ;;  %726 = vmatprep.subr.bf16.mxu1 %v2150_v1  ;;  %v2156_v6 = vld [vmem:[%s3247_s1 + $0x2c] ss:$16 sps:$4 sm:$0xff]   ;;  %v2158_v7 = vld [vmem:[%s3247_s1 + $0x20] ss:$16 sps:$4 sm:$0xff]   ;;  %v2159_v8 = vld [vmem:[%s3247_s1 + $0x28] ss:$16 sps:$4 sm:$0xff]  }
  0x11   : > { %614 = vmatpush1.bf16.msra.mxu0 %v2152_v3  ;;  %727 = vmatpush1.bf16.msra.mxu1 %v2153_v4  ;;  %v2160_v9 = vld [vmem:[%s3247_s1 + $0x44] ss:$16 sps:$4 sm:$0xff]   ;;  %v2162_v10 = vld [vmem:[%s3247_s1 + $0x4c] ss:$16 sps:$4 sm:$0xff]   ;;  %v2164_v11 = vld [vmem:[%s3247_s1 + $0x40] ss:$16 sps:$4 sm:$0xff]  }
  0x12   : > { %615 = vmatprep.subr.bf16.mxu0 %v2154_v5  ;;  %728 = vmatprep.subr.bf16.mxu1 %v2156_v6  ;;  %v2165_v12 = vld [vmem:[%s3247_s1 + $0x48] ss:$16 sps:$4 sm:$0xff]   ;;  %v2166_v13 = vld [vmem:[%s3247_s1 + $0x64] ss:$16 sps:$4 sm:$0xff]   ;;  %v2168_v14 = vld [vmem:[%s3247_s1 + $0x6c] ss:$16 sps:$4 sm:$0xff]  }
  0x13   : > { %p202_p4 = scmp.lt.s32.totalorder %s2011_s7, 63  ;;  %v2170_v15 = vld [vmem:[%s3247_s1 + $0x60] ss:$16 sps:$4 sm:$0xff]   ;;  %v2171_v16 = vld [vmem:[%s3247_s1 + $0x68] ss:$16 sps:$4 sm:$0xff]   ;;  %v1037_v42 = vshrl.u32 %v1036_v41, 7 }
  0x14   : > { %v2172_v17 = vld [vmem:[%s3247_s1 + $0x84] ss:$16 sps:$4 sm:$0xff]   ;;  %v2174_v18 = vld [vmem:[%s3247_s1 + $0x8c] ss:$16 sps:$4 sm:$0xff]   ;;  %v2176_v19 = vld [vmem:[%s3247_s1 + $0x80] ss:$16 sps:$4 sm:$0xff]  }
  0x15   : > { %616 = vmatpush1.bf16.msra.mxu0 %v2158_v7  ;;  %729 = vmatpush1.bf16.msra.mxu1 %v2159_v8  ;;  %s3279_s7 = smov (!%p202_p4, %s2011_s7), 63  ;;  %v2177_v20 = vld [vmem:[%s3247_s1 + $0x88] ss:$16 sps:$4 sm:$0xff]   ;;  %v2178_v21 = vld [vmem:[%s3247_s1 + $0xa4] ss:$16 sps:$4 sm:$0xff]   ;;  %v1038_v43 = vsub.s32 0, %v1037_v42 }
  0x16   : > { %617 = vmatprep.subr.bf16.mxu0 %v2160_v9  ;;  %730 = vmatprep.subr.bf16.mxu1 %v2162_v10  ;;  %v2180_v22 = vld [vmem:[%s3247_s1 + $0xac] ss:$16 sps:$4 sm:$0xff]   ;;  %s2012_s11 = sshll.u32 %s3279_s7, 2  ;;  %v2182_v23 = vld [vmem:[%s3247_s1 + $0xa0] ss:$16 sps:$4 sm:$0xff]   ;;  %v1046_v44 = vsub.s32 2, %v1037_v42 }
  0x17   : > { %v2183_v24 = vld [vmem:[%s3247_s1 + $0xa8] ss:$16 sps:$4 sm:$0xff]   ;;  %v2184_v25 = vld [vmem:[%s3247_s1 + $0xc4] ss:$16 sps:$4 sm:$0xff]   ;;  %s2481_s23 = scalar_lea.vmem %s3246_s0, %s2012_s11  ;;  %v2186_v26 = vld [vmem:[%s3247_s1 + $0xcc] ss:$16 sps:$4 sm:$0xff]  }
  0x18   : > { %v2188_v27 = vld [vmem:[%s3247_s1 + $0xc0] ss:$16 sps:$4 sm:$0xff]   ;;  %v2189_v28 = vld [vmem:[%s3247_s1 + $0xc8] ss:$16 sps:$4 sm:$0xff]   ;;  %v2190_v29 = vld [vmem:[%s3247_s1 + $0xe4] ss:$16 sps:$4 sm:$0xff]  }
  0x19   : > { %618 = vmatpush1.bf16.msra.mxu0 %v2164_v11  ;;  %731 = vmatpush1.bf16.msra.mxu1 %v2165_v12  ;;  %v2192_v30 = vld [vmem:[%s3247_s1 + $0xec] ss:$16 sps:$4 sm:$0xff]   ;;  %v2194_v31 = vld [vmem:[%s3247_s1 + $0xe0] ss:$16 sps:$4 sm:$0xff]   ;;  %v2195_v32 = vld [vmem:[%s3247_s1 + $0xe8] ss:$16 sps:$4 sm:$0xff]  }
  0x1a   : > { %619 = vmatprep.subr.bf16.mxu0 %v2166_v13  ;;  %732 = vmatprep.subr.bf16.mxu1 %v2168_v14  ;;  %v2196_v33 = vld [vmem:[%s2481_s23] sm:$0xff]   ;;  %v2197_v34 = vld [vmem:[%s2481_s23 + $0x8] sm:$0xff]   ;;  %v2198_v35 = vld [vmem:[%s2481_s23 + $0x10] sm:$0xff]   ;;  %v1042_v46 = vsub.s32 1, %v1037_v42  ;;  %v1050_v47 = vsub.s32 3, %v1037_v42  ;;  %s2090_s18 = sshll.u32 %s3279_s7, 4 }
  0x1b   : > { %v2199_v36 = vld [vmem:[%s2481_s23 + $0x18] sm:$0xff]   ;;  %v2200_v37 = vld [vmem:[%s2481_s23 + $0x20] sm:$0xff]   ;;  %v2201_v38 = vld [vmem:[%s2481_s23 + $0x28] sm:$0xff]   ;;  %s2682_s7 = scalar_lea.vmem %s3249_s3, %s2090_s18 }
  0x1c   : > { %v2202_v39 = vld [vmem:[%s2481_s23 + $0x30] sm:$0xff]   ;;  %v2203_v40 = vld [vmem:[%s2481_s23 + $0x38] sm:$0xff]   ;;  %v1034_v45 = vld [vmem:[%s3248_s2] sm:$0xf] }
  0x1d   : > { %620 = vmatpush1.bf16.msra.mxu0 %v2170_v15  ;;  %733 = vmatpush1.bf16.msra.mxu1 %v2171_v16  ;;  %v2529_v48 = vrot.slane %v1034_v45, %v1038_v43  ;;  %v2531_v49 = vrot.slane %v1034_v45, %v1046_v44  ;;  %v2533_v50 = vrot.slane %v1034_v45, %v1042_v46 }
  0x1e   : > { %621 = vmatprep.subr.bf16.mxu0 %v2172_v17  ;;  %734 = vmatprep.subr.bf16.mxu1 %v2174_v18  ;;  %v2535_v51 = vrot.slane %v1034_v45, %v1050_v47 }
  0x21   : > { %622 = vmatpush1.bf16.msra.mxu0 %v2176_v19  ;;  %735 = vmatpush1.bf16.msra.mxu1 %v2177_v20 }
  0x22   : > { %623 = vmatprep.subr.bf16.mxu0 %v2178_v21  ;;  %736 = vmatprep.subr.bf16.mxu1 %v2180_v22 }
  0x25   : > { %624 = vmatpush1.bf16.msra.mxu0 %v2182_v23  ;;  %737 = vmatpush1.bf16.msra.mxu1 %v2183_v24 }
  0x26   : > { %625 = vmatprep.subr.bf16.mxu0 %v2184_v25  ;;  %738 = vmatprep.subr.bf16.mxu1 %v2186_v26 }
  0x29   : > { %626 = vmatpush1.bf16.msra.mxu0 %v2188_v27  ;;  %739 = vmatpush1.bf16.msra.mxu1 %v2189_v28 }
  0x2a   : > { %627 = vmatprep.subr.bf16.mxu0 %v2190_v29  ;;  %740 = vmatprep.subr.bf16.mxu1 %v2192_v30 }
  0x2d   : > { %628 = vmatpush1.bf16.msra.mxu0 %v2194_v31  ;;  %741 = vmatpush1.bf16.msra.mxu1 %v2195_v32 }
  0x30   : > { %646 = vmatmul.mubr.bf16.vlgmr.msra.gmra.mrb[0].mxu0 %v2196_v33  ;;  %759 = vmatmul.mubr.bf16.vlgmr.msra.gmra.mrb[0].mxu1 %v2196_v33 }
  0x31   : > { %655 = vmatprep.mubr.bf16.mxu0 %v2356_v2  ;;  %768 = vmatprep.mubr.bf16.mxu1 %v2356_v2 }
  0x38   : > { %656 = vmatmul.mubr.bf16.gmra.mrb[4].mxu0 %v2197_v34  ;;  %769 = vmatmul.mubr.bf16.gmra.mrb[4].mxu1 %v2197_v34 }
  0x39   : > { %665 = vmatprep.mubr.bf16.mxu0 %v2356_v2  ;;  %778 = vmatprep.mubr.bf16.mxu1 %v2356_v2 }
  0x40   : > { %666 = vmatmul.mubr.bf16.gmra.mrb[8].mxu0 %v2198_v35  ;;  %779 = vmatmul.mubr.bf16.gmra.mrb[8].mxu1 %v2198_v35 }
  0x41   : > { %675 = vmatprep.mubr.bf16.mxu0 %v2356_v2  ;;  %788 = vmatprep.mubr.bf16.mxu1 %v2356_v2 }
  0x48   : > { %676 = vmatmul.mubr.bf16.gmra.mrb[12].mxu0 %v2199_v36  ;;  %789 = vmatmul.mubr.bf16.gmra.mrb[12].mxu1 %v2199_v36 }
  0x49   : > { %685 = vmatprep.mubr.bf16.mxu0 %v2356_v2  ;;  %798 = vmatprep.mubr.bf16.mxu1 %v2356_v2 }
  0x50   : > { %686 = vmatmul.mubr.bf16.gmra.mrb[16].mxu0 %v2200_v37  ;;  %799 = vmatmul.mubr.bf16.gmra.mrb[16].mxu1 %v2200_v37 }
  0x51   : > { %695 = vmatprep.mubr.bf16.mxu0 %v2356_v2  ;;  %808 = vmatprep.mubr.bf16.mxu1 %v2356_v2 }
  0x58   : > { %696 = vmatmul.mubr.bf16.gmra.mrb[20].mxu0 %v2201_v38  ;;  %809 = vmatmul.mubr.bf16.gmra.mrb[20].mxu1 %v2201_v38 }
  0x59   : > { %705 = vmatprep.mubr.bf16.mxu0 %v2356_v2  ;;  %818 = vmatprep.mubr.bf16.mxu1 %v2356_v2 }
  0x60   : > { %706 = vmatmul.mubr.bf16.gmra.mrb[24].mxu0 %v2202_v39  ;;  %819 = vmatmul.mubr.bf16.gmra.mrb[24].mxu1 %v2202_v39 }
  0x61   : > { %715 = vmatprep.mubr.bf16.mxu0 %v2356_v2  ;;  %828 = vmatprep.mubr.bf16.mxu1 %v2356_v2 }
  0x68   : > { %716 = vmatmul.mubr.bf16.gmra.mrb[28].mxu0 %v2203_v40  ;;  %829 = vmatmul.mubr.bf16.gmra.mrb[28].mxu1 %v2203_v40 }
 0x103   : > { %v647_v52 = vpop.f32.mrb[0].mxu0  ;;  %v760_v53 = vpop.f32.mrb[0].mxu1 }
 0x104   : > { %v2538_v54 = vadd.f32 %v2529_v48, %v647_v52  ;;  %v2541_v55 = vadd.f32 %v2531_v49, %v760_v53  ;;  %v649_v56 = vpop.f32.mrb[1].mxu0  ;;  %v762_v57 = vpop.f32.mrb[1].mxu1 }
 0x105   : > { %v2544_v58 = vadd.f32 %v2533_v50, %v649_v56  ;;  %v2547_v59 = vadd.f32 %v2535_v51, %v762_v57  ;;  %v651_v60 = vpop.f32.mrb[2].mxu0  ;;  %v764_v61 = vpop.f32.mrb[2].mxu1 }
 0x106   : > { %v1120_v62 = vmul.f32 %v2538_v54, %v2538_v54  ;;  %v1122_v63 = vmul.f32 %v2541_v55, %v2541_v55  ;;  %v2554_v0 = vadd.f32 %v2529_v48, %v651_v60  ;;  %v2557_v1 = vadd.f32 %v2531_v49, %v764_v61  ;;  %v653_v2 = vpop.f32.mrb[3].mxu0  ;;  %v766_v3 = vpop.f32.mrb[3].mxu1 }
 0x107   : > { %v1121_v4 = vmul.f32 %v2544_v58, %v2544_v58  ;;  %v1123_v5 = vmul.f32 %v2547_v59, %v2547_v59  ;;  %v2564_v6 = vadd.f32 %v2533_v50, %v653_v2  ;;  %v2567_v7 = vadd.f32 %v2535_v51, %v766_v3 }
 0x108   : > { %v1184_v8 = vmul.f32 %v1120_v62, %v2538_v54  ;;  %v1186_v9 = vmul.f32 %v1122_v63, %v2541_v55  ;;  %v1124_v10 = vmul.f32 %v2554_v0, %v2554_v0  ;;  %v1126_v11 = vmul.f32 %v2557_v1, %v2557_v1 }
 0x109   : > { %v1185_v12 = vmul.f32 %v1121_v4, %v2544_v58  ;;  %v1187_v13 = vmul.f32 %v1123_v5, %v2547_v59  ;;  %v1125_v14 = vmul.f32 %v2564_v6, %v2564_v6  ;;  %v1127_v15 = vmul.f32 %v2567_v7, %v2567_v7 }
 0x10a   : > { %v1248_v16 = vmul.f32 0.044715, %v1184_v8  ;;  %v1250_v17 = vmul.f32 0.044715, %v1186_v9  ;;  %v1188_v18 = vmul.f32 %v1124_v10, %v2554_v0  ;;  %v1190_v19 = vmul.f32 %v1126_v11, %v2557_v1 }
 0x10b   : > { %v1249_v20 = vmul.f32 0.044715, %v1185_v12  ;;  %v1251_v21 = vmul.f32 0.044715, %v1187_v13  ;;  %v1189_v22 = vmul.f32 %v1125_v14, %v2564_v6  ;;  %v1191_v23 = vmul.f32 %v1127_v15, %v2567_v7  ;;  %v657_v24 = vpop.f32.mrb[4].mxu0  ;;  %v770_v25 = vpop.f32.mrb[4].mxu1 }
 0x10c   : > { %v1312_v26 = vadd.f32 %v1248_v16, %v2538_v54  ;;  %v1314_v27 = vadd.f32 %v1250_v17, %v2541_v55  ;;  %v1252_v28 = vmul.f32 0.044715, %v1188_v18  ;;  %v1254_v29 = vmul.f32 0.044715, %v1190_v19  ;;  %v659_v30 = vpop.f32.mrb[5].mxu0  ;;  %v772_v31 = vpop.f32.mrb[5].mxu1 }
 0x10d   : > { %v1313_v32 = vadd.f32 %v1249_v20, %v2544_v58  ;;  %v1315_v33 = vadd.f32 %v1251_v21, %v2547_v59  ;;  %v1253_v34 = vmul.f32 0.044715, %v1189_v22  ;;  %v1255_v35 = vmul.f32 0.044715, %v1191_v23  ;;  %v661_v36 = vpop.f32.mrb[6].mxu0  ;;  %v774_v37 = vpop.f32.mrb[6].mxu1 }
 0x10e   : > { %v1376_v38 = vmul.f32 0.7978846, %v1312_v26  ;;  %v1378_v39 = vmul.f32 0.7978846, %v1314_v27  ;;  %v1316_v40 = vadd.f32 %v1252_v28, %v2554_v0  ;;  %v1318_v41 = vadd.f32 %v1254_v29, %v2557_v1  ;;  %v663_v42 = vpop.f32.mrb[7].mxu0  ;;  %v776_v43 = vpop.f32.mrb[7].mxu1 }
 0x10f   : > { %v1377_v44 = vmul.f32 0.7978846, %v1313_v32  ;;  %v1379_v45 = vmul.f32 0.7978846, %v1315_v33  ;;  %v1317_v46 = vadd.f32 %v1253_v34, %v2564_v6  ;;  %v1319_v47 = vadd.f32 %v1255_v35, %v2567_v7 }
 0x110   : > { %2204 = vtanh.f32 %v1376_v38  ;;  %v1380_v52 = vmul.f32 0.7978846, %v1316_v40  ;;  %v1382_v53 = vmul.f32 0.7978846, %v1318_v41  ;;  %v2594_v56 = vadd.f32 %v2529_v48, %v657_v24 }
 0x111   : > { %2206 = vtanh.f32 %v1378_v39  ;;  %v1381_v57 = vmul.f32 0.7978846, %v1317_v46  ;;  %v1383_v60 = vmul.f32 0.7978846, %v1319_v47  ;;  %v2597_v61 = vadd.f32 %v2531_v49, %v770_v25 }
 0x112   : > { %2208 = vtanh.f32 %v1377_v44  ;;  %v1128_v62 = vmul.f32 %v2594_v56, %v2594_v56  ;;  %v2602_v63 = vadd.f32 %v2533_v50, %v659_v30  ;;  %v2605_v2 = vadd.f32 %v2535_v51, %v772_v31 }
 0x113   : > { %2210 = vtanh.f32 %v1379_v45  ;;  %v1130_v3 = vmul.f32 %v2597_v61, %v2597_v61  ;;  %v2610_v4 = vadd.f32 %v2529_v48, %v661_v36  ;;  %v2613_v5 = vadd.f32 %v2531_v49, %v774_v37  ;;  %v2615_v8 = vpop.f32.mrb[8].mxu0  ;;  %v2617_v9 = vpop.f32.mrb[8].mxu1 }
 0x114   : > { %2212 = vtanh.f32 %v1380_v52  ;;  %v1192_v10 = vmul.f32 %v1128_v62, %v2594_v56  ;;  %v1129_v11 = vmul.f32 %v2602_v63, %v2602_v63  ;;  %v1131_v12 = vmul.f32 %v2605_v2, %v2605_v2  ;;  %v2624_v13 = vpop.f32.mrb[9].mxu0  ;;  %v2626_v14 = vpop.f32.mrb[9].mxu1 }
 0x115   : > { %2214 = vtanh.f32 %v1382_v53  ;;  %v1194_v15 = vmul.f32 %v1130_v3, %v2597_v61  ;;  %v1132_v16 = vmul.f32 %v2610_v4, %v2610_v4  ;;  %v1134_v17 = vmul.f32 %v2613_v5, %v2613_v5  ;;  %v2633_v18 = vpop.f32.mrb[10].mxu0  ;;  %v2635_v19 = vpop.f32.mrb[10].mxu1 }
 0x116   : > { %2216 = vtanh.f32 %v1381_v57  ;;  %v1256_v20 = vmul.f32 0.044715, %v1192_v10  ;;  %v1193_v21 = vmul.f32 %v1129_v11, %v2602_v63  ;;  %v1195_v22 = vmul.f32 %v1131_v12, %v2605_v2  ;;  %v2639_v23 = vpop.f32.mrb[11].mxu0  ;;  %v2641_v24 = vpop.f32.mrb[11].mxu1 }
 0x117   : > { %2218 = vtanh.f32 %v1383_v60  ;;  %v1258_v25 = vmul.f32 0.044715, %v1194_v15  ;;  %v1196_v26 = vmul.f32 %v1132_v16, %v2610_v4  ;;  %v1198_v27 = vmul.f32 %v1134_v17, %v2613_v5 }
 0x118   : > { %v1320_v28 = vadd.f32 %v1256_v20, %v2594_v56  ;;  %v1257_v29 = vmul.f32 0.044715, %v1193_v21  ;;  %v1259_v30 = vmul.f32 0.044715, %v1195_v22  ;;  %v2647_v31 = vadd.f32 %v2533_v50, %v663_v42 }
 0x119   : > { %v1322_v32 = vadd.f32 %v1258_v25, %v2597_v61  ;;  %v1260_v33 = vmul.f32 0.044715, %v1196_v26  ;;  %v1262_v34 = vmul.f32 0.044715, %v1198_v27  ;;  %v2651_v35 = vadd.f32 %v2535_v51, %v776_v43 }
 0x11a   : > { %v2205_v36 = vpop.eup %2204  ;;  %v1384_v37 = vmul.f32 0.7978846, %v1320_v28  ;;  %v1321_v38 = vadd.f32 %v1257_v29, %v2602_v63  ;;  %v1323_v39 = vadd.f32 %v1259_v30, %v2605_v2  ;;  %v1133_v40 = vmul.f32 %v2647_v31, %v2647_v31 }
 0x11b   : > { %v2207_v41 = vpop.eup %2206  ;;  %v1504_v44 = vadd.f32 1.0, %v2205_v36  ;;  %v1386_v42 = vmul.f32 0.7978846, %v1322_v32  ;;  %v1324_v45 = vadd.f32 %v1260_v33, %v2610_v4  ;;  %v1326_v46 = vadd.f32 %v1262_v34, %v2613_v5  ;;  %v2659_v47 = vpop.f32.mrb[12].mxu0 }
 0x11c   : > { %v2661_v43 = vpop.f32.mrb[12].mxu1  ;;  %v2209_v52 = vpop.eup %2208  ;;  %v1506_v53 = vadd.f32 1.0, %v2207_v41  ;;  %2220 = vtanh.f32 %v1384_v37  ;;  %v1385_v57 = vmul.f32 0.7978846, %v1321_v38  ;;  %v1387_v60 = vmul.f32 0.7978846, %v1323_v39 }
 0x11d   : > { %v2663_v62 = vpop.f32.mrb[13].mxu0  ;;  %v2211_v3 = vpop.eup %2210  ;;  %v1568_v10 = vmul.f32 0.5, %v1504_v44  ;;  %v1505_v11 = vadd.f32 1.0, %v2209_v52  ;;  %2222 = vtanh.f32 %v1386_v42  ;;  %v1388_v12 = vmul.f32 0.7978846, %v1324_v45 }
 0x11e   : > { %v2665_v15 = vpop.f32.mrb[13].mxu1  ;;  %v2667_v16 = vpop.f32.mrb[14].mxu0  ;;  %v1570_v20 = vmul.f32 0.5, %v1506_v53  ;;  %v1507_v21 = vadd.f32 1.0, %v2211_v3  ;;  %2224 = vtanh.f32 %v1385_v57  ;;  %v1390_v22 = vmul.f32 0.7978846, %v1326_v46 }
 0x11f   : > { %v2213_v17 = vpop.eup %2212  ;;  %v2669_v25 = vpop.f32.mrb[14].mxu1  ;;  %v1632_v28 = vmul.f32 %v1568_v10, %v2538_v54  ;;  %v1569_v29 = vmul.f32 0.5, %v1505_v11  ;;  %2226 = vtanh.f32 %v1387_v60 }
 0x120   : > { %v2671_v26 = vpop.f32.mrb[15].mxu0  ;;  %v2215_v27 = vpop.eup %2214  ;;  %v1508_v30 = vadd.f32 1.0, %v2213_v17  ;;  %v1634_v34 = vmul.f32 %v1570_v20, %v2541_v55  ;;  %v1571_v36 = vmul.f32 0.5, %v1507_v21  ;;  %2228 = vtanh.f32 %v1388_v12 }
 0x121   : > { %v2675_v32 = vpop.f32.mrb[15].mxu1  ;;  %v2217_v33 = vpop.eup %2216  ;;  %v1510_v37 = vadd.f32 1.0, %v2215_v27  ;;  %v1633_v39 = vmul.f32 %v1569_v29, %v2544_v58  ;;  %2230 = vtanh.f32 %v1390_v22  ;;  %v1197_v55 = vmul.f32 %v1133_v40, %v2647_v31 }
 0x122   : > { %v2219_v38 = vpop.eup %2218  ;;  %v1572_v41 = vmul.f32 0.5, %v1508_v30  ;;  %v1509_v44 = vadd.f32 1.0, %v2217_v33  ;;  %v1635_v54 = vmul.f32 %v1571_v36, %v2547_v59  ;;  %v1135_v58 = vmul.f32 %v2651_v35, %v2651_v35 }
 0x123   : > { %v1574_v42 = vmul.f32 0.5, %v1510_v37  ;;  %v1511_v45 = vadd.f32 1.0, %v2219_v38  ;;  %v2091_v46 = vpack.c.bf16 %v1633_v39, %v1632_v28  ;;  %v2689_v57 = vpop.f32.mrb[16].mxu0  ;;  %v2691_v60 = vpop.f32.mrb[16].mxu1  ;;  %v1261_v11 = vmul.f32 0.044715, %v1197_v55 }
 0x124   : > { %v1636_v52 = vmul.f32 %v1572_v41, %v2554_v0  ;;  %v1573_v53 = vmul.f32 0.5, %v1509_v44  ;;  %v2092_v3 = vpack.c.bf16 %v1635_v54, %v1634_v34  ;;  %v2694_v12 = vpop.f32.mrb[17].mxu0  ;;  %v2696_v40 = vpop.f32.mrb[17].mxu1  ;;  %v1199_v17 = vmul.f32 %v1135_v58, %v2651_v35 }
 0x125   : > { %v1638_v59 = vmul.f32 %v1574_v42, %v2557_v1  ;;  %v1575_v10 = vmul.f32 0.5, %v1511_v45  ;;  %1888 = vst [vmem:[%s2682_s7] sm:$0xff] %v2091_v46  ;;  %v2703_v20 = vadd.f32 %v2529_v48, %v2615_v8  ;;  %v2707_v21 = vadd.f32 %v2531_v49, %v2617_v9  ;;  %v2709_v1 = vpop.f32.mrb[18].mxu0  ;;  %v2711_v22 = vpop.f32.mrb[18].mxu1 }
 0x126   : > { %v1637_v0 = vmul.f32 %v1573_v53, %v2564_v6  ;;  %v2221_v27 = vpop.eup %2220  ;;  %1889 = vst [vmem:[%s2682_s7 + $0x8] sm:$0xff] %v2092_v3  ;;  %v1325_v6 = vadd.f32 %v1261_v11, %v2647_v31  ;;  %v2718_v29 = vadd.f32 %v2533_v50, %v2624_v13  ;;  %v2722_v8 = vadd.f32 %v2535_v51, %v2626_v14  ;;  %v2724_v9 = vpop.f32.mrb[19].mxu0 }
 0x127   : > { %v1639_v28 = vmul.f32 %v1575_v10, %v2567_v7  ;;  %v2726_v30 = vpop.f32.mrb[19].mxu1  ;;  %v2223_v33 = vpop.eup %2222  ;;  %v1512_v36 = vadd.f32 1.0, %v2221_v27  ;;  %v1263_v7 = vmul.f32 0.044715, %v1199_v17  ;;  %v1136_v37 = vmul.f32 %v2703_v20, %v2703_v20 }
 0x128   : > { %v2093_v34 = vpack.c.bf16 %v1637_v0, %v1636_v52  ;;  %v2225_v38 = vpop.eup %2224  ;;  %v1514_v13 = vadd.f32 1.0, %v2223_v33  ;;  %v1389_v41 = vmul.f32 0.7978846, %v1325_v6  ;;  %v1138_v14 = vmul.f32 %v2707_v21, %v2707_v21 }
 0x129   : > { %v2094_v39 = vpack.c.bf16 %v1639_v28, %v1638_v59  ;;  %v2227_v44 = vpop.eup %2226  ;;  %v1576_v54 = vmul.f32 0.5, %v1512_v36  ;;  %v1513_v42 = vadd.f32 1.0, %v2225_v38  ;;  %v1327_v45 = vadd.f32 %v1263_v7, %v2651_v35 }
 0x12a   : > { %1890 = vst [vmem:[%s2682_s7 + $0x10] sm:$0xff] %v2093_v34  ;;  %v1200_v55 = vmul.f32 %v1136_v37, %v2703_v20  ;;  %v2229_v46 = vpop.eup %2228  ;;  %v1578_v52 = vmul.f32 0.5, %v1514_v13  ;;  %v1515_v53 = vadd.f32 1.0, %v2227_v44  ;;  %2232 = vtanh.f32 %v1389_v41 }
 0x12b   : > { %1891 = vst [vmem:[%s2682_s7 + $0x18] sm:$0xff] %v2094_v39  ;;  %v1202_v58 = vmul.f32 %v1138_v14, %v2707_v21  ;;  %v2231_v3 = vpop.eup %2230  ;;  %v1640_v59 = vmul.f32 %v1576_v54, %v2594_v56  ;;  %v1577_v10 = vmul.f32 0.5, %v1513_v42  ;;  %v1516_v11 = vadd.f32 1.0, %v2229_v46  ;;  %v2738_v17 = vpop.f32.mrb[20].mxu0 }
 0x12c   : > { %v1391_v0 = vmul.f32 0.7978846, %v1327_v45  ;;  %v2740_v27 = vpop.f32.mrb[20].mxu1  ;;  %v1642_v28 = vmul.f32 %v1578_v52, %v2597_v61  ;;  %v1579_v6 = vmul.f32 0.5, %v1515_v53  ;;  %v1518_v33 = vadd.f32 1.0, %v2231_v3  ;;  %v2743_v36 = vpop.f32.mrb[21].mxu0 }
 0x12d   : > { %v1264_v34 = vmul.f32 0.044715, %v1200_v55  ;;  %v2745_v7 = vpop.f32.mrb[21].mxu1  ;;  %v1641_v37 = vmul.f32 %v1577_v10, %v2602_v63  ;;  %v1580_v38 = vmul.f32 0.5, %v1516_v11  ;;  %v1266_v56 = vmul.f32 0.044715, %v1202_v58 }
 0x12e   : > { %2234 = vtanh.f32 %v1391_v0  ;;  %v2748_v39 = vpop.f32.mrb[22].mxu0  ;;  %v2750_v13 = vpop.f32.mrb[22].mxu1  ;;  %v1643_v41 = vmul.f32 %v1579_v6, %v2605_v2  ;;  %v1582_v61 = vmul.f32 0.5, %v1518_v33  ;;  %v1137_v44 = vmul.f32 %v2718_v29, %v2718_v29 }
 0x12f   : > { %v1328_v14 = vadd.f32 %v1264_v34, %v2703_v20  ;;  %v2756_v54 = vpop.f32.mrb[23].mxu0  ;;  %v2758_v63 = vpop.f32.mrb[23].mxu1  ;;  %v2095_v42 = vpack.c.bf16 %v1641_v37, %v1640_v59  ;;  %v2761_v45 = vmul.f32 %v1580_v38, %v2610_v4  ;;  %v1330_v55 = vadd.f32 %v1266_v56, %v2707_v21 }
 0x130   : > { %v1139_v2 = vmul.f32 %v2722_v8, %v2722_v8  ;;  %v2096_v46 = vpack.c.bf16 %v1643_v41, %v1642_v28  ;;  %v2767_v52 = vmul.f32 %v1582_v61, %v2613_v5  ;;  %v1201_v58 = vmul.f32 %v1137_v44, %v2718_v29 }
 0x131   : > { %v1392_v53 = vmul.f32 0.7978846, %v1328_v14  ;;  %1892 = vst [vmem:[%s2682_s7 + $0x20] sm:$0xff] %v2095_v42  ;;  %v1394_v3 = vmul.f32 0.7978846, %v1330_v55  ;;  %v2774_v4 = vadd.f32 %v2529_v48, %v2633_v18  ;;  %v2778_v59 = vadd.f32 %v2531_v49, %v2635_v19 }
 0x132   : > { %v1203_v10 = vmul.f32 %v1139_v2, %v2722_v8  ;;  %1893 = vst [vmem:[%s2682_s7 + $0x28] sm:$0xff] %v2096_v46  ;;  %v1265_v11 = vmul.f32 0.044715, %v1201_v58  ;;  %v2783_v5 = vadd.f32 %v2533_v50, %v2639_v23  ;;  %v2787_v0 = vadd.f32 %v2535_v51, %v2641_v24 }
 0x133   : > { %2236 = vtanh.f32 %v1392_v53  ;;  %v1140_v18 = vmul.f32 %v2774_v4, %v2774_v4  ;;  %v1142_v19 = vmul.f32 %v2778_v59, %v2778_v59  ;;  %v2793_v6 = vpop.f32.mrb[24].mxu0  ;;  %v2795_v33 = vpop.f32.mrb[24].mxu1  ;;  %v2804_v38 = vadd.f32 %v2529_v48, %v2659_v47 }
 0x134   : > { %2238 = vtanh.f32 %v1394_v3  ;;  %v1267_v28 = vmul.f32 0.044715, %v1203_v10  ;;  %v2233_v34 = vpop.eup %2232  ;;  %v1329_v23 = vadd.f32 %v1265_v11, %v2718_v29  ;;  %v1141_v37 = vmul.f32 %v2783_v5, %v2783_v5  ;;  %v2806_v56 = vpop.f32.mrb[25].mxu0 }
 0x135   : > { %v1143_v24 = vmul.f32 %v2787_v0, %v2787_v0  ;;  %v2808_v41 = vpop.f32.mrb[25].mxu1  ;;  %v1517_v61 = vadd.f32 1.0, %v2233_v34  ;;  %v1204_v44 = vmul.f32 %v1140_v18, %v2774_v4  ;;  %v1206_v42 = vmul.f32 %v1142_v19, %v2778_v59  ;;  %v2813_v55 = vpop.f32.mrb[26].mxu0 }
 0x136   : > { %3250 = vst [vmem:[#allocation3_spill] sm:$0xff] %v2808_v41  ;;  %v1331_v14 = vadd.f32 %v1267_v28, %v2722_v8  ;;  %3251 = vst [vmem:[#allocation4_spill] sm:$0xff] %v2813_v55  ;;  %v2815_v2 = vpop.f32.mrb[26].mxu1  ;;  %v1393_v46 = vmul.f32 0.7978846, %v1329_v23  ;;  %v1205_v53 = vmul.f32 %v1141_v37, %v2783_v5  ;;  %v1144_v58 = vmul.f32 %v2804_v38, %v2804_v38  ;;  %v2821_v3 = vpop.f32.mrb[27].mxu0 }
 0x137   : > { %3252 = vst [vmem:[#allocation5_spill] sm:$0xff] %v2815_v2  ;;  %v1207_v47 = vmul.f32 %v1143_v24, %v2787_v0  ;;  %3253 = vst [vmem:[#allocation6_spill] sm:$0xff] %v2821_v3  ;;  %v2823_v10 = vpop.f32.mrb[27].mxu1  ;;  %v1581_v28 = vmul.f32 0.5, %v1517_v61  ;;  %v1268_v19 = vmul.f32 0.044715, %v1204_v44  ;;  %v2827_v34 = vadd.f32 %v2531_v49, %v2661_v43 }
 0x138   : > { %v2235_v11 = vpop.eup %2234  ;;  %v1395_v18 = vmul.f32 0.7978846, %v1331_v14  ;;  %2240 = vtanh.f32 %v1393_v46  ;;  %v1270_v37 = vmul.f32 0.044715, %v1206_v42  ;;  %v1269_v2 = vmul.f32 0.044715, %v1205_v53 }
 0x139   : > { %v1519_v23 = vadd.f32 1.0, %v2235_v11  ;;  %v1645_v24 = vmul.f32 %v1581_v28, %v2647_v31  ;;  %v1332_v55 = vadd.f32 %v1268_v19, %v2774_v4  ;;  %v1271_v3 = vmul.f32 0.044715, %v1207_v47 }
 0x13a   : > { %2242 = vtanh.f32 %v1395_v18  ;;  %v1334_v61 = vadd.f32 %v1270_v37, %v2778_v59  ;;  %v1333_v14 = vadd.f32 %v1269_v2, %v2783_v5  ;;  %v1208_v44 = vmul.f32 %v1144_v58, %v2804_v38 }
 0x13b   : > { %v1583_v41 = vmul.f32 0.5, %v1519_v23  ;;  %v2097_v43 = vpack.c.bf16 %v1645_v24, %v2761_v45  ;;  %v1396_v11 = vmul.f32 0.7978846, %v1332_v55  ;;  %v1335_v42 = vadd.f32 %v1271_v3, %v2787_v0  ;;  %v2838_v46 = vpop.f32.mrb[28].mxu0  ;;  %v2840_v53 = vpop.f32.mrb[28].mxu1 }
 0x13c   : > { %v1146_v31 = vmul.f32 %v2827_v34, %v2827_v34  ;;  %3254 = vst [vmem:[#allocation7_spill] sm:$0xff] %v2838_v46  ;;  %3255 = vst [vmem:[#allocation8_spill] sm:$0xff] %v2840_v53  ;;  %v1398_v18 = vmul.f32 0.7978846, %v1334_v61  ;;  %v1397_v19 = vmul.f32 0.7978846, %v1333_v14 }
 0x13d   : > { %v2237_v47 = vpop.eup %2236  ;;  %v1647_v28 = vmul.f32 %v1583_v41, %v2651_v35  ;;  %v1272_v2 = vmul.f32 0.044715, %v1208_v44  ;;  %1894 = vst [vmem:[%s2682_s7 + $0x30] sm:$0xff] %v2097_v43  ;;  %2244 = vtanh.f32 %v1396_v11  ;;  %v1399_v45 = vmul.f32 0.7978846, %v1335_v42  ;;  %v2845_v3 = vpop.f32.mrb[29].mxu0 }
 0x13e   : > { %v2239_v23 = vpop.eup %2238  ;;  %v1520_v58 = vadd.f32 1.0, %v2237_v47  ;;  %v1210_v55 = vmul.f32 %v1146_v31, %v2827_v34  ;;  %3256 = vst [vmem:[#allocation9_spill] sm:$0xff] %v2845_v3  ;;  %v2847_v37 = vpop.f32.mrb[29].mxu1  ;;  %2246 = vtanh.f32 %v1398_v18  ;;  %v2857_v43 = vadd.f32 %v2533_v50, %v2663_v62 }
 0x13f   : > { %3257 = vst [vmem:[#allocation10_spill] sm:$0xff] %v2847_v37  ;;  %v2098_v24 = vpack.c.bf16 %v1647_v28, %v2767_v52  ;;  %v1522_v53 = vadd.f32 1.0, %v2239_v23  ;;  %v1336_v35 = vadd.f32 %v1272_v2, %v2804_v38  ;;  %v2851_v41 = vpop.f32.mrb[30].mxu0  ;;  %v2853_v61 = vpop.f32.mrb[30].mxu1  ;;  %2248 = vtanh.f32 %v1397_v19 }
 0x140   : > { %3258 = vst [vmem:[#allocation11_spill] sm:$0xff] %v2851_v41  ;;  %3259 = vst [vmem:[#allocation12_spill] sm:$0xff] %v2853_v61  ;;  %v1584_v14 = vmul.f32 0.5, %v1520_v58  ;;  %v1274_v44 = vmul.f32 0.044715, %v1210_v55  ;;  %v2859_v11 = vpop.f32.mrb[31].mxu0  ;;  %2250 = vtanh.f32 %v1399_v45  ;;  %v2866_v47 = vadd.f32 %v2535_v51, %v2665_v15 }
 0x141   : > { %3260 = vst [vmem:[#allocation13_spill] sm:$0xff] %v2859_v11  ;;  %v2861_v42 = vpop.f32.mrb[31].mxu1  ;;  %1895 = vst [vmem:[%s2682_s7 + $0x38] sm:$0xff] %v2098_v24  ;;  %v1586_v52 = vmul.f32 0.5, %v1522_v53  ;;  %v1400_v31 = vmul.f32 0.7978846, %v1336_v35  ;;  %v1145_v62 = vmul.f32 %v2857_v43, %v2857_v43  ;;  %v2874_v19 = vadd.f32 %v2529_v48, %v2667_v16 }
 0x142   : > { %3261 = vst [vmem:[#allocation14_spill] sm:$0xff] %v2861_v42  ;;  %v1648_v28 = vmul.f32 %v1584_v14, %v2703_v20  ;;  %v1338_v18 = vadd.f32 %v1274_v44, %v2827_v34  ;;  %v2241_v2 = vpop.eup %2240  ;;  %v1147_v23 = vmul.f32 %v2866_v47, %v2866_v47  ;;  %v2881_v15 = vadd.f32 %v2531_v49, %v2669_v25 }
 0x143   : > { %v1650_v53 = vmul.f32 %v1586_v52, %v2707_v21  ;;  %2252 = vtanh.f32 %v1400_v31  ;;  %v1521_v58 = vadd.f32 1.0, %v2241_v2  ;;  %v1209_v55 = vmul.f32 %v1145_v62, %v2857_v43 }
 0x144   : > { %v2243_v20 = vpop.eup %2242  ;;  %v1402_v45 = vmul.f32 0.7978846, %v1338_v18  ;;  %v1148_v16 = vmul.f32 %v2874_v19, %v2874_v19  ;;  %v1211_v35 = vmul.f32 %v1147_v23, %v2866_v47  ;;  %v1150_v21 = vmul.f32 %v2881_v15, %v2881_v15 }
 0x145   : > { %v1523_v24 = vadd.f32 1.0, %v2243_v20  ;;  %v2891_v14 = vadd.f32 %v2533_v50, %v2671_v26  ;;  %v1585_v25 = vmul.f32 0.5, %v1521_v58  ;;  %v1273_v44 = vmul.f32 0.044715, %v1209_v55 }
 0x146   : > { %2254 = vtanh.f32 %v1402_v45  ;;  %v1212_v52 = vmul.f32 %v1148_v16, %v2874_v19  ;;  %v1275_v18 = vmul.f32 0.044715, %v1211_v35  ;;  %v1214_v62 = vmul.f32 %v1150_v21, %v2881_v15 }
 0x147   : > { %v1587_v31 = vmul.f32 0.5, %v1523_v24  ;;  %v1149_v2 = vmul.f32 %v2891_v14, %v2891_v14  ;;  %v2245_v23 = vpop.eup %2244  ;;  %v1649_v20 = vmul.f32 %v1585_v25, %v2718_v29  ;;  %v1337_v42 = vadd.f32 %v1273_v44, %v2857_v43 }
 0x148   : > { %v1276_v11 = vmul.f32 0.044715, %v1212_v52  ;;  %v2901_v26 = vadd.f32 %v2535_v51, %v2675_v32  ;;  %v2247_v58 = vpop.eup %2246  ;;  %v1524_v55 = vadd.f32 1.0, %v2245_v23  ;;  %v1339_v16 = vadd.f32 %v1275_v18, %v2866_v47 }
 0x149   : > { %v1651_v45 = vmul.f32 %v1587_v31, %v2722_v8  ;;  %v1278_v24 = vmul.f32 0.044715, %v1214_v62  ;;  %v2249_v35 = vpop.eup %2248  ;;  %v2099_v21 = vpack.c.bf16 %v1649_v20, %v1648_v28  ;;  %v1526_v61 = vadd.f32 1.0, %v2247_v58 }
 0x14a   : > { %v1401_v29 = vmul.f32 0.7978846, %v1337_v42  ;;  %v1340_v25 = vadd.f32 %v1276_v11, %v2874_v19  ;;  %v2251_v44 = vpop.eup %2250  ;;  %v1588_v41 = vmul.f32 0.5, %v1524_v55  ;;  %v1525_v32 = vadd.f32 1.0, %v2249_v35 }
 0x14b   : > { %v2100_v52 = vpack.c.bf16 %v1651_v45, %v1650_v53  ;;  %v1403_v37 = vmul.f32 0.7978846, %v1339_v16  ;;  %1896 = vst [vmem:[%s2682_s7 + $0x40] sm:$0xff] %v2099_v21  ;;  %v1590_v3 = vmul.f32 0.5, %v1526_v61  ;;  %v1527_v46 = vadd.f32 1.0, %v2251_v44 }
 0x14c   : > { %2256 = vtanh.f32 %v1401_v29  ;;  %v1404_v8 = vmul.f32 0.7978846, %v1340_v25  ;;  %v1652_v18 = vmul.f32 %v1588_v41, %v2774_v4  ;;  %v1589_v62 = vmul.f32 0.5, %v1525_v32 }
 0x14d   : > { %v2253_v31 = vpop.eup %2252  ;;  %1897 = vst [vmem:[%s2682_s7 + $0x48] sm:$0xff] %v2100_v52  ;;  %2258 = vtanh.f32 %v1403_v37  ;;  %v1342_v42 = vadd.f32 %v1278_v24, %v2881_v15  ;;  %v1654_v11 = vmul.f32 %v1590_v3, %v2778_v59  ;;  %v1591_v28 = vmul.f32 0.5, %v1527_v46 }
 0x14e   : > { %v1528_v53 = vadd.f32 1.0, %v2253_v31  ;;  %2260 = vtanh.f32 %v1404_v8  ;;  %v1653_v23 = vmul.f32 %v1589_v62, %v2783_v5  ;;  %v1213_v61 = vmul.f32 %v1149_v2, %v2891_v14 }
 0x14f   : > { %v1406_v20 = vmul.f32 0.7978846, %v1342_v42  ;;  %v1151_v58 = vmul.f32 %v2901_v26, %v2901_v26  ;;  %v1655_v4 = vmul.f32 %v1591_v28, %v2787_v0  ;;  %v2918_v59 = vadd.f32 %v2529_v48, %v2689_v57 }
 0x150   : > { %v2255_v45 = vpop.eup %2254  ;;  %v1592_v37 = vmul.f32 0.5, %v1528_v53  ;;  %v2922_v46 = vadd.f32 %v2531_v49, %v2691_v60  ;;  %v2101_v5 = vpack.c.bf16 %v1653_v23, %v1652_v18  ;;  %v1277_v41 = vmul.f32 0.044715, %v1213_v61 }
 0x151   : > { %v1530_v3 = vadd.f32 1.0, %v2255_v45  ;;  %2262 = vtanh.f32 %v1406_v20  ;;  %v2102_v2 = vpack.c.bf16 %v1655_v4, %v1654_v11  ;;  %v1215_v16 = vmul.f32 %v1151_v58, %v2901_v26 }
 0x152   : > { %v1656_v55 = vmul.f32 %v1592_v37, %v2804_v38  ;;  %v1152_v0 = vmul.f32 %v2918_v59, %v2918_v59  ;;  %1898 = vst [vmem:[%s2682_s7 + $0x50] sm:$0xff] %v2101_v5  ;;  %v1341_v57 = vadd.f32 %v1277_v41, %v2891_v14  ;;  %v1154_v60 = vmul.f32 %v2922_v46, %v2922_v46 }
 0x153   : > { %v1594_v24 = vmul.f32 0.5, %v1530_v3  ;;  %v2934_v35 = vadd.f32 %v2533_v50, %v2694_v12  ;;  %1899 = vst [vmem:[%s2682_s7 + $0x58] sm:$0xff] %v2102_v2  ;;  %v1279_v21 = vmul.f32 0.044715, %v1215_v16  ;;  %v2940_v29 = vadd.f32 %v2535_v51, %v2696_v40 }
 0x154   : > { %v1216_v38 = vmul.f32 %v1152_v0, %v2918_v59  ;;  %v2944_v25 = vadd.f32 %v2529_v48, %v2709_v1  ;;  %v1405_v52 = vmul.f32 0.7978846, %v1341_v57  ;;  %v1218_v32 = vmul.f32 %v1154_v60, %v2922_v46 }
 0x155   : > { %v1658_v44 = vmul.f32 %v1594_v24, %v2827_v34  ;;  %v1153_v12 = vmul.f32 %v2934_v35, %v2934_v35  ;;  %v1343_v31 = vadd.f32 %v1279_v21, %v2901_v26  ;;  %v1155_v40 = vmul.f32 %v2940_v29, %v2940_v29 }
 0x156   : > { %v2257_v8 = vpop.eup %2256  ;;  %v1280_v18 = vmul.f32 0.044715, %v1216_v38  ;;  %v1156_v62 = vmul.f32 %v2944_v25, %v2944_v25  ;;  %2264 = vtanh.f32 %v1405_v52  ;;  %v1282_v34 = vmul.f32 0.044715, %v1218_v32 }
 0x157   : > { %v2259_v1 = vpop.eup %2258  ;;  %v1529_v42 = vadd.f32 1.0, %v2257_v8  ;;  %v1217_v11 = vmul.f32 %v1153_v12, %v2934_v35  ;;  %v1407_v23 = vmul.f32 0.7978846, %v1343_v31  ;;  %v1219_v61 = vmul.f32 %v1155_v40, %v2940_v29 }
 0x158   : > { %v2261_v28 = vpop.eup %2260  ;;  %v1531_v53 = vadd.f32 1.0, %v2259_v1  ;;  %v1344_v20 = vadd.f32 %v1280_v18, %v2918_v59  ;;  %v1346_v4 = vadd.f32 %v1282_v34, %v2922_v46  ;;  %v1220_v18 = vmul.f32 %v1156_v62, %v2944_v25 }
 0x159   : > { %v1593_v58 = vmul.f32 0.5, %v1529_v42  ;;  %v1532_v45 = vadd.f32 1.0, %v2261_v28  ;;  %v1281_v37 = vmul.f32 0.044715, %v1217_v11  ;;  %2266 = vtanh.f32 %v1407_v23 }
 0x15a   : > { %v1595_v5 = vmul.f32 0.5, %v1531_v53  ;;  %v1408_v3 = vmul.f32 0.7978846, %v1344_v20  ;;  %v1283_v41 = vmul.f32 0.044715, %v1219_v61  ;;  %v2972_v40 = vadd.f32 %v2533_v50, %v2724_v9 }
 0x15b   : > { %v2263_v2 = vpop.eup %2262  ;;  %v1657_v16 = vmul.f32 %v1593_v58, %v2857_v43  ;;  %v1596_v0 = vmul.f32 0.5, %v1532_v45  ;;  %v1410_v24 = vmul.f32 0.7978846, %v1346_v4  ;;  %v1345_v57 = vadd.f32 %v1281_v37, %v2934_v35 }
 0x15c   : > { %v1659_v60 = vmul.f32 %v1595_v5, %v2866_v47  ;;  %v1534_v21 = vadd.f32 1.0, %v2263_v2  ;;  %2268 = vtanh.f32 %v1408_v3  ;;  %v1347_v38 = vadd.f32 %v1283_v41, %v2940_v29 }
 0x15d   : > { %v2103_v52 = vpack.c.bf16 %v1657_v16, %v1656_v55  ;;  %v1660_v32 = vmul.f32 %v1596_v0, %v2874_v19  ;;  %2270 = vtanh.f32 %v1410_v24  ;;  %v1409_v12 = vmul.f32 0.7978846, %v1345_v57 }
 0x15e   : > { %v2104_v8 = vpack.c.bf16 %v1659_v60, %v1658_v44  ;;  %v1598_v31 = vmul.f32 0.5, %v1534_v21  ;;  %v1411_v43 = vmul.f32 0.7978846, %v1347_v38  ;;  %v2968_v47 = vadd.f32 %v2531_v49, %v2711_v22 }
 0x15f   : > { %1900 = vst [vmem:[%s2682_s7 + $0x60] sm:$0xff] %v2103_v52  ;;  %2272 = vtanh.f32 %v1409_v12  ;;  %v2976_v19 = vadd.f32 %v2535_v51, %v2726_v30  ;;  %v1284_v44 = vmul.f32 0.044715, %v1220_v18  ;;  %v2982_v62 = vadd.f32 %v2529_v48, %v2738_v17 }
 0x160   : > { %1901 = vst [vmem:[%s2682_s7 + $0x68] sm:$0xff] %v2104_v8  ;;  %v1662_v55 = vmul.f32 %v1598_v31, %v2881_v15  ;;  %2274 = vtanh.f32 %v1411_v43  ;;  %v2265_v1 = vpop.eup %2264  ;;  %v1158_v22 = vmul.f32 %v2968_v47, %v2968_v47  ;;  %v1157_v9 = vmul.f32 %v2972_v40, %v2972_v40 }
 0x161   : > { %v1159_v30 = vmul.f32 %v2976_v19, %v2976_v19  ;;  %v2992_v42 = vadd.f32 %v2531_v49, %v2740_v27  ;;  %v1533_v15 = vadd.f32 1.0, %v2265_v1  ;;  %v1348_v34 = vadd.f32 %v1284_v44, %v2944_v25 }
 0x162   : > { %v1160_v17 = vmul.f32 %v2982_v62, %v2982_v62  ;;  %v2999_v11 = vadd.f32 %v2533_v50, %v2743_v36  ;;  %v1222_v28 = vmul.f32 %v1158_v22, %v2968_v47  ;;  %v1221_v53 = vmul.f32 %v1157_v9, %v2972_v40 }
 0x163   : > { %v1223_v23 = vmul.f32 %v1159_v30, %v2976_v19  ;;  %v1162_v27 = vmul.f32 %v2992_v42, %v2992_v42  ;;  %v2267_v20 = vpop.eup %2266  ;;  %v1597_v61 = vmul.f32 0.5, %v1533_v15  ;;  %v1412_v58 = vmul.f32 0.7978846, %v1348_v34 }
 0x164   : > { %v1224_v45 = vmul.f32 %v1160_v17, %v2982_v62  ;;  %v1161_v4 = vmul.f32 %v2999_v11, %v2999_v11  ;;  %v1535_v37 = vadd.f32 1.0, %v2267_v20  ;;  %v1286_v36 = vmul.f32 0.044715, %v1222_v28 }
 0x165   : > { %v1285_v5 = vmul.f32 0.044715, %v1221_v53  ;;  %v1226_v3 = vmul.f32 %v1162_v27, %v2992_v42  ;;  %v1661_v2 = vmul.f32 %v1597_v61, %v2891_v14  ;;  %2276 = vtanh.f32 %v1412_v58 }
 0x166   : > { %v2269_v41 = vpop.eup %2268  ;;  %v1287_v16 = vmul.f32 0.044715, %v1223_v23  ;;  %v1288_v0 = vmul.f32 0.044715, %v1224_v45  ;;  %v1599_v57 = vmul.f32 0.5, %v1535_v37  ;;  %v1350_v21 = vadd.f32 %v1286_v36, %v2968_v47 }
 0x167   : > { %v2271_v24 = vpop.eup %2270  ;;  %v1536_v60 = vadd.f32 1.0, %v2269_v41  ;;  %v1349_v38 = vadd.f32 %v1285_v5, %v2972_v40  ;;  %v2105_v52 = vpack.c.bf16 %v1661_v2, %v1660_v32  ;;  %v1225_v20 = vmul.f32 %v1161_v4, %v2999_v11 }
 0x168   : > { %v1538_v12 = vadd.f32 1.0, %v2271_v24  ;;  %v1351_v8 = vadd.f32 %v1287_v16, %v2976_v19  ;;  %v1352_v31 = vadd.f32 %v1288_v0, %v2982_v62  ;;  %v1663_v14 = vmul.f32 %v1599_v57, %v2901_v26 }
 0x169   : > { %v2273_v43 = vpop.eup %2272  ;;  %v1600_v18 = vmul.f32 0.5, %v1536_v60  ;;  %v1414_v44 = vmul.f32 0.7978846, %v1350_v21  ;;  %v1413_v1 = vmul.f32 0.7978846, %v1349_v38  ;;  %1902 = vst [vmem:[%s2682_s7 + $0x70] sm:$0xff] %v2105_v52  ;;  %v3023_v61 = vadd.f32 %v2535_v51, %v2745_v7 }
 0x16a   : > { %v2275_v22 = vpop.eup %2274  ;;  %v1602_v9 = vmul.f32 0.5, %v1538_v12  ;;  %v1537_v30 = vadd.f32 1.0, %v2273_v43  ;;  %v1415_v15 = vmul.f32 0.7978846, %v1351_v8  ;;  %v1416_v34 = vmul.f32 0.7978846, %v1352_v31 }
 0x16b   : > { %v2106_v17 = vpack.c.bf16 %v1663_v14, %v1662_v55  ;;  %v1664_v32 = vmul.f32 %v1600_v18, %v2918_v59  ;;  %v1539_v28 = vadd.f32 1.0, %v2275_v22  ;;  %2278 = vtanh.f32 %v1414_v44 }
 0x16c   : > { %v1666_v53 = vmul.f32 %v1602_v9, %v2922_v46  ;;  %v1601_v23 = vmul.f32 0.5, %v1537_v30  ;;  %2280 = vtanh.f32 %v1413_v1  ;;  %v1290_v26 = vmul.f32 0.044715, %v1226_v3 }
 0x16d   : > { %1903 = vst [vmem:[%s2682_s7 + $0x78] sm:$0xff] %v2106_v17  ;;  %v1603_v27 = vmul.f32 0.5, %v1539_v28  ;;  %2282 = vtanh.f32 %v1415_v15  ;;  %v3029_v46 = vadd.f32 %v2529_v48, %v2748_v39  ;;  %v1289_v45 = vmul.f32 0.044715, %v1225_v20 }
 0x16e   : > { %v1665_v55 = vmul.f32 %v1601_v23, %v2934_v35  ;;  %2284 = vtanh.f32 %v1416_v34  ;;  %v1354_v59 = vadd.f32 %v1290_v26, %v2992_v42  ;;  %v1163_v4 = vmul.f32 %v3023_v61, %v3023_v61 }
 0x16f   : > { %v1667_v58 = vmul.f32 %v1603_v27, %v2940_v29  ;;  %v3036_v7 = vadd.f32 %v2531_v49, %v2750_v13  ;;  %v2277_v35 = vpop.eup %2276  ;;  %v1164_v5 = vmul.f32 %v3029_v46, %v3029_v46  ;;  %v3042_v39 = vadd.f32 %v2533_v50, %v2756_v54 }
 0x170   : > { %v2107_v37 = vpack.c.bf16 %v1665_v55, %v1664_v32  ;;  %v1418_v36 = vmul.f32 0.7978846, %v1354_v59  ;;  %v1540_v3 = vadd.f32 1.0, %v2277_v35  ;;  %v1353_v41 = vadd.f32 %v1289_v45, %v2999_v11 }
 0x171   : > { %v2108_v29 = vpack.c.bf16 %v1667_v58, %v1666_v53  ;;  %v1227_v2 = vmul.f32 %v1163_v4, %v3023_v61  ;;  %v1228_v13 = vmul.f32 %v1164_v5, %v3029_v46  ;;  %v1166_v16 = vmul.f32 %v3036_v7, %v3036_v7 }
 0x172   : > { %1904 = vst [vmem:[%s2682_s7 + $0x80] sm:$0xff] %v2107_v37  ;;  %2286 = vtanh.f32 %v1418_v36  ;;  %v1165_v0 = vmul.f32 %v3042_v39, %v3042_v39  ;;  %v1604_v24 = vmul.f32 0.5, %v1540_v3  ;;  %v1417_v54 = vmul.f32 0.7978846, %v1353_v41 }
 0x173   : > { %1905 = vst [vmem:[%s2682_s7 + $0x88] sm:$0xff] %v2108_v29  ;;  %v1291_v57 = vmul.f32 0.044715, %v1227_v2  ;;  %v3055_v60 = vadd.f32 %v2535_v51, %v2758_v63  ;;  %v1292_v21 = vmul.f32 0.044715, %v1228_v13  ;;  %v1230_v38 = vmul.f32 %v1166_v16, %v3036_v7 }
 0x174   : > { %v1229_v52 = vmul.f32 %v1165_v0, %v3042_v39  ;;  %v3061_v12 = vadd.f32 %v2529_v48, %v2793_v6  ;;  %v1668_v31 = vmul.f32 %v1604_v24, %v2944_v25  ;;  %2288 = vtanh.f32 %v1417_v54 }
 0x175   : > { %v2279_v8 = vpop.eup %2278  ;;  %v1355_v43 = vadd.f32 %v1291_v57, %v3023_v61  ;;  %v1167_v14 = vmul.f32 %v3055_v60, %v3055_v60  ;;  %v1356_v44 = vadd.f32 %v1292_v21, %v3029_v46  ;;  %v1294_v1 = vmul.f32 0.044715, %v1230_v38 }
 0x176   : > { %v2281_v63 = vpop.eup %2280  ;;  %v1542_v18 = vadd.f32 1.0, %v2279_v8  ;;  %v1293_v22 = vmul.f32 0.044715, %v1229_v52  ;;  %v1168_v25 = vmul.f32 %v3061_v12, %v3061_v12  ;;  %v3079_v29 = vadd.f32 %v2531_v49, %v2795_v33  ;;  %v3262_v33 = vld [vmem:[#allocation3_spill] sm:$0xff] }
 0x177   : > { %v2283_v9 = vpop.eup %2282  ;;  %v1541_v30 = vadd.f32 1.0, %v2281_v63  ;;  %v1419_v15 = vmul.f32 0.7978846, %v1355_v43  ;;  %v1231_v6 = vmul.f32 %v1167_v14, %v3055_v60  ;;  %v1420_v28 = vmul.f32 0.7978846, %v1356_v44 }
 0x178   : > { %v2285_v34 = vpop.eup %2284  ;;  %v1606_v17 = vmul.f32 0.5, %v1542_v18  ;;  %v1543_v32 = vadd.f32 1.0, %v2283_v9  ;;  %v1358_v53 = vadd.f32 %v1294_v1, %v3036_v7  ;;  %v1357_v27 = vadd.f32 %v1293_v22, %v3042_v39 }
 0x179   : > { %v1605_v23 = vmul.f32 0.5, %v1541_v30  ;;  %v1544_v26 = vadd.f32 1.0, %v2285_v34  ;;  %2290 = vtanh.f32 %v1419_v15  ;;  %v1295_v35 = vmul.f32 0.044715, %v1231_v6  ;;  %v3264_v30 = vld [vmem:[#allocation5_spill] sm:$0xff] }
 0x17a   : > { %v1670_v20 = vmul.f32 %v1606_v17, %v2968_v47  ;;  %v1607_v55 = vmul.f32 0.5, %v1543_v32  ;;  %2292 = vtanh.f32 %v1420_v28  ;;  %v1422_v59 = vmul.f32 0.7978846, %v1358_v53 }
 0x17b   : > { %v1669_v58 = vmul.f32 %v1605_v23, %v2972_v40  ;;  %v1608_v45 = vmul.f32 0.5, %v1544_v26  ;;  %v1421_v4 = vmul.f32 0.7978846, %v1357_v27  ;;  %v1232_v5 = vmul.f32 %v1168_v25, %v3061_v12 }
 0x17c   : > { %v2287_v37 = vpop.eup %2286  ;;  %v1671_v36 = vmul.f32 %v1607_v55, %v2976_v19  ;;  %2294 = vtanh.f32 %v1422_v59  ;;  %v1359_v2 = vadd.f32 %v1295_v35, %v3055_v60  ;;  %v1170_v19 = vmul.f32 %v3079_v29, %v3079_v29 }
 0x17d   : > { %v2109_v47 = vpack.c.bf16 %v1669_v58, %v1668_v31  ;;  %v1672_v3 = vmul.f32 %v1608_v45, %v2982_v62  ;;  %v1546_v41 = vadd.f32 1.0, %v2287_v37  ;;  %2296 = vtanh.f32 %v1421_v4  ;;  %v3263_v62 = vld [vmem:[#allocation4_spill] sm:$0xff] }
 0x17e   : > { %v2110_v40 = vpack.c.bf16 %v1671_v36, %v1670_v20  ;;  %v1296_v13 = vmul.f32 0.044715, %v1232_v5  ;;  %v2289_v16 = vpop.eup %2288  ;;  %v3088_v24 = vadd.f32 %v2533_v50, %v2806_v56  ;;  %v3092_v54 = vadd.f32 %v2535_v51, %v3262_v33  ;;  %v3265_v33 = vld [vmem:[#allocation6_spill] sm:$0xff] }
 0x17f   : > { %1906 = vst [vmem:[%s2682_s7 + $0x90] sm:$0xff] %v2109_v47  ;;  %v1610_v0 = vmul.f32 0.5, %v1546_v41  ;;  %v3096_v57 = vadd.f32 %v2529_v48, %v3263_v62  ;;  %v1545_v21 = vadd.f32 1.0, %v2289_v16  ;;  %v1423_v38 = vmul.f32 0.7978846, %v1359_v2 }
 0x180   : > { %1907 = vst [vmem:[%s2682_s7 + $0x98] sm:$0xff] %v2110_v40  ;;  %v1360_v52 = vadd.f32 %v1296_v13, %v3061_v12  ;;  %v1234_v8 = vmul.f32 %v1170_v19, %v3079_v29  ;;  %v1169_v56 = vmul.f32 %v3088_v24, %v3088_v24  ;;  %v1171_v43 = vmul.f32 %v3092_v54, %v3092_v54 }
 0x181   : > { %v1674_v31 = vmul.f32 %v1610_v0, %v2992_v42  ;;  %v1172_v14 = vmul.f32 %v3096_v57, %v3096_v57  ;;  %v1609_v63 = vmul.f32 0.5, %v1545_v21  ;;  %2298 = vtanh.f32 %v1423_v38 }
 0x182   : > { %v1424_v18 = vmul.f32 0.7978846, %v1360_v52  ;;  %v1298_v44 = vmul.f32 0.044715, %v1234_v8  ;;  %v1233_v22 = vmul.f32 %v1169_v56, %v3088_v24  ;;  %v1235_v9 = vmul.f32 %v1171_v43, %v3092_v54  ;;  %v3266_v52 = vld [vmem:[#allocation7_spill] sm:$0xff] }
 0x183   : > { %v2291_v1 = vpop.eup %2290  ;;  %v1236_v42 = vmul.f32 %v1172_v14, %v3096_v57  ;;  %v3113_v15 = vadd.f32 %v2531_v49, %v3264_v30  ;;  %v1673_v25 = vmul.f32 %v1609_v63, %v2999_v11  ;;  %v3133_v62 = vadd.f32 %v2535_v51, %v2823_v10  ;;  %v3267_v63 = vld [vmem:[#allocation8_spill] sm:$0xff] }
 0x184   : > { %v2293_v6 = vpop.eup %2292  ;;  %v1547_v34 = vadd.f32 1.0, %v2291_v1  ;;  %2300 = vtanh.f32 %v1424_v18  ;;  %v1362_v17 = vadd.f32 %v1298_v44, %v3079_v29  ;;  %v1297_v28 = vmul.f32 0.044715, %v1233_v22 }
 0x185   : > { %v1548_v32 = vadd.f32 1.0, %v2293_v6  ;;  %v1299_v53 = vmul.f32 0.044715, %v1235_v9  ;;  %v1174_v23 = vmul.f32 %v3113_v15, %v3113_v15  ;;  %v2111_v27 = vpack.c.bf16 %v1673_v25, %v1672_v3  ;;  %v3268_v25 = vld [vmem:[#allocation9_spill] sm:$0xff] }
 0x186   : > { %v2295_v26 = vpop.eup %2294  ;;  %v1611_v20 = vmul.f32 0.5, %v1547_v34  ;;  %v1426_v55 = vmul.f32 0.7978846, %v1362_v17  ;;  %v1300_v59 = vmul.f32 0.044715, %v1236_v42  ;;  %v1361_v11 = vadd.f32 %v1297_v28, %v3088_v24 }
 0x187   : > { %v2297_v58 = vpop.eup %2296  ;;  %v1612_v45 = vmul.f32 0.5, %v1548_v32  ;;  %v1550_v4 = vadd.f32 1.0, %v2295_v26  ;;  %v1363_v35 = vadd.f32 %v1299_v53, %v3092_v54  ;;  %1908 = vst [vmem:[%s2682_s7 + $0xa0] sm:$0xff] %v2111_v27  ;;  %v1238_v16 = vmul.f32 %v1174_v23, %v3113_v15 }
 0x188   : > { %v1675_v37 = vmul.f32 %v1611_v20, %v3023_v61  ;;  %v1549_v36 = vadd.f32 1.0, %v2297_v58  ;;  %2302 = vtanh.f32 %v1426_v55  ;;  %v1364_v5 = vadd.f32 %v1300_v59, %v3096_v57 }
 0x189   : > { %v1676_v47 = vmul.f32 %v1612_v45, %v3029_v46  ;;  %v1614_v3 = vmul.f32 0.5, %v1550_v4  ;;  %v1425_v41 = vmul.f32 0.7978846, %v1361_v11  ;;  %v1427_v40 = vmul.f32 0.7978846, %v1363_v35 }
 0x18a   : > { %v2112_v2 = vpack.c.bf16 %v1675_v37, %v1674_v31  ;;  %v1613_v13 = vmul.f32 0.5, %v1549_v36  ;;  %v1428_v19 = vmul.f32 0.7978846, %v1364_v5  ;;  %v3129_v61 = vadd.f32 %v2533_v50, %v3265_v33  ;;  %v3269_v5 = vld [vmem:[#allocation10_spill] sm:$0xff] }
 0x18b   : > { %v1678_v0 = vmul.f32 %v1614_v3, %v3036_v7  ;;  %2304 = vtanh.f32 %v1425_v41  ;;  %v2299_v46 = vpop.eup %2298  ;;  %v1302_v38 = vmul.f32 0.044715, %v1238_v16  ;;  %v3139_v8 = vadd.f32 %v2529_v48, %v3266_v52  ;;  %v3270_v3 = vld [vmem:[#allocation11_spill] sm:$0xff] }
 0x18c   : > { %1909 = vst [vmem:[%s2682_s7 + $0xa8] sm:$0xff] %v2112_v2  ;;  %v1677_v21 = vmul.f32 %v1613_v13, %v3042_v39  ;;  %2306 = vtanh.f32 %v1427_v40  ;;  %v1551_v7 = vadd.f32 1.0, %v2299_v46  ;;  %v1173_v31 = vmul.f32 %v3129_v61, %v3129_v61 }
 0x18d   : > { %2308 = vtanh.f32 %v1428_v19  ;;  %v1175_v10 = vmul.f32 %v3133_v62, %v3133_v62  ;;  %v1366_v14 = vadd.f32 %v1302_v38, %v3113_v15  ;;  %v1176_v39 = vmul.f32 %v3139_v8, %v3139_v8 }
 0x18e   : > { %v2301_v56 = vpop.eup %2300  ;;  %v2113_v43 = vpack.c.bf16 %v1677_v21, %v1676_v47  ;;  %v3150_v18 = vadd.f32 %v2531_v49, %v3267_v63  ;;  %v1615_v44 = vmul.f32 0.5, %v1551_v7  ;;  %v1237_v22 = vmul.f32 %v1173_v31, %v3129_v61  ;;  %v3271_v63 = vld [vmem:[#allocation12_spill] sm:$0xff] }
 0x18f   : > { %v1552_v1 = vadd.f32 1.0, %v2301_v56  ;;  %v1239_v9 = vmul.f32 %v1175_v10, %v3133_v62  ;;  %v1430_v42 = vmul.f32 0.7978846, %v1366_v14  ;;  %v1240_v30 = vmul.f32 %v1176_v39, %v3139_v8 }
 0x190   : > { %1910 = vst [vmem:[%s2682_s7 + $0xb0] sm:$0xff] %v2113_v43  ;;  %v1178_v6 = vmul.f32 %v3150_v18, %v3150_v18  ;;  %v3160_v34 = vadd.f32 %v2533_v50, %v3268_v25  ;;  %v1679_v17 = vmul.f32 %v1615_v44, %v3055_v60  ;;  %v1301_v32 = vmul.f32 0.044715, %v1237_v22 }
 0x191   : > { %v1303_v28 = vmul.f32 0.044715, %v1239_v9  ;;  %2310 = vtanh.f32 %v1430_v42  ;;  %v1304_v23 = vmul.f32 0.044715, %v1240_v30  ;;  %v1616_v55 = vmul.f32 0.5, %v1552_v1  ;;  %v3272_v9 = vld [vmem:[#allocation13_spill] sm:$0xff] }
 0x192   : > { %v2303_v53 = vpop.eup %2302  ;;  %v1242_v26 = vmul.f32 %v1178_v6, %v3150_v18  ;;  %v1177_v27 = vmul.f32 %v3160_v34, %v3160_v34  ;;  %v2114_v20 = vpack.c.bf16 %v1679_v17, %v1678_v0  ;;  %v1365_v58 = vadd.f32 %v1301_v32, %v3129_v61  ;;  %v3273_v32 = vld [vmem:[#allocation14_spill] sm:$0xff] }
 0x193   : > { %v1554_v59 = vadd.f32 1.0, %v2303_v53  ;;  %v1367_v45 = vadd.f32 %v1303_v28, %v3133_v62  ;;  %v1368_v60 = vadd.f32 %v1304_v23, %v3139_v8  ;;  %v3173_v47 = vadd.f32 %v2535_v51, %v3269_v5 }
 0x194   : > { %v1306_v4 = vmul.f32 0.044715, %v1242_v26  ;;  %v1241_v11 = vmul.f32 %v1177_v27, %v3160_v34  ;;  %1911 = vst [vmem:[%s2682_s7 + $0xb8] sm:$0xff] %v2114_v20  ;;  %v1429_v36 = vmul.f32 0.7978846, %v1365_v58  ;;  %v3177_v41 = vadd.f32 %v2529_v48, %v3270_v3 }
 0x195   : > { %v2305_v35 = vpop.eup %2304  ;;  %v1618_v37 = vmul.f32 0.5, %v1554_v59  ;;  %v1431_v13 = vmul.f32 0.7978846, %v1367_v45  ;;  %v1432_v19 = vmul.f32 0.7978846, %v1368_v60  ;;  %v1680_v33 = vmul.f32 %v1616_v55, %v3061_v12 }
 0x196   : > { %v2307_v40 = vpop.eup %2306  ;;  %v1553_v2 = vadd.f32 1.0, %v2305_v35  ;;  %v1370_v16 = vadd.f32 %v1306_v4, %v3150_v18  ;;  %2312 = vtanh.f32 %v1429_v36  ;;  %v1305_v21 = vmul.f32 0.044715, %v1241_v11 }
 0x197   : > { %v2309_v0 = vpop.eup %2308  ;;  %v1555_v46 = vadd.f32 1.0, %v2307_v40  ;;  %v1682_v38 = vmul.f32 %v1618_v37, %v3079_v29  ;;  %2314 = vtanh.f32 %v1431_v13  ;;  %v1179_v10 = vmul.f32 %v3173_v47, %v3173_v47 }
 0x198   : > { %v1617_v52 = vmul.f32 0.5, %v1553_v2  ;;  %v1434_v7 = vmul.f32 0.7978846, %v1370_v16  ;;  %2316 = vtanh.f32 %v1432_v19  ;;  %v1369_v48 = vadd.f32 %v1305_v21, %v3160_v34 }
 0x199   : > { %v1619_v31 = vmul.f32 0.5, %v1555_v46  ;;  %v1556_v43 = vadd.f32 1.0, %v2309_v0  ;;  %v1180_v12 = vmul.f32 %v3177_v41, %v3177_v41  ;;  %v1243_v39 = vmul.f32 %v1179_v10, %v3173_v47 }
 0x19a   : > { %v1681_v56 = vmul.f32 %v1617_v52, %v3088_v24  ;;  %2318 = vtanh.f32 %v1434_v7  ;;  %v1433_v14 = vmul.f32 0.7978846, %v1369_v48  ;;  %v3192_v44 = vadd.f32 %v2531_v49, %v3271_v63 }
 0x19b   : > { %v1683_v29 = vmul.f32 %v1619_v31, %v3092_v54  ;;  %v2311_v1 = vpop.eup %2310  ;;  %v1244_v24 = vmul.f32 %v1180_v12, %v3177_v41  ;;  %v3197_v42 = vadd.f32 %v2533_v50, %v3272_v9  ;;  %v1307_v54 = vmul.f32 0.044715, %v1243_v39 }
 0x19c   : > { %v2115_v22 = vpack.c.bf16 %v1681_v56, %v1680_v33  ;;  %v1558_v6 = vadd.f32 1.0, %v2311_v1  ;;  %2320 = vtanh.f32 %v1433_v14  ;;  %v1182_v17 = vmul.f32 %v3192_v44, %v3192_v44 }
 0x19d   : > { %v2116_v30 = vpack.c.bf16 %v1683_v29, %v1682_v38  ;;  %v1308_v25 = vmul.f32 0.044715, %v1244_v24  ;;  %v1181_v49 = vmul.f32 %v3197_v42, %v3197_v42  ;;  %v3206_v28 = vadd.f32 %v2535_v51, %v3273_v32 }
 0x19e   : > { %1912 = vst [vmem:[%s2682_s7 + $0xc0] sm:$0xff] %v2115_v22  ;;  %v1620_v53 = vmul.f32 0.5, %v1556_v43  ;;  %v1371_v50 = vadd.f32 %v1307_v54, %v3173_v47  ;;  %v1246_v26 = vmul.f32 %v1182_v17, %v3192_v44  ;;  %v1622_v59 = vmul.f32 0.5, %v1558_v6 }
 0x19f   : > { %1913 = vst [vmem:[%s2682_s7 + $0xc8] sm:$0xff] %v2116_v30  ;;  %v1372_v23 = vadd.f32 %v1308_v25, %v3177_v41  ;;  %v1245_v27 = vmul.f32 %v1181_v49, %v3197_v42  ;;  %v1183_v20 = vmul.f32 %v3206_v28, %v3206_v28 }
 0x1a0   : > { %v2313_v55 = vpop.eup %2312  ;;  %v1435_v58 = vmul.f32 0.7978846, %v1371_v50  ;;  %v1310_v4 = vmul.f32 0.044715, %v1246_v26  ;;  %v1684_v37 = vmul.f32 %v1620_v53, %v3096_v57  ;;  %v1686_v19 = vmul.f32 %v1622_v59, %v3113_v15 }
 0x1a1   : > { %v2315_v45 = vpop.eup %2314  ;;  %v1557_v60 = vadd.f32 1.0, %v2313_v55  ;;  %v1436_v51 = vmul.f32 0.7978846, %v1372_v23  ;;  %v1247_v11 = vmul.f32 %v1183_v20, %v3206_v28  ;;  %v1309_v5 = vmul.f32 0.044715, %v1245_v27 }
 0x1a2   : > { %v2317_v35 = vpop.eup %2316  ;;  %v1559_v36 = vadd.f32 1.0, %v2315_v45  ;;  %2322 = vtanh.f32 %v1435_v58  ;;  %v1374_v13 = vadd.f32 %v1310_v4, %v3192_v44 }
 0x1a3   : > { %v1621_v40 = vmul.f32 0.5, %v1557_v60  ;;  %v1560_v2 = vadd.f32 1.0, %v2317_v35  ;;  %2324 = vtanh.f32 %v1436_v51  ;;  %v1373_v0 = vadd.f32 %v1309_v5, %v3197_v42 }
 0x1a4   : > { %v2319_v3 = vpop.eup %2318  ;;  %v1623_v16 = vmul.f32 0.5, %v1559_v36  ;;  %v1311_v33 = vmul.f32 0.044715, %v1247_v11  ;;  %v1438_v57 = vmul.f32 0.7978846, %v1374_v13 }
 0x1a5   : > { %v1685_v46 = vmul.f32 %v1621_v40, %v3129_v61  ;;  %v1624_v21 = vmul.f32 0.5, %v1560_v2  ;;  %v1437_v7 = vmul.f32 0.7978846, %v1373_v0  ;;  %v1562_v10 = vadd.f32 1.0, %v2319_v3 }
 0x1a6   : > { %v2321_v38 = vpop.eup %2320  ;;  %v1687_v52 = vmul.f32 %v1623_v16, %v3133_v62  ;;  %v1375_v31 = vadd.f32 %v1311_v33, %v3206_v28  ;;  %2326 = vtanh.f32 %v1438_v57 }
 0x1a7   : > { %v2117_v48 = vpack.c.bf16 %v1685_v46, %v1684_v37  ;;  %v1561_v56 = vadd.f32 1.0, %v2321_v38  ;;  %2328 = vtanh.f32 %v1437_v7  ;;  %v1688_v61 = vmul.f32 %v1624_v21, %v3139_v8 }
 0x1a8   : > { %v2118_v15 = vpack.c.bf16 %v1687_v52, %v1686_v19  ;;  %v1439_v43 = vmul.f32 0.7978846, %v1375_v31  ;;  %v1626_v29 = vmul.f32 0.5, %v1562_v10 }
 0x1a9   : > { %1914 = vst [vmem:[%s2682_s7 + $0xd0] sm:$0xff] %v2117_v48  ;;  %v1625_v12 = vmul.f32 0.5, %v1561_v56 }
 0x1aa   : > { %1915 = vst [vmem:[%s2682_s7 + $0xd8] sm:$0xff] %v2118_v15  ;;  %2330 = vtanh.f32 %v1439_v43  ;;  %v1690_v24 = vmul.f32 %v1626_v29, %v3150_v18 }
 0x1ab   : > { %v1689_v62 = vmul.f32 %v1625_v12, %v3160_v34 }
 0x1ac   : > { %v2323_v14 = vpop.eup %2322 }
 0x1ad   : > { %v2325_v39 = vpop.eup %2324  ;;  %v2119_v63 = vpack.c.bf16 %v1689_v62, %v1688_v61  ;;  %v1563_v1 = vadd.f32 1.0, %v2323_v14 }
 0x1ae   : > { %v1564_v22 = vadd.f32 1.0, %v2325_v39 }
 0x1af   : > { %1916 = vst [vmem:[%s2682_s7 + $0xe0] sm:$0xff] %v2119_v63  ;;  %v1627_v9 = vmul.f32 0.5, %v1563_v1 }
 0x1b0   : > { %v2327_v30 = vpop.eup %2326  ;;  %v1628_v8 = vmul.f32 0.5, %v1564_v22 }
 0x1b1   : > { %v1691_v6 = vmul.f32 %v1627_v9, %v3173_v47  ;;  %v2329_v54 = vpop.eup %2328  ;;  %v1566_v25 = vadd.f32 1.0, %v2327_v30 }
 0x1b2   : > { %v1565_v34 = vadd.f32 1.0, %v2329_v54  ;;  %v1692_v53 = vmul.f32 %v1628_v8, %v3177_v41 }
 0x1b3   : > { %v2120_v17 = vpack.c.bf16 %v1691_v6, %v1690_v24  ;;  %v1630_v32 = vmul.f32 0.5, %v1566_v25 }
 0x1b4   : > { %v2331_v49 = vpop.eup %2330  ;;  %v1629_v50 = vmul.f32 0.5, %v1565_v34 }
 0x1b5   : > { %1917 = vst [vmem:[%s2682_s7 + $0xe8] sm:$0xff] %v2120_v17  ;;  %v1567_v23 = vadd.f32 1.0, %v2331_v49  ;;  %v1694_v18 = vmul.f32 %v1630_v32, %v3192_v44 }
 0x1b6   : > { %v1693_v26 = vmul.f32 %v1629_v50, %v3197_v42 }
 0x1b7   : > { %v1631_v27 = vmul.f32 0.5, %v1567_v23 }
 0x1b8   : > { %v2121_v47 = vpack.c.bf16 %v1693_v26, %v1692_v53 }
 0x1b9   : > { %v1695_v20 = vmul.f32 %v1631_v27, %v3206_v28 }
 0x1ba   : > { %1918 = vst [vmem:[%s2682_s7 + $0xf0] sm:$0xff] %v2121_v47 }
 0x1bb   : > { %v2122_v55 = vpack.c.bf16 %v1695_v20, %v1694_v18 }
 0x1bd   : > { %1919 = vst [vmem:[%s2682_s7 + $0xf8] sm:$0xff] %v2122_v55 }
 0x1be PF: > { %s13_s14 = sadd.s32 1, %s2354_s14   ;;  %s3274_s12 = smov %s2350_s13 }
 0x1bf   : > { %p10_p5 = scmp.ge.s32.totalorder %s13_s14, 6   ;;  %s3275_s13 = smov %s3277_s15 }
 0x1c1   :  { %12 = sbr.rel (!%p10_p5) target bundleno = 2 (0x2), region = 73 }

</bundles_post_ra>
